<compile_context>
chip_gen: v7x
topology: tpu7x:2x2x1
jax: 0.10.0
libtpu: 0.0.40
codegen_flags: <defaults>
</compile_context>

<pallas_src>
import jax
import jax.numpy as jnp
from jax.experimental import pallas as pl
from jax.experimental.pallas import tpu as pltpu


# ---------------------------------------------------------------------------
# Pallas kernel 1: transposed conv GEMM   o = relu(Wm @ P + b)
#   Wm: (C_out, K) bf16,  P: (K, M) bf16,  b: (C_out, 1) f32,  o: (C_out, M) bf16
# Single grid step: every operand fits VMEM easily at these sizes (<2 MB),
# so tiling would only add per-step pipeline overhead.
# ---------------------------------------------------------------------------
def _conv_gemm_kernel(w_ref, p_ref, b_ref, o_ref):
    acc = jnp.dot(w_ref[...], p_ref[...], preferred_element_type=jnp.float32)
    o_ref[...] = jnp.maximum(acc + b_ref[...], 0.0).astype(o_ref.dtype)


def conv_gemm_relu(w_mat, patches, b):
    c_out, k = w_mat.shape
    k2, m = patches.shape
    assert k == k2, (k, k2)
    return pl.pallas_call(
        _conv_gemm_kernel,
        out_shape=jax.ShapeDtypeStruct((c_out, m), jnp.bfloat16),
        grid_spec=pltpu.PrefetchScalarGridSpec(
            num_scalar_prefetch=0,
            grid=(1,),
            in_specs=[
                pl.BlockSpec((c_out, k), lambda i: (0, 0)),
                pl.BlockSpec((k, m), lambda i: (0, 0)),
                pl.BlockSpec((c_out, 1), lambda i: (0, 0)),
            ],
            out_specs=pl.BlockSpec((c_out, m), lambda i: (0, 0)),
        ),
        compiler_params=pltpu.CompilerParams(dimension_semantics=("arbitrary",)),
    )(w_mat, patches, b)


# ---------------------------------------------------------------------------
# Pallas kernel 2: fused FC head.
#   K-tiled:  acc += x_tile @ w1_tile   (bf16 in, f32 accumulate)
#   finalize: o = relu(acc + b1) @ w2 + b2   (Dropout(0.5) = identity at inference)
# ---------------------------------------------------------------------------
def _fc_head_kernel(x_ref, w1_ref, b1_ref, w2_ref, b2_ref, o_ref, acc_ref):
    k = pl.program_id(0)

    @pl.when(k == 0)
    def _():
        acc_ref[...] = jnp.zeros_like(acc_ref)

    acc_ref[...] += jnp.dot(
        x_ref[...], w1_ref[...], preferred_element_type=jnp.float32
    )

    @pl.when(k == pl.num_programs(0) - 1)
    def _():
        h = jnp.maximum(acc_ref[...] + b1_ref[...], 0.0)       # fc1 + ReLU
        y = jnp.dot(h, w2_ref[...], preferred_element_type=jnp.float32) + b2_ref[...]
        o_ref[...] = y.astype(o_ref.dtype)                     # fc2 (fused finalize)


def _pick_tk(k_total, max_tk=4096):
    """Largest multiple-of-128 divisor of k_total not exceeding max_tk."""
    best = None
    t = 128
    while t <= min(k_total, max_tk):
        if k_total % t == 0:
            best = t
        t += 128
    return best if best is not None else k_total


def fc_head(x, w1, b1, w2, b2):
    m, k = x.shape
    k2, n1 = w1.shape
    n12, n2 = w2.shape
    assert k == k2 and n1 == n12
    tk = _pick_tk(k)          # 2816 for K = 19712 -> 7 pipelined weight-stream steps
    grid = (k // tk,)
    return pl.pallas_call(
        _fc_head_kernel,
        out_shape=jax.ShapeDtypeStruct((m, n2), jnp.float32),
        grid_spec=pltpu.PrefetchScalarGridSpec(
            num_scalar_prefetch=0,
            grid=grid,
            in_specs=[
                pl.BlockSpec((m, tk), lambda i: (0, i)),
                pl.BlockSpec((tk, n1), lambda i: (i, 0)),
                pl.BlockSpec((1, n1), lambda i: (0, 0)),
                pl.BlockSpec((n1, n2), lambda i: (0, 0)),
                pl.BlockSpec((1, n2), lambda i: (0, 0)),
            ],
            out_specs=pl.BlockSpec((m, n2), lambda i: (0, 0)),
            scratch_shapes=[pltpu.VMEM((m, n1), jnp.float32)],
        ),
        compiler_params=pltpu.CompilerParams(dimension_semantics=("arbitrary",)),
    )(x, w1, b1, w2, b2)


# ---------------------------------------------------------------------------
# im2col in the channel-leading, lane-dense layout (no gather, no lane transpose).
#   a: (C, R, W)  ->  P: (kw*C, R*w_out)  with  P[t*C + c, r*w_out + wo] = a[c, r, s*wo + t]
# ---------------------------------------------------------------------------
def _im2col_T(a, kw, stride):
    c, r, w = a.shape
    w_out = (w - kw) // stride + 1
    taps = [a[:, :, t : t + (w_out - 1) * stride + 1 : stride] for t in range(kw)]
    p = jnp.stack(taps, axis=0)                    # (kw, C, R, w_out)
    return p.reshape(kw * c, r * w_out), w_out


# ---------------------------------------------------------------------------
# Parameter init (deterministic, in-script), stored in kernel-ready layouts.
# ---------------------------------------------------------------------------
def _xavier_uniform(key, shape):
    fan_out, fan_in = shape
    limit = jnp.sqrt(6.0 / (fan_in + fan_out))
    return jax.random.uniform(key, shape, jnp.float32, -limit, limit)


def _conv_init(key, c_out, c_in, kh, kw):
    k1, k2 = jax.random.split(key)
    fan_in = c_in * kh * kw
    limit = jnp.sqrt(1.0 / fan_in)
    w = jax.random.uniform(k1, (c_out, c_in, kh, kw), jnp.float32, -limit, limit)
    b = jax.random.uniform(k2, (c_out,), jnp.float32, -limit, limit)
    return w, b


def init_params(key):
    keys = jax.random.split(key, 8)
    p = {}
    for i, (c_out, c_in) in enumerate(((32, 1), (64, 32), (128, 64))):
        w, b = _conv_init(keys[i], c_out, c_in, 1, 10)
        # Flat conv weight (C_out, kw*C_in), K ordered (tap, c_in) to match _im2col_T rows.
        w_mat = jnp.transpose(w[:, :, 0, :], (0, 2, 1)).reshape(c_out, 10 * c_in)
        p[f"conv{i + 1}_w"] = w_mat.astype(jnp.bfloat16)
        p[f"conv{i + 1}_b"] = b.reshape(c_out, 1).astype(jnp.float32)
    # FC weights pre-transposed ONCE here (never inside the forward pass).
    fc1_w = _xavier_uniform(keys[3], (500, 128 * 22 * 7))
    p["fc1_w"] = jnp.asarray(fc1_w.T, jnp.bfloat16)          # (19712, 500), bf16 stream
    p["fc1_b"] = jnp.zeros((1, 500), jnp.float32)
    fc2_w = _xavier_uniform(keys[4], (4, 500))
    p["fc2_w"] = jnp.asarray(fc2_w.T, jnp.float32)           # (500, 4)
    p["fc2_b"] = jnp.zeros((1, 4), jnp.float32)
    return p


# ---------------------------------------------------------------------------
# Forward pass (eval mode: Dropout = identity).
# ---------------------------------------------------------------------------
@jax.jit
def cnn_forward(params, x):
    # x: (N, 1, H, W) NCHW float32  (H=22, W=576 -> fc1's expected 128*22*7 features)
    n, c_in, h, w = x.shape
    assert c_in == 1
    # Channel-leading, lane-dense layout (C, N*H, W); free reshape since C == 1.
    a = x.astype(jnp.bfloat16).reshape(1, n * h, w)

    for li, c_out in ((1, 32), (2, 64), (3, 128)):
        patches, w = _im2col_T(a, kw=10, stride=4)                     # (kw*C_in, N*H*w_out)
        y = conv_gemm_relu(params[f"conv{li}_w"], patches, params[f"conv{li}_b"])
        a = y.reshape(c_out, n * h, w)                                 # stays channel-leading

    # Flatten to PyTorch x.view(N, -1) (C, H, W) order: tiny (2,128,22,7) transpose (~80 KB).
    c_out, _, w_out = a.shape
    xf = a.reshape(c_out, n, h, w_out).transpose(1, 0, 2, 3).reshape(n, c_out * h * w_out)

    # fc1 + ReLU (+ Dropout identity) + fc2, all fused in one Pallas kernel.
    return fc_head(xf, params["fc1_w"], params["fc1_b"], params["fc2_w"], params["fc2_b"])


if __name__ == "__main__":
    key = jax.random.PRNGKey(0)
    pkey, xkey = jax.random.split(key)
    params = init_params(pkey)

    # Width must give W=7 after three (1,10)/(1,4) convs, and H must be 22,
    # so the flattened features match fc1's 128*22*7 = 19712.
    x = jax.random.normal(xkey, (2, 1, 22, 576), jnp.float32)

    out = cnn_forward(params, x)
    out = jax.block_until_ready(out)
    assert out.shape == (2, 4), out.shape
    assert bool(jnp.all(jnp.isfinite(out)))
    print("KERNEL_OK")
</pallas_src>

<mosaic_0001>
module attributes {stable_mosaic.version = 11 : i64} {
  func.func @_conv_gemm_kernel(%arg0: i32, %arg1: memref<32x10xbf16, #tpu.memory_space<vmem>>, %arg2: memref<10x6248xbf16, #tpu.memory_space<vmem>>, %arg3: memref<32x1xf32, #tpu.memory_space<vmem>>, %arg4: memref<32x6248xbf16, #tpu.memory_space<vmem>>) attributes {dimension_semantics = [#tpu.dimension_semantics<arbitrary>], iteration_bounds = array<i64: 1>, scalar_prefetch = 0 : i64, scratch_operands = 0 : i64, tpu.core_type = #tpu.core_type<tc>, window_params = [{pipeline_mode = #tpu.pipeline_mode<synchronous>, transform_indices = @transform_0, window_bounds = array<i64: 32, 10>}, {pipeline_mode = #tpu.pipeline_mode<synchronous>, transform_indices = @transform_1, window_bounds = array<i64: 10, 6248>}, {pipeline_mode = #tpu.pipeline_mode<synchronous>, transform_indices = @transform_2, window_bounds = array<i64: 32, 1>}, {pipeline_mode = #tpu.pipeline_mode<synchronous>, transform_indices = @transform_3, window_bounds = array<i64: 32, 6248>}]} {
    %c0 = arith.constant 0 : index
    %c0_0 = arith.constant 0 : index
    %0 = vector.load %arg1[%c0, %c0_0] : memref<32x10xbf16, #tpu.memory_space<vmem>>, vector<32x10xbf16>
    %c0_1 = arith.constant 0 : index
    %c0_2 = arith.constant 0 : index
    %1 = vector.load %arg2[%c0_1, %c0_2] : memref<10x6248xbf16, #tpu.memory_space<vmem>>, vector<10x6248xbf16>
    %cst = arith.constant dense<0.000000e+00> : vector<32x6248xf32>
    %2 = tpu.matmul %0, %1, %cst {dimension_numbers = #tpu.dot_dimension_numbers<[1], [0], [0], [1], [0, 0, 1, 1], [], []>} : vector<32x10xbf16>, vector<10x6248xbf16>, vector<32x6248xf32> -> vector<32x6248xf32>
    %c0_3 = arith.constant 0 : index
    %c0_4 = arith.constant 0 : index
    %3 = vector.load %arg3[%c0_3, %c0_4] : memref<32x1xf32, #tpu.memory_space<vmem>>, vector<32x1xf32>
    %4 = vector.broadcast %3 : vector<32x1xf32> to vector<32x6248xf32>
    %5 = arith.addf %2, %4 : vector<32x6248xf32>
    %cst_5 = arith.constant 0.000000e+00 : f32
    %6 = vector.broadcast %cst_5 : f32 to vector<32x6248xf32>
    %7 = arith.maximumf %5, %6 : vector<32x6248xf32>
    %8 = arith.truncf %7 : vector<32x6248xf32> to vector<32x6248xbf16>
    %c0_6 = arith.constant 0 : index
    %c0_7 = arith.constant 0 : index
    %9 = vector.load %arg4[%c0_6, %c0_7] : memref<32x6248xbf16, #tpu.memory_space<vmem>>, vector<32x6248xbf16>
    tpu.vector_store %arg4[%c0_6, %c0_7], %8 {strides = array<i32>} : memref<32x6248xbf16, #tpu.memory_space<vmem>>, vector<32x6248xbf16>,
    return
  }
  func.func @transform_0(%arg0: i32) -> (i32, i32) {
    %c0_i32 = arith.constant 0 : i32
    %c0_i32_0 = arith.constant 0 : i32
    %c0_i32_1 = arith.constant 0 : i32
    return %c0_i32, %c0_i32_0 : i32, i32
  }
  func.func @transform_1(%arg0: i32) -> (i32, i32) {
    %c0_i32 = arith.constant 0 : i32
    %c0_i32_0 = arith.constant 0 : i32
    %c0_i32_1 = arith.constant 0 : i32
    return %c0_i32, %c0_i32_0 : i32, i32
  }
  func.func @transform_2(%arg0: i32) -> (i32, i32) {
    %c0_i32 = arith.constant 0 : i32
    %c0_i32_0 = arith.constant 0 : i32
    %c0_i32_1 = arith.constant 0 : i32
    return %c0_i32, %c0_i32_0 : i32, i32
  }
  func.func @transform_3(%arg0: i32) -> (i32, i32) {
    %c0_i32 = arith.constant 0 : i32
    %c0_i32_0 = arith.constant 0 : i32
    %c0_i32_1 = arith.constant 0 : i32
    return %c0_i32, %c0_i32_0 : i32, i32
  }
}

module attributes {stable_mosaic.version = 11 : i64} {
  func.func @_conv_gemm_kernel(%arg0: i32, %arg1: memref<64x320xbf16, #tpu.memory_space<vmem>>, %arg2: memref<320x1496xbf16, #tpu.memory_space<vmem>>, %arg3: memref<64x1xf32, #tpu.memory_space<vmem>>, %arg4: memref<64x1496xbf16, #tpu.memory_space<vmem>>) attributes {dimension_semantics = [#tpu.dimension_semantics<arbitrary>], iteration_bounds = array<i64: 1>, scalar_prefetch = 0 : i64, scratch_operands = 0 : i64, tpu.core_type = #tpu.core_type<tc>, window_params = [{pipeline_mode = #tpu.pipeline_mode<synchronous>, transform_indices = @transform_0, window_bounds = array<i64: 64, 320>}, {pipeline_mode = #tpu.pipeline_mode<synchronous>, transform_indices = @transform_1, window_bounds = array<i64: 320, 1496>}, {pipeline_mode = #tpu.pipeline_mode<synchronous>, transform_indices = @transform_2, window_bounds = array<i64: 64, 1>}, {pipeline_mode = #tpu.pipeline_mode<synchronous>, transform_indices = @transform_3, window_bounds = array<i64: 64, 1496>}]} {
    %c0 = arith.constant 0 : index
    %c0_0 = arith.constant 0 : index
    %0 = vector.load %arg1[%c0, %c0_0] : memref<64x320xbf16, #tpu.memory_space<vmem>>, vector<64x320xbf16>
    %c0_1 = arith.constant 0 : index
    %c0_2 = arith.constant 0 : index
    %1 = vector.load %arg2[%c0_1, %c0_2] : memref<320x1496xbf16, #tpu.memory_space<vmem>>, vector<320x1496xbf16>
    %cst = arith.constant dense<0.000000e+00> : vector<64x1496xf32>
    %2 = tpu.matmul %0, %1, %cst {dimension_numbers = #tpu.dot_dimension_numbers<[1], [0], [0], [1], [0, 0, 1, 1], [], []>} : vector<64x320xbf16>, vector<320x1496xbf16>, vector<64x1496xf32> -> vector<64x1496xf32>
    %c0_3 = arith.constant 0 : index
    %c0_4 = arith.constant 0 : index
    %3 = vector.load %arg3[%c0_3, %c0_4] : memref<64x1xf32, #tpu.memory_space<vmem>>, vector<64x1xf32>
    %4 = vector.broadcast %3 : vector<64x1xf32> to vector<64x1496xf32>
    %5 = arith.addf %2, %4 : vector<64x1496xf32>
    %cst_5 = arith.constant 0.000000e+00 : f32
    %6 = vector.broadcast %cst_5 : f32 to vector<64x1496xf32>
    %7 = arith.maximumf %5, %6 : vector<64x1496xf32>
    %8 = arith.truncf %7 : vector<64x1496xf32> to vector<64x1496xbf16>
    %c0_6 = arith.constant 0 : index
    %c0_7 = arith.constant 0 : index
    %9 = vector.load %arg4[%c0_6, %c0_7] : memref<64x1496xbf16, #tpu.memory_space<vmem>>, vector<64x1496xbf16>
    tpu.vector_store %arg4[%c0_6, %c0_7], %8 {strides = array<i32>} : memref<64x1496xbf16, #tpu.memory_space<vmem>>, vector<64x1496xbf16>,
    return
  }
  func.func @transform_0(%arg0: i32) -> (i32, i32) {
    %c0_i32 = arith.constant 0 : i32
    %c0_i32_0 = arith.constant 0 : i32
    %c0_i32_1 = arith.constant 0 : i32
    return %c0_i32, %c0_i32_0 : i32, i32
  }
  func.func @transform_1(%arg0: i32) -> (i32, i32) {
    %c0_i32 = arith.constant 0 : i32
    %c0_i32_0 = arith.constant 0 : i32
    %c0_i32_1 = arith.constant 0 : i32
    return %c0_i32, %c0_i32_0 : i32, i32
  }
  func.func @transform_2(%arg0: i32) -> (i32, i32) {
    %c0_i32 = arith.constant 0 : i32
    %c0_i32_0 = arith.constant 0 : i32
    %c0_i32_1 = arith.constant 0 : i32
    return %c0_i32, %c0_i32_0 : i32, i32
  }
  func.func @transform_3(%arg0: i32) -> (i32, i32) {
    %c0_i32 = arith.constant 0 : i32
    %c0_i32_0 = arith.constant 0 : i32
    %c0_i32_1 = arith.constant 0 : i32
    return %c0_i32, %c0_i32_0 : i32, i32
  }
}

module attributes {stable_mosaic.version = 11 : i64} {
  func.func @_conv_gemm_kernel(%arg0: i32, %arg1: memref<128x640xbf16, #tpu.memory_space<vmem>>, %arg2: memref<640x308xbf16, #tpu.memory_space<vmem>>, %arg3: memref<128x1xf32, #tpu.memory_space<vmem>>, %arg4: memref<128x308xbf16, #tpu.memory_space<vmem>>) attributes {dimension_semantics = [#tpu.dimension_semantics<arbitrary>], iteration_bounds = array<i64: 1>, scalar_prefetch = 0 : i64, scratch_operands = 0 : i64, tpu.core_type = #tpu.core_type<tc>, window_params = [{pipeline_mode = #tpu.pipeline_mode<synchronous>, transform_indices = @transform_0, window_bounds = array<i64: 128, 640>}, {pipeline_mode = #tpu.pipeline_mode<synchronous>, transform_indices = @transform_1, window_bounds = array<i64: 640, 308>}, {pipeline_mode = #tpu.pipeline_mode<synchronous>, transform_indices = @transform_2, window_bounds = array<i64: 128, 1>}, {pipeline_mode = #tpu.pipeline_mode<synchronous>, transform_indices = @transform_3, window_bounds = array<i64: 128, 308>}]} {
    %c0 = arith.constant 0 : index
    %c0_0 = arith.constant 0 : index
    %0 = vector.load %arg1[%c0, %c0_0] : memref<128x640xbf16, #tpu.memory_space<vmem>>, vector<128x640xbf16>
    %c0_1 = arith.constant 0 : index
    %c0_2 = arith.constant 0 : index
    %1 = vector.load %arg2[%c0_1, %c0_2] : memref<640x308xbf16, #tpu.memory_space<vmem>>, vector<640x308xbf16>
    %cst = arith.constant dense<0.000000e+00> : vector<128x308xf32>
    %2 = tpu.matmul %0, %1, %cst {dimension_numbers = #tpu.dot_dimension_numbers<[1], [0], [0], [1], [0, 0, 1, 1], [], []>} : vector<128x640xbf16>, vector<640x308xbf16>, vector<128x308xf32> -> vector<128x308xf32>
    %c0_3 = arith.constant 0 : index
    %c0_4 = arith.constant 0 : index
    %3 = vector.load %arg3[%c0_3, %c0_4] : memref<128x1xf32, #tpu.memory_space<vmem>>, vector<128x1xf32>
    %4 = vector.broadcast %3 : vector<128x1xf32> to vector<128x308xf32>
    %5 = arith.addf %2, %4 : vector<128x308xf32>
    %cst_5 = arith.constant 0.000000e+00 : f32
    %6 = vector.broadcast %cst_5 : f32 to vector<128x308xf32>
    %7 = arith.maximumf %5, %6 : vector<128x308xf32>
    %8 = arith.truncf %7 : vector<128x308xf32> to vector<128x308xbf16>
    %c0_6 = arith.constant 0 : index
    %c0_7 = arith.constant 0 : index
    %9 = vector.load %arg4[%c0_6, %c0_7] : memref<128x308xbf16, #tpu.memory_space<vmem>>, vector<128x308xbf16>
    tpu.vector_store %arg4[%c0_6, %c0_7], %8 {strides = array<i32>} : memref<128x308xbf16, #tpu.memory_space<vmem>>, vector<128x308xbf16>,
    return
  }
  func.func @transform_0(%arg0: i32) -> (i32, i32) {
    %c0_i32 = arith.constant 0 : i32
    %c0_i32_0 = arith.constant 0 : i32
    %c0_i32_1 = arith.constant 0 : i32
    return %c0_i32, %c0_i32_0 : i32, i32
  }
  func.func @transform_1(%arg0: i32) -> (i32, i32) {
    %c0_i32 = arith.constant 0 : i32
    %c0_i32_0 = arith.constant 0 : i32
    %c0_i32_1 = arith.constant 0 : i32
    return %c0_i32, %c0_i32_0 : i32, i32
  }
  func.func @transform_2(%arg0: i32) -> (i32, i32) {
    %c0_i32 = arith.constant 0 : i32
    %c0_i32_0 = arith.constant 0 : i32
    %c0_i32_1 = arith.constant 0 : i32
    return %c0_i32, %c0_i32_0 : i32, i32
  }
  func.func @transform_3(%arg0: i32) -> (i32, i32) {
    %c0_i32 = arith.constant 0 : i32
    %c0_i32_0 = arith.constant 0 : i32
    %c0_i32_1 = arith.constant 0 : i32
    return %c0_i32, %c0_i32_0 : i32, i32
  }
}

module attributes {stable_mosaic.version = 11 : i64} {
  func.func @_fc_head_kernel(%arg0: i32, %arg1: memref<2x2816xbf16, #tpu.memory_space<vmem>>, %arg2: memref<2816x500xbf16, #tpu.memory_space<vmem>>, %arg3: memref<1x500xf32, #tpu.memory_space<vmem>>, %arg4: memref<500x4xf32, #tpu.memory_space<vmem>>, %arg5: memref<1x4xf32, #tpu.memory_space<vmem>>, %arg6: memref<2x4xf32, #tpu.memory_space<vmem>>, %arg7: memref<2x500xf32, #tpu.memory_space<vmem>>) attributes {dimension_semantics = [#tpu.dimension_semantics<arbitrary>], iteration_bounds = array<i64: 7>, scalar_prefetch = 0 : i64, scratch_operands = 1 : i64, tpu.core_type = #tpu.core_type<tc>, window_params = [{transform_indices = @transform_0, window_bounds = array<i64: 2, 2816>}, {transform_indices = @transform_1, window_bounds = array<i64: 2816, 500>}, {pipeline_mode = #tpu.pipeline_mode<synchronous>, transform_indices = @transform_2, window_bounds = array<i64: 1, 500>}, {pipeline_mode = #tpu.pipeline_mode<synchronous>, transform_indices = @transform_3, window_bounds = array<i64: 500, 4>}, {pipeline_mode = #tpu.pipeline_mode<synchronous>, transform_indices = @transform_4, window_bounds = array<i64: 1, 4>}, {pipeline_mode = #tpu.pipeline_mode<synchronous>, transform_indices = @transform_5, window_bounds = array<i64: 2, 4>}]} {
    %c0_i32 = arith.constant 0 : i32
    %0 = arith.cmpi eq, %arg0, %c0_i32 : i32
    %1 = arith.extui %0 : i1 to i32
    %c0_i32_0 = arith.constant 0 : i32
    %2 = arith.cmpi ne, %1, %c0_i32_0 : i32
    scf.if %2 {
      %cst_9 = arith.constant 0.000000e+00 : f32
      %12 = vector.broadcast %cst_9 : f32 to vector<2x500xf32>
      %c0_10 = arith.constant 0 : index
      %c0_11 = arith.constant 0 : index
      %13 = vector.load %arg7[%c0_10, %c0_11] : memref<2x500xf32, #tpu.memory_space<vmem>>, vector<2x500xf32>
      tpu.vector_store %arg7[%c0_10, %c0_11], %12 {strides = array<i32>} : memref<2x500xf32, #tpu.memory_space<vmem>>, vector<2x500xf32>,
    } else {
    }
    %c0 = arith.constant 0 : index
    %c0_1 = arith.constant 0 : index
    %3 = vector.load %arg7[%c0, %c0_1] : memref<2x500xf32, #tpu.memory_space<vmem>>, vector<2x500xf32>
    %c0_2 = arith.constant 0 : index
    %c0_3 = arith.constant 0 : index
    %4 = vector.load %arg1[%c0_2, %c0_3] : memref<2x2816xbf16, #tpu.memory_space<vmem>>, vector<2x2816xbf16>
    %c0_4 = arith.constant 0 : index
    %c0_5 = arith.constant 0 : index
    %5 = vector.load %arg2[%c0_4, %c0_5] : memref<2816x500xbf16, #tpu.memory_space<vmem>>, vector<2816x500xbf16>
    %cst = arith.constant dense<0.000000e+00> : vector<2x500xf32>
    %6 = tpu.matmul %4, %5, %cst {dimension_numbers = #tpu.dot_dimension_numbers<[1], [0], [0], [1], [0, 0, 1, 1], [], []>} : vector<2x2816xbf16>, vector<2816x500xbf16>, vector<2x500xf32> -> vector<2x500xf32>
    %7 = arith.addf %3, %6 : vector<2x500xf32>
    %c0_6 = arith.constant 0 : index
    %c0_7 = arith.constant 0 : index
    %8 = vector.load %arg7[%c0_6, %c0_7] : memref<2x500xf32, #tpu.memory_space<vmem>>, vector<2x500xf32>
    tpu.vector_store %arg7[%c0_6, %c0_7], %7 {strides = array<i32>} : memref<2x500xf32, #tpu.memory_space<vmem>>, vector<2x500xf32>,
    %c6_i32 = arith.constant 6 : i32
    %9 = arith.cmpi eq, %arg0, %c6_i32 : i32
    %10 = arith.extui %9 : i1 to i32
    %c0_i32_8 = arith.constant 0 : i32
    %11 = arith.cmpi ne, %10, %c0_i32_8 : i32
    scf.if %11 {
      %c0_9 = arith.constant 0 : index
      %c0_10 = arith.constant 0 : index
      %12 = vector.load %arg7[%c0_9, %c0_10] : memref<2x500xf32, #tpu.memory_space<vmem>>, vector<2x500xf32>
      %c0_11 = arith.constant 0 : index
      %c0_12 = arith.constant 0 : index
      %13 = vector.load %arg3[%c0_11, %c0_12] : memref<1x500xf32, #tpu.memory_space<vmem>>, vector<1x500xf32>
      %14 = vector.broadcast %13 : vector<1x500xf32> to vector<2x500xf32>
      %15 = arith.addf %12, %14 : vector<2x500xf32>
      %cst_13 = arith.constant 0.000000e+00 : f32
      %16 = vector.broadcast %cst_13 : f32 to vector<2x500xf32>
      %17 = arith.maximumf %15, %16 : vector<2x500xf32>
      %c0_14 = arith.constant 0 : index
      %c0_15 = arith.constant 0 : index
      %18 = vector.load %arg4[%c0_14, %c0_15] : memref<500x4xf32, #tpu.memory_space<vmem>>, vector<500x4xf32>
      %cst_16 = arith.constant dense<0.000000e+00> : vector<2x4xf32>
      %19 = tpu.matmul %17, %18, %cst_16 {dimension_numbers = #tpu.dot_dimension_numbers<[1], [0], [0], [1], [0, 0, 1, 1], [], []>} : vector<2x500xf32>, vector<500x4xf32>, vector<2x4xf32> -> vector<2x4xf32>
      %c0_17 = arith.constant 0 : index
      %c0_18 = arith.constant 0 : index
      %20 = vector.load %arg5[%c0_17, %c0_18] : memref<1x4xf32, #tpu.memory_space<vmem>>, vector<1x4xf32>
      %21 = vector.broadcast %20 : vector<1x4xf32> to vector<2x4xf32>
      %22 = arith.addf %19, %21 : vector<2x4xf32>
      %c0_19 = arith.constant 0 : index
      %c0_20 = arith.constant 0 : index
      %23 = vector.load %arg6[%c0_19, %c0_20] : memref<2x4xf32, #tpu.memory_space<vmem>>, vector<2x4xf32>
      tpu.vector_store %arg6[%c0_19, %c0_20], %22 {strides = array<i32>} : memref<2x4xf32, #tpu.memory_space<vmem>>, vector<2x4xf32>,
    } else {
    }
    return
  }
  func.func @transform_0(%arg0: i32) -> (i32, i32) {
    %c0_i32 = arith.constant 0 : i32
    %c0_i32_0 = arith.constant 0 : i32
    return %c0_i32, %arg0 : i32, i32
  }
  func.func @transform_1(%arg0: i32) -> (i32, i32) {
    %c0_i32 = arith.constant 0 : i32
    %c0_i32_0 = arith.constant 0 : i32
    return %arg0, %c0_i32 : i32, i32
  }
  func.func @transform_2(%arg0: i32) -> (i32, i32) {
    %c0_i32 = arith.constant 0 : i32
    %c0_i32_0 = arith.constant 0 : i32
    %c0_i32_1 = arith.constant 0 : i32
    return %c0_i32, %c0_i32_0 : i32, i32
  }
  func.func @transform_3(%arg0: i32) -> (i32, i32) {
    %c0_i32 = arith.constant 0 : i32
    %c0_i32_0 = arith.constant 0 : i32
    %c0_i32_1 = arith.constant 0 : i32
    return %c0_i32, %c0_i32_0 : i32, i32
  }
  func.func @transform_4(%arg0: i32) -> (i32, i32) {
    %c0_i32 = arith.constant 0 : i32
    %c0_i32_0 = arith.constant 0 : i32
    %c0_i32_1 = arith.constant 0 : i32
    return %c0_i32, %c0_i32_0 : i32, i32
  }
  func.func @transform_5(%arg0: i32) -> (i32, i32) {
    %c0_i32 = arith.constant 0 : i32
    %c0_i32_0 = arith.constant 0 : i32
    %c0_i32_1 = arith.constant 0 : i32
    return %c0_i32, %c0_i32_0 : i32, i32
  }
}

</mosaic_0001>

<bundles_post_ra>
// kernel: cnn_forward.4
= control target key start
LH: loop header
LB: loop body
LE: loop exit
PB: predicated region body
PF: predicated region fallthrough
CT: control target
= control target key end

     0   :  { %vm307_vm0 = vcmask 1044480   ;;  %v3082_v1 = vmov 0   ;;  %vm300_vm1 = vcmask 80896   ;;  %vm2588_vm2 = vcmask 846848   ;;  %s3976_s1 = inlined_call_operand.vmem [shape: bf16[10,6248], index: 1, kind: input, shape index: {}]   ;;  %s3977_s0 = inlined_call_operand.vmem [shape: bf16[32,10], index: 0, kind: input, shape index: {}]   ;;  %s3978_s2 = inlined_call_operand.vmem [shape: f32[32,1], index: 2, kind: input, shape index: {}]   ;;  %s3979_s3 = inlined_call_operand.vmem [shape: bf16[32,6248], index: 3, kind: output, shape index: {}]  }
   0x1   :  { %v3007_v0 = vld [vmem:[%s3976_s1 + $0x4] ss:$196 sps:$4 sm:$0x1f]   ;;  %487 = vmatprep.mubr.bf16.mxu0 %v3082_v1  ;;  %540 = vmatprep.mubr.bf16.mxu1 %v3082_v1  ;;  %v3011_v5 = vld [vmem:[%s3976_s1 + $0x14] ss:$196 sps:$4 sm:$0x1f]  }
   0x2   :  { %v3009_v2 = vld [vmem:[%s3976_s1] ss:$196 sps:$4 sm:$0x1f]   ;;  %3005 = vset.pattern.permute.xlu0 %v3082_v1  ;;  %3006 = vset.pattern.permute.xlu1 %v3082_v1  ;;  %v3013_v6 = vld [vmem:[%s3976_s1 + $0xc] ss:$196 sps:$4 sm:$0x1f]  }
   0x3   :  { %2720 = vmatprep.subr.msk.bf16.mxu0 %vm307_vm0, %v3007_v0  ;;  %v309_v3 = vsel %vm307_vm0, %v3009_v2, 0  ;;  %v3118_v4 = vld [vmem:[%s3977_s0] sm:$0xff]   ;;  %v3015_v7 = vld [vmem:[%s3976_s1 + $0x10] ss:$196 sps:$4 sm:$0x1f]   ;;  %2723 = vmatprep.subr.msk.bf16.mxu1 %vm307_vm0, %v3013_v6  ;;  %v3158_v16 = vld [vmem:[%s3977_s0 + $0x8] sm:$0xff]  }
   0x4   :  { %456 = vmatpush1.bf16.msra.mxu0 %v309_v3  ;;  %v3016_v8 = vld [vmem:[%s3976_s1 + $0x8] ss:$196 sps:$4 sm:$0x1f]   ;;  %v321_v9 = vsel %vm307_vm0, %v3015_v7, 0  ;;  %v69_v21 = vld [vmem:[%s3978_s2] sm:$0xff]  ;;  %v71_v23 = vld [vmem:[%s3978_s2 + $0x10] sm:$0xff] }
   0x5   :  { %2726 = vmatprep.subr.msk.bf16.mxu0 %vm307_vm0, %v3011_v5  ;;  %v315_v10 = vsel %vm307_vm0, %v3016_v8, 0  ;;  %v3018_v11 = vld [vmem:[%s3976_s1 + $0x1c] ss:$196 sps:$4 sm:$0x1f]   ;;  %75 = vperm.xlu0 %3005, %v69_v21   ;;  %v70_v22 = vld [vmem:[%s3978_s2 + $0x8] sm:$0xff] }
   0x6   :  { %509 = vmatpush1.bf16.msra.mxu1 %v315_v10  ;;  %v3020_v12 = vld [vmem:[%s3976_s1 + $0x18] ss:$196 sps:$4 sm:$0x1f]   ;;  %v3021_v13 = vld [vmem:[%s3976_s1 + $0x24] ss:$196 sps:$4 sm:$0x1f]   ;;  %85 = vperm.xlu1 %3006, %v71_v23  }
   0x7   :  { %2721 = vmatmul.mubr.msk.bf16.vlgmr.msra.gmra.mrb[0].mxu0 %vm300_vm1, %v3118_v4  ;;  %2729 = vmatprep.subr.msk.bf16.mxu1 %vm307_vm0, %v3018_v11  ;;  %v327_v14 = vsel %vm307_vm0, %v3020_v12, 0  ;;  %v3024_v15 = vld [vmem:[%s3976_s1 + $0x2c] ss:$196 sps:$4 sm:$0x1f]   ;;  %v72_v26 = vld [vmem:[%s3978_s2 + $0x18] sm:$0xff] }
   0x8   :  { %562 = vmatpush1.bf16.msra.mxu0 %v321_v9  ;;  %497 = vmatprep.mubr.bf16.mxu0 %v3082_v1  ;;  %v3023_v17 = vld [vmem:[%s3976_s1 + $0x20] ss:$196 sps:$4 sm:$0x1f]   ;;  %v3026_v18 = vld [vmem:[%s3976_s1 + $0x28] ss:$196 sps:$4 sm:$0x1f]  }
   0x9   :  { %2724 = vmatmul.mubr.msk.bf16.vlgmr.msra.gmra.mrb[0].mxu1 %vm300_vm1, %v3118_v4  ;;  %2732 = vmatprep.subr.msk.bf16.mxu0 %vm307_vm0, %v3021_v13  ;;  %v333_v19 = vsel %vm307_vm0, %v3023_v17, 0  ;;  %v3027_v20 = vld [vmem:[%s3976_s1 + $0x34] ss:$196 sps:$4 sm:$0x1f]   ;;  %v339_v24 = vsel %vm307_vm0, %v3026_v18, 0 }
   0xa   :  { %615 = vmatpush1.bf16.msra.mxu1 %v327_v14  ;;  %550 = vmatprep.mubr.bf16.mxu1 %v3082_v1  ;;  %v3030_v25 = vld [vmem:[%s3976_s1 + $0x3c] ss:$196 sps:$4 sm:$0x1f]   ;;  %v3029_v27 = vld [vmem:[%s3976_s1 + $0x30] ss:$196 sps:$4 sm:$0x1f]  }
   0xb   :  { %2735 = vmatprep.subr.msk.bf16.mxu1 %vm307_vm0, %v3024_v15  ;;  %80 = vperm.xlu0 %3005, %v70_v22   ;;  %v3032_v28 = vld [vmem:[%s3976_s1 + $0x38] ss:$196 sps:$4 sm:$0x1f]   ;;  %v345_v29 = vsel %vm307_vm0, %v3029_v27, 0 }
   0xc   :  { %90 = vperm.xlu1 %3006, %v72_v26   ;;  %v3033_v30 = vld [vmem:[%s3976_s1 + $0x44] ss:$196 sps:$4 sm:$0x1f]   ;;  %v351_v31 = vsel %vm307_vm0, %v3032_v28, 0 }
   0xd   :  { %v3036_v32 = vld [vmem:[%s3976_s1 + $0x4c] ss:$196 sps:$4 sm:$0x1f]   ;;  %v3035_v33 = vld [vmem:[%s3976_s1 + $0x40] ss:$196 sps:$4 sm:$0x1f]  }
   0xe   :  { %v357_v34 = vsel %vm307_vm0, %v3035_v33, 0  ;;  %v3038_v35 = vld [vmem:[%s3976_s1 + $0x48] ss:$196 sps:$4 sm:$0x1f]  }
   0xf   :  { %2722 = vmatmul.mubr.msk.bf16.gmra.mrb[4].mxu0 %vm300_vm1, %v3158_v16  ;;  %v3039_v36 = vld [vmem:[%s3976_s1 + $0x54] ss:$196 sps:$4 sm:$0x1f]   ;;  %v363_v37 = vsel %vm307_vm0, %v3038_v35, 0 }
  0x10   :  { %593 = vmatprep.mubr.bf16.mxu0 %v3082_v1  ;;  %v3042_v38 = vld [vmem:[%s3976_s1 + $0x5c] ss:$196 sps:$4 sm:$0x1f]   ;;  %v3041_v39 = vld [vmem:[%s3976_s1 + $0x50] ss:$196 sps:$4 sm:$0x1f]  }
  0x11   :  { %2725 = vmatmul.mubr.msk.bf16.gmra.mrb[4].mxu1 %vm300_vm1, %v3158_v16  ;;  %v369_v40 = vsel %vm307_vm0, %v3041_v39, 0  ;;  %v3044_v41 = vld [vmem:[%s3976_s1 + $0x58] ss:$196 sps:$4 sm:$0x1f]  }
  0x12   :  { %646 = vmatprep.mubr.bf16.mxu1 %v3082_v1  ;;  %v3045_v42 = vld [vmem:[%s3976_s1 + $0x64] ss:$196 sps:$4 sm:$0x1f]   ;;  %v375_v43 = vsel %vm307_vm0, %v3044_v41, 0 }
  0x13   :  { %v3048_v44 = vld [vmem:[%s3976_s1 + $0x6c] ss:$196 sps:$4 sm:$0x1f]   ;;  %v3047_v45 = vld [vmem:[%s3976_s1 + $0x60] ss:$196 sps:$4 sm:$0x1f]  }
  0x14   :  { %v381_v46 = vsel %vm307_vm0, %v3047_v45, 0  ;;  %v3050_v47 = vld [vmem:[%s3976_s1 + $0x68] ss:$196 sps:$4 sm:$0x1f]  }
  0x15   :  { %v3051_v48 = vld [vmem:[%s3976_s1 + $0x74] ss:$196 sps:$4 sm:$0x1f]   ;;  %v387_v49 = vsel %vm307_vm0, %v3050_v47, 0 }
  0x16   :  { %v3054_v50 = vld [vmem:[%s3976_s1 + $0x7c] ss:$196 sps:$4 sm:$0x1f]   ;;  %v3053_v51 = vld [vmem:[%s3976_s1 + $0x70] ss:$196 sps:$4 sm:$0x1f]  }
  0x17   :  { %2727 = vmatmul.mubr.msk.bf16.vlgmr.msra.gmra.mrb[8].mxu0 %vm300_vm1, %v3118_v4  ;;  %v3056_v52 = vld [vmem:[%s3976_s1 + $0x78] ss:$196 sps:$4 sm:$0x1f]   ;;  %v393_v53 = vsel %vm307_vm0, %v3053_v51, 0 }
  0x18   :  { %668 = vmatpush1.bf16.msra.mxu0 %v333_v19  ;;  %603 = vmatprep.mubr.bf16.mxu0 %v3082_v1  ;;  %v3057_v54 = vld [vmem:[%s3976_s1 + $0x84] ss:$196 sps:$4 sm:$0x1f]   ;;  %v399_v55 = vsel %vm307_vm0, %v3056_v52, 0 }
  0x19   :  { %2738 = vmatprep.subr.msk.bf16.mxu0 %vm307_vm0, %v3027_v20  ;;  %2730 = vmatmul.mubr.msk.bf16.vlgmr.msra.gmra.mrb[8].mxu1 %vm300_vm1, %v3118_v4  ;;  %v3060_v56 = vld [vmem:[%s3976_s1 + $0x8c] ss:$196 sps:$4 sm:$0x1f]   ;;  %v3059_v57 = vld [vmem:[%s3976_s1 + $0x80] ss:$196 sps:$4 sm:$0x1f]  }
  0x1a   :  { %721 = vmatpush1.bf16.msra.mxu1 %v339_v24  ;;  %656 = vmatprep.mubr.bf16.mxu1 %v3082_v1  ;;  %v405_v58 = vsel %vm307_vm0, %v3059_v57, 0  ;;  %v3062_v59 = vld [vmem:[%s3976_s1 + $0x88] ss:$196 sps:$4 sm:$0x1f]  }
  0x1b   :  { %2741 = vmatprep.subr.msk.bf16.mxu1 %vm307_vm0, %v3030_v25  ;;  %v3063_v60 = vld [vmem:[%s3976_s1 + $0x94] ss:$196 sps:$4 sm:$0x1f]   ;;  %v411_v61 = vsel %vm307_vm0, %v3062_v59, 0 }
  0x1c   :  { %v3066_v62 = vld [vmem:[%s3976_s1 + $0x9c] ss:$196 sps:$4 sm:$0x1f]   ;;  %v3065_v63 = vld [vmem:[%s3976_s1 + $0x90] ss:$196 sps:$4 sm:$0x1f]  }
  0x1d   :  { %v417_v0 = vsel %vm307_vm0, %v3065_v63, 0  ;;  %v3068_v2 = vld [vmem:[%s3976_s1 + $0x98] ss:$196 sps:$4 sm:$0x1f]  }
  0x1e   :  { %v3069_v3 = vld [vmem:[%s3976_s1 + $0xa4] ss:$196 sps:$4 sm:$0x1f]   ;;  %v423_v5 = vsel %vm307_vm0, %v3068_v2, 0 }
  0x1f   :  { %2728 = vmatmul.mubr.msk.bf16.gmra.mrb[12].mxu0 %vm300_vm1, %v3158_v16  ;;  %v3072_v6 = vld [vmem:[%s3976_s1 + $0xac] ss:$196 sps:$4 sm:$0x1f]   ;;  %v3071_v7 = vld [vmem:[%s3976_s1 + $0xa0] ss:$196 sps:$4 sm:$0x1f]  }
  0x20   :  { %699 = vmatprep.mubr.bf16.mxu0 %v3082_v1  ;;  %v3074_v8 = vld [vmem:[%s3976_s1 + $0xa8] ss:$196 sps:$4 sm:$0x1f]   ;;  %v429_v9 = vsel %vm307_vm0, %v3071_v7, 0 }
  0x21   :  { %2731 = vmatmul.mubr.msk.bf16.gmra.mrb[12].mxu1 %vm300_vm1, %v3158_v16  ;;  %v3075_v10 = vld [vmem:[%s3976_s1 + $0xb4] ss:$196 sps:$4 sm:$0x1f]   ;;  %v435_v11 = vsel %vm307_vm0, %v3074_v8, 0 }
  0x22   :  { %752 = vmatprep.mubr.bf16.mxu1 %v3082_v1  ;;  %v3078_v12 = vld [vmem:[%s3976_s1 + $0xbc] ss:$196 sps:$4 sm:$0x1f]   ;;  %v3077_v13 = vld [vmem:[%s3976_s1 + $0xb0] ss:$196 sps:$4 sm:$0x1f]  }
  0x23   :  { %v441_v14 = vsel %vm307_vm0, %v3077_v13, 0  ;;  %v3080_v15 = vld [vmem:[%s3976_s1 + $0xb8] ss:$196 sps:$4 sm:$0x1f]  }
  0x24   :  { %v3081_v17 = vld [vmem:[%s3976_s1 + $0xc0] ss:$196 sps:$4 sm:$0x1f]   ;;  %v447_v18 = vsel %vm307_vm0, %v3080_v15, 0 }
  0x25   :  { %v453_v19 = vsel %vm307_vm0, %v3081_v17, 0 }
  0x27   :  { %2733 = vmatmul.mubr.msk.bf16.vlgmr.msra.gmra.mrb[16].mxu0 %vm300_vm1, %v3118_v4 }
  0x28   :  { %774 = vmatpush1.bf16.msra.mxu0 %v345_v29  ;;  %709 = vmatprep.mubr.bf16.mxu0 %v3082_v1 }
  0x29   :  { %2744 = vmatprep.subr.msk.bf16.mxu0 %vm307_vm0, %v3033_v30  ;;  %2736 = vmatmul.mubr.msk.bf16.vlgmr.msra.gmra.mrb[16].mxu1 %vm300_vm1, %v3118_v4 }
  0x2a   :  { %827 = vmatpush1.bf16.msra.mxu1 %v351_v31  ;;  %762 = vmatprep.mubr.bf16.mxu1 %v3082_v1 }
  0x2b   :  { %2747 = vmatprep.subr.msk.bf16.mxu1 %vm307_vm0, %v3036_v32 }
  0x2f   :  { %2734 = vmatmul.mubr.msk.bf16.gmra.mrb[20].mxu0 %vm300_vm1, %v3158_v16 }
  0x30   :  { %805 = vmatprep.mubr.bf16.mxu0 %v3082_v1 }
  0x31   :  { %2737 = vmatmul.mubr.msk.bf16.gmra.mrb[20].mxu1 %vm300_vm1, %v3158_v16 }
  0x32   :  { %858 = vmatprep.mubr.bf16.mxu1 %v3082_v1 }
  0x37   :  { %2739 = vmatmul.mubr.msk.bf16.vlgmr.msra.gmra.mrb[24].mxu0 %vm300_vm1, %v3118_v4 }
  0x38   :  { %880 = vmatpush1.bf16.msra.mxu0 %v357_v34  ;;  %815 = vmatprep.mubr.bf16.mxu0 %v3082_v1 }
  0x39   :  { %2750 = vmatprep.subr.msk.bf16.mxu0 %vm307_vm0, %v3039_v36  ;;  %2742 = vmatmul.mubr.msk.bf16.vlgmr.msra.gmra.mrb[24].mxu1 %vm300_vm1, %v3118_v4 }
  0x3a   :  { %933 = vmatpush1.bf16.msra.mxu1 %v363_v37  ;;  %868 = vmatprep.mubr.bf16.mxu1 %v3082_v1 }
  0x3b   :  { %2753 = vmatprep.subr.msk.bf16.mxu1 %vm307_vm0, %v3042_v38 }
  0x3f   :  { %2740 = vmatmul.mubr.msk.bf16.gmra.mrb[28].mxu0 %vm300_vm1, %v3158_v16 }
  0x40   :  { %911 = vmatprep.mubr.bf16.mxu0 %v3082_v1 }
  0x41   :  { %2743 = vmatmul.mubr.msk.bf16.gmra.mrb[28].mxu1 %vm300_vm1, %v3158_v16 }
  0x42   :  { %964 = vmatprep.mubr.bf16.mxu1 %v3082_v1 }
  0x47   :  { %2745 = vmatmul.mubr.msk.bf16.vlgmr.msra.gmra.mrb[32].mxu0 %vm300_vm1, %v3118_v4 }
  0x48   :  { %986 = vmatpush1.bf16.msra.mxu0 %v369_v40  ;;  %921 = vmatprep.mubr.bf16.mxu0 %v3082_v1 }
  0x49   :  { %2756 = vmatprep.subr.msk.bf16.mxu0 %vm307_vm0, %v3045_v42  ;;  %2748 = vmatmul.mubr.msk.bf16.vlgmr.msra.gmra.mrb[32].mxu1 %vm300_vm1, %v3118_v4 }
  0x4a   :  { %1039 = vmatpush1.bf16.msra.mxu1 %v375_v43  ;;  %974 = vmatprep.mubr.bf16.mxu1 %v3082_v1 }
  0x4b   :  { %2759 = vmatprep.subr.msk.bf16.mxu1 %vm307_vm0, %v3048_v44 }
  0x4f   :  { %2746 = vmatmul.mubr.msk.bf16.gmra.mrb[36].mxu0 %vm300_vm1, %v3158_v16 }
  0x50   :  { %1017 = vmatprep.mubr.bf16.mxu0 %v3082_v1 }
  0x51   :  { %2749 = vmatmul.mubr.msk.bf16.gmra.mrb[36].mxu1 %vm300_vm1, %v3158_v16 }
  0x52   :  { %1070 = vmatprep.mubr.bf16.mxu1 %v3082_v1 }
  0x57   :  { %2751 = vmatmul.mubr.msk.bf16.vlgmr.msra.gmra.mrb[40].mxu0 %vm300_vm1, %v3118_v4 }
  0x58   :  { %1092 = vmatpush1.bf16.msra.mxu0 %v381_v46  ;;  %1027 = vmatprep.mubr.bf16.mxu0 %v3082_v1 }
  0x59   :  { %2762 = vmatprep.subr.msk.bf16.mxu0 %vm307_vm0, %v3051_v48  ;;  %2754 = vmatmul.mubr.msk.bf16.vlgmr.msra.gmra.mrb[40].mxu1 %vm300_vm1, %v3118_v4 }
  0x5a   :  { %1145 = vmatpush1.bf16.msra.mxu1 %v387_v49  ;;  %1080 = vmatprep.mubr.bf16.mxu1 %v3082_v1 }
  0x5b   :  { %2765 = vmatprep.subr.msk.bf16.mxu1 %vm307_vm0, %v3054_v50 }
  0x5f   :  { %2752 = vmatmul.mubr.msk.bf16.gmra.mrb[44].mxu0 %vm300_vm1, %v3158_v16 }
  0x60   :  { %1123 = vmatprep.mubr.bf16.mxu0 %v3082_v1 }
  0x61   :  { %2755 = vmatmul.mubr.msk.bf16.gmra.mrb[44].mxu1 %vm300_vm1, %v3158_v16 }
  0x62   :  { %1176 = vmatprep.mubr.bf16.mxu1 %v3082_v1 }
  0x67   :  { %2757 = vmatmul.mubr.msk.bf16.vlgmr.msra.gmra.mrb[48].mxu0 %vm300_vm1, %v3118_v4 }
  0x68   :  { %1198 = vmatpush1.bf16.msra.mxu0 %v393_v53  ;;  %1133 = vmatprep.mubr.bf16.mxu0 %v3082_v1 }
  0x69   :  { %2768 = vmatprep.subr.msk.bf16.mxu0 %vm307_vm0, %v3057_v54  ;;  %2760 = vmatmul.mubr.msk.bf16.vlgmr.msra.gmra.mrb[48].mxu1 %vm300_vm1, %v3118_v4 }
  0x6a   :  { %1251 = vmatpush1.bf16.msra.mxu1 %v399_v55  ;;  %1186 = vmatprep.mubr.bf16.mxu1 %v3082_v1 }
  0x6b   :  { %2771 = vmatprep.subr.msk.bf16.mxu1 %vm307_vm0, %v3060_v56 }
  0x6f   :  { %2758 = vmatmul.mubr.msk.bf16.gmra.mrb[52].mxu0 %vm300_vm1, %v3158_v16 }
  0x70   :  { %1229 = vmatprep.mubr.bf16.mxu0 %v3082_v1 }
  0x71   :  { %2761 = vmatmul.mubr.msk.bf16.gmra.mrb[52].mxu1 %vm300_vm1, %v3158_v16 }
  0x72   :  { %1282 = vmatprep.mubr.bf16.mxu1 %v3082_v1 }
  0x77   :  { %2763 = vmatmul.mubr.msk.bf16.vlgmr.msra.gmra.mrb[56].mxu0 %vm300_vm1, %v3118_v4 }
  0x78   :  { %1304 = vmatpush1.bf16.msra.mxu0 %v405_v58  ;;  %1239 = vmatprep.mubr.bf16.mxu0 %v3082_v1 }
  0x79   :  { %2774 = vmatprep.subr.msk.bf16.mxu0 %vm307_vm0, %v3063_v60  ;;  %2766 = vmatmul.mubr.msk.bf16.vlgmr.msra.gmra.mrb[56].mxu1 %vm300_vm1, %v3118_v4 }
  0x7a   :  { %1357 = vmatpush1.bf16.msra.mxu1 %v411_v61  ;;  %1292 = vmatprep.mubr.bf16.mxu1 %v3082_v1 }
  0x7b   :  { %2777 = vmatprep.subr.msk.bf16.mxu1 %vm307_vm0, %v3066_v62 }
  0x7f   :  { %2764 = vmatmul.mubr.msk.bf16.gmra.mrb[60].mxu0 %vm300_vm1, %v3158_v16 }
  0x80   :  { %1335 = vmatprep.mubr.bf16.mxu0 %v3082_v1 }
  0x81   :  { %2767 = vmatmul.mubr.msk.bf16.gmra.mrb[60].mxu1 %vm300_vm1, %v3158_v16 }
  0x82   :  { %1388 = vmatprep.mubr.bf16.mxu1 %v3082_v1 }
  0x84   :  { %v3472_v20 = vpop.permute.xlu0 %75 }
  0x85   :  { %v3478_v26 = vpop.permute.xlu1 %85 }
  0x87   :  { %2769 = vmatmul.mubr.msk.bf16.vlgmr.msra.gmra.mrb[64].mxu0 %vm300_vm1, %v3118_v4 }
  0x88   :  { %1410 = vmatpush1.bf16.msra.mxu0 %v417_v0  ;;  %1345 = vmatprep.mubr.bf16.mxu0 %v3082_v1 }
  0x89   :  { %2780 = vmatprep.subr.msk.bf16.mxu0 %vm307_vm0, %v3069_v3  ;;  %2772 = vmatmul.mubr.msk.bf16.vlgmr.msra.gmra.mrb[64].mxu1 %vm300_vm1, %v3118_v4 }
  0x8a   :  { %1463 = vmatpush1.bf16.msra.mxu1 %v423_v5  ;;  %1398 = vmatprep.mubr.bf16.mxu1 %v3082_v1  ;;  %v3474_v22 = vpop.permute.xlu0 %80 }
  0x8b   :  { %2783 = vmatprep.subr.msk.bf16.mxu1 %vm307_vm0, %v3072_v6  ;;  %v3489_v45 = vpop.permute.xlu1 %90 }
  0x8f   :  { %2770 = vmatmul.mubr.msk.bf16.gmra.mrb[68].mxu0 %vm300_vm1, %v3158_v16 }
  0x90   :  { %1441 = vmatprep.mubr.bf16.mxu0 %v3082_v1 }
  0x91   :  { %2773 = vmatmul.mubr.msk.bf16.gmra.mrb[68].mxu1 %vm300_vm1, %v3158_v16 }
  0x92   :  { %1494 = vmatprep.mubr.bf16.mxu1 %v3082_v1 }
  0x97   :  { %2775 = vmatmul.mubr.msk.bf16.vlgmr.msra.gmra.mrb[72].mxu0 %vm300_vm1, %v3118_v4 }
  0x98   :  { %1516 = vmatpush1.bf16.msra.mxu0 %v429_v9  ;;  %1451 = vmatprep.mubr.bf16.mxu0 %v3082_v1 }
  0x99   :  { %2786 = vmatprep.subr.msk.bf16.mxu0 %vm307_vm0, %v3075_v10  ;;  %2778 = vmatmul.mubr.msk.bf16.vlgmr.msra.gmra.mrb[72].mxu1 %vm300_vm1, %v3118_v4 }
  0x9a   :  { %1569 = vmatpush1.bf16.msra.mxu1 %v435_v11  ;;  %1504 = vmatprep.mubr.bf16.mxu1 %v3082_v1 }
  0x9b   :  { %2789 = vmatprep.subr.msk.bf16.mxu1 %vm307_vm0, %v3078_v12 }
  0x9f   :  { %2776 = vmatmul.mubr.msk.bf16.gmra.mrb[76].mxu0 %vm300_vm1, %v3158_v16 }
  0xa0   :  { %1547 = vmatprep.mubr.bf16.mxu0 %v3082_v1 }
  0xa1   :  { %2779 = vmatmul.mubr.msk.bf16.gmra.mrb[76].mxu1 %vm300_vm1, %v3158_v16 }
  0xa2   :  { %1600 = vmatprep.mubr.bf16.mxu1 %v3082_v1 }
  0xa7   :  { %2781 = vmatmul.mubr.msk.bf16.vlgmr.msra.gmra.mrb[80].mxu0 %vm300_vm1, %v3118_v4 }
  0xa8   :  { %1622 = vmatpush1.bf16.msra.mxu0 %v441_v14  ;;  %1557 = vmatprep.mubr.bf16.mxu0 %v3082_v1 }
  0xa9   :  { %3003 = vmatprep.subr.msk.bf16.mxu0 %vm307_vm0, %v3081_v17  ;;  %2784 = vmatmul.mubr.msk.bf16.vlgmr.msra.gmra.mrb[80].mxu1 %vm300_vm1, %v3118_v4 }
  0xaa   :  { %1675 = vmatpush1.bf16.msra.mxu1 %v447_v18  ;;  %1610 = vmatprep.mubr.bf16.mxu1 %v3082_v1 }
  0xaf   :  { %2782 = vmatmul.mubr.msk.bf16.gmra.mrb[84].mxu0 %vm300_vm1, %v3158_v16 }
  0xb0   :  { %1653 = vmatprep.mubr.bf16.mxu0 %v3082_v1 }
  0xb1   :  { %2785 = vmatmul.mubr.msk.bf16.gmra.mrb[84].mxu1 %vm300_vm1, %v3158_v16 }
  0xb2   :  { %1706 = vmatprep.mubr.bf16.mxu1 %v3082_v1 }
  0xb7   :  { %2787 = vmatmul.mubr.msk.bf16.vlgmr.msra.gmra.mrb[88].mxu0 %vm300_vm1, %v3118_v4 }
  0xb8   :  { %2998 = vmatpush3.bf16.msra.mxu0 %v453_v19  ;;  %1663 = vmatprep.mubr.bf16.mxu0 %v3082_v1 }
  0xb9   :  { %2790 = vmatmul.mubr.msk.bf16.vlgmr.msra.gmra.mrb[88].mxu1 %vm300_vm1, %v3118_v4 }
  0xba   :  { %1716 = vmatprep.mubr.bf16.mxu1 %v3082_v1 }
  0xbf   :  { %2788 = vmatmul.mubr.msk.bf16.gmra.mrb[92].mxu0 %vm300_vm1, %v3158_v16 }
  0xc0   :  { %2999 = vmatprep.mubr.msk.bf16.mxu0 %vm300_vm1, %v3118_v4 }
  0xc1   :  { %2791 = vmatmul.mubr.msk.bf16.gmra.mrb[92].mxu1 %vm300_vm1, %v3158_v16 }
  0xc7   :  { %3000 = vmatmul.mubr.msk.bf16.vlgmr.msra.gmra.mrb[96].mxu0 %vm300_vm1, %v3158_v16 }
  0xda   :  { %v489_v21 = vpop.f32.mrb[0].mxu0 }
  0xdb   :  { %v490_v23 = vadd.f32 %v489_v21, %v3472_v20  ;;  %v491_v1 = vpop.f32.mrb[1].mxu0 }
  0xdc   :  { %v492_v24 = vadd.f32 %v491_v1, %v3472_v20  ;;  %v493_v25 = vpop.f32.mrb[2].mxu0  ;;  %v542_v30 = vpop.f32.mrb[0].mxu1 }
  0xdd   :  { %v1776_v4 = vmax.f32 %v490_v23, 0.0  ;;  %v494_v27 = vadd.f32 %v493_v25, %v3474_v22  ;;  %v495_v28 = vpop.f32.mrb[3].mxu0  ;;  %v543_v32 = vadd.f32 %v542_v30, %v3472_v20  ;;  %v544_v33 = vpop.f32.mrb[1].mxu1 }
  0xde   :  { %v1777_v29 = vmax.f32 %v492_v24, 0.0  ;;  %v496_v16 = vadd.f32 %v495_v28, %v3474_v22  ;;  %v545_v36 = vadd.f32 %v544_v33, %v3472_v20  ;;  %v546_v37 = vpop.f32.mrb[2].mxu1 }
  0xdf   :  { %v1825_v31 = vmax.f32 %v494_v27, 0.0  ;;  %v1778_v38 = vmax.f32 %v543_v32, 0.0  ;;  %v547_v39 = vadd.f32 %v546_v37, %v3474_v22  ;;  %v548_v40 = vpop.f32.mrb[3].mxu1 }
  0xe0   :  { %v2894_v34 = vpack.c.bf16 %v1777_v29, %v1776_v4  ;;  %v1826_v35 = vmax.f32 %v496_v16, 0.0  ;;  %v1779_v42 = vmax.f32 %v545_v36, 0.0  ;;  %v549_v44 = vadd.f32 %v548_v40, %v3474_v22 }
  0xe1   :  { %v1827_v47 = vmax.f32 %v547_v39, 0.0 }
  0xe2   :  { %2564 = vst [vmem:[%s3979_s3] sm:$0xff] %v2894_v34  ;;  %v2919_v41 = vpack.c.bf16 %v1826_v35, %v1825_v31  ;;  %v499_v43 = vpop.f32.mrb[4].mxu0  ;;  %v2895_v49 = vpack.c.bf16 %v1779_v42, %v1778_v38  ;;  %v1828_v51 = vmax.f32 %v549_v44, 0.0 }
  0xe3   :  { %v500_v46 = vadd.f32 %v499_v43, %v3478_v26  ;;  %v501_v48 = vpop.f32.mrb[5].mxu0 }
  0xe4   :  { %2590 = vst [vmem:[%s3979_s3 + $0xc4] sm:$0xff] %v2919_v41  ;;  %v502_v50 = vadd.f32 %v501_v48, %v3478_v26  ;;  %v503_v52 = vpop.f32.mrb[6].mxu0  ;;  %2565 = vst [vmem:[%s3979_s3 + $0x8] sm:$0xff] %v2895_v49  ;;  %v2920_v57 = vpack.c.bf16 %v1828_v51, %v1827_v47  ;;  %v552_v59 = vpop.f32.mrb[4].mxu1 }
  0xe5   :  { %v1874_v53 = vmax.f32 %v500_v46, 0.0  ;;  %v504_v54 = vadd.f32 %v503_v52, %v3489_v45  ;;  %v505_v55 = vpop.f32.mrb[7].mxu0  ;;  %v553_v61 = vadd.f32 %v552_v59, %v3478_v26  ;;  %v554_v62 = vpop.f32.mrb[5].mxu1 }
  0xe6   :  { %v1875_v56 = vmax.f32 %v502_v50, 0.0  ;;  %v506_v58 = vadd.f32 %v505_v55, %v3489_v45  ;;  %2591 = vst [vmem:[%s3979_s3 + $0xcc] sm:$0xff] %v2920_v57  ;;  %v555_v2 = vadd.f32 %v554_v62, %v3478_v26  ;;  %v556_v3 = vpop.f32.mrb[6].mxu1 }
  0xe7   :  { %v1923_v60 = vmax.f32 %v504_v54, 0.0  ;;  %v1876_v5 = vmax.f32 %v553_v61, 0.0  ;;  %v557_v6 = vadd.f32 %v556_v3, %v3489_v45  ;;  %v558_v7 = vpop.f32.mrb[7].mxu1 }
  0xe8   :  { %v2944_v63 = vpack.c.bf16 %v1875_v56, %v1874_v53  ;;  %v1924_v0 = vmax.f32 %v506_v58, 0.0  ;;  %v1877_v9 = vmax.f32 %v555_v2, 0.0  ;;  %v559_v11 = vadd.f32 %v558_v7, %v3489_v45 }
  0xe9   :  { %v1925_v12 = vmax.f32 %v557_v6, 0.0 }
  0xea   :  { %2615 = vst [vmem:[%s3979_s3 + $0x188] sm:$0xff] %v2944_v63  ;;  %v2969_v8 = vpack.c.bf16 %v1924_v0, %v1923_v60  ;;  %v595_v10 = vpop.f32.mrb[8].mxu0  ;;  %v2945_v15 = vpack.c.bf16 %v1877_v9, %v1876_v5  ;;  %v1926_v17 = vmax.f32 %v559_v11, 0.0 }
  0xeb   :  { %v596_v13 = vadd.f32 %v595_v10, %v3472_v20  ;;  %v597_v14 = vpop.f32.mrb[9].mxu0 }
  0xec   :  { %2640 = vst [vmem:[%s3979_s3 + $0x24c] sm:$0xff] %v2969_v8  ;;  %v598_v18 = vadd.f32 %v597_v14, %v3472_v20  ;;  %v599_v19 = vpop.f32.mrb[10].mxu0  ;;  %2616 = vst [vmem:[%s3979_s3 + $0x190] sm:$0xff] %v2945_v15  ;;  %v2970_v24 = vpack.c.bf16 %v1926_v17, %v1925_v12  ;;  %v648_v27 = vpop.f32.mrb[8].mxu1 }
  0xed   :  { %v1780_v21 = vmax.f32 %v596_v13, 0.0  ;;  %v600_v23 = vadd.f32 %v599_v19, %v3474_v22  ;;  %v601_v1 = vpop.f32.mrb[11].mxu0  ;;  %v649_v29 = vadd.f32 %v648_v27, %v3472_v20  ;;  %v650_v16 = vpop.f32.mrb[9].mxu1 }
  0xee   :  { %v1781_v25 = vmax.f32 %v598_v18, 0.0  ;;  %v602_v4 = vadd.f32 %v601_v1, %v3474_v22  ;;  %2641 = vst [vmem:[%s3979_s3 + $0x254] sm:$0xff] %v2970_v24  ;;  %v651_v32 = vadd.f32 %v650_v16, %v3472_v20  ;;  %v652_v33 = vpop.f32.mrb[10].mxu1 }
  0xef   :  { %v1829_v28 = vmax.f32 %v600_v23, 0.0  ;;  %v1782_v34 = vmax.f32 %v649_v29, 0.0  ;;  %v653_v35 = vadd.f32 %v652_v33, %v3474_v22  ;;  %v654_v36 = vpop.f32.mrb[11].mxu1 }
  0xf0   :  { %v2896_v30 = vpack.c.bf16 %v1781_v25, %v1780_v21  ;;  %v1830_v31 = vmax.f32 %v602_v4, 0.0  ;;  %v1783_v38 = vmax.f32 %v651_v32, 0.0  ;;  %v655_v40 = vadd.f32 %v654_v36, %v3474_v22 }
  0xf1   :  { %v1831_v42 = vmax.f32 %v653_v35, 0.0 }
  0xf2   :  { %2566 = vst [vmem:[%s3979_s3 + $0x10] sm:$0xff] %v2896_v30  ;;  %v2921_v37 = vpack.c.bf16 %v1830_v31, %v1829_v28  ;;  %v605_v39 = vpop.f32.mrb[12].mxu0  ;;  %v2897_v44 = vpack.c.bf16 %v1783_v38, %v1782_v34  ;;  %v1832_v47 = vmax.f32 %v655_v40, 0.0 }
  0xf3   :  { %v606_v41 = vadd.f32 %v605_v39, %v3478_v26  ;;  %v607_v43 = vpop.f32.mrb[13].mxu0 }
  0xf4   :  { %2592 = vst [vmem:[%s3979_s3 + $0xd4] sm:$0xff] %v2921_v37  ;;  %v608_v46 = vadd.f32 %v607_v43, %v3478_v26  ;;  %v609_v48 = vpop.f32.mrb[14].mxu0  ;;  %2567 = vst [vmem:[%s3979_s3 + $0x18] sm:$0xff] %v2897_v44  ;;  %v2922_v53 = vpack.c.bf16 %v1832_v47, %v1831_v42  ;;  %v658_v55 = vpop.f32.mrb[12].mxu1 }
  0xf5   :  { %v1878_v49 = vmax.f32 %v606_v41, 0.0  ;;  %v610_v50 = vadd.f32 %v609_v48, %v3489_v45  ;;  %v611_v51 = vpop.f32.mrb[15].mxu0  ;;  %v659_v57 = vadd.f32 %v658_v55, %v3478_v26  ;;  %v660_v58 = vpop.f32.mrb[13].mxu1 }
  0xf6   :  { %v1879_v52 = vmax.f32 %v608_v46, 0.0  ;;  %v612_v54 = vadd.f32 %v611_v51, %v3489_v45  ;;  %2593 = vst [vmem:[%s3979_s3 + $0xdc] sm:$0xff] %v2922_v53  ;;  %v661_v61 = vadd.f32 %v660_v58, %v3478_v26  ;;  %v662_v62 = vpop.f32.mrb[14].mxu1 }
  0xf7   :  { %v1927_v56 = vmax.f32 %v610_v50, 0.0  ;;  %v1880_v63 = vmax.f32 %v659_v57, 0.0  ;;  %v663_v0 = vadd.f32 %v662_v62, %v3489_v45  ;;  %v664_v2 = vpop.f32.mrb[15].mxu1 }
  0xf8   :  { %v2946_v59 = vpack.c.bf16 %v1879_v52, %v1878_v49  ;;  %v1928_v60 = vmax.f32 %v612_v54, 0.0  ;;  %v1881_v5 = vmax.f32 %v661_v61, 0.0  ;;  %v665_v7 = vadd.f32 %v664_v2, %v3489_v45 }
  0xf9   :  { %v1929_v8 = vmax.f32 %v663_v0, 0.0 }
  0xfa   :  { %2617 = vst [vmem:[%s3979_s3 + $0x198] sm:$0xff] %v2946_v59  ;;  %v2971_v3 = vpack.c.bf16 %v1928_v60, %v1927_v56  ;;  %v701_v6 = vpop.f32.mrb[16].mxu0  ;;  %v2947_v11 = vpack.c.bf16 %v1881_v5, %v1880_v63  ;;  %v1930_v12 = vmax.f32 %v665_v7, 0.0 }
  0xfb   :  { %v702_v9 = vadd.f32 %v701_v6, %v3472_v20  ;;  %v703_v10 = vpop.f32.mrb[17].mxu0 }
  0xfc   :  { %2642 = vst [vmem:[%s3979_s3 + $0x25c] sm:$0xff] %v2971_v3  ;;  %v704_v13 = vadd.f32 %v703_v10, %v3472_v20  ;;  %v705_v14 = vpop.f32.mrb[18].mxu0  ;;  %2618 = vst [vmem:[%s3979_s3 + $0x1a0] sm:$0xff] %v2947_v11  ;;  %v2972_v19 = vpack.c.bf16 %v1930_v12, %v1929_v8  ;;  %v754_v1 = vpop.f32.mrb[16].mxu1 }
  0xfd   :  { %v1784_v15 = vmax.f32 %v702_v9, 0.0  ;;  %v706_v17 = vadd.f32 %v705_v14, %v3474_v22  ;;  %v707_v18 = vpop.f32.mrb[19].mxu0  ;;  %v755_v25 = vadd.f32 %v754_v1, %v3472_v20  ;;  %v756_v4 = vpop.f32.mrb[17].mxu1 }
  0xfe   :  { %v1785_v21 = vmax.f32 %v704_v13, 0.0  ;;  %v708_v23 = vadd.f32 %v707_v18, %v3474_v22  ;;  %2643 = vst [vmem:[%s3979_s3 + $0x264] sm:$0xff] %v2972_v19  ;;  %v757_v29 = vadd.f32 %v756_v4, %v3472_v20  ;;  %v758_v16 = vpop.f32.mrb[18].mxu1 }
  0xff   :  { %v1833_v24 = vmax.f32 %v706_v17, 0.0  ;;  %v1786_v30 = vmax.f32 %v755_v25, 0.0  ;;  %v759_v31 = vadd.f32 %v758_v16, %v3474_v22  ;;  %v760_v32 = vpop.f32.mrb[19].mxu1 }
 0x100   :  { %v2898_v27 = vpack.c.bf16 %v1785_v21, %v1784_v15  ;;  %v1834_v28 = vmax.f32 %v708_v23, 0.0  ;;  %v1787_v34 = vmax.f32 %v757_v29, 0.0  ;;  %v761_v36 = vadd.f32 %v760_v32, %v3474_v22 }
 0x101   :  { %v1835_v38 = vmax.f32 %v759_v31, 0.0 }
 0x102   :  { %2568 = vst [vmem:[%s3979_s3 + $0x20] sm:$0xff] %v2898_v27  ;;  %v2923_v33 = vpack.c.bf16 %v1834_v28, %v1833_v24  ;;  %v711_v35 = vpop.f32.mrb[20].mxu0  ;;  %v2899_v40 = vpack.c.bf16 %v1787_v34, %v1786_v30  ;;  %v1836_v42 = vmax.f32 %v761_v36, 0.0 }
 0x103   :  { %v712_v37 = vadd.f32 %v711_v35, %v3478_v26  ;;  %v713_v39 = vpop.f32.mrb[21].mxu0 }
 0x104   :  { %2594 = vst [vmem:[%s3979_s3 + $0xe4] sm:$0xff] %v2923_v33  ;;  %v714_v41 = vadd.f32 %v713_v39, %v3478_v26  ;;  %v715_v43 = vpop.f32.mrb[22].mxu0  ;;  %2569 = vst [vmem:[%s3979_s3 + $0x28] sm:$0xff] %v2899_v40  ;;  %v2924_v49 = vpack.c.bf16 %v1836_v42, %v1835_v38  ;;  %v764_v51 = vpop.f32.mrb[20].mxu1 }
 0x105   :  { %v1882_v44 = vmax.f32 %v712_v37, 0.0  ;;  %v716_v46 = vadd.f32 %v715_v43, %v3489_v45  ;;  %v717_v47 = vpop.f32.mrb[23].mxu0  ;;  %v765_v53 = vadd.f32 %v764_v51, %v3478_v26  ;;  %v766_v54 = vpop.f32.mrb[21].mxu1 }
 0x106   :  { %v1883_v48 = vmax.f32 %v714_v41, 0.0  ;;  %v718_v50 = vadd.f32 %v717_v47, %v3489_v45  ;;  %2595 = vst [vmem:[%s3979_s3 + $0xec] sm:$0xff] %v2924_v49  ;;  %v767_v57 = vadd.f32 %v766_v54, %v3478_v26  ;;  %v768_v58 = vpop.f32.mrb[22].mxu1 }
 0x107   :  { %v1931_v52 = vmax.f32 %v716_v46, 0.0  ;;  %v1884_v59 = vmax.f32 %v765_v53, 0.0  ;;  %v769_v60 = vadd.f32 %v768_v58, %v3489_v45  ;;  %v770_v61 = vpop.f32.mrb[23].mxu1 }
 0x108   :  { %v2948_v55 = vpack.c.bf16 %v1883_v48, %v1882_v44  ;;  %v1932_v56 = vmax.f32 %v718_v50, 0.0  ;;  %v1885_v63 = vmax.f32 %v767_v57, 0.0  ;;  %v771_v2 = vadd.f32 %v770_v61, %v3489_v45 }
 0x109   :  { %v1933_v3 = vmax.f32 %v769_v60, 0.0 }
 0x10a   :  { %2619 = vst [vmem:[%s3979_s3 + $0x1a8] sm:$0xff] %v2948_v55  ;;  %v2973_v62 = vpack.c.bf16 %v1932_v56, %v1931_v52  ;;  %v807_v0 = vpop.f32.mrb[24].mxu0  ;;  %v2949_v7 = vpack.c.bf16 %v1885_v63, %v1884_v59  ;;  %v1934_v8 = vmax.f32 %v771_v2, 0.0 }
 0x10b   :  { %v808_v5 = vadd.f32 %v807_v0, %v3472_v20  ;;  %v809_v6 = vpop.f32.mrb[25].mxu0 }
 0x10c   :  { %2644 = vst [vmem:[%s3979_s3 + $0x26c] sm:$0xff] %v2973_v62  ;;  %v810_v9 = vadd.f32 %v809_v6, %v3472_v20  ;;  %v811_v10 = vpop.f32.mrb[26].mxu0  ;;  %2620 = vst [vmem:[%s3979_s3 + $0x1b0] sm:$0xff] %v2949_v7  ;;  %v2974_v14 = vpack.c.bf16 %v1934_v8, %v1933_v3  ;;  %v860_v18 = vpop.f32.mrb[24].mxu1 }
 0x10d   :  { %v1788_v11 = vmax.f32 %v808_v5, 0.0  ;;  %v812_v12 = vadd.f32 %v811_v10, %v3474_v22  ;;  %v813_v13 = vpop.f32.mrb[27].mxu0  ;;  %v861_v21 = vadd.f32 %v860_v18, %v3472_v20  ;;  %v862_v23 = vpop.f32.mrb[25].mxu1 }
 0x10e   :  { %v1789_v15 = vmax.f32 %v810_v9, 0.0  ;;  %v814_v17 = vadd.f32 %v813_v13, %v3474_v22  ;;  %2645 = vst [vmem:[%s3979_s3 + $0x274] sm:$0xff] %v2974_v14  ;;  %v863_v25 = vadd.f32 %v862_v23, %v3472_v20  ;;  %v864_v4 = vpop.f32.mrb[26].mxu1 }
 0x10f   :  { %v1837_v19 = vmax.f32 %v812_v12, 0.0  ;;  %v1790_v27 = vmax.f32 %v861_v21, 0.0  ;;  %v865_v28 = vadd.f32 %v864_v4, %v3474_v22  ;;  %v866_v29 = vpop.f32.mrb[27].mxu1 }
 0x110   :  { %v2900_v1 = vpack.c.bf16 %v1789_v15, %v1788_v11  ;;  %v1838_v24 = vmax.f32 %v814_v17, 0.0  ;;  %v1791_v30 = vmax.f32 %v863_v25, 0.0  ;;  %v867_v32 = vadd.f32 %v866_v29, %v3474_v22 }
 0x111   :  { %v1839_v34 = vmax.f32 %v865_v28, 0.0 }
 0x112   :  { %2570 = vst [vmem:[%s3979_s3 + $0x30] sm:$0xff] %v2900_v1  ;;  %v2925_v16 = vpack.c.bf16 %v1838_v24, %v1837_v19  ;;  %v817_v31 = vpop.f32.mrb[28].mxu0  ;;  %v2901_v36 = vpack.c.bf16 %v1791_v30, %v1790_v27  ;;  %v1840_v38 = vmax.f32 %v867_v32, 0.0 }
 0x113   :  { %v818_v33 = vadd.f32 %v817_v31, %v3478_v26  ;;  %v819_v35 = vpop.f32.mrb[29].mxu0 }
 0x114   :  { %2596 = vst [vmem:[%s3979_s3 + $0xf4] sm:$0xff] %v2925_v16  ;;  %v820_v37 = vadd.f32 %v819_v35, %v3478_v26  ;;  %v821_v39 = vpop.f32.mrb[30].mxu0  ;;  %2571 = vst [vmem:[%s3979_s3 + $0x38] sm:$0xff] %v2901_v36  ;;  %v2926_v44 = vpack.c.bf16 %v1840_v38, %v1839_v34  ;;  %v870_v47 = vpop.f32.mrb[28].mxu1 }
 0x115   :  { %v1886_v40 = vmax.f32 %v818_v33, 0.0  ;;  %v822_v41 = vadd.f32 %v821_v39, %v3489_v45  ;;  %v823_v42 = vpop.f32.mrb[31].mxu0  ;;  %v871_v49 = vadd.f32 %v870_v47, %v3478_v26  ;;  %v872_v50 = vpop.f32.mrb[29].mxu1 }
 0x116   :  { %v1887_v43 = vmax.f32 %v820_v37, 0.0  ;;  %v824_v46 = vadd.f32 %v823_v42, %v3489_v45  ;;  %2597 = vst [vmem:[%s3979_s3 + $0xfc] sm:$0xff] %v2926_v44  ;;  %v873_v53 = vadd.f32 %v872_v50, %v3478_v26  ;;  %v874_v54 = vpop.f32.mrb[30].mxu1 }
 0x117   :  { %v1935_v48 = vmax.f32 %v822_v41, 0.0  ;;  %v1888_v55 = vmax.f32 %v871_v49, 0.0  ;;  %v875_v56 = vadd.f32 %v874_v54, %v3489_v45  ;;  %v876_v57 = vpop.f32.mrb[31].mxu1 }
 0x118   :  { %v2950_v51 = vpack.c.bf16 %v1887_v43, %v1886_v40  ;;  %v1936_v52 = vmax.f32 %v824_v46, 0.0  ;;  %v1889_v59 = vmax.f32 %v873_v53, 0.0  ;;  %v877_v61 = vadd.f32 %v876_v57, %v3489_v45 }
 0x119   :  { %v1937_v62 = vmax.f32 %v875_v56, 0.0 }
 0x11a   :  { %2621 = vst [vmem:[%s3979_s3 + $0x1b8] sm:$0xff] %v2950_v51  ;;  %v2975_v58 = vpack.c.bf16 %v1936_v52, %v1935_v48  ;;  %v913_v60 = vpop.f32.mrb[32].mxu0  ;;  %v2951_v2 = vpack.c.bf16 %v1889_v59, %v1888_v55  ;;  %v1938_v3 = vmax.f32 %v877_v61, 0.0 }
 0x11b   :  { %v914_v63 = vadd.f32 %v913_v60, %v3472_v20  ;;  %v915_v0 = vpop.f32.mrb[33].mxu0 }
 0x11c   :  { %2646 = vst [vmem:[%s3979_s3 + $0x27c] sm:$0xff] %v2975_v58  ;;  %v916_v5 = vadd.f32 %v915_v0, %v3472_v20  ;;  %v917_v6 = vpop.f32.mrb[34].mxu0  ;;  %2622 = vst [vmem:[%s3979_s3 + $0x1c0] sm:$0xff] %v2951_v2  ;;  %v2976_v10 = vpack.c.bf16 %v1938_v3, %v1937_v62  ;;  %v966_v13 = vpop.f32.mrb[32].mxu1 }
 0x11d   :  { %v1792_v7 = vmax.f32 %v914_v63, 0.0  ;;  %v918_v8 = vadd.f32 %v917_v6, %v3474_v22  ;;  %v919_v9 = vpop.f32.mrb[35].mxu0  ;;  %v967_v15 = vadd.f32 %v966_v13, %v3472_v20  ;;  %v968_v17 = vpop.f32.mrb[33].mxu1 }
 0x11e   :  { %v1793_v11 = vmax.f32 %v916_v5, 0.0  ;;  %v920_v12 = vadd.f32 %v919_v9, %v3474_v22  ;;  %2647 = vst [vmem:[%s3979_s3 + $0x284] sm:$0xff] %v2976_v10  ;;  %v969_v21 = vadd.f32 %v968_v17, %v3472_v20  ;;  %v970_v23 = vpop.f32.mrb[34].mxu1 }
 0x11f   :  { %v1841_v14 = vmax.f32 %v918_v8, 0.0  ;;  %v1794_v1 = vmax.f32 %v967_v15, 0.0  ;;  %v971_v24 = vadd.f32 %v970_v23, %v3474_v22  ;;  %v972_v25 = vpop.f32.mrb[35].mxu1 }
 0x120   :  { %v2902_v18 = vpack.c.bf16 %v1793_v11, %v1792_v7  ;;  %v1842_v19 = vmax.f32 %v920_v12, 0.0  ;;  %v1795_v27 = vmax.f32 %v969_v21, 0.0  ;;  %v973_v29 = vadd.f32 %v972_v25, %v3474_v22 }
 0x121   :  { %v1843_v30 = vmax.f32 %v971_v24, 0.0 }
 0x122   :  { %2572 = vst [vmem:[%s3979_s3 + $0x40] sm:$0xff] %v2902_v18  ;;  %v2927_v4 = vpack.c.bf16 %v1842_v19, %v1841_v14  ;;  %v923_v28 = vpop.f32.mrb[36].mxu0  ;;  %v2903_v32 = vpack.c.bf16 %v1795_v27, %v1794_v1  ;;  %v1844_v34 = vmax.f32 %v973_v29, 0.0 }
 0x123   :  { %v924_v16 = vadd.f32 %v923_v28, %v3478_v26  ;;  %v925_v31 = vpop.f32.mrb[37].mxu0 }
 0x124   :  { %2598 = vst [vmem:[%s3979_s3 + $0x104] sm:$0xff] %v2927_v4  ;;  %v926_v33 = vadd.f32 %v925_v31, %v3478_v26  ;;  %v927_v35 = vpop.f32.mrb[38].mxu0  ;;  %2573 = vst [vmem:[%s3979_s3 + $0x48] sm:$0xff] %v2903_v32  ;;  %v2928_v40 = vpack.c.bf16 %v1844_v34, %v1843_v30  ;;  %v976_v42 = vpop.f32.mrb[36].mxu1 }
 0x125   :  { %v1890_v36 = vmax.f32 %v924_v16, 0.0  ;;  %v928_v37 = vadd.f32 %v927_v35, %v3489_v45  ;;  %v929_v38 = vpop.f32.mrb[39].mxu0  ;;  %v977_v44 = vadd.f32 %v976_v42, %v3478_v26  ;;  %v978_v46 = vpop.f32.mrb[37].mxu1 }
 0x126   :  { %v1891_v39 = vmax.f32 %v926_v33, 0.0  ;;  %v930_v41 = vadd.f32 %v929_v38, %v3489_v45  ;;  %2599 = vst [vmem:[%s3979_s3 + $0x10c] sm:$0xff] %v2928_v40  ;;  %v979_v49 = vadd.f32 %v978_v46, %v3478_v26  ;;  %v980_v50 = vpop.f32.mrb[38].mxu1 }
 0x127   :  { %v1939_v43 = vmax.f32 %v928_v37, 0.0  ;;  %v1892_v51 = vmax.f32 %v977_v44, 0.0  ;;  %v981_v52 = vadd.f32 %v980_v50, %v3489_v45  ;;  %v982_v53 = vpop.f32.mrb[39].mxu1 }
 0x128   :  { %v2952_v47 = vpack.c.bf16 %v1891_v39, %v1890_v36  ;;  %v1940_v48 = vmax.f32 %v930_v41, 0.0  ;;  %v1893_v55 = vmax.f32 %v979_v49, 0.0  ;;  %v983_v57 = vadd.f32 %v982_v53, %v3489_v45 }
 0x129   :  { %v1941_v58 = vmax.f32 %v981_v52, 0.0 }
 0x12a   :  { %2623 = vst [vmem:[%s3979_s3 + $0x1c8] sm:$0xff] %v2952_v47  ;;  %v2977_v54 = vpack.c.bf16 %v1940_v48, %v1939_v43  ;;  %v1019_v56 = vpop.f32.mrb[40].mxu0  ;;  %v2953_v61 = vpack.c.bf16 %v1893_v55, %v1892_v51  ;;  %v1942_v62 = vmax.f32 %v983_v57, 0.0 }
 0x12b   :  { %v1020_v59 = vadd.f32 %v1019_v56, %v3472_v20  ;;  %v1021_v60 = vpop.f32.mrb[41].mxu0 }
 0x12c   :  { %2648 = vst [vmem:[%s3979_s3 + $0x28c] sm:$0xff] %v2977_v54  ;;  %v1022_v63 = vadd.f32 %v1021_v60, %v3472_v20  ;;  %v1023_v0 = vpop.f32.mrb[42].mxu0  ;;  %2624 = vst [vmem:[%s3979_s3 + $0x1d0] sm:$0xff] %v2953_v61  ;;  %v2978_v6 = vpack.c.bf16 %v1942_v62, %v1941_v58  ;;  %v1072_v9 = vpop.f32.mrb[40].mxu1 }
 0x12d   :  { %v1796_v2 = vmax.f32 %v1020_v59, 0.0  ;;  %v1024_v3 = vadd.f32 %v1023_v0, %v3474_v22  ;;  %v1025_v5 = vpop.f32.mrb[43].mxu0  ;;  %v1073_v11 = vadd.f32 %v1072_v9, %v3472_v20  ;;  %v1074_v12 = vpop.f32.mrb[41].mxu1 }
 0x12e   :  { %v1797_v7 = vmax.f32 %v1022_v63, 0.0  ;;  %v1026_v8 = vadd.f32 %v1025_v5, %v3474_v22  ;;  %2649 = vst [vmem:[%s3979_s3 + $0x294] sm:$0xff] %v2978_v6  ;;  %v1075_v15 = vadd.f32 %v1074_v12, %v3472_v20  ;;  %v1076_v17 = vpop.f32.mrb[42].mxu1 }
 0x12f   :  { %v1845_v10 = vmax.f32 %v1024_v3, 0.0  ;;  %v1798_v18 = vmax.f32 %v1073_v11, 0.0  ;;  %v1077_v19 = vadd.f32 %v1076_v17, %v3474_v22  ;;  %v1078_v21 = vpop.f32.mrb[43].mxu1 }
 0x130   :  { %v2904_v13 = vpack.c.bf16 %v1797_v7, %v1796_v2  ;;  %v1846_v14 = vmax.f32 %v1026_v8, 0.0  ;;  %v1799_v1 = vmax.f32 %v1075_v15, 0.0  ;;  %v1079_v25 = vadd.f32 %v1078_v21, %v3474_v22 }
 0x131   :  { %v1847_v27 = vmax.f32 %v1077_v19, 0.0 }
 0x132   :  { %2574 = vst [vmem:[%s3979_s3 + $0x50] sm:$0xff] %v2904_v13  ;;  %v2929_v23 = vpack.c.bf16 %v1846_v14, %v1845_v10  ;;  %v1029_v24 = vpop.f32.mrb[44].mxu0  ;;  %v2905_v29 = vpack.c.bf16 %v1799_v1, %v1798_v18  ;;  %v1848_v30 = vmax.f32 %v1079_v25, 0.0 }
 0x133   :  { %v1030_v4 = vadd.f32 %v1029_v24, %v3478_v26  ;;  %v1031_v28 = vpop.f32.mrb[45].mxu0 }
 0x134   :  { %2600 = vst [vmem:[%s3979_s3 + $0x114] sm:$0xff] %v2929_v23  ;;  %v1032_v16 = vadd.f32 %v1031_v28, %v3478_v26  ;;  %v1033_v31 = vpop.f32.mrb[46].mxu0  ;;  %2575 = vst [vmem:[%s3979_s3 + $0x58] sm:$0xff] %v2905_v29  ;;  %v2930_v36 = vpack.c.bf16 %v1848_v30, %v1847_v27  ;;  %v1082_v38 = vpop.f32.mrb[44].mxu1 }
 0x135   :  { %v1894_v32 = vmax.f32 %v1030_v4, 0.0  ;;  %v1034_v33 = vadd.f32 %v1033_v31, %v3489_v45  ;;  %v1035_v34 = vpop.f32.mrb[47].mxu0  ;;  %v1083_v40 = vadd.f32 %v1082_v38, %v3478_v26  ;;  %v1084_v41 = vpop.f32.mrb[45].mxu1 }
 0x136   :  { %v1895_v35 = vmax.f32 %v1032_v16, 0.0  ;;  %v1036_v37 = vadd.f32 %v1035_v34, %v3489_v45  ;;  %2601 = vst [vmem:[%s3979_s3 + $0x11c] sm:$0xff] %v2930_v36  ;;  %v1085_v44 = vadd.f32 %v1084_v41, %v3478_v26  ;;  %v1086_v46 = vpop.f32.mrb[46].mxu1 }
 0x137   :  { %v1943_v39 = vmax.f32 %v1034_v33, 0.0  ;;  %v1896_v47 = vmax.f32 %v1083_v40, 0.0  ;;  %v1087_v48 = vadd.f32 %v1086_v46, %v3489_v45  ;;  %v1088_v49 = vpop.f32.mrb[47].mxu1 }
 0x138   :  { %v2954_v42 = vpack.c.bf16 %v1895_v35, %v1894_v32  ;;  %v1944_v43 = vmax.f32 %v1036_v37, 0.0  ;;  %v1897_v51 = vmax.f32 %v1085_v44, 0.0  ;;  %v1089_v53 = vadd.f32 %v1088_v49, %v3489_v45 }
 0x139   :  { %v1945_v54 = vmax.f32 %v1087_v48, 0.0 }
 0x13a   :  { %2625 = vst [vmem:[%s3979_s3 + $0x1d8] sm:$0xff] %v2954_v42  ;;  %v2979_v50 = vpack.c.bf16 %v1944_v43, %v1943_v39  ;;  %v1125_v52 = vpop.f32.mrb[48].mxu0  ;;  %v2955_v57 = vpack.c.bf16 %v1897_v51, %v1896_v47  ;;  %v1946_v58 = vmax.f32 %v1089_v53, 0.0 }
 0x13b   :  { %v1126_v55 = vadd.f32 %v1125_v52, %v3472_v20  ;;  %v1127_v56 = vpop.f32.mrb[49].mxu0 }
 0x13c   :  { %2650 = vst [vmem:[%s3979_s3 + $0x29c] sm:$0xff] %v2979_v50  ;;  %v1128_v59 = vadd.f32 %v1127_v56, %v3472_v20  ;;  %v1129_v60 = vpop.f32.mrb[50].mxu0  ;;  %2626 = vst [vmem:[%s3979_s3 + $0x1e0] sm:$0xff] %v2955_v57  ;;  %v2980_v0 = vpack.c.bf16 %v1946_v58, %v1945_v54  ;;  %v1178_v5 = vpop.f32.mrb[48].mxu1 }
 0x13d   :  { %v1800_v61 = vmax.f32 %v1126_v55, 0.0  ;;  %v1130_v62 = vadd.f32 %v1129_v60, %v3474_v22  ;;  %v1131_v63 = vpop.f32.mrb[51].mxu0  ;;  %v1179_v7 = vadd.f32 %v1178_v5, %v3472_v20  ;;  %v1180_v8 = vpop.f32.mrb[49].mxu1 }
 0x13e   :  { %v1801_v2 = vmax.f32 %v1128_v59, 0.0  ;;  %v1132_v3 = vadd.f32 %v1131_v63, %v3474_v22  ;;  %2651 = vst [vmem:[%s3979_s3 + $0x2a4] sm:$0xff] %v2980_v0  ;;  %v1181_v11 = vadd.f32 %v1180_v8, %v3472_v20  ;;  %v1182_v12 = vpop.f32.mrb[50].mxu1 }
 0x13f   :  { %v1849_v6 = vmax.f32 %v1130_v62, 0.0  ;;  %v1802_v13 = vmax.f32 %v1179_v7, 0.0  ;;  %v1183_v14 = vadd.f32 %v1182_v12, %v3474_v22  ;;  %v1184_v15 = vpop.f32.mrb[51].mxu1 }
 0x140   :  { %v2906_v9 = vpack.c.bf16 %v1801_v2, %v1800_v61  ;;  %v1850_v10 = vmax.f32 %v1132_v3, 0.0  ;;  %v1803_v18 = vmax.f32 %v1181_v11, 0.0  ;;  %v1185_v21 = vadd.f32 %v1184_v15, %v3474_v22 }
 0x141   :  { %v1851_v1 = vmax.f32 %v1183_v14, 0.0 }
 0x142   :  { %2576 = vst [vmem:[%s3979_s3 + $0x60] sm:$0xff] %v2906_v9  ;;  %v2931_v17 = vpack.c.bf16 %v1850_v10, %v1849_v6  ;;  %v1135_v19 = vpop.f32.mrb[52].mxu0  ;;  %v2907_v25 = vpack.c.bf16 %v1803_v18, %v1802_v13  ;;  %v1852_v27 = vmax.f32 %v1185_v21, 0.0 }
 0x143   :  { %v1136_v23 = vadd.f32 %v1135_v19, %v3478_v26  ;;  %v1137_v24 = vpop.f32.mrb[53].mxu0 }
 0x144   :  { %2602 = vst [vmem:[%s3979_s3 + $0x124] sm:$0xff] %v2931_v17  ;;  %v1138_v4 = vadd.f32 %v1137_v24, %v3478_v26  ;;  %v1139_v28 = vpop.f32.mrb[54].mxu0  ;;  %2577 = vst [vmem:[%s3979_s3 + $0x68] sm:$0xff] %v2907_v25  ;;  %v2932_v32 = vpack.c.bf16 %v1852_v27, %v1851_v1  ;;  %v1188_v34 = vpop.f32.mrb[52].mxu1 }
 0x145   :  { %v1898_v29 = vmax.f32 %v1136_v23, 0.0  ;;  %v1140_v16 = vadd.f32 %v1139_v28, %v3489_v45  ;;  %v1141_v30 = vpop.f32.mrb[55].mxu0  ;;  %v1189_v36 = vadd.f32 %v1188_v34, %v3478_v26  ;;  %v1190_v37 = vpop.f32.mrb[53].mxu1 }
 0x146   :  { %v1899_v31 = vmax.f32 %v1138_v4, 0.0  ;;  %v1142_v33 = vadd.f32 %v1141_v30, %v3489_v45  ;;  %2603 = vst [vmem:[%s3979_s3 + $0x12c] sm:$0xff] %v2932_v32  ;;  %v1191_v40 = vadd.f32 %v1190_v37, %v3478_v26  ;;  %v1192_v41 = vpop.f32.mrb[54].mxu1 }
 0x147   :  { %v1947_v35 = vmax.f32 %v1140_v16, 0.0  ;;  %v1900_v42 = vmax.f32 %v1189_v36, 0.0  ;;  %v1193_v43 = vadd.f32 %v1192_v41, %v3489_v45  ;;  %v1194_v44 = vpop.f32.mrb[55].mxu1 }
 0x148   :  { %v2956_v38 = vpack.c.bf16 %v1899_v31, %v1898_v29  ;;  %v1948_v39 = vmax.f32 %v1142_v33, 0.0  ;;  %v1901_v47 = vmax.f32 %v1191_v40, 0.0  ;;  %v1195_v49 = vadd.f32 %v1194_v44, %v3489_v45 }
 0x149   :  { %v1949_v50 = vmax.f32 %v1193_v43, 0.0 }
 0x14a   :  { %2627 = vst [vmem:[%s3979_s3 + $0x1e8] sm:$0xff] %v2956_v38  ;;  %v2981_v46 = vpack.c.bf16 %v1948_v39, %v1947_v35  ;;  %v1231_v48 = vpop.f32.mrb[56].mxu0  ;;  %v2957_v53 = vpack.c.bf16 %v1901_v47, %v1900_v42  ;;  %v1950_v54 = vmax.f32 %v1195_v49, 0.0 }
 0x14b   :  { %v1232_v51 = vadd.f32 %v1231_v48, %v3472_v20  ;;  %v1233_v52 = vpop.f32.mrb[57].mxu0 }
 0x14c   :  { %2652 = vst [vmem:[%s3979_s3 + $0x2ac] sm:$0xff] %v2981_v46  ;;  %v1234_v55 = vadd.f32 %v1233_v52, %v3472_v20  ;;  %v1235_v56 = vpop.f32.mrb[58].mxu0  ;;  %2628 = vst [vmem:[%s3979_s3 + $0x1f0] sm:$0xff] %v2957_v53  ;;  %v2982_v60 = vpack.c.bf16 %v1950_v54, %v1949_v50  ;;  %v1284_v63 = vpop.f32.mrb[56].mxu1 }
 0x14d   :  { %v1804_v57 = vmax.f32 %v1232_v51, 0.0  ;;  %v1236_v58 = vadd.f32 %v1235_v56, %v3474_v22  ;;  %v1237_v59 = vpop.f32.mrb[59].mxu0  ;;  %v1285_v2 = vadd.f32 %v1284_v63, %v3472_v20  ;;  %v1286_v3 = vpop.f32.mrb[57].mxu1 }
 0x14e   :  { %v1805_v61 = vmax.f32 %v1234_v55, 0.0  ;;  %v1238_v62 = vadd.f32 %v1237_v59, %v3474_v22  ;;  %2653 = vst [vmem:[%s3979_s3 + $0x2b4] sm:$0xff] %v2982_v60  ;;  %v1287_v7 = vadd.f32 %v1286_v3, %v3472_v20  ;;  %v1288_v8 = vpop.f32.mrb[58].mxu1 }
 0x14f   :  { %v1853_v0 = vmax.f32 %v1236_v58, 0.0  ;;  %v1806_v9 = vmax.f32 %v1285_v2, 0.0  ;;  %v1289_v10 = vadd.f32 %v1288_v8, %v3474_v22  ;;  %v1290_v11 = vpop.f32.mrb[59].mxu1 }
 0x150   :  { %v2908_v5 = vpack.c.bf16 %v1805_v61, %v1804_v57  ;;  %v1854_v6 = vmax.f32 %v1238_v62, 0.0  ;;  %v1807_v13 = vmax.f32 %v1287_v7, 0.0  ;;  %v1291_v15 = vadd.f32 %v1290_v11, %v3474_v22 }
 0x151   :  { %v1855_v18 = vmax.f32 %v1289_v10, 0.0 }
 0x152   :  { %2578 = vst [vmem:[%s3979_s3 + $0x70] sm:$0xff] %v2908_v5  ;;  %v2933_v12 = vpack.c.bf16 %v1854_v6, %v1853_v0  ;;  %v1241_v14 = vpop.f32.mrb[60].mxu0  ;;  %v2909_v21 = vpack.c.bf16 %v1807_v13, %v1806_v9  ;;  %v1856_v1 = vmax.f32 %v1291_v15, 0.0 }
 0x153   :  { %v1242_v17 = vadd.f32 %v1241_v14, %v3478_v26  ;;  %v1243_v19 = vpop.f32.mrb[61].mxu0 }
 0x154   :  { %2604 = vst [vmem:[%s3979_s3 + $0x134] sm:$0xff] %v2933_v12  ;;  %v1244_v23 = vadd.f32 %v1243_v19, %v3478_v26  ;;  %v1245_v24 = vpop.f32.mrb[62].mxu0  ;;  %2579 = vst [vmem:[%s3979_s3 + $0x78] sm:$0xff] %v2909_v21  ;;  %v2934_v29 = vpack.c.bf16 %v1856_v1, %v1855_v18  ;;  %v1294_v30 = vpop.f32.mrb[60].mxu1 }
 0x155   :  { %v1902_v25 = vmax.f32 %v1242_v17, 0.0  ;;  %v1246_v4 = vadd.f32 %v1245_v24, %v3489_v45  ;;  %v1247_v27 = vpop.f32.mrb[63].mxu0  ;;  %v1295_v32 = vadd.f32 %v1294_v30, %v3478_v26  ;;  %v1296_v33 = vpop.f32.mrb[61].mxu1 }
 0x156   :  { %v1903_v28 = vmax.f32 %v1244_v23, 0.0  ;;  %v1248_v16 = vadd.f32 %v1247_v27, %v3489_v45  ;;  %2605 = vst [vmem:[%s3979_s3 + $0x13c] sm:$0xff] %v2934_v29  ;;  %v1297_v36 = vadd.f32 %v1296_v33, %v3478_v26  ;;  %v1298_v37 = vpop.f32.mrb[62].mxu1 }
 0x157   :  { %v1951_v31 = vmax.f32 %v1246_v4, 0.0  ;;  %v1904_v38 = vmax.f32 %v1295_v32, 0.0  ;;  %v1299_v39 = vadd.f32 %v1298_v37, %v3489_v45  ;;  %v1300_v40 = vpop.f32.mrb[63].mxu1 }
 0x158   :  { %v2958_v34 = vpack.c.bf16 %v1903_v28, %v1902_v25  ;;  %v1952_v35 = vmax.f32 %v1248_v16, 0.0  ;;  %v1905_v42 = vmax.f32 %v1297_v36, 0.0  ;;  %v1301_v44 = vadd.f32 %v1300_v40, %v3489_v45 }
 0x159   :  { %v1953_v46 = vmax.f32 %v1299_v39, 0.0 }
 0x15a   :  { %2629 = vst [vmem:[%s3979_s3 + $0x1f8] sm:$0xff] %v2958_v34  ;;  %v2983_v41 = vpack.c.bf16 %v1952_v35, %v1951_v31  ;;  %v1337_v43 = vpop.f32.mrb[64].mxu0  ;;  %v2959_v49 = vpack.c.bf16 %v1905_v42, %v1904_v38  ;;  %v1954_v50 = vmax.f32 %v1301_v44, 0.0 }
 0x15b   :  { %v1338_v47 = vadd.f32 %v1337_v43, %v3472_v20  ;;  %v1339_v48 = vpop.f32.mrb[65].mxu0 }
 0x15c   :  { %2654 = vst [vmem:[%s3979_s3 + $0x2bc] sm:$0xff] %v2983_v41  ;;  %v1340_v51 = vadd.f32 %v1339_v48, %v3472_v20  ;;  %v1341_v52 = vpop.f32.mrb[66].mxu0  ;;  %2630 = vst [vmem:[%s3979_s3 + $0x200] sm:$0xff] %v2959_v49  ;;  %v2984_v56 = vpack.c.bf16 %v1954_v50, %v1953_v46  ;;  %v1390_v59 = vpop.f32.mrb[64].mxu1 }
 0x15d   :  { %v1808_v53 = vmax.f32 %v1338_v47, 0.0  ;;  %v1342_v54 = vadd.f32 %v1341_v52, %v3474_v22  ;;  %v1343_v55 = vpop.f32.mrb[67].mxu0  ;;  %v1391_v61 = vadd.f32 %v1390_v59, %v3472_v20  ;;  %v1392_v62 = vpop.f32.mrb[65].mxu1 }
 0x15e   :  { %v1809_v57 = vmax.f32 %v1340_v51, 0.0  ;;  %v1344_v58 = vadd.f32 %v1343_v55, %v3474_v22  ;;  %2655 = vst [vmem:[%s3979_s3 + $0x2c4] sm:$0xff] %v2984_v56  ;;  %v1393_v2 = vadd.f32 %v1392_v62, %v3472_v20  ;;  %v1394_v3 = vpop.f32.mrb[66].mxu1 }
 0x15f   :  { %v1857_v60 = vmax.f32 %v1342_v54, 0.0  ;;  %v1810_v5 = vmax.f32 %v1391_v61, 0.0  ;;  %v1395_v6 = vadd.f32 %v1394_v3, %v3474_v22  ;;  %v1396_v7 = vpop.f32.mrb[67].mxu1 }
 0x160   :  { %v2910_v63 = vpack.c.bf16 %v1809_v57, %v1808_v53  ;;  %v1858_v0 = vmax.f32 %v1344_v58, 0.0  ;;  %v1811_v9 = vmax.f32 %v1393_v2, 0.0  ;;  %v1397_v11 = vadd.f32 %v1396_v7, %v3474_v22 }
 0x161   :  { %v1859_v13 = vmax.f32 %v1395_v6, 0.0 }
 0x162   :  { %2580 = vst [vmem:[%s3979_s3 + $0x80] sm:$0xff] %v2910_v63  ;;  %v2935_v8 = vpack.c.bf16 %v1858_v0, %v1857_v60  ;;  %v1347_v10 = vpop.f32.mrb[68].mxu0  ;;  %v2911_v15 = vpack.c.bf16 %v1811_v9, %v1810_v5  ;;  %v1860_v18 = vmax.f32 %v1397_v11, 0.0 }
 0x163   :  { %v1348_v12 = vadd.f32 %v1347_v10, %v3478_v26  ;;  %v1349_v14 = vpop.f32.mrb[69].mxu0 }
 0x164   :  { %2606 = vst [vmem:[%s3979_s3 + $0x144] sm:$0xff] %v2935_v8  ;;  %v1350_v17 = vadd.f32 %v1349_v14, %v3478_v26  ;;  %v1351_v19 = vpop.f32.mrb[70].mxu0  ;;  %2581 = vst [vmem:[%s3979_s3 + $0x88] sm:$0xff] %v2911_v15  ;;  %v2936_v25 = vpack.c.bf16 %v1860_v18, %v1859_v13  ;;  %v1400_v27 = vpop.f32.mrb[68].mxu1 }
 0x165   :  { %v1906_v21 = vmax.f32 %v1348_v12, 0.0  ;;  %v1352_v23 = vadd.f32 %v1351_v19, %v3489_v45  ;;  %v1353_v1 = vpop.f32.mrb[71].mxu0  ;;  %v1401_v29 = vadd.f32 %v1400_v27, %v3478_v26  ;;  %v1402_v16 = vpop.f32.mrb[69].mxu1 }
 0x166   :  { %v1907_v24 = vmax.f32 %v1350_v17, 0.0  ;;  %v1354_v4 = vadd.f32 %v1353_v1, %v3489_v45  ;;  %2607 = vst [vmem:[%s3979_s3 + $0x14c] sm:$0xff] %v2936_v25  ;;  %v1403_v32 = vadd.f32 %v1402_v16, %v3478_v26  ;;  %v1404_v33 = vpop.f32.mrb[70].mxu1 }
 0x167   :  { %v1955_v28 = vmax.f32 %v1352_v23, 0.0  ;;  %v1908_v34 = vmax.f32 %v1401_v29, 0.0  ;;  %v1405_v35 = vadd.f32 %v1404_v33, %v3489_v45  ;;  %v1406_v36 = vpop.f32.mrb[71].mxu1 }
 0x168   :  { %v2960_v30 = vpack.c.bf16 %v1907_v24, %v1906_v21  ;;  %v1956_v31 = vmax.f32 %v1354_v4, 0.0  ;;  %v1909_v38 = vmax.f32 %v1403_v32, 0.0  ;;  %v1407_v40 = vadd.f32 %v1406_v36, %v3489_v45 }
 0x169   :  { %v1957_v41 = vmax.f32 %v1405_v35, 0.0 }
 0x16a   :  { %2631 = vst [vmem:[%s3979_s3 + $0x208] sm:$0xff] %v2960_v30  ;;  %v2985_v37 = vpack.c.bf16 %v1956_v31, %v1955_v28  ;;  %v1443_v39 = vpop.f32.mrb[72].mxu0  ;;  %v2961_v44 = vpack.c.bf16 %v1909_v38, %v1908_v34  ;;  %v1958_v46 = vmax.f32 %v1407_v40, 0.0 }
 0x16b   :  { %v1444_v42 = vadd.f32 %v1443_v39, %v3472_v20  ;;  %v1445_v43 = vpop.f32.mrb[73].mxu0 }
 0x16c   :  { %2656 = vst [vmem:[%s3979_s3 + $0x2cc] sm:$0xff] %v2985_v37  ;;  %v1446_v47 = vadd.f32 %v1445_v43, %v3472_v20  ;;  %v1447_v48 = vpop.f32.mrb[74].mxu0  ;;  %2632 = vst [vmem:[%s3979_s3 + $0x210] sm:$0xff] %v2961_v44  ;;  %v2986_v52 = vpack.c.bf16 %v1958_v46, %v1957_v41  ;;  %v1496_v55 = vpop.f32.mrb[72].mxu1 }
 0x16d   :  { %v1812_v49 = vmax.f32 %v1444_v42, 0.0  ;;  %v1448_v50 = vadd.f32 %v1447_v48, %v3474_v22  ;;  %v1449_v51 = vpop.f32.mrb[75].mxu0  ;;  %v1497_v57 = vadd.f32 %v1496_v55, %v3472_v20  ;;  %v1498_v58 = vpop.f32.mrb[73].mxu1 }
 0x16e   :  { %v1813_v53 = vmax.f32 %v1446_v47, 0.0  ;;  %v1450_v54 = vadd.f32 %v1449_v51, %v3474_v22  ;;  %2657 = vst [vmem:[%s3979_s3 + $0x2d4] sm:$0xff] %v2986_v52  ;;  %v1499_v61 = vadd.f32 %v1498_v58, %v3472_v20  ;;  %v1500_v62 = vpop.f32.mrb[74].mxu1 }
 0x16f   :  { %v1861_v56 = vmax.f32 %v1448_v50, 0.0  ;;  %v1814_v63 = vmax.f32 %v1497_v57, 0.0  ;;  %v1501_v0 = vadd.f32 %v1500_v62, %v3474_v22  ;;  %v1502_v2 = vpop.f32.mrb[75].mxu1 }
 0x170   :  { %v2912_v59 = vpack.c.bf16 %v1813_v53, %v1812_v49  ;;  %v1862_v60 = vmax.f32 %v1450_v54, 0.0  ;;  %v1815_v5 = vmax.f32 %v1499_v61, 0.0  ;;  %v1503_v7 = vadd.f32 %v1502_v2, %v3474_v22 }
 0x171   :  { %v1863_v9 = vmax.f32 %v1501_v0, 0.0 }
 0x172   :  { %2582 = vst [vmem:[%s3979_s3 + $0x90] sm:$0xff] %v2912_v59  ;;  %v2937_v3 = vpack.c.bf16 %v1862_v60, %v1861_v56  ;;  %v1453_v6 = vpop.f32.mrb[76].mxu0  ;;  %v2913_v11 = vpack.c.bf16 %v1815_v5, %v1814_v63  ;;  %v1864_v13 = vmax.f32 %v1503_v7, 0.0 }
 0x173   :  { %v1454_v8 = vadd.f32 %v1453_v6, %v3478_v26  ;;  %v1455_v10 = vpop.f32.mrb[77].mxu0 }
 0x174   :  { %2608 = vst [vmem:[%s3979_s3 + $0x154] sm:$0xff] %v2937_v3  ;;  %v1456_v12 = vadd.f32 %v1455_v10, %v3478_v26  ;;  %v1457_v14 = vpop.f32.mrb[78].mxu0  ;;  %2583 = vst [vmem:[%s3979_s3 + $0x98] sm:$0xff] %v2913_v11  ;;  %v2938_v21 = vpack.c.bf16 %v1864_v13, %v1863_v9  ;;  %v1506_v1 = vpop.f32.mrb[76].mxu1 }
 0x175   :  { %v1910_v15 = vmax.f32 %v1454_v8, 0.0  ;;  %v1458_v17 = vadd.f32 %v1457_v14, %v3489_v45  ;;  %v1459_v18 = vpop.f32.mrb[79].mxu0  ;;  %v1507_v25 = vadd.f32 %v1506_v1, %v3478_v26  ;;  %v1508_v4 = vpop.f32.mrb[77].mxu1 }
 0x176   :  { %v1911_v19 = vmax.f32 %v1456_v12, 0.0  ;;  %v1460_v23 = vadd.f32 %v1459_v18, %v3489_v45  ;;  %2609 = vst [vmem:[%s3979_s3 + $0x15c] sm:$0xff] %v2938_v21  ;;  %v1509_v29 = vadd.f32 %v1508_v4, %v3478_v26  ;;  %v1510_v16 = vpop.f32.mrb[78].mxu1 }
 0x177   :  { %v1959_v24 = vmax.f32 %v1458_v17, 0.0  ;;  %v1912_v30 = vmax.f32 %v1507_v25, 0.0  ;;  %v1511_v31 = vadd.f32 %v1510_v16, %v3489_v45  ;;  %v1512_v32 = vpop.f32.mrb[79].mxu1 }
 0x178   :  { %v2962_v27 = vpack.c.bf16 %v1911_v19, %v1910_v15  ;;  %v1960_v28 = vmax.f32 %v1460_v23, 0.0  ;;  %v1913_v34 = vmax.f32 %v1509_v29, 0.0  ;;  %v1513_v36 = vadd.f32 %v1512_v32, %v3489_v45 }
 0x179   :  { %v1961_v37 = vmax.f32 %v1511_v31, 0.0 }
 0x17a   :  { %2633 = vst [vmem:[%s3979_s3 + $0x218] sm:$0xff] %v2962_v27  ;;  %v2987_v33 = vpack.c.bf16 %v1960_v28, %v1959_v24  ;;  %v1549_v35 = vpop.f32.mrb[80].mxu0  ;;  %v2963_v40 = vpack.c.bf16 %v1913_v34, %v1912_v30  ;;  %v1962_v41 = vmax.f32 %v1513_v36, 0.0 }
 0x17b   :  { %v1550_v38 = vadd.f32 %v1549_v35, %v3472_v20  ;;  %v1551_v39 = vpop.f32.mrb[81].mxu0 }
 0x17c   :  { %2658 = vst [vmem:[%s3979_s3 + $0x2dc] sm:$0xff] %v2987_v33  ;;  %v1552_v42 = vadd.f32 %v1551_v39, %v3472_v20  ;;  %v1553_v43 = vpop.f32.mrb[82].mxu0  ;;  %2634 = vst [vmem:[%s3979_s3 + $0x220] sm:$0xff] %v2963_v40  ;;  %v2988_v48 = vpack.c.bf16 %v1962_v41, %v1961_v37  ;;  %v1602_v51 = vpop.f32.mrb[80].mxu1 }
 0x17d   :  { %v1816_v44 = vmax.f32 %v1550_v38, 0.0  ;;  %v1554_v46 = vadd.f32 %v1553_v43, %v3474_v22  ;;  %v1555_v47 = vpop.f32.mrb[83].mxu0  ;;  %v1603_v53 = vadd.f32 %v1602_v51, %v3472_v20  ;;  %v1604_v54 = vpop.f32.mrb[81].mxu1 }
 0x17e   :  { %v1817_v49 = vmax.f32 %v1552_v42, 0.0  ;;  %v1556_v50 = vadd.f32 %v1555_v47, %v3474_v22  ;;  %2659 = vst [vmem:[%s3979_s3 + $0x2e4] sm:$0xff] %v2988_v48  ;;  %v1605_v57 = vadd.f32 %v1604_v54, %v3472_v20  ;;  %v1606_v58 = vpop.f32.mrb[82].mxu1 }
 0x17f   :  { %v1865_v52 = vmax.f32 %v1554_v46, 0.0  ;;  %v1818_v59 = vmax.f32 %v1603_v53, 0.0  ;;  %v1607_v60 = vadd.f32 %v1606_v58, %v3474_v22  ;;  %v1608_v61 = vpop.f32.mrb[83].mxu1 }
 0x180   :  { %v2914_v55 = vpack.c.bf16 %v1817_v49, %v1816_v44  ;;  %v1866_v56 = vmax.f32 %v1556_v50, 0.0  ;;  %v1819_v63 = vmax.f32 %v1605_v57, 0.0  ;;  %v1609_v2 = vadd.f32 %v1608_v61, %v3474_v22 }
 0x181   :  { %v1867_v5 = vmax.f32 %v1607_v60, 0.0 }
 0x182   :  { %2584 = vst [vmem:[%s3979_s3 + $0xa0] sm:$0xff] %v2914_v55  ;;  %v2939_v62 = vpack.c.bf16 %v1866_v56, %v1865_v52  ;;  %v1559_v0 = vpop.f32.mrb[84].mxu0  ;;  %v2915_v7 = vpack.c.bf16 %v1819_v63, %v1818_v59  ;;  %v1868_v9 = vmax.f32 %v1609_v2, 0.0 }
 0x183   :  { %v1560_v3 = vadd.f32 %v1559_v0, %v3478_v26  ;;  %v1561_v6 = vpop.f32.mrb[85].mxu0 }
 0x184   :  { %2610 = vst [vmem:[%s3979_s3 + $0x164] sm:$0xff] %v2939_v62  ;;  %v1562_v8 = vadd.f32 %v1561_v6, %v3478_v26  ;;  %v1563_v10 = vpop.f32.mrb[86].mxu0  ;;  %2585 = vst [vmem:[%s3979_s3 + $0xa8] sm:$0xff] %v2915_v7  ;;  %v2940_v15 = vpack.c.bf16 %v1868_v9, %v1867_v5  ;;  %v1612_v18 = vpop.f32.mrb[84].mxu1 }
 0x185   :  { %v1914_v11 = vmax.f32 %v1560_v3, 0.0  ;;  %v1564_v12 = vadd.f32 %v1563_v10, %v3489_v45  ;;  %v1565_v13 = vpop.f32.mrb[87].mxu0  ;;  %v1613_v21 = vadd.f32 %v1612_v18, %v3478_v26  ;;  %v1614_v23 = vpop.f32.mrb[85].mxu1 }
 0x186   :  { %v1915_v14 = vmax.f32 %v1562_v8, 0.0  ;;  %v1566_v17 = vadd.f32 %v1565_v13, %v3489_v45  ;;  %2611 = vst [vmem:[%s3979_s3 + $0x16c] sm:$0xff] %v2940_v15  ;;  %v1615_v25 = vadd.f32 %v1614_v23, %v3478_v26  ;;  %v1616_v4 = vpop.f32.mrb[86].mxu1 }
 0x187   :  { %v1963_v19 = vmax.f32 %v1564_v12, 0.0  ;;  %v1916_v27 = vmax.f32 %v1613_v21, 0.0  ;;  %v1617_v28 = vadd.f32 %v1616_v4, %v3489_v45  ;;  %v1618_v29 = vpop.f32.mrb[87].mxu1 }
 0x188   :  { %v2964_v1 = vpack.c.bf16 %v1915_v14, %v1914_v11  ;;  %v1964_v24 = vmax.f32 %v1566_v17, 0.0  ;;  %v1917_v30 = vmax.f32 %v1615_v25, 0.0  ;;  %v1619_v32 = vadd.f32 %v1618_v29, %v3489_v45 }
 0x189   :  { %v1965_v33 = vmax.f32 %v1617_v28, 0.0 }
 0x18a   :  { %2635 = vst [vmem:[%s3979_s3 + $0x228] sm:$0xff] %v2964_v1  ;;  %v2989_v16 = vpack.c.bf16 %v1964_v24, %v1963_v19  ;;  %v1655_v31 = vpop.f32.mrb[88].mxu0  ;;  %v2965_v36 = vpack.c.bf16 %v1917_v30, %v1916_v27  ;;  %v1966_v37 = vmax.f32 %v1619_v32, 0.0 }
 0x18b   :  { %v1656_v34 = vadd.f32 %v1655_v31, %v3472_v20  ;;  %v1657_v35 = vpop.f32.mrb[89].mxu0 }
 0x18c   :  { %2660 = vst [vmem:[%s3979_s3 + $0x2ec] sm:$0xff] %v2989_v16  ;;  %v1658_v38 = vadd.f32 %v1657_v35, %v3472_v20  ;;  %v1659_v39 = vpop.f32.mrb[90].mxu0  ;;  %2636 = vst [vmem:[%s3979_s3 + $0x230] sm:$0xff] %v2965_v36  ;;  %v2990_v43 = vpack.c.bf16 %v1966_v37, %v1965_v33  ;;  %v1708_v47 = vpop.f32.mrb[88].mxu1 }
 0x18d   :  { %v1820_v40 = vmax.f32 %v1656_v34, 0.0  ;;  %v1660_v41 = vadd.f32 %v1659_v39, %v3474_v22  ;;  %v1661_v42 = vpop.f32.mrb[91].mxu0  ;;  %v1709_v49 = vadd.f32 %v1708_v47, %v3472_v20  ;;  %v1710_v50 = vpop.f32.mrb[89].mxu1 }
 0x18e   :  { %v1821_v44 = vmax.f32 %v1658_v38, 0.0  ;;  %v1662_v46 = vadd.f32 %v1661_v42, %v3474_v22  ;;  %2661 = vst [vmem:[%s3979_s3 + $0x2f4] sm:$0xff] %v2990_v43  ;;  %v1711_v53 = vadd.f32 %v1710_v50, %v3472_v20  ;;  %v1712_v54 = vpop.f32.mrb[90].mxu1 }
 0x18f   :  { %v1869_v48 = vmax.f32 %v1660_v41, 0.0  ;;  %v1822_v55 = vmax.f32 %v1709_v49, 0.0  ;;  %v1713_v56 = vadd.f32 %v1712_v54, %v3474_v22  ;;  %v1714_v57 = vpop.f32.mrb[91].mxu1 }
 0x190   :  { %v2916_v51 = vpack.c.bf16 %v1821_v44, %v1820_v40  ;;  %v1870_v52 = vmax.f32 %v1662_v46, 0.0  ;;  %v1823_v59 = vmax.f32 %v1711_v53, 0.0  ;;  %v1715_v61 = vadd.f32 %v1714_v57, %v3474_v22 }
 0x191   :  { %v1871_v63 = vmax.f32 %v1713_v56, 0.0 }
 0x192   :  { %2586 = vst [vmem:[%s3979_s3 + $0xb0] sm:$0xff] %v2916_v51  ;;  %v2941_v58 = vpack.c.bf16 %v1870_v52, %v1869_v48  ;;  %v1665_v60 = vpop.f32.mrb[92].mxu0  ;;  %v2917_v2 = vpack.c.bf16 %v1823_v59, %v1822_v55  ;;  %v1872_v5 = vmax.f32 %v1715_v61, 0.0 }
 0x193   :  { %v1666_v62 = vadd.f32 %v1665_v60, %v3478_v26  ;;  %v1667_v0 = vpop.f32.mrb[93].mxu0 }
 0x194   :  { %2612 = vst [vmem:[%s3979_s3 + $0x174] sm:$0xff] %v2941_v58  ;;  %v1668_v3 = vadd.f32 %v1667_v0, %v3478_v26  ;;  %v1669_v6 = vpop.f32.mrb[94].mxu0  ;;  %2587 = vst [vmem:[%s3979_s3 + $0xb8] sm:$0xff] %v2917_v2  ;;  %v2942_v11 = vpack.c.bf16 %v1872_v5, %v1871_v63  ;;  %v1718_v13 = vpop.f32.mrb[92].mxu1 }
 0x195   :  { %v1918_v7 = vmax.f32 %v1666_v62, 0.0  ;;  %v1670_v8 = vadd.f32 %v1669_v6, %v3489_v45  ;;  %v1671_v9 = vpop.f32.mrb[95].mxu0  ;;  %v1719_v15 = vadd.f32 %v1718_v13, %v3478_v26  ;;  %v1720_v17 = vpop.f32.mrb[93].mxu1 }
 0x196   :  { %v1919_v10 = vmax.f32 %v1668_v3, 0.0  ;;  %v1672_v12 = vadd.f32 %v1671_v9, %v3489_v45  ;;  %2613 = vst [vmem:[%s3979_s3 + $0x17c] sm:$0xff] %v2942_v11  ;;  %v1721_v21 = vadd.f32 %v1720_v17, %v3478_v26  ;;  %v1722_v23 = vpop.f32.mrb[94].mxu1 }
 0x197   :  { %v1967_v14 = vmax.f32 %v1670_v8, 0.0  ;;  %v1920_v1 = vmax.f32 %v1719_v15, 0.0  ;;  %v1723_v24 = vadd.f32 %v1722_v23, %v3489_v45  ;;  %v1724_v25 = vpop.f32.mrb[95].mxu1 }
 0x198   :  { %v2966_v18 = vpack.c.bf16 %v1919_v10, %v1918_v7  ;;  %v1968_v19 = vmax.f32 %v1672_v12, 0.0  ;;  %v1921_v27 = vmax.f32 %v1721_v21, 0.0  ;;  %v1725_v28 = vadd.f32 %v1724_v25, %v3489_v45 }
 0x199   :  { %v1969_v16 = vmax.f32 %v1723_v24, 0.0 }
 0x19a   :  { %2637 = vst [vmem:[%s3979_s3 + $0x238] sm:$0xff] %v2966_v18  ;;  %v2991_v4 = vpack.c.bf16 %v1968_v19, %v1967_v14  ;;  %v3001_v29 = vpop.f32.mrb[96].mxu0  ;;  %v2967_v32 = vpack.c.bf16 %v1921_v27, %v1920_v1  ;;  %v1970_v33 = vmax.f32 %v1725_v28, 0.0 }
 0x19b   :  { %v1770_v30 = vadd.f32 %v3001_v29, %v3478_v26  ;;  %v1761_v31 = vpop.f32.mrb[97].mxu0 }
 0x19c   :  { %2662 = vst [vmem:[%s3979_s3 + $0x2fc] sm:$0xff] %v2991_v4  ;;  %v1762_v34 = vadd.f32 %v1761_v31, %v3472_v20  ;;  %v3002_v35 = vpop.f32.mrb[98].mxu0  ;;  %2638 = vst [vmem:[%s3979_s3 + $0x240] sm:$0xff] %v2967_v32  ;;  %v2992_v39 = vpack.c.bf16 %v1970_v33, %v1969_v16 }
 0x19d   :  { %v1922_v36 = vmax.f32 %v1770_v30, 0.0  ;;  %v1773_v37 = vadd.f32 %v3002_v35, %v3489_v45  ;;  %v1764_v38 = vpop.f32.mrb[99].mxu0 }
 0x19e   :  { %v1824_v26 = vmax.f32 %v1762_v34, 0.0  ;;  %v1765_v40 = vadd.f32 %v1764_v38, %v3474_v22  ;;  %2663 = vst [vmem:[%s3979_s3 + $0x304] sm:$0xff] %v2992_v39 }
 0x19f   :  { %v2968_v41 = vpack.c.bf16 %v1922_v36, %v1922_v36  ;;  %v1971_v42 = vmax.f32 %v1773_v37, 0.0 }
 0x1a0   :  { %v2918_v20 = vpack.c.bf16 %v1824_v26, %v1824_v26  ;;  %v1873_v43 = vmax.f32 %v1765_v40, 0.0 }
 0x1a1   :  { %2639 = vst.msk [vmem:[%s3979_s3 + $0x248] sm:$0xf] %vm2588_vm2, %v2968_v41  ;;  %v2993_v45 = vpack.c.bf16 %v1971_v42, %v1971_v42 }
 0x1a2   :  { %2589 = vst.msk [vmem:[%s3979_s3 + $0xc0] sm:$0xf] %vm2588_vm2, %v2918_v20  ;;  %v2943_v44 = vpack.c.bf16 %v1873_v43, %v1873_v43 }
 0x1a3   :  { %2664 = vst.msk [vmem:[%s3979_s3 + $0x30c] sm:$0xf] %vm2588_vm2, %v2993_v45 }
 0x1a4   :  { %2614 = vst.msk [vmem:[%s3979_s3 + $0x184] sm:$0xf] %vm2588_vm2, %v2943_v44 }

// kernel: cnn_forward.5
= control target key start
LH: loop header
LB: loop body
LE: loop exit
PB: predicated region body
PF: predicated region fallthrough
CT: control target
= control target key end

     0   :  { %v3859_v1 = vmov 0   ;;  %vm1579_vm0 = vcmask 523264   ;;  %vm2857_vm1 = vcmask 1043456   ;;  %vm2858_vm2 = vcmask 719876   ;;  %s5092_s1 = inlined_call_operand.vmem [shape: bf16[320,1496], index: 1, kind: input, shape index: {}]   ;;  %s5093_s0 = inlined_call_operand.vmem [shape: bf16[64,320], index: 0, kind: input, shape index: {}]   ;;  %s5094_s2 = inlined_call_operand.vmem [shape: f32[64,1], index: 2, kind: input, shape index: {}]   ;;  %s5095_s3 = inlined_call_operand.vmem [shape: bf16[64,1496], index: 3, kind: output, shape index: {}]  }
   0x1   :  { %v3474_v0 = vld [vmem:[%s5092_s1 + $0x4] ss:$48 sps:$4 sm:$0xff]   ;;  %3472 = vset.pattern.permute.xlu0 %v3859_v1  ;;  %3473 = vset.pattern.permute.xlu1 %v3859_v1  ;;  %v3476_v2 = vld [vmem:[%s5092_s1 + $0xc] ss:$48 sps:$4 sm:$0xff]   ;;  %v3478_v3 = vld [vmem:[%s5092_s1] ss:$48 sps:$4 sm:$0xff]  }
   0x2   :  { %1592 = vmatprep.subr.bf16.mxu0 %v3474_v0  ;;  %v3479_v4 = vld [vmem:[%s5092_s1 + $0x8] ss:$48 sps:$4 sm:$0xff]   ;;  %1738 = vmatprep.subr.bf16.mxu1 %v3476_v2  ;;  %v3480_v5 = vld [vmem:[%s5092_s1 + $0x64] ss:$48 sps:$4 sm:$0xff]   ;;  %v3482_v6 = vld [vmem:[%s5092_s1 + $0x6c] ss:$48 sps:$4 sm:$0xff]  }
   0x3   :  { %1593 = vmatpush1.bf16.msra.mxu0 %v3478_v3  ;;  %1739 = vmatpush1.bf16.msra.mxu1 %v3479_v4  ;;  %v3484_v7 = vld [vmem:[%s5092_s1 + $0x60] ss:$48 sps:$4 sm:$0xff]   ;;  %v3485_v8 = vld [vmem:[%s5092_s1 + $0x68] ss:$48 sps:$4 sm:$0xff]   ;;  %v3486_v9 = vld [vmem:[%s5092_s1 + $0xc4] ss:$48 sps:$4 sm:$0xff]  }
   0x4   :  { %1594 = vmatprep.subr.bf16.mxu0 %v3480_v5  ;;  %1740 = vmatprep.subr.bf16.mxu1 %v3482_v6  ;;  %v3488_v10 = vld [vmem:[%s5092_s1 + $0xcc] ss:$48 sps:$4 sm:$0xff]   ;;  %v3490_v11 = vld [vmem:[%s5092_s1 + $0xc0] ss:$48 sps:$4 sm:$0xff]   ;;  %v3491_v12 = vld [vmem:[%s5092_s1 + $0xc8] ss:$48 sps:$4 sm:$0xff]  }
   0x5   :  { %v3492_v13 = vld [vmem:[%s5092_s1 + $0x124] ss:$48 sps:$4 sm:$0xff]   ;;  %v3494_v14 = vld [vmem:[%s5092_s1 + $0x12c] ss:$48 sps:$4 sm:$0xff]   ;;  %v3496_v15 = vld [vmem:[%s5092_s1 + $0x120] ss:$48 sps:$4 sm:$0xff]  }
   0x6   :  { %v3497_v16 = vld [vmem:[%s5092_s1 + $0x128] ss:$48 sps:$4 sm:$0xff]   ;;  %v3498_v17 = vld [vmem:[%s5092_s1 + $0x184] ss:$48 sps:$4 sm:$0xff]   ;;  %v3500_v18 = vld [vmem:[%s5092_s1 + $0x18c] ss:$48 sps:$4 sm:$0xff]  }
   0x7   :  { %1595 = vmatpush1.bf16.msra.mxu0 %v3484_v7  ;;  %1741 = vmatpush1.bf16.msra.mxu1 %v3485_v8  ;;  %v3502_v19 = vld [vmem:[%s5092_s1 + $0x180] ss:$48 sps:$4 sm:$0xff]   ;;  %v3503_v20 = vld [vmem:[%s5092_s1 + $0x188] ss:$48 sps:$4 sm:$0xff]   ;;  %v3504_v21 = vld [vmem:[%s5092_s1 + $0x1e4] ss:$48 sps:$4 sm:$0xff]  }
   0x8   :  { %1596 = vmatprep.subr.bf16.mxu0 %v3486_v9  ;;  %1742 = vmatprep.subr.bf16.mxu1 %v3488_v10  ;;  %v3506_v22 = vld [vmem:[%s5092_s1 + $0x1ec] ss:$48 sps:$4 sm:$0xff]   ;;  %v3508_v23 = vld [vmem:[%s5092_s1 + $0x1e0] ss:$48 sps:$4 sm:$0xff]   ;;  %v3509_v24 = vld [vmem:[%s5092_s1 + $0x1e8] ss:$48 sps:$4 sm:$0xff]  }
   0x9   :  { %v3510_v25 = vld [vmem:[%s5092_s1 + $0x244] ss:$48 sps:$4 sm:$0xff]   ;;  %v3512_v26 = vld [vmem:[%s5092_s1 + $0x24c] ss:$48 sps:$4 sm:$0xff]   ;;  %v3514_v27 = vld [vmem:[%s5092_s1 + $0x240] ss:$48 sps:$4 sm:$0xff]  }
   0xa   :  { %v3515_v28 = vld [vmem:[%s5092_s1 + $0x248] ss:$48 sps:$4 sm:$0xff]   ;;  %v3516_v29 = vld [vmem:[%s5092_s1 + $0x2a4] ss:$48 sps:$4 sm:$0xff]   ;;  %v3518_v30 = vld [vmem:[%s5092_s1 + $0x2ac] ss:$48 sps:$4 sm:$0xff]  }
   0xb   :  { %1597 = vmatpush1.bf16.msra.mxu0 %v3490_v11  ;;  %1743 = vmatpush1.bf16.msra.mxu1 %v3491_v12  ;;  %v3520_v31 = vld [vmem:[%s5092_s1 + $0x2a0] ss:$48 sps:$4 sm:$0xff]   ;;  %v3521_v32 = vld [vmem:[%s5092_s1 + $0x2a8] ss:$48 sps:$4 sm:$0xff]   ;;  %v3522_v33 = vld [vmem:[%s5092_s1 + $0x304] ss:$48 sps:$4 sm:$0xff]  }
   0xc   :  { %1598 = vmatprep.subr.bf16.mxu0 %v3492_v13  ;;  %1744 = vmatprep.subr.bf16.mxu1 %v3494_v14  ;;  %v3524_v34 = vld [vmem:[%s5092_s1 + $0x30c] ss:$48 sps:$4 sm:$0xff]   ;;  %v3526_v35 = vld [vmem:[%s5092_s1 + $0x300] ss:$48 sps:$4 sm:$0xff]   ;;  %v3527_v36 = vld [vmem:[%s5092_s1 + $0x308] ss:$48 sps:$4 sm:$0xff]  }
   0xd   :  { %v3528_v37 = vld [vmem:[%s5092_s1 + $0x364] ss:$48 sps:$4 sm:$0xff]   ;;  %v3530_v38 = vld [vmem:[%s5092_s1 + $0x36c] ss:$48 sps:$4 sm:$0xff]   ;;  %v3532_v39 = vld [vmem:[%s5092_s1 + $0x360] ss:$48 sps:$4 sm:$0xff]  }
   0xe   :  { %v3533_v40 = vld [vmem:[%s5092_s1 + $0x368] ss:$48 sps:$4 sm:$0xff]   ;;  %v3534_v41 = vld [vmem:[%s5092_s1 + $0x3c4] ss:$48 sps:$4 sm:$0xff]   ;;  %v3536_v42 = vld [vmem:[%s5092_s1 + $0x3cc] ss:$48 sps:$4 sm:$0xff]  }
   0xf   :  { %1599 = vmatpush1.bf16.msra.mxu0 %v3496_v15  ;;  %1745 = vmatpush1.bf16.msra.mxu1 %v3497_v16  ;;  %v3538_v43 = vld [vmem:[%s5092_s1 + $0x3c0] ss:$48 sps:$4 sm:$0xff]   ;;  %v3539_v44 = vld [vmem:[%s5092_s1 + $0x3c8] ss:$48 sps:$4 sm:$0xff]   ;;  %v3540_v45 = vld [vmem:[%s5092_s1 + $0x424] ss:$48 sps:$4 sm:$0xff]  }
  0x10   :  { %1600 = vmatprep.subr.bf16.mxu0 %v3498_v17  ;;  %1746 = vmatprep.subr.bf16.mxu1 %v3500_v18  ;;  %v3542_v46 = vld [vmem:[%s5092_s1 + $0x42c] ss:$48 sps:$4 sm:$0xff]   ;;  %v3544_v47 = vld [vmem:[%s5092_s1 + $0x420] ss:$48 sps:$4 sm:$0xff]   ;;  %v3545_v48 = vld [vmem:[%s5092_s1 + $0x428] ss:$48 sps:$4 sm:$0xff]  }
  0x11   :  { %v4029_v49 = vld [vmem:[%s5093_s0 + $0x4] ss:$12 sps:$4 sm:$0xff]   ;;  %v3548_v51 = vld [vmem:[%s5092_s1 + $0x48c] ss:$48 sps:$4 sm:$0xff]   ;;  %v3551_v53 = vld [vmem:[%s5092_s1 + $0x488] ss:$48 sps:$4 sm:$0xff]  }
  0x12   :  { %v3546_v50 = vld [vmem:[%s5092_s1 + $0x484] ss:$48 sps:$4 sm:$0xff]   ;;  %1624 = vmatprep.mubr.bf16.mxu0 %v4029_v49  ;;  %1770 = vmatprep.mubr.bf16.mxu1 %v4029_v49  ;;  %v3550_v52 = vld [vmem:[%s5092_s1 + $0x480] ss:$48 sps:$4 sm:$0xff]   ;;  %v3554_v55 = vld [vmem:[%s5092_s1 + $0x4ec] ss:$48 sps:$4 sm:$0xff]  }
  0x13   :  { %1601 = vmatpush1.bf16.msra.mxu0 %v3502_v19  ;;  %1747 = vmatpush1.bf16.msra.mxu1 %v3503_v20  ;;  %v3552_v54 = vld [vmem:[%s5092_s1 + $0x4e4] ss:$48 sps:$4 sm:$0xff]   ;;  %v3556_v56 = vld [vmem:[%s5092_s1 + $0x4e0] ss:$48 sps:$4 sm:$0xff]   ;;  %v3557_v57 = vld [vmem:[%s5092_s1 + $0x4e8] ss:$48 sps:$4 sm:$0xff]  }
  0x14   :  { %1602 = vmatprep.subr.bf16.mxu0 %v3504_v21  ;;  %1748 = vmatprep.subr.bf16.mxu1 %v3506_v22  ;;  %v3558_v58 = vld [vmem:[%s5092_s1 + $0x544] ss:$48 sps:$4 sm:$0xff]   ;;  %v3560_v59 = vld [vmem:[%s5092_s1 + $0x54c] ss:$48 sps:$4 sm:$0xff]   ;;  %v3562_v60 = vld [vmem:[%s5092_s1 + $0x540] ss:$48 sps:$4 sm:$0xff]  }
  0x15   :  { %v3563_v61 = vld [vmem:[%s5092_s1 + $0x548] ss:$48 sps:$4 sm:$0xff]   ;;  %v3564_v62 = vld [vmem:[%s5092_s1 + $0x5a4] ss:$48 sps:$4 sm:$0xff]   ;;  %v3566_v63 = vld [vmem:[%s5092_s1 + $0x5ac] ss:$48 sps:$4 sm:$0xff]  }
  0x16   :  { %v3568_v0 = vld [vmem:[%s5092_s1 + $0x5a0] ss:$48 sps:$4 sm:$0xff]   ;;  %v3569_v2 = vld [vmem:[%s5092_s1 + $0x5a8] ss:$48 sps:$4 sm:$0xff]   ;;  %v3575_v3 = vld [vmem:[%s5092_s1 + $0x604] ss:$48 sps:$4 sm:$0xff]  }
  0x17   :  { %1603 = vmatpush1.bf16.msra.mxu0 %v3508_v23  ;;  %1749 = vmatpush1.bf16.msra.mxu1 %v3509_v24  ;;  %v3578_v4 = vld [vmem:[%s5092_s1 + $0x60c] ss:$48 sps:$4 sm:$0xff]   ;;  %v3573_v6 = vld [vmem:[%s5092_s1 + $0x600] ss:$48 sps:$4 sm:$0xff]   ;;  %v3576_v7 = vld [vmem:[%s5092_s1 + $0x608] ss:$48 sps:$4 sm:$0xff]  }
  0x18   :  { %1604 = vmatprep.subr.bf16.mxu0 %v3510_v25  ;;  %1750 = vmatprep.subr.bf16.mxu1 %v3512_v26  ;;  %v4090_v5 = vld [vmem:[%s5093_s0] ss:$12 sps:$4 sm:$0xff]   ;;  %v4101_v8 = vld [vmem:[%s5093_s0 + $0x1c] ss:$12 sps:$4 sm:$0xff]   ;;  %v3584_v9 = vld [vmem:[%s5092_s1 + $0x664] ss:$48 sps:$4 sm:$0xff]  }
  0x19   :  { %v3587_v10 = vld [vmem:[%s5092_s1 + $0x66c] ss:$48 sps:$4 sm:$0xff]   ;;  %v3582_v11 = vld [vmem:[%s5092_s1 + $0x660] ss:$48 sps:$4 sm:$0xff]   ;;  %v3585_v12 = vld [vmem:[%s5092_s1 + $0x668] ss:$48 sps:$4 sm:$0xff]  }
  0x1a   :  { %v3593_v13 = vld [vmem:[%s5092_s1 + $0x6c4] ss:$48 sps:$4 sm:$0xff]   ;;  %v3596_v14 = vld [vmem:[%s5092_s1 + $0x6cc] ss:$48 sps:$4 sm:$0xff]   ;;  %v3591_v17 = vld [vmem:[%s5092_s1 + $0x6c0] ss:$48 sps:$4 sm:$0xff]  }
  0x1b   :  { %1605 = vmatpush1.bf16.msra.mxu0 %v3514_v27  ;;  %1751 = vmatpush1.bf16.msra.mxu1 %v3515_v28  ;;  %v4128_v15 = vld [vmem:[%s5093_s0 + $0x18] ss:$12 sps:$4 sm:$0xff]   ;;  %v4133_v16 = vld [vmem:[%s5093_s0 + $0x34] ss:$12 sps:$4 sm:$0xff]   ;;  %v3605_v20 = vld [vmem:[%s5092_s1 + $0x72c] ss:$48 sps:$4 sm:$0xff]  }
  0x1c   :  { %1606 = vmatprep.subr.bf16.mxu0 %v3516_v29  ;;  %1752 = vmatprep.subr.bf16.mxu1 %v3518_v30  ;;  %v3594_v18 = vld [vmem:[%s5092_s1 + $0x6c8] ss:$48 sps:$4 sm:$0xff]   ;;  %v3602_v19 = vld [vmem:[%s5092_s1 + $0x724] ss:$48 sps:$4 sm:$0xff]   ;;  %v3600_v21 = vld [vmem:[%s5092_s1 + $0x720] ss:$48 sps:$4 sm:$0xff]  }
  0x1d   :  { %v3603_v22 = vld [vmem:[%s5092_s1 + $0x728] ss:$48 sps:$4 sm:$0xff]   ;;  %v3608_v23 = vld [vmem:[%s5092_s1 + $0x14] ss:$48 sps:$4 sm:$0xff]   ;;  %v3611_v24 = vld [vmem:[%s5092_s1 + $0x1c] ss:$48 sps:$4 sm:$0xff]  }
  0x1e   :  { %v4166_v25 = vld [vmem:[%s5093_s0 + $0x30] ss:$12 sps:$4 sm:$0xff]   ;;  %v4171_v26 = vld [vmem:[%s5093_s0 + $0x4c] ss:$12 sps:$4 sm:$0xff]   ;;  %v4180_v27 = vld [vmem:[%s5093_s0 + $0x48] ss:$12 sps:$4 sm:$0xff]  }
  0x1f   :  { %1607 = vmatpush1.bf16.msra.mxu0 %v3520_v31  ;;  %1753 = vmatpush1.bf16.msra.mxu1 %v3521_v32  ;;  %v3606_v28 = vld [vmem:[%s5092_s1 + $0x10] ss:$48 sps:$4 sm:$0xff]   ;;  %v3609_v29 = vld [vmem:[%s5092_s1 + $0x18] ss:$48 sps:$4 sm:$0xff]   ;;  %v3615_v31 = vld [vmem:[%s5092_s1 + $0x74] ss:$48 sps:$4 sm:$0xff]  }
  0x20   :  { %1608 = vmatprep.subr.bf16.mxu0 %v3522_v33  ;;  %1754 = vmatprep.subr.bf16.mxu1 %v3524_v34  ;;  %v4195_v30 = vld [vmem:[%s5093_s0 + $0x8] ss:$12 sps:$4 sm:$0xff]   ;;  %v3618_v32 = vld [vmem:[%s5092_s1 + $0x7c] ss:$48 sps:$4 sm:$0xff]   ;;  %v3613_v33 = vld [vmem:[%s5092_s1 + $0x70] ss:$48 sps:$4 sm:$0xff]  }
  0x21   :  { %v3616_v34 = vld [vmem:[%s5092_s1 + $0x78] ss:$48 sps:$4 sm:$0xff]   ;;  %vm5000_vm3 = vmor %vm2858_vm2, %vm2857_vm1 }
  0x23   :  { %1609 = vmatpush1.bf16.msra.mxu0 %v3526_v35  ;;  %1755 = vmatpush1.bf16.msra.mxu1 %v3527_v36  ;;  %v3621_v35 = vld [vmem:[%s5092_s1 + $0xd4] ss:$48 sps:$4 sm:$0xff]   ;;  %v3624_v36 = vld [vmem:[%s5092_s1 + $0xdc] ss:$48 sps:$4 sm:$0xff]  }
  0x24   :  { %1610 = vmatprep.subr.bf16.mxu0 %v3528_v37  ;;  %1756 = vmatprep.subr.bf16.mxu1 %v3530_v38  ;;  %v3619_v37 = vld [vmem:[%s5092_s1 + $0xd0] ss:$48 sps:$4 sm:$0xff]   ;;  %v3622_v38 = vld [vmem:[%s5092_s1 + $0xd8] ss:$48 sps:$4 sm:$0xff]  }
  0x27   :  { %1611 = vmatpush1.bf16.msra.mxu0 %v3532_v39  ;;  %1757 = vmatpush1.bf16.msra.mxu1 %v3533_v40  ;;  %v4230_v39 = vld [vmem:[%s5093_s0 + $0x20] ss:$12 sps:$4 sm:$0xff]   ;;  %v3628_v40 = vld [vmem:[%s5092_s1 + $0x134] ss:$48 sps:$4 sm:$0xff]  }
  0x28   :  { %1612 = vmatprep.subr.bf16.mxu0 %v3534_v41  ;;  %1758 = vmatprep.subr.bf16.mxu1 %v3536_v42  ;;  %v3631_v41 = vld [vmem:[%s5092_s1 + $0x13c] ss:$48 sps:$4 sm:$0xff]   ;;  %v3626_v42 = vld [vmem:[%s5092_s1 + $0x130] ss:$48 sps:$4 sm:$0xff]  }
  0x2b   :  { %1613 = vmatpush1.bf16.msra.mxu0 %v3538_v43  ;;  %1759 = vmatpush1.bf16.msra.mxu1 %v3539_v44  ;;  %v3629_v43 = vld [vmem:[%s5092_s1 + $0x138] ss:$48 sps:$4 sm:$0xff]   ;;  %v3634_v44 = vld [vmem:[%s5092_s1 + $0x194] ss:$48 sps:$4 sm:$0xff]  }
  0x2c   :  { %1614 = vmatprep.subr.bf16.mxu0 %v3540_v45  ;;  %1760 = vmatprep.subr.bf16.mxu1 %v3542_v46  ;;  %v3637_v45 = vld [vmem:[%s5092_s1 + $0x19c] ss:$48 sps:$4 sm:$0xff]   ;;  %v3632_v46 = vld [vmem:[%s5092_s1 + $0x190] ss:$48 sps:$4 sm:$0xff]  }
  0x2f   :  { %1615 = vmatpush1.bf16.msra.mxu0 %v3544_v47  ;;  %1761 = vmatpush1.bf16.msra.mxu1 %v3545_v48  ;;  %v4262_v47 = vld [vmem:[%s5093_s0 + $0x38] ss:$12 sps:$4 sm:$0xff]  }
  0x30   :  { %1616 = vmatprep.subr.bf16.mxu0 %v3546_v50  ;;  %1762 = vmatprep.subr.bf16.mxu1 %v3548_v51  ;;  %v3635_v48 = vld [vmem:[%s5092_s1 + $0x198] ss:$48 sps:$4 sm:$0xff]   ;;  %v3641_v50 = vld [vmem:[%s5092_s1 + $0x1f4] ss:$48 sps:$4 sm:$0xff]   ;;  %v3644_v51 = vld [vmem:[%s5092_s1 + $0x1fc] ss:$48 sps:$4 sm:$0xff]  }
  0x33   :  { %1617 = vmatpush1.bf16.msra.mxu0 %v3550_v52  ;;  %1763 = vmatpush1.bf16.msra.mxu1 %v3551_v53  ;;  %v271_v52 = vld [vmem:[%s5094_s2] sm:$0xff] }
  0x34   :  { %1618 = vmatprep.subr.bf16.mxu0 %v3552_v54  ;;  %1764 = vmatprep.subr.bf16.mxu1 %v3554_v55  ;;  %v3639_v53 = vld [vmem:[%s5092_s1 + $0x1f0] ss:$48 sps:$4 sm:$0xff]   ;;  %v3642_v54 = vld [vmem:[%s5092_s1 + $0x1f8] ss:$48 sps:$4 sm:$0xff]   ;;  %v3647_v55 = vld [vmem:[%s5092_s1 + $0x254] ss:$48 sps:$4 sm:$0xff]  }
  0x35   :  { %281 = vperm.xlu0 %3472, %v271_v52   ;;  %v3706_v52 = vld [vmem:[%s5092_s1 + $0x610] ss:$48 sps:$4 sm:$0xff]  }
  0x37   :  { %1619 = vmatpush1.bf16.msra.mxu0 %v3556_v56  ;;  %1765 = vmatpush1.bf16.msra.mxu1 %v3557_v57  ;;  %v272_v56 = vld [vmem:[%s5094_s2 + $0x8] sm:$0xff]  ;;  %v273_v57 = vld [vmem:[%s5094_s2 + $0x10] sm:$0xff] }
  0x38   :  { %1620 = vmatprep.subr.bf16.mxu0 %v3558_v58  ;;  %1766 = vmatprep.subr.bf16.mxu1 %v3560_v59  ;;  %v3650_v58 = vld [vmem:[%s5092_s1 + $0x25c] ss:$48 sps:$4 sm:$0xff]   ;;  %v3645_v59 = vld [vmem:[%s5092_s1 + $0x250] ss:$48 sps:$4 sm:$0xff]  }
  0x39   :  { %286 = vperm.xlu0 %3472, %v272_v56   ;;  %291 = vperm.xlu1 %3473, %v273_v57   ;;  %v3712_v56 = vld [vmem:[%s5092_s1 + $0x670] ss:$48 sps:$4 sm:$0xff]   ;;  %v3715_v57 = vld [vmem:[%s5092_s1 + $0x678] ss:$48 sps:$4 sm:$0xff]  }
  0x3b   :  { %1621 = vmatpush1.bf16.msra.mxu0 %v3562_v60  ;;  %1767 = vmatpush1.bf16.msra.mxu1 %v3563_v61  ;;  %v3648_v60 = vld [vmem:[%s5092_s1 + $0x258] ss:$48 sps:$4 sm:$0xff]   ;;  %v4309_v61 = vld [vmem:[%s5093_s0 + $0x50] ss:$12 sps:$4 sm:$0xff]  }
  0x3c   :  { %1622 = vmatprep.subr.bf16.mxu0 %v3564_v62  ;;  %1768 = vmatprep.subr.bf16.mxu1 %v3566_v63  ;;  %v3654_v62 = vld [vmem:[%s5092_s1 + $0x2b4] ss:$48 sps:$4 sm:$0xff]   ;;  %v3657_v63 = vld [vmem:[%s5092_s1 + $0x2bc] ss:$48 sps:$4 sm:$0xff]  }
  0x3f   :  { %1623 = vmatpush1.bf16.msra.mxu0 %v3568_v0  ;;  %1769 = vmatpush1.bf16.msra.mxu1 %v3569_v2  ;;  %v3652_v0 = vld [vmem:[%s5092_s1 + $0x2b0] ss:$48 sps:$4 sm:$0xff]   ;;  %v3655_v2 = vld [vmem:[%s5092_s1 + $0x2b8] ss:$48 sps:$4 sm:$0xff]  }
  0x40   :  { %1665 = vmatprep.subr.bf16.mxu0 %v3575_v3  ;;  %1811 = vmatprep.subr.bf16.mxu1 %v3578_v4  ;;  %v274_v3 = vld [vmem:[%s5094_s2 + $0x18] sm:$0xff]  ;;  %v275_v4 = vld [vmem:[%s5094_s2 + $0x20] sm:$0xff] }
  0x41   :  { %296 = vperm.xlu1 %3473, %v274_v3   ;;  %301 = vperm.xlu0 %3472, %v275_v4   ;;  %v3736_v3 = vld [vmem:[%s5092_s1 + $0x80] ss:$48 sps:$4 sm:$0xff]   ;;  %v3739_v4 = vld [vmem:[%s5092_s1 + $0x88] ss:$48 sps:$4 sm:$0xff]  }
  0x42   :  { %1625 = vmatmul.mubr.bf16.vlgmr.msra.gmra.mrb[0].mxu0 %v4090_v5  ;;  %1771 = vmatmul.mubr.bf16.vlgmr.msra.gmra.mrb[0].mxu1 %v4090_v5 }
  0x43   :  { %1666 = vmatpush1.bf16.msra.mxu0 %v3573_v6  ;;  %1812 = vmatpush1.bf16.msra.mxu1 %v3576_v7  ;;  %v3660_v6 = vld [vmem:[%s5092_s1 + $0x314] ss:$48 sps:$4 sm:$0xff]   ;;  %v3663_v7 = vld [vmem:[%s5092_s1 + $0x31c] ss:$48 sps:$4 sm:$0xff]  }
  0x44   :  { %1634 = vmatprep.mubr.bf16.mxu0 %v4101_v8  ;;  %1780 = vmatprep.mubr.bf16.mxu1 %v4101_v8 }
  0x45   :  { %1667 = vmatprep.subr.bf16.mxu0 %v3584_v9  ;;  %1813 = vmatprep.subr.bf16.mxu1 %v3587_v10  ;;  %v3658_v9 = vld [vmem:[%s5092_s1 + $0x310] ss:$48 sps:$4 sm:$0xff]   ;;  %v3661_v10 = vld [vmem:[%s5092_s1 + $0x318] ss:$48 sps:$4 sm:$0xff]  }
  0x47   :  { %1668 = vmatpush1.bf16.msra.mxu0 %v3582_v11  ;;  %1814 = vmatpush1.bf16.msra.mxu1 %v3585_v12  ;;  %v3666_v11 = vld [vmem:[%s5092_s1 + $0x374] ss:$48 sps:$4 sm:$0xff]   ;;  %v276_v12 = vld [vmem:[%s5094_s2 + $0x28] sm:$0xff] }
  0x48   :  { %1669 = vmatprep.subr.bf16.mxu0 %v3593_v13  ;;  %1815 = vmatprep.subr.bf16.mxu1 %v3596_v14  ;;  %v3669_v13 = vld [vmem:[%s5092_s1 + $0x37c] ss:$48 sps:$4 sm:$0xff]   ;;  %v3664_v14 = vld [vmem:[%s5092_s1 + $0x370] ss:$48 sps:$4 sm:$0xff]  }
  0x49   :  { %306 = vperm.xlu1 %3473, %v276_v12   ;;  %v3753_v12 = vld [vmem:[%s5092_s1 + $0x14c] ss:$48 sps:$4 sm:$0xff]  }
  0x4a   :  { %1635 = vmatmul.mubr.bf16.gmra.mrb[4].mxu0 %v4128_v15  ;;  %1781 = vmatmul.mubr.bf16.gmra.mrb[4].mxu1 %v4128_v15 }
  0x4b   :  { %1644 = vmatprep.mubr.bf16.mxu0 %v4133_v16  ;;  %1790 = vmatprep.mubr.bf16.mxu1 %v4133_v16 }
  0x4c   :  { %1670 = vmatpush1.bf16.msra.mxu0 %v3591_v17  ;;  %1816 = vmatpush1.bf16.msra.mxu1 %v3594_v18  ;;  %v3667_v17 = vld [vmem:[%s5092_s1 + $0x378] ss:$48 sps:$4 sm:$0xff]   ;;  %v3672_v18 = vld [vmem:[%s5092_s1 + $0x3d4] ss:$48 sps:$4 sm:$0xff]  }
  0x4d   :  { %1671 = vmatprep.subr.bf16.mxu0 %v3602_v19  ;;  %1817 = vmatprep.subr.bf16.mxu1 %v3605_v20  ;;  %v278_v19 = vld [vmem:[%s5094_s2 + $0x38] sm:$0xff] }
  0x4e   :  { %v3675_v20 = vld [vmem:[%s5092_s1 + $0x3dc] ss:$48 sps:$4 sm:$0xff]   ;;  %316 = vperm.xlu1 %3473, %v278_v19   ;;  %v3757_v19 = vld [vmem:[%s5092_s1 + $0x1a8] ss:$48 sps:$4 sm:$0xff]  }
  0x50   :  { %1672 = vmatpush1.bf16.msra.mxu0 %v3600_v21  ;;  %1818 = vmatpush1.bf16.msra.mxu1 %v3603_v22  ;;  %v3670_v21 = vld [vmem:[%s5092_s1 + $0x3d0] ss:$48 sps:$4 sm:$0xff]   ;;  %v3673_v22 = vld [vmem:[%s5092_s1 + $0x3d8] ss:$48 sps:$4 sm:$0xff]  }
  0x51   :  { %1884 = vmatprep.subr.bf16.mxu0 %v3608_v23  ;;  %2030 = vmatprep.subr.bf16.mxu1 %v3611_v24  ;;  %v3678_v23 = vld [vmem:[%s5092_s1 + $0x434] ss:$48 sps:$4 sm:$0xff]   ;;  %v3681_v24 = vld [vmem:[%s5092_s1 + $0x43c] ss:$48 sps:$4 sm:$0xff]  }
  0x52   :  { %1645 = vmatmul.mubr.bf16.gmra.mrb[8].mxu0 %v4166_v25  ;;  %1791 = vmatmul.mubr.bf16.gmra.mrb[8].mxu1 %v4166_v25 }
  0x53   :  { %1654 = vmatprep.mubr.bf16.mxu0 %v4171_v26  ;;  %1800 = vmatprep.mubr.bf16.mxu1 %v4171_v26 }
  0x5a   :  { %1655 = vmatmul.mubr.bf16.gmra.mrb[12].mxu0 %v4180_v27  ;;  %1801 = vmatmul.mubr.bf16.gmra.mrb[12].mxu1 %v4180_v27 }
  0x5b   :  { %1697 = vmatprep.mubr.bf16.mxu0 %v3859_v1  ;;  %1843 = vmatprep.mubr.bf16.mxu1 %v3859_v1 }
  0x62   :  { %3159 = vmatmul.mubr.msk.bf16.vlgmr.msra.gmra.mrb[0].mxu0 %vm1579_vm0, %v4195_v30  ;;  %3163 = vmatmul.mubr.msk.bf16.vlgmr.msra.gmra.mrb[0].mxu1 %vm1579_vm0, %v4195_v30 }
  0x63   :  { %1885 = vmatpush1.bf16.msra.mxu0 %v3606_v28  ;;  %2031 = vmatpush1.bf16.msra.mxu1 %v3609_v29  ;;  %v3676_v28 = vld [vmem:[%s5092_s1 + $0x430] ss:$48 sps:$4 sm:$0xff]   ;;  %v3679_v29 = vld [vmem:[%s5092_s1 + $0x438] ss:$48 sps:$4 sm:$0xff]  }
  0x64   :  { %1886 = vmatprep.subr.bf16.mxu0 %v3615_v31  ;;  %2032 = vmatprep.subr.bf16.mxu1 %v3618_v32  ;;  %v3684_v31 = vld [vmem:[%s5092_s1 + $0x494] ss:$48 sps:$4 sm:$0xff]   ;;  %v3687_v32 = vld [vmem:[%s5092_s1 + $0x49c] ss:$48 sps:$4 sm:$0xff]  }
  0x65   :  { %1707 = vmatprep.mubr.bf16.mxu0 %v3859_v1  ;;  %1853 = vmatprep.mubr.bf16.mxu1 %v3859_v1 }
  0x67   :  { %1887 = vmatpush1.bf16.msra.mxu0 %v3613_v33  ;;  %2033 = vmatpush1.bf16.msra.mxu1 %v3616_v34  ;;  %v3682_v33 = vld [vmem:[%s5092_s1 + $0x490] ss:$48 sps:$4 sm:$0xff]   ;;  %v3685_v34 = vld [vmem:[%s5092_s1 + $0x498] ss:$48 sps:$4 sm:$0xff]  }
  0x68   :  { %1888 = vmatprep.subr.bf16.mxu0 %v3621_v35  ;;  %2034 = vmatprep.subr.bf16.mxu1 %v3624_v36  ;;  %v3690_v35 = vld [vmem:[%s5092_s1 + $0x4f4] ss:$48 sps:$4 sm:$0xff]   ;;  %v3693_v36 = vld [vmem:[%s5092_s1 + $0x4fc] ss:$48 sps:$4 sm:$0xff]  }
  0x6a   :  { %3160 = vmatmul.mubr.msk.bf16.gmra.mrb[4].mxu0 %vm1579_vm0, %v4230_v39  ;;  %3164 = vmatmul.mubr.msk.bf16.gmra.mrb[4].mxu1 %vm1579_vm0, %v4230_v39 }
  0x6b   :  { %1889 = vmatpush1.bf16.msra.mxu0 %v3619_v37  ;;  %2035 = vmatpush1.bf16.msra.mxu1 %v3622_v38  ;;  %v3688_v37 = vld [vmem:[%s5092_s1 + $0x4f0] ss:$48 sps:$4 sm:$0xff]   ;;  %v3691_v38 = vld [vmem:[%s5092_s1 + $0x4f8] ss:$48 sps:$4 sm:$0xff]  }
  0x6c   :  { %1890 = vmatprep.subr.bf16.mxu0 %v3628_v40  ;;  %2036 = vmatprep.subr.bf16.mxu1 %v3631_v41  ;;  %v3696_v40 = vld [vmem:[%s5092_s1 + $0x554] ss:$48 sps:$4 sm:$0xff]   ;;  %v3699_v41 = vld [vmem:[%s5092_s1 + $0x55c] ss:$48 sps:$4 sm:$0xff]  }
  0x6d   :  { %1717 = vmatprep.mubr.bf16.mxu0 %v3859_v1  ;;  %1863 = vmatprep.mubr.bf16.mxu1 %v3859_v1 }
  0x6f   :  { %1891 = vmatpush1.bf16.msra.mxu0 %v3626_v42  ;;  %2037 = vmatpush1.bf16.msra.mxu1 %v3629_v43  ;;  %v3694_v42 = vld [vmem:[%s5092_s1 + $0x550] ss:$48 sps:$4 sm:$0xff]   ;;  %v3697_v43 = vld [vmem:[%s5092_s1 + $0x558] ss:$48 sps:$4 sm:$0xff]  }
  0x70   :  { %1892 = vmatprep.subr.bf16.mxu0 %v3634_v44  ;;  %2038 = vmatprep.subr.bf16.mxu1 %v3637_v45  ;;  %v3702_v44 = vld [vmem:[%s5092_s1 + $0x5b4] ss:$48 sps:$4 sm:$0xff]   ;;  %v3705_v45 = vld [vmem:[%s5092_s1 + $0x5bc] ss:$48 sps:$4 sm:$0xff]  }
  0x72   :  { %3161 = vmatmul.mubr.msk.bf16.gmra.mrb[8].mxu0 %vm1579_vm0, %v4262_v47  ;;  %3165 = vmatmul.mubr.msk.bf16.gmra.mrb[8].mxu1 %vm1579_vm0, %v4262_v47 }
  0x73   :  { %1893 = vmatpush1.bf16.msra.mxu0 %v3632_v46  ;;  %2039 = vmatpush1.bf16.msra.mxu1 %v3635_v48  ;;  %v3700_v46 = vld [vmem:[%s5092_s1 + $0x5b0] ss:$48 sps:$4 sm:$0xff]   ;;  %v3703_v48 = vld [vmem:[%s5092_s1 + $0x5b8] ss:$48 sps:$4 sm:$0xff]  }
  0x74   :  { %1894 = vmatprep.subr.bf16.mxu0 %v3641_v50  ;;  %2040 = vmatprep.subr.bf16.mxu1 %v3644_v51  ;;  %v3708_v50 = vld [vmem:[%s5092_s1 + $0x614] ss:$48 sps:$4 sm:$0xff]   ;;  %v3711_v51 = vld [vmem:[%s5092_s1 + $0x61c] ss:$48 sps:$4 sm:$0xff]  }
  0x75   :  { %1727 = vmatprep.mubr.bf16.mxu0 %v3859_v1  ;;  %1873 = vmatprep.mubr.bf16.mxu1 %v3859_v1 }
  0x77   :  { %1895 = vmatpush1.bf16.msra.mxu0 %v3639_v53  ;;  %2041 = vmatpush1.bf16.msra.mxu1 %v3642_v54  ;;  %v3709_v53 = vld [vmem:[%s5092_s1 + $0x618] ss:$48 sps:$4 sm:$0xff]   ;;  %v3714_v54 = vld [vmem:[%s5092_s1 + $0x674] ss:$48 sps:$4 sm:$0xff]  }
  0x78   :  { %1896 = vmatprep.subr.bf16.mxu0 %v3647_v55  ;;  %2042 = vmatprep.subr.bf16.mxu1 %v3650_v58  ;;  %v3717_v55 = vld [vmem:[%s5092_s1 + $0x67c] ss:$48 sps:$4 sm:$0xff]   ;;  %v3720_v58 = vld [vmem:[%s5092_s1 + $0x6d4] ss:$48 sps:$4 sm:$0xff]  }
  0x7a   :  { %3162 = vmatmul.mubr.msk.bf16.gmra.mrb[12].mxu0 %vm1579_vm0, %v4309_v61  ;;  %3166 = vmatmul.mubr.msk.bf16.gmra.mrb[12].mxu1 %vm1579_vm0, %v4309_v61 }
  0x7b   :  { %1897 = vmatpush1.bf16.msra.mxu0 %v3645_v59  ;;  %2043 = vmatpush1.bf16.msra.mxu1 %v3648_v60  ;;  %v3718_v59 = vld [vmem:[%s5092_s1 + $0x6d0] ss:$48 sps:$4 sm:$0xff]   ;;  %v3721_v60 = vld [vmem:[%s5092_s1 + $0x6d8] ss:$48 sps:$4 sm:$0xff]  }
  0x7c   :  { %1898 = vmatprep.subr.bf16.mxu0 %v3654_v62  ;;  %2044 = vmatprep.subr.bf16.mxu1 %v3657_v63  ;;  %v3729_v62 = vld [vmem:[%s5092_s1 + $0x73c] ss:$48 sps:$4 sm:$0xff]   ;;  %v3724_v63 = vld [vmem:[%s5092_s1 + $0x730] ss:$48 sps:$4 sm:$0xff]  }
  0x7d   :  { %1916 = vmatprep.mubr.bf16.mxu0 %v4029_v49  ;;  %2062 = vmatprep.mubr.bf16.mxu1 %v4029_v49  ;;  %v277_v49 = vld [vmem:[%s5094_s2 + $0x30] sm:$0xff] }
  0x7e   :  { %311 = vperm.xlu0 %3472, %v277_v49   ;;  %v3748_v49 = vld [vmem:[%s5092_s1 + $0x140] ss:$48 sps:$4 sm:$0xff]  }
  0x7f   :  { %1899 = vmatpush1.bf16.msra.mxu0 %v3652_v0  ;;  %2045 = vmatpush1.bf16.msra.mxu1 %v3655_v2  ;;  %v3727_v0 = vld [vmem:[%s5092_s1 + $0x738] ss:$48 sps:$4 sm:$0xff]   ;;  %v3730_v2 = vld [vmem:[%s5092_s1 + $0x20] ss:$48 sps:$4 sm:$0xff]  }
  0x80   :  { %1900 = vmatprep.subr.bf16.mxu0 %v3660_v6  ;;  %2046 = vmatprep.subr.bf16.mxu1 %v3663_v7  ;;  %v3744_v6 = vld [vmem:[%s5092_s1 + $0xe4] ss:$48 sps:$4 sm:$0xff]   ;;  %v3747_v7 = vld [vmem:[%s5092_s1 + $0xec] ss:$48 sps:$4 sm:$0xff]  }
  0x83   :  { %1901 = vmatpush1.bf16.msra.mxu0 %v3658_v9  ;;  %2047 = vmatpush1.bf16.msra.mxu1 %v3661_v10  ;;  %v3742_v9 = vld [vmem:[%s5092_s1 + $0xe0] ss:$48 sps:$4 sm:$0xff]   ;;  %v3745_v10 = vld [vmem:[%s5092_s1 + $0xe8] ss:$48 sps:$4 sm:$0xff]  }
  0x84   :  { %1902 = vmatprep.subr.bf16.mxu0 %v3666_v11  ;;  %2048 = vmatprep.subr.bf16.mxu1 %v3669_v13  ;;  %v3750_v11 = vld [vmem:[%s5092_s1 + $0x144] ss:$48 sps:$4 sm:$0xff]   ;;  %v3751_v13 = vld [vmem:[%s5092_s1 + $0x148] ss:$48 sps:$4 sm:$0xff]  }
  0x87   :  { %1903 = vmatpush1.bf16.msra.mxu0 %v3664_v14  ;;  %2049 = vmatpush1.bf16.msra.mxu1 %v3667_v17  ;;  %v3756_v14 = vld [vmem:[%s5092_s1 + $0x1a4] ss:$48 sps:$4 sm:$0xff]   ;;  %v3759_v17 = vld [vmem:[%s5092_s1 + $0x1ac] ss:$48 sps:$4 sm:$0xff]  }
  0x88   :  { %1904 = vmatprep.subr.bf16.mxu0 %v3672_v18  ;;  %2050 = vmatprep.subr.bf16.mxu1 %v3675_v20  ;;  %v3754_v18 = vld [vmem:[%s5092_s1 + $0x1a0] ss:$48 sps:$4 sm:$0xff]   ;;  %v3762_v20 = vld [vmem:[%s5092_s1 + $0x204] ss:$48 sps:$4 sm:$0xff]  }
  0x8b   :  { %1905 = vmatpush1.bf16.msra.mxu0 %v3670_v21  ;;  %2051 = vmatpush1.bf16.msra.mxu1 %v3673_v22  ;;  %v3765_v21 = vld [vmem:[%s5092_s1 + $0x20c] ss:$48 sps:$4 sm:$0xff]   ;;  %v3760_v22 = vld [vmem:[%s5092_s1 + $0x200] ss:$48 sps:$4 sm:$0xff]  }
  0x8c   :  { %1906 = vmatprep.subr.bf16.mxu0 %v3678_v23  ;;  %2052 = vmatprep.subr.bf16.mxu1 %v3681_v24  ;;  %v3763_v23 = vld [vmem:[%s5092_s1 + $0x208] ss:$48 sps:$4 sm:$0xff]   ;;  %v3768_v24 = vld [vmem:[%s5092_s1 + $0x264] ss:$48 sps:$4 sm:$0xff]  }
  0x8f   :  { %1907 = vmatpush1.bf16.msra.mxu0 %v3676_v28  ;;  %2053 = vmatpush1.bf16.msra.mxu1 %v3679_v29  ;;  %v3771_v28 = vld [vmem:[%s5092_s1 + $0x26c] ss:$48 sps:$4 sm:$0xff]   ;;  %v3766_v29 = vld [vmem:[%s5092_s1 + $0x260] ss:$48 sps:$4 sm:$0xff]  }
  0x90   :  { %1908 = vmatprep.subr.bf16.mxu0 %v3684_v31  ;;  %2054 = vmatprep.subr.bf16.mxu1 %v3687_v32  ;;  %v3769_v31 = vld [vmem:[%s5092_s1 + $0x268] ss:$48 sps:$4 sm:$0xff]   ;;  %v3774_v32 = vld [vmem:[%s5092_s1 + $0x2c4] ss:$48 sps:$4 sm:$0xff]  }
  0x93   :  { %1909 = vmatpush1.bf16.msra.mxu0 %v3682_v33  ;;  %2055 = vmatpush1.bf16.msra.mxu1 %v3685_v34  ;;  %v3777_v33 = vld [vmem:[%s5092_s1 + $0x2cc] ss:$48 sps:$4 sm:$0xff]   ;;  %v3772_v34 = vld [vmem:[%s5092_s1 + $0x2c0] ss:$48 sps:$4 sm:$0xff]  }
  0x94   :  { %1910 = vmatprep.subr.bf16.mxu0 %v3690_v35  ;;  %2056 = vmatprep.subr.bf16.mxu1 %v3693_v36  ;;  %v3775_v35 = vld [vmem:[%s5092_s1 + $0x2c8] ss:$48 sps:$4 sm:$0xff]   ;;  %v3780_v36 = vld [vmem:[%s5092_s1 + $0x324] ss:$48 sps:$4 sm:$0xff]  }
  0x97   :  { %1911 = vmatpush1.bf16.msra.mxu0 %v3688_v37  ;;  %2057 = vmatpush1.bf16.msra.mxu1 %v3691_v38  ;;  %v3783_v37 = vld [vmem:[%s5092_s1 + $0x32c] ss:$48 sps:$4 sm:$0xff]   ;;  %v3850_v38 = vld [vmem:[%s5093_s0 + $0x4] ss:$12 sps:$4 sm:$0xff]  }
  0x98   :  { %1912 = vmatprep.subr.bf16.mxu0 %v3696_v40  ;;  %2058 = vmatprep.subr.bf16.mxu1 %v3699_v41  ;;  %v3778_v40 = vld [vmem:[%s5092_s1 + $0x320] ss:$48 sps:$4 sm:$0xff]   ;;  %v3781_v41 = vld [vmem:[%s5092_s1 + $0x328] ss:$48 sps:$4 sm:$0xff]  }
  0x9b   :  { %1913 = vmatpush1.bf16.msra.mxu0 %v3694_v42  ;;  %2059 = vmatpush1.bf16.msra.mxu1 %v3697_v43  ;;  %v3786_v42 = vld [vmem:[%s5092_s1 + $0x384] ss:$48 sps:$4 sm:$0xff]   ;;  %v3789_v43 = vld [vmem:[%s5092_s1 + $0x38c] ss:$48 sps:$4 sm:$0xff]  }
  0x9c   :  { %1914 = vmatprep.subr.bf16.mxu0 %v3702_v44  ;;  %2060 = vmatprep.subr.bf16.mxu1 %v3705_v45  ;;  %v3784_v44 = vld [vmem:[%s5092_s1 + $0x380] ss:$48 sps:$4 sm:$0xff]   ;;  %v3787_v45 = vld [vmem:[%s5092_s1 + $0x388] ss:$48 sps:$4 sm:$0xff]  }
  0x9f   :  { %1915 = vmatpush1.bf16.msra.mxu0 %v3700_v46  ;;  %2061 = vmatpush1.bf16.msra.mxu1 %v3703_v48  ;;  %v3792_v46 = vld [vmem:[%s5092_s1 + $0x3e4] ss:$48 sps:$4 sm:$0xff]   ;;  %v3795_v48 = vld [vmem:[%s5092_s1 + $0x3ec] ss:$48 sps:$4 sm:$0xff]  }
  0xa0   :  { %1957 = vmatprep.subr.bf16.mxu0 %v3708_v50  ;;  %2103 = vmatprep.subr.bf16.mxu1 %v3711_v51  ;;  %v3790_v50 = vld [vmem:[%s5092_s1 + $0x3e0] ss:$48 sps:$4 sm:$0xff]   ;;  %v3793_v51 = vld [vmem:[%s5092_s1 + $0x3e8] ss:$48 sps:$4 sm:$0xff]  }
  0xa2   :  { %1917 = vmatmul.mubr.bf16.vlgmr.msra.gmra.mrb[16].mxu0 %v4090_v5  ;;  %2063 = vmatmul.mubr.bf16.vlgmr.msra.gmra.mrb[16].mxu1 %v4090_v5  ;;  %v3723_v5 = vld [vmem:[%s5092_s1 + $0x6dc] ss:$48 sps:$4 sm:$0xff]  }
  0xa3   :  { %1958 = vmatpush1.bf16.msra.mxu0 %v3706_v52  ;;  %2104 = vmatpush1.bf16.msra.mxu1 %v3709_v53  ;;  %v3798_v52 = vld [vmem:[%s5092_s1 + $0x444] ss:$48 sps:$4 sm:$0xff]   ;;  %v3801_v53 = vld [vmem:[%s5092_s1 + $0x44c] ss:$48 sps:$4 sm:$0xff]  }
  0xa4   :  { %1926 = vmatprep.mubr.bf16.mxu0 %v4101_v8  ;;  %2072 = vmatprep.mubr.bf16.mxu1 %v4101_v8  ;;  %v3726_v8 = vld [vmem:[%s5092_s1 + $0x734] ss:$48 sps:$4 sm:$0xff]  }
  0xa5   :  { %1959 = vmatprep.subr.bf16.mxu0 %v3714_v54  ;;  %2105 = vmatprep.subr.bf16.mxu1 %v3717_v55  ;;  %v3796_v54 = vld [vmem:[%s5092_s1 + $0x440] ss:$48 sps:$4 sm:$0xff]   ;;  %v3799_v55 = vld [vmem:[%s5092_s1 + $0x448] ss:$48 sps:$4 sm:$0xff]  }
  0xa7   :  { %1960 = vmatpush1.bf16.msra.mxu0 %v3712_v56  ;;  %2106 = vmatpush1.bf16.msra.mxu1 %v3715_v57  ;;  %v3804_v56 = vld [vmem:[%s5092_s1 + $0x4a4] ss:$48 sps:$4 sm:$0xff]   ;;  %v3807_v57 = vld [vmem:[%s5092_s1 + $0x4ac] ss:$48 sps:$4 sm:$0xff]  }
  0xa8   :  { %1961 = vmatprep.subr.bf16.mxu0 %v3720_v58  ;;  %2107 = vmatprep.subr.bf16.mxu1 %v3723_v5  ;;  %v3802_v58 = vld [vmem:[%s5092_s1 + $0x4a0] ss:$48 sps:$4 sm:$0xff]   ;;  %v3805_v5 = vld [vmem:[%s5092_s1 + $0x4a8] ss:$48 sps:$4 sm:$0xff]  }
  0xaa   :  { %1927 = vmatmul.mubr.bf16.gmra.mrb[20].mxu0 %v4128_v15  ;;  %2073 = vmatmul.mubr.bf16.gmra.mrb[20].mxu1 %v4128_v15  ;;  %v3732_v15 = vld [vmem:[%s5092_s1 + $0x24] ss:$48 sps:$4 sm:$0xff]  }
  0xab   :  { %1936 = vmatprep.mubr.bf16.mxu0 %v4133_v16  ;;  %2082 = vmatprep.mubr.bf16.mxu1 %v4133_v16  ;;  %v3735_v16 = vld [vmem:[%s5092_s1 + $0x2c] ss:$48 sps:$4 sm:$0xff]  }
  0xac   :  { %1962 = vmatpush1.bf16.msra.mxu0 %v3718_v59  ;;  %2108 = vmatpush1.bf16.msra.mxu1 %v3721_v60  ;;  %v3810_v59 = vld [vmem:[%s5092_s1 + $0x504] ss:$48 sps:$4 sm:$0xff]   ;;  %v3813_v60 = vld [vmem:[%s5092_s1 + $0x50c] ss:$48 sps:$4 sm:$0xff]  }
  0xad   :  { %1963 = vmatprep.subr.bf16.mxu0 %v3726_v8  ;;  %2109 = vmatprep.subr.bf16.mxu1 %v3729_v62  ;;  %v3808_v8 = vld [vmem:[%s5092_s1 + $0x500] ss:$48 sps:$4 sm:$0xff]   ;;  %v3811_v62 = vld [vmem:[%s5092_s1 + $0x508] ss:$48 sps:$4 sm:$0xff]  }
  0xb0   :  { %1964 = vmatpush1.bf16.msra.mxu0 %v3724_v63  ;;  %2110 = vmatpush1.bf16.msra.mxu1 %v3727_v0  ;;  %v3816_v63 = vld [vmem:[%s5092_s1 + $0x564] ss:$48 sps:$4 sm:$0xff]   ;;  %v3819_v0 = vld [vmem:[%s5092_s1 + $0x56c] ss:$48 sps:$4 sm:$0xff]  }
  0xb1   :  { %2176 = vmatprep.subr.bf16.mxu0 %v3732_v15  ;;  %2322 = vmatprep.subr.bf16.mxu1 %v3735_v16  ;;  %v3814_v15 = vld [vmem:[%s5092_s1 + $0x560] ss:$48 sps:$4 sm:$0xff]   ;;  %v3817_v16 = vld [vmem:[%s5092_s1 + $0x568] ss:$48 sps:$4 sm:$0xff]  }
  0xb2   :  { %1937 = vmatmul.mubr.bf16.gmra.mrb[24].mxu0 %v4166_v25  ;;  %2083 = vmatmul.mubr.bf16.gmra.mrb[24].mxu1 %v4166_v25  ;;  %v3733_v25 = vld [vmem:[%s5092_s1 + $0x28] ss:$48 sps:$4 sm:$0xff]  }
  0xb3   :  { %1946 = vmatprep.mubr.bf16.mxu0 %v4171_v26  ;;  %2092 = vmatprep.mubr.bf16.mxu1 %v4171_v26  ;;  %v3738_v26 = vld [vmem:[%s5092_s1 + $0x84] ss:$48 sps:$4 sm:$0xff]  }
  0xba   :  { %1947 = vmatmul.mubr.bf16.gmra.mrb[28].mxu0 %v4180_v27  ;;  %2093 = vmatmul.mubr.bf16.gmra.mrb[28].mxu1 %v4180_v27  ;;  %v3741_v27 = vld [vmem:[%s5092_s1 + $0x8c] ss:$48 sps:$4 sm:$0xff]  }
  0xbb   :  { %1989 = vmatprep.mubr.bf16.mxu0 %v3859_v1  ;;  %2135 = vmatprep.mubr.bf16.mxu1 %v3859_v1 }
  0xc2   :  { %3167 = vmatmul.mubr.msk.bf16.vlgmr.msra.gmra.mrb[16].mxu0 %vm1579_vm0, %v4195_v30  ;;  %3171 = vmatmul.mubr.msk.bf16.vlgmr.msra.gmra.mrb[16].mxu1 %vm1579_vm0, %v4195_v30 }
  0xc3   :  { %2177 = vmatpush1.bf16.msra.mxu0 %v3730_v2  ;;  %2323 = vmatpush1.bf16.msra.mxu1 %v3733_v25  ;;  %v3822_v2 = vld [vmem:[%s5092_s1 + $0x5c4] ss:$48 sps:$4 sm:$0xff]   ;;  %v3825_v25 = vld [vmem:[%s5092_s1 + $0x5cc] ss:$48 sps:$4 sm:$0xff]  }
  0xc4   :  { %2178 = vmatprep.subr.bf16.mxu0 %v3738_v26  ;;  %2324 = vmatprep.subr.bf16.mxu1 %v3741_v27  ;;  %v3820_v26 = vld [vmem:[%s5092_s1 + $0x5c0] ss:$48 sps:$4 sm:$0xff]   ;;  %v3823_v27 = vld [vmem:[%s5092_s1 + $0x5c8] ss:$48 sps:$4 sm:$0xff]  }
  0xc5   :  { %1999 = vmatprep.mubr.bf16.mxu0 %v3859_v1  ;;  %2145 = vmatprep.mubr.bf16.mxu1 %v3859_v1 }
  0xc7   :  { %2179 = vmatpush1.bf16.msra.mxu0 %v3736_v3  ;;  %2325 = vmatpush1.bf16.msra.mxu1 %v3739_v4  ;;  %v3828_v3 = vld [vmem:[%s5092_s1 + $0x624] ss:$48 sps:$4 sm:$0xff]   ;;  %v3831_v4 = vld [vmem:[%s5092_s1 + $0x62c] ss:$48 sps:$4 sm:$0xff]  }
  0xc8   :  { %2180 = vmatprep.subr.bf16.mxu0 %v3744_v6  ;;  %2326 = vmatprep.subr.bf16.mxu1 %v3747_v7  ;;  %v3826_v6 = vld [vmem:[%s5092_s1 + $0x620] ss:$48 sps:$4 sm:$0xff]   ;;  %v3829_v7 = vld [vmem:[%s5092_s1 + $0x628] ss:$48 sps:$4 sm:$0xff]  }
  0xca   :  { %3168 = vmatmul.mubr.msk.bf16.gmra.mrb[20].mxu0 %vm1579_vm0, %v4230_v39  ;;  %3172 = vmatmul.mubr.msk.bf16.gmra.mrb[20].mxu1 %vm1579_vm0, %v4230_v39 }
  0xcb   :  { %2181 = vmatpush1.bf16.msra.mxu0 %v3742_v9  ;;  %2327 = vmatpush1.bf16.msra.mxu1 %v3745_v10  ;;  %v3834_v9 = vld [vmem:[%s5092_s1 + $0x684] ss:$48 sps:$4 sm:$0xff]   ;;  %v3837_v10 = vld [vmem:[%s5092_s1 + $0x68c] ss:$48 sps:$4 sm:$0xff]  }
  0xcc   :  { %2182 = vmatprep.subr.bf16.mxu0 %v3750_v11  ;;  %2328 = vmatprep.subr.bf16.mxu1 %v3753_v12  ;;  %v3851_v11 = vld [vmem:[%s5093_s0] ss:$12 sps:$4 sm:$0xff]  }
  0xcd   :  { %2009 = vmatprep.mubr.bf16.mxu0 %v3859_v1  ;;  %2155 = vmatprep.mubr.bf16.mxu1 %v3859_v1  ;;  %v3832_v12 = vld [vmem:[%s5092_s1 + $0x680] ss:$48 sps:$4 sm:$0xff]  }
  0xcf   :  { %2183 = vmatpush1.bf16.msra.mxu0 %v3748_v49  ;;  %2329 = vmatpush1.bf16.msra.mxu1 %v3751_v13  ;;  %v3835_v49 = vld [vmem:[%s5092_s1 + $0x688] ss:$48 sps:$4 sm:$0xff]  }
  0xd0   :  { %2184 = vmatprep.subr.bf16.mxu0 %v3756_v14  ;;  %2330 = vmatprep.subr.bf16.mxu1 %v3759_v17  ;;  %v3852_v13 = vld [vmem:[%s5093_s0 + $0x1c] ss:$12 sps:$4 sm:$0xff]   ;;  %v3840_v14 = vld [vmem:[%s5092_s1 + $0x6e4] ss:$48 sps:$4 sm:$0xff]  }
  0xd1   :  { %v3843_v17 = vld [vmem:[%s5092_s1 + $0x6ec] ss:$48 sps:$4 sm:$0xff]  }
  0xd2   :  { %3169 = vmatmul.mubr.msk.bf16.gmra.mrb[24].mxu0 %vm1579_vm0, %v4262_v47  ;;  %3173 = vmatmul.mubr.msk.bf16.gmra.mrb[24].mxu1 %vm1579_vm0, %v4262_v47 }
  0xd3   :  { %2185 = vmatpush1.bf16.msra.mxu0 %v3754_v18  ;;  %2331 = vmatpush1.bf16.msra.mxu1 %v3757_v19  ;;  %v3838_v18 = vld [vmem:[%s5092_s1 + $0x6e0] ss:$48 sps:$4 sm:$0xff]   ;;  %v3841_v19 = vld [vmem:[%s5092_s1 + $0x6e8] ss:$48 sps:$4 sm:$0xff]  }
  0xd4   :  { %2186 = vmatprep.subr.bf16.mxu0 %v3762_v20  ;;  %2332 = vmatprep.subr.bf16.mxu1 %v3765_v21  ;;  %v3846_v20 = vld [vmem:[%s5092_s1 + $0x744] ss:$48 sps:$4 sm:$0xff]   ;;  %v3849_v21 = vld [vmem:[%s5092_s1 + $0x74c] ss:$48 sps:$4 sm:$0xff]  }
  0xd5   :  { %2019 = vmatprep.mubr.bf16.mxu0 %v3859_v1  ;;  %2165 = vmatprep.mubr.bf16.mxu1 %v3859_v1 }
  0xd7   :  { %2187 = vmatpush1.bf16.msra.mxu0 %v3760_v22  ;;  %2333 = vmatpush1.bf16.msra.mxu1 %v3763_v23  ;;  %v3853_v22 = vld [vmem:[%s5093_s0 + $0x18] ss:$12 sps:$4 sm:$0xff]   ;;  %v3854_v23 = vld [vmem:[%s5093_s0 + $0x34] ss:$12 sps:$4 sm:$0xff]  }
  0xd8   :  { %2188 = vmatprep.subr.bf16.mxu0 %v3768_v24  ;;  %2334 = vmatprep.subr.bf16.mxu1 %v3771_v28  ;;  %v3844_v24 = vld [vmem:[%s5092_s1 + $0x740] ss:$48 sps:$4 sm:$0xff]   ;;  %v3847_v28 = vld [vmem:[%s5092_s1 + $0x748] ss:$48 sps:$4 sm:$0xff]  }
  0xda   :  { %3170 = vmatmul.mubr.msk.bf16.gmra.mrb[28].mxu0 %vm1579_vm0, %v4309_v61  ;;  %3174 = vmatmul.mubr.msk.bf16.gmra.mrb[28].mxu1 %vm1579_vm0, %v4309_v61 }
  0xdb   :  { %2189 = vmatpush1.bf16.msra.mxu0 %v3766_v29  ;;  %2335 = vmatpush1.bf16.msra.mxu1 %v3769_v31  ;;  %v3855_v29 = vld [vmem:[%s5093_s0 + $0x30] ss:$12 sps:$4 sm:$0xff]   ;;  %v3856_v31 = vld [vmem:[%s5093_s0 + $0x4c] ss:$12 sps:$4 sm:$0xff]  }
  0xdc   :  { %2190 = vmatprep.subr.bf16.mxu0 %v3774_v32  ;;  %2336 = vmatprep.subr.bf16.mxu1 %v3777_v33  ;;  %v3857_v32 = vld [vmem:[%s5093_s0 + $0x48] ss:$12 sps:$4 sm:$0xff]  }
  0xdd   :  { %2208 = vmatprep.mubr.bf16.mxu0 %v3850_v38  ;;  %2354 = vmatprep.mubr.bf16.mxu1 %v3850_v38  ;;  %v3858_v33 = vld [vmem:[%s5093_s0 + $0x8] ss:$12 sps:$4 sm:$0xff]  }
  0xdf   :  { %2191 = vmatpush1.bf16.msra.mxu0 %v3772_v34  ;;  %2337 = vmatpush1.bf16.msra.mxu1 %v3775_v35  ;;  %v4816_v35 = vpop.permute.xlu1 %291 }
  0xe0   :  { %2192 = vmatprep.subr.bf16.mxu0 %v3780_v36  ;;  %2338 = vmatprep.subr.bf16.mxu1 %v3783_v37 }
  0xe3   :  { %2193 = vmatpush1.bf16.msra.mxu0 %v3778_v40  ;;  %2339 = vmatpush1.bf16.msra.mxu1 %v3781_v41 }
  0xe4   :  { %2194 = vmatprep.subr.bf16.mxu0 %v3786_v42  ;;  %2340 = vmatprep.subr.bf16.mxu1 %v3789_v43 }
  0xe7   :  { %2195 = vmatpush1.bf16.msra.mxu0 %v3784_v44  ;;  %2341 = vmatpush1.bf16.msra.mxu1 %v3787_v45 }
  0xe8   :  { %2196 = vmatprep.subr.bf16.mxu0 %v3792_v46  ;;  %2342 = vmatprep.subr.bf16.mxu1 %v3795_v48 }
  0xeb   :  { %2197 = vmatpush1.bf16.msra.mxu0 %v3790_v50  ;;  %2343 = vmatpush1.bf16.msra.mxu1 %v3793_v51 }
  0xec   :  { %2198 = vmatprep.subr.bf16.mxu0 %v3798_v52  ;;  %2344 = vmatprep.subr.bf16.mxu1 %v3801_v53 }
  0xef   :  { %2199 = vmatpush1.bf16.msra.mxu0 %v3796_v54  ;;  %2345 = vmatpush1.bf16.msra.mxu1 %v3799_v55 }
  0xf0   :  { %2200 = vmatprep.subr.bf16.mxu0 %v3804_v56  ;;  %2346 = vmatprep.subr.bf16.mxu1 %v3807_v57 }
  0xf3   :  { %2201 = vmatpush1.bf16.msra.mxu0 %v3802_v58  ;;  %2347 = vmatpush1.bf16.msra.mxu1 %v3805_v5 }
  0xf4   :  { %2202 = vmatprep.subr.bf16.mxu0 %v3810_v59  ;;  %2348 = vmatprep.subr.bf16.mxu1 %v3813_v60 }
  0xf7   :  { %2203 = vmatpush1.bf16.msra.mxu0 %v3808_v8  ;;  %2349 = vmatpush1.bf16.msra.mxu1 %v3811_v62  ;;  %v4830_v8 = vpop.permute.xlu1 %296 }
  0xf8   :  { %2204 = vmatprep.subr.bf16.mxu0 %v3816_v63  ;;  %2350 = vmatprep.subr.bf16.mxu1 %v3819_v0 }
  0xfb   :  { %2205 = vmatpush1.bf16.msra.mxu0 %v3814_v15  ;;  %2351 = vmatpush1.bf16.msra.mxu1 %v3817_v16 }
  0xfc   :  { %2206 = vmatprep.subr.bf16.mxu0 %v3822_v2  ;;  %2352 = vmatprep.subr.bf16.mxu1 %v3825_v25 }
  0xff   :  { %2207 = vmatpush1.bf16.msra.mxu0 %v3820_v26  ;;  %2353 = vmatpush1.bf16.msra.mxu1 %v3823_v27 }
 0x100   :  { %2249 = vmatprep.subr.bf16.mxu0 %v3828_v3  ;;  %2395 = vmatprep.subr.bf16.mxu1 %v3831_v4 }
 0x102   :  { %2209 = vmatmul.mubr.bf16.vlgmr.msra.gmra.mrb[32].mxu0 %v3851_v11  ;;  %2355 = vmatmul.mubr.bf16.vlgmr.msra.gmra.mrb[32].mxu1 %v3851_v11 }
 0x103   :  { %2250 = vmatpush1.bf16.msra.mxu0 %v3826_v6  ;;  %2396 = vmatpush1.bf16.msra.mxu1 %v3829_v7 }
 0x104   :  { %2218 = vmatprep.mubr.bf16.mxu0 %v3852_v13  ;;  %2364 = vmatprep.mubr.bf16.mxu1 %v3852_v13 }
 0x105   :  { %2251 = vmatprep.subr.bf16.mxu0 %v3834_v9  ;;  %2397 = vmatprep.subr.bf16.mxu1 %v3837_v10 }
 0x107   :  { %2252 = vmatpush1.bf16.msra.mxu0 %v3832_v12  ;;  %2398 = vmatpush1.bf16.msra.mxu1 %v3835_v49 }
 0x108   :  { %2253 = vmatprep.subr.bf16.mxu0 %v3840_v14  ;;  %2399 = vmatprep.subr.bf16.mxu1 %v3843_v17 }
 0x10a   :  { %2219 = vmatmul.mubr.bf16.gmra.mrb[36].mxu0 %v3853_v22  ;;  %2365 = vmatmul.mubr.bf16.gmra.mrb[36].mxu1 %v3853_v22 }
 0x10b   :  { %2228 = vmatprep.mubr.bf16.mxu0 %v3854_v23  ;;  %2374 = vmatprep.mubr.bf16.mxu1 %v3854_v23 }
 0x10c   :  { %2254 = vmatpush1.bf16.msra.mxu0 %v3838_v18  ;;  %2400 = vmatpush1.bf16.msra.mxu1 %v3841_v19 }
 0x10d   :  { %2255 = vmatprep.subr.bf16.mxu0 %v3846_v20  ;;  %2401 = vmatprep.subr.bf16.mxu1 %v3849_v21 }
 0x110   :  { %2256 = vmatpush1.bf16.msra.mxu0 %v3844_v24  ;;  %2402 = vmatpush1.bf16.msra.mxu1 %v3847_v28  ;;  %v4854_v28 = vpop.permute.xlu1 %306 }
 0x112   :  { %2229 = vmatmul.mubr.bf16.gmra.mrb[40].mxu0 %v3855_v29  ;;  %2375 = vmatmul.mubr.bf16.gmra.mrb[40].mxu1 %v3855_v29 }
 0x113   :  { %2238 = vmatprep.mubr.bf16.mxu0 %v3856_v31  ;;  %2384 = vmatprep.mubr.bf16.mxu1 %v3856_v31 }
 0x11a   :  { %2239 = vmatmul.mubr.bf16.gmra.mrb[44].mxu0 %v3857_v32  ;;  %2385 = vmatmul.mubr.bf16.gmra.mrb[44].mxu1 %v3857_v32 }
 0x11b   :  { %2281 = vmatprep.mubr.bf16.mxu0 %v3859_v1  ;;  %2427 = vmatprep.mubr.bf16.mxu1 %v3859_v1 }
 0x122   :  { %3175 = vmatmul.mubr.msk.bf16.vlgmr.msra.gmra.mrb[32].mxu0 %vm1579_vm0, %v4195_v30  ;;  %3179 = vmatmul.mubr.msk.bf16.vlgmr.msra.gmra.mrb[32].mxu1 %vm1579_vm0, %v3858_v33  ;;  %v4806_v30 = vpop.permute.xlu0 %281 }
 0x123   :  { %2291 = vmatprep.mubr.bf16.mxu0 %v3859_v1  ;;  %2437 = vmatprep.mubr.bf16.mxu1 %v3859_v1 }
 0x126   :  { %v4814_v34 = vpop.permute.xlu0 %286 }
 0x12a   :  { %3176 = vmatmul.mubr.msk.bf16.gmra.mrb[36].mxu0 %vm1579_vm0, %v4230_v39  ;;  %3180 = vmatmul.mubr.msk.bf16.gmra.mrb[36].mxu1 %vm1579_vm0, %v4230_v39  ;;  %v4852_v24 = vpop.permute.xlu0 %301 }
 0x12b   :  { %2301 = vmatprep.mubr.bf16.mxu0 %v3859_v1  ;;  %2447 = vmatprep.mubr.bf16.mxu1 %v3859_v1 }
 0x132   :  { %3177 = vmatmul.mubr.msk.bf16.gmra.mrb[40].mxu0 %vm1579_vm0, %v4262_v47  ;;  %3181 = vmatmul.mubr.msk.bf16.gmra.mrb[40].mxu1 %vm1579_vm0, %v4262_v47 }
 0x133   :  { %2311 = vmatprep.mubr.bf16.mxu0 %v3859_v1  ;;  %2457 = vmatprep.mubr.bf16.mxu1 %v3859_v1 }
 0x135   :  { %v1699_v39 = vpop.f32.mrb[0].mxu0  ;;  %v1845_v36 = vpop.f32.mrb[0].mxu1 }
 0x136   :  { %v3279_v37 = vadd.f32 %v1699_v39, %v4806_v30  ;;  %v3295_v38 = vadd.f32 %v1845_v36, %v4806_v30  ;;  %v1701_v40 = vpop.f32.mrb[1].mxu0  ;;  %v1847_v41 = vpop.f32.mrb[1].mxu1 }
 0x137   :  { %v3280_v42 = vadd.f32 %v1701_v40, %v4806_v30  ;;  %v3296_v47 = vadd.f32 %v1847_v41, %v4806_v30  ;;  %v1703_v43 = vpop.f32.mrb[2].mxu0  ;;  %v1849_v44 = vpop.f32.mrb[2].mxu1 }
 0x138   :  { %v2468_v45 = vmax.f32 %v3279_v37, 0.0  ;;  %v2470_v1 = vmax.f32 %v3295_v38, 0.0  ;;  %v3281_v46 = vadd.f32 %v1703_v43, %v4814_v34  ;;  %v3297_v48 = vadd.f32 %v1849_v44, %v4814_v34  ;;  %v1705_v50 = vpop.f32.mrb[3].mxu0  ;;  %v1851_v51 = vpop.f32.mrb[3].mxu1 }
 0x139   :  { %v2469_v52 = vmax.f32 %v3280_v42, 0.0  ;;  %v2471_v53 = vmax.f32 %v3296_v47, 0.0  ;;  %v3282_v54 = vadd.f32 %v1705_v50, %v4814_v34  ;;  %v3298_v55 = vadd.f32 %v1851_v51, %v4814_v34 }
 0x13a   :  { %v2480_v56 = vmax.f32 %v3281_v46, 0.0  ;;  %v2482_v57 = vmax.f32 %v3297_v48, 0.0  ;;  %3178 = vmatmul.mubr.msk.bf16.gmra.mrb[44].mxu0 %vm1579_vm0, %v4309_v61  ;;  %3182 = vmatmul.mubr.msk.bf16.gmra.mrb[44].mxu1 %vm1579_vm0, %v4309_v61 }
 0x13b   :  { %v3231_v58 = vpack.c.bf16 %v2469_v52, %v2468_v45  ;;  %v3232_v5 = vpack.c.bf16 %v2471_v53, %v2470_v1  ;;  %v2481_v59 = vmax.f32 %v3282_v54, 0.0  ;;  %v2483_v60 = vmax.f32 %v3298_v55, 0.0 }
 0x13d   :  { %2852 = vst [vmem:[%s5095_s3] sm:$0xff] %v3231_v58  ;;  %2853 = vst [vmem:[%s5095_s3 + $0x8] sm:$0xff] %v3232_v5  ;;  %v3237_v62 = vpack.c.bf16 %v2481_v59, %v2480_v56  ;;  %v3238_v63 = vpack.c.bf16 %v2483_v60, %v2482_v57  ;;  %v1709_v0 = vpop.f32.mrb[4].mxu0  ;;  %v1855_v15 = vpop.f32.mrb[4].mxu1 }
 0x13e   :  { %v3283_v61 = vadd.f32 %v1709_v0, %v4816_v35  ;;  %v3299_v16 = vadd.f32 %v1855_v15, %v4816_v35  ;;  %v1711_v2 = vpop.f32.mrb[5].mxu0  ;;  %v1857_v25 = vpop.f32.mrb[5].mxu1 }
 0x13f   :  { %2861 = vst [vmem:[%s5095_s3 + $0x30] sm:$0xff] %v3237_v62  ;;  %2862 = vst [vmem:[%s5095_s3 + $0x38] sm:$0xff] %v3238_v63  ;;  %v3284_v26 = vadd.f32 %v1711_v2, %v4816_v35  ;;  %v3300_v27 = vadd.f32 %v1857_v25, %v4816_v35  ;;  %v1713_v3 = vpop.f32.mrb[6].mxu0  ;;  %v1859_v4 = vpop.f32.mrb[6].mxu1 }
 0x140   :  { %v2492_v6 = vmax.f32 %v3283_v61, 0.0  ;;  %v2494_v7 = vmax.f32 %v3299_v16, 0.0  ;;  %v3285_v9 = vadd.f32 %v1713_v3, %v4830_v8  ;;  %v3301_v10 = vadd.f32 %v1859_v4, %v4830_v8  ;;  %v1715_v11 = vpop.f32.mrb[7].mxu0  ;;  %v1861_v12 = vpop.f32.mrb[7].mxu1 }
 0x141   :  { %v2493_v49 = vmax.f32 %v3284_v26, 0.0  ;;  %v2495_v13 = vmax.f32 %v3300_v27, 0.0  ;;  %v3286_v14 = vadd.f32 %v1715_v11, %v4830_v8  ;;  %v3302_v17 = vadd.f32 %v1861_v12, %v4830_v8  ;;  %v4876_v59 = vpop.permute.xlu0 %311  ;;  %v4878_v60 = vpop.permute.xlu1 %316 }
 0x142   :  { %v2504_v18 = vmax.f32 %v3285_v9, 0.0  ;;  %v2506_v19 = vmax.f32 %v3301_v10, 0.0 }
 0x143   :  { %v3243_v20 = vpack.c.bf16 %v2493_v49, %v2492_v6  ;;  %v3244_v21 = vpack.c.bf16 %v2495_v13, %v2494_v7  ;;  %v2505_v22 = vmax.f32 %v3286_v14, 0.0  ;;  %v2507_v23 = vmax.f32 %v3302_v17, 0.0 }
 0x145   :  { %2867 = vst [vmem:[%s5095_s3 + $0x60] sm:$0xff] %v3243_v20  ;;  %2868 = vst [vmem:[%s5095_s3 + $0x68] sm:$0xff] %v3244_v21  ;;  %v3249_v29 = vpack.c.bf16 %v2505_v22, %v2504_v18  ;;  %v3250_v31 = vpack.c.bf16 %v2507_v23, %v2506_v19  ;;  %v1719_v32 = vpop.f32.mrb[8].mxu0  ;;  %v1865_v33 = vpop.f32.mrb[8].mxu1 }
 0x146   :  { %v3287_v39 = vadd.f32 %v1719_v32, %v4852_v24  ;;  %v3303_v36 = vadd.f32 %v1865_v33, %v4852_v24  ;;  %v1721_v37 = vpop.f32.mrb[9].mxu0  ;;  %v1867_v38 = vpop.f32.mrb[9].mxu1 }
 0x147   :  { %2873 = vst [vmem:[%s5095_s3 + $0x90] sm:$0xff] %v3249_v29  ;;  %2874 = vst [vmem:[%s5095_s3 + $0x98] sm:$0xff] %v3250_v31  ;;  %v3288_v40 = vadd.f32 %v1721_v37, %v4852_v24  ;;  %v3304_v41 = vadd.f32 %v1867_v38, %v4852_v24  ;;  %v1723_v42 = vpop.f32.mrb[10].mxu0  ;;  %v1869_v47 = vpop.f32.mrb[10].mxu1 }
 0x148   :  { %v2516_v43 = vmax.f32 %v3287_v39, 0.0  ;;  %v2518_v44 = vmax.f32 %v3303_v36, 0.0  ;;  %v3289_v45 = vadd.f32 %v1723_v42, %v4854_v28  ;;  %v3305_v1 = vadd.f32 %v1869_v47, %v4854_v28  ;;  %v1725_v46 = vpop.f32.mrb[11].mxu0  ;;  %v1871_v48 = vpop.f32.mrb[11].mxu1 }
 0x149   :  { %v2517_v50 = vmax.f32 %v3288_v40, 0.0  ;;  %v2519_v51 = vmax.f32 %v3304_v41, 0.0  ;;  %v3290_v52 = vadd.f32 %v1725_v46, %v4854_v28  ;;  %v3306_v53 = vadd.f32 %v1871_v48, %v4854_v28 }
 0x14a   :  { %v2528_v54 = vmax.f32 %v3289_v45, 0.0  ;;  %v2530_v55 = vmax.f32 %v3305_v1, 0.0 }
 0x14b   :  { %v3255_v56 = vpack.c.bf16 %v2517_v50, %v2516_v43  ;;  %v3256_v57 = vpack.c.bf16 %v2519_v51, %v2518_v44  ;;  %v2529_v58 = vmax.f32 %v3290_v52, 0.0  ;;  %v2531_v5 = vmax.f32 %v3306_v53, 0.0 }
 0x14d   :  { %2879 = vst [vmem:[%s5095_s3 + $0xc0] sm:$0xff] %v3255_v56  ;;  %2880 = vst [vmem:[%s5095_s3 + $0xc8] sm:$0xff] %v3256_v57  ;;  %v3261_v62 = vpack.c.bf16 %v2529_v58, %v2528_v54  ;;  %v3262_v63 = vpack.c.bf16 %v2531_v5, %v2530_v55  ;;  %v1729_v0 = vpop.f32.mrb[12].mxu0  ;;  %v1875_v15 = vpop.f32.mrb[12].mxu1 }
 0x14e   :  { %v3291_v61 = vadd.f32 %v1729_v0, %v4876_v59  ;;  %v3307_v16 = vadd.f32 %v1875_v15, %v4876_v59  ;;  %v1731_v2 = vpop.f32.mrb[13].mxu0  ;;  %v1877_v25 = vpop.f32.mrb[13].mxu1 }
 0x14f   :  { %2885 = vst [vmem:[%s5095_s3 + $0xf0] sm:$0xff] %v3261_v62  ;;  %2886 = vst [vmem:[%s5095_s3 + $0xf8] sm:$0xff] %v3262_v63  ;;  %v3292_v26 = vadd.f32 %v1731_v2, %v4876_v59  ;;  %v3308_v27 = vadd.f32 %v1877_v25, %v4876_v59  ;;  %v1733_v3 = vpop.f32.mrb[14].mxu0  ;;  %v1879_v4 = vpop.f32.mrb[14].mxu1 }
 0x150   :  { %v2540_v6 = vmax.f32 %v3291_v61, 0.0  ;;  %v2542_v7 = vmax.f32 %v3307_v16, 0.0  ;;  %v3293_v9 = vadd.f32 %v1733_v3, %v4878_v60  ;;  %v3309_v10 = vadd.f32 %v1879_v4, %v4878_v60  ;;  %v1735_v11 = vpop.f32.mrb[15].mxu0  ;;  %v1881_v12 = vpop.f32.mrb[15].mxu1 }
 0x151   :  { %v2541_v49 = vmax.f32 %v3292_v26, 0.0  ;;  %v2543_v13 = vmax.f32 %v3308_v27, 0.0  ;;  %v3294_v14 = vadd.f32 %v1735_v11, %v4878_v60  ;;  %v3310_v17 = vadd.f32 %v1881_v12, %v4878_v60 }
 0x152   :  { %v2552_v18 = vmax.f32 %v3293_v9, 0.0  ;;  %v2554_v19 = vmax.f32 %v3309_v10, 0.0 }
 0x153   :  { %v3267_v20 = vpack.c.bf16 %v2541_v49, %v2540_v6  ;;  %v3268_v21 = vpack.c.bf16 %v2543_v13, %v2542_v7  ;;  %v2553_v22 = vmax.f32 %v3294_v14, 0.0  ;;  %v2555_v23 = vmax.f32 %v3310_v17, 0.0 }
 0x155   :  { %2891 = vst [vmem:[%s5095_s3 + $0x120] sm:$0xff] %v3267_v20  ;;  %2892 = vst [vmem:[%s5095_s3 + $0x128] sm:$0xff] %v3268_v21  ;;  %v3273_v29 = vpack.c.bf16 %v2553_v22, %v2552_v18  ;;  %v3274_v31 = vpack.c.bf16 %v2555_v23, %v2554_v19 }
 0x157   :  { %2897 = vst [vmem:[%s5095_s3 + $0x150] sm:$0xff] %v3273_v29  ;;  %2898 = vst [vmem:[%s5095_s3 + $0x158] sm:$0xff] %v3274_v31 }
 0x195   :  { %v1991_v32 = vpop.f32.mrb[16].mxu0  ;;  %v2137_v33 = vpop.f32.mrb[16].mxu1 }
 0x196   :  { %v3311_v39 = vadd.f32 %v1991_v32, %v4806_v30  ;;  %v3327_v36 = vadd.f32 %v2137_v33, %v4806_v30  ;;  %v1993_v37 = vpop.f32.mrb[17].mxu0  ;;  %v2139_v38 = vpop.f32.mrb[17].mxu1 }
 0x197   :  { %v3312_v40 = vadd.f32 %v1993_v37, %v4806_v30  ;;  %v3328_v41 = vadd.f32 %v2139_v38, %v4806_v30  ;;  %v1995_v42 = vpop.f32.mrb[18].mxu0  ;;  %v2141_v47 = vpop.f32.mrb[18].mxu1 }
 0x198   :  { %v2472_v43 = vmax.f32 %v3311_v39, 0.0  ;;  %v2474_v44 = vmax.f32 %v3327_v36, 0.0  ;;  %v3313_v45 = vadd.f32 %v1995_v42, %v4814_v34  ;;  %v3329_v1 = vadd.f32 %v2141_v47, %v4814_v34  ;;  %v1997_v46 = vpop.f32.mrb[19].mxu0  ;;  %v2143_v48 = vpop.f32.mrb[19].mxu1 }
 0x199   :  { %v2473_v50 = vmax.f32 %v3312_v40, 0.0  ;;  %v2475_v51 = vmax.f32 %v3328_v41, 0.0  ;;  %v3314_v52 = vadd.f32 %v1997_v46, %v4814_v34  ;;  %v3330_v53 = vadd.f32 %v2143_v48, %v4814_v34 }
 0x19a   :  { %v2484_v54 = vmax.f32 %v3313_v45, 0.0  ;;  %v2486_v55 = vmax.f32 %v3329_v1, 0.0 }
 0x19b   :  { %v3233_v56 = vpack.c.bf16 %v2473_v50, %v2472_v43  ;;  %v3234_v57 = vpack.c.bf16 %v2475_v51, %v2474_v44  ;;  %v2485_v58 = vmax.f32 %v3314_v52, 0.0  ;;  %v2487_v5 = vmax.f32 %v3330_v53, 0.0 }
 0x19d   :  { %2854 = vst [vmem:[%s5095_s3 + $0x10] sm:$0xff] %v3233_v56  ;;  %2855 = vst [vmem:[%s5095_s3 + $0x18] sm:$0xff] %v3234_v57  ;;  %v3239_v62 = vpack.c.bf16 %v2485_v58, %v2484_v54  ;;  %v3240_v63 = vpack.c.bf16 %v2487_v5, %v2486_v55  ;;  %v2001_v0 = vpop.f32.mrb[20].mxu0  ;;  %v2147_v15 = vpop.f32.mrb[20].mxu1 }
 0x19e   :  { %v3315_v61 = vadd.f32 %v2001_v0, %v4816_v35  ;;  %v3331_v16 = vadd.f32 %v2147_v15, %v4816_v35  ;;  %v2003_v2 = vpop.f32.mrb[21].mxu0  ;;  %v2149_v25 = vpop.f32.mrb[21].mxu1 }
 0x19f   :  { %2863 = vst [vmem:[%s5095_s3 + $0x40] sm:$0xff] %v3239_v62  ;;  %2864 = vst [vmem:[%s5095_s3 + $0x48] sm:$0xff] %v3240_v63  ;;  %v3316_v26 = vadd.f32 %v2003_v2, %v4816_v35  ;;  %v3332_v27 = vadd.f32 %v2149_v25, %v4816_v35  ;;  %v2005_v3 = vpop.f32.mrb[22].mxu0  ;;  %v2151_v4 = vpop.f32.mrb[22].mxu1 }
 0x1a0   :  { %v2496_v6 = vmax.f32 %v3315_v61, 0.0  ;;  %v2498_v7 = vmax.f32 %v3331_v16, 0.0  ;;  %v3317_v9 = vadd.f32 %v2005_v3, %v4830_v8  ;;  %v3333_v10 = vadd.f32 %v2151_v4, %v4830_v8  ;;  %v2007_v11 = vpop.f32.mrb[23].mxu0  ;;  %v2153_v12 = vpop.f32.mrb[23].mxu1 }
 0x1a1   :  { %v2497_v49 = vmax.f32 %v3316_v26, 0.0  ;;  %v2499_v13 = vmax.f32 %v3332_v27, 0.0  ;;  %v3318_v14 = vadd.f32 %v2007_v11, %v4830_v8  ;;  %v3334_v17 = vadd.f32 %v2153_v12, %v4830_v8 }
 0x1a2   :  { %v2508_v18 = vmax.f32 %v3317_v9, 0.0  ;;  %v2510_v19 = vmax.f32 %v3333_v10, 0.0 }
 0x1a3   :  { %v3245_v20 = vpack.c.bf16 %v2497_v49, %v2496_v6  ;;  %v3246_v21 = vpack.c.bf16 %v2499_v13, %v2498_v7  ;;  %v2509_v22 = vmax.f32 %v3318_v14, 0.0  ;;  %v2511_v23 = vmax.f32 %v3334_v17, 0.0 }
 0x1a5   :  { %2869 = vst [vmem:[%s5095_s3 + $0x70] sm:$0xff] %v3245_v20  ;;  %2870 = vst [vmem:[%s5095_s3 + $0x78] sm:$0xff] %v3246_v21  ;;  %v3251_v29 = vpack.c.bf16 %v2509_v22, %v2508_v18  ;;  %v3252_v31 = vpack.c.bf16 %v2511_v23, %v2510_v19  ;;  %v2011_v32 = vpop.f32.mrb[24].mxu0  ;;  %v2157_v33 = vpop.f32.mrb[24].mxu1 }
 0x1a6   :  { %v3319_v39 = vadd.f32 %v2011_v32, %v4852_v24  ;;  %v3335_v36 = vadd.f32 %v2157_v33, %v4852_v24  ;;  %v2013_v37 = vpop.f32.mrb[25].mxu0  ;;  %v2159_v38 = vpop.f32.mrb[25].mxu1 }
 0x1a7   :  { %2875 = vst [vmem:[%s5095_s3 + $0xa0] sm:$0xff] %v3251_v29  ;;  %2876 = vst [vmem:[%s5095_s3 + $0xa8] sm:$0xff] %v3252_v31  ;;  %v3320_v40 = vadd.f32 %v2013_v37, %v4852_v24  ;;  %v3336_v41 = vadd.f32 %v2159_v38, %v4852_v24  ;;  %v2015_v42 = vpop.f32.mrb[26].mxu0  ;;  %v2161_v47 = vpop.f32.mrb[26].mxu1 }
 0x1a8   :  { %v2520_v43 = vmax.f32 %v3319_v39, 0.0  ;;  %v2522_v44 = vmax.f32 %v3335_v36, 0.0  ;;  %v3321_v45 = vadd.f32 %v2015_v42, %v4854_v28  ;;  %v3337_v1 = vadd.f32 %v2161_v47, %v4854_v28  ;;  %v2017_v46 = vpop.f32.mrb[27].mxu0  ;;  %v2163_v48 = vpop.f32.mrb[27].mxu1 }
 0x1a9   :  { %v2521_v50 = vmax.f32 %v3320_v40, 0.0  ;;  %v2523_v51 = vmax.f32 %v3336_v41, 0.0  ;;  %v3322_v52 = vadd.f32 %v2017_v46, %v4854_v28  ;;  %v3338_v53 = vadd.f32 %v2163_v48, %v4854_v28 }
 0x1aa   :  { %v2532_v54 = vmax.f32 %v3321_v45, 0.0  ;;  %v2534_v55 = vmax.f32 %v3337_v1, 0.0 }
 0x1ab   :  { %v3257_v56 = vpack.c.bf16 %v2521_v50, %v2520_v43  ;;  %v3258_v57 = vpack.c.bf16 %v2523_v51, %v2522_v44  ;;  %v2533_v58 = vmax.f32 %v3322_v52, 0.0  ;;  %v2535_v5 = vmax.f32 %v3338_v53, 0.0 }
 0x1ad   :  { %2881 = vst [vmem:[%s5095_s3 + $0xd0] sm:$0xff] %v3257_v56  ;;  %2882 = vst [vmem:[%s5095_s3 + $0xd8] sm:$0xff] %v3258_v57  ;;  %v3263_v62 = vpack.c.bf16 %v2533_v58, %v2532_v54  ;;  %v3264_v63 = vpack.c.bf16 %v2535_v5, %v2534_v55  ;;  %v2021_v0 = vpop.f32.mrb[28].mxu0  ;;  %v2167_v15 = vpop.f32.mrb[28].mxu1 }
 0x1ae   :  { %v3323_v61 = vadd.f32 %v2021_v0, %v4876_v59  ;;  %v3339_v16 = vadd.f32 %v2167_v15, %v4876_v59  ;;  %v2023_v2 = vpop.f32.mrb[29].mxu0  ;;  %v2169_v25 = vpop.f32.mrb[29].mxu1 }
 0x1af   :  { %2887 = vst [vmem:[%s5095_s3 + $0x100] sm:$0xff] %v3263_v62  ;;  %2888 = vst [vmem:[%s5095_s3 + $0x108] sm:$0xff] %v3264_v63  ;;  %v3324_v26 = vadd.f32 %v2023_v2, %v4876_v59  ;;  %v3340_v27 = vadd.f32 %v2169_v25, %v4876_v59  ;;  %v2025_v3 = vpop.f32.mrb[30].mxu0  ;;  %v2171_v4 = vpop.f32.mrb[30].mxu1 }
 0x1b0   :  { %v2544_v6 = vmax.f32 %v3323_v61, 0.0  ;;  %v2546_v7 = vmax.f32 %v3339_v16, 0.0  ;;  %v3325_v9 = vadd.f32 %v2025_v3, %v4878_v60  ;;  %v3341_v10 = vadd.f32 %v2171_v4, %v4878_v60  ;;  %v2027_v11 = vpop.f32.mrb[31].mxu0  ;;  %v2173_v12 = vpop.f32.mrb[31].mxu1 }
 0x1b1   :  { %v2545_v49 = vmax.f32 %v3324_v26, 0.0  ;;  %v2547_v13 = vmax.f32 %v3340_v27, 0.0  ;;  %v3326_v14 = vadd.f32 %v2027_v11, %v4878_v60  ;;  %v3342_v17 = vadd.f32 %v2173_v12, %v4878_v60 }
 0x1b2   :  { %v2556_v18 = vmax.f32 %v3325_v9, 0.0  ;;  %v2558_v19 = vmax.f32 %v3341_v10, 0.0 }
 0x1b3   :  { %v3269_v20 = vpack.c.bf16 %v2545_v49, %v2544_v6  ;;  %v3270_v21 = vpack.c.bf16 %v2547_v13, %v2546_v7  ;;  %v2557_v22 = vmax.f32 %v3326_v14, 0.0  ;;  %v2559_v23 = vmax.f32 %v3342_v17, 0.0 }
 0x1b5   :  { %2893 = vst [vmem:[%s5095_s3 + $0x130] sm:$0xff] %v3269_v20  ;;  %2894 = vst [vmem:[%s5095_s3 + $0x138] sm:$0xff] %v3270_v21  ;;  %v3275_v29 = vpack.c.bf16 %v2557_v22, %v2556_v18  ;;  %v3276_v31 = vpack.c.bf16 %v2559_v23, %v2558_v19 }
 0x1b7   :  { %2899 = vst [vmem:[%s5095_s3 + $0x160] sm:$0xff] %v3275_v29  ;;  %2900 = vst [vmem:[%s5095_s3 + $0x168] sm:$0xff] %v3276_v31 }
 0x1f5   :  { %v2283_v32 = vpop.f32.mrb[32].mxu0  ;;  %v2429_v33 = vpop.f32.mrb[32].mxu1 }
 0x1f6   :  { %v3343_v39 = vadd.f32 %v2283_v32, %v4806_v30  ;;  %v3359_v36 = vadd.f32 %v2429_v33, %v4806_v30  ;;  %v2285_v37 = vpop.f32.mrb[33].mxu0  ;;  %v2431_v38 = vpop.f32.mrb[33].mxu1 }
 0x1f7   :  { %v3344_v40 = vadd.f32 %v2285_v37, %v4806_v30  ;;  %v3360_v41 = vadd.f32 %v2431_v38, %v4806_v30  ;;  %v2287_v42 = vpop.f32.mrb[34].mxu0  ;;  %v2433_v47 = vpop.f32.mrb[34].mxu1 }
 0x1f8   :  { %v2476_v43 = vmax.f32 %v3343_v39, 0.0  ;;  %v2478_v44 = vmax.f32 %v3359_v36, 0.0  ;;  %v3345_v45 = vadd.f32 %v2287_v42, %v4814_v34  ;;  %v3361_v1 = vadd.f32 %v2433_v47, %v4814_v34  ;;  %v2289_v46 = vpop.f32.mrb[35].mxu0  ;;  %v2435_v48 = vpop.f32.mrb[35].mxu1 }
 0x1f9   :  { %v2477_v50 = vmax.f32 %v3344_v40, 0.0  ;;  %v2479_v51 = vmax.f32 %v3360_v41, 0.0  ;;  %v3346_v52 = vadd.f32 %v2289_v46, %v4814_v34  ;;  %v3362_v53 = vadd.f32 %v2435_v48, %v4814_v34 }
 0x1fa   :  { %v2488_v54 = vmax.f32 %v3345_v45, 0.0  ;;  %v2490_v55 = vmax.f32 %v3361_v1, 0.0 }
 0x1fb   :  { %v3235_v56 = vpack.c.bf16 %v2477_v50, %v2476_v43  ;;  %v3236_v57 = vpack.c.bf16 %v2479_v51, %v2478_v44  ;;  %v2489_v58 = vmax.f32 %v3346_v52, 0.0  ;;  %v2491_v5 = vmax.f32 %v3362_v53, 0.0 }
 0x1fd   :  { %2856 = vst [vmem:[%s5095_s3 + $0x20] sm:$0xff] %v3235_v56  ;;  %2860 = vst.msk [vmem:[%s5095_s3 + $0x28] sm:$0xff] %vm5000_vm3, %v3236_v57  ;;  %v3241_v34 = vpack.c.bf16 %v2489_v58, %v2488_v54  ;;  %v3242_v62 = vpack.c.bf16 %v2491_v5, %v2490_v55  ;;  %v2293_v63 = vpop.f32.mrb[36].mxu0  ;;  %v2439_v0 = vpop.f32.mrb[36].mxu1 }
 0x1fe   :  { %v3347_v15 = vadd.f32 %v2293_v63, %v4816_v35  ;;  %v3363_v61 = vadd.f32 %v2439_v0, %v4816_v35  ;;  %v2295_v16 = vpop.f32.mrb[37].mxu0  ;;  %v2441_v2 = vpop.f32.mrb[37].mxu1 }
 0x1ff   :  { %2865 = vst [vmem:[%s5095_s3 + $0x50] sm:$0xff] %v3241_v34  ;;  %2866 = vst.msk [vmem:[%s5095_s3 + $0x58] sm:$0xff] %vm5000_vm3, %v3242_v62  ;;  %v3348_v25 = vadd.f32 %v2295_v16, %v4816_v35  ;;  %v3364_v26 = vadd.f32 %v2441_v2, %v4816_v35  ;;  %v2297_v27 = vpop.f32.mrb[38].mxu0  ;;  %v2443_v3 = vpop.f32.mrb[38].mxu1 }
 0x200   :  { %v2500_v4 = vmax.f32 %v3347_v15, 0.0  ;;  %v2502_v6 = vmax.f32 %v3363_v61, 0.0  ;;  %v3349_v7 = vadd.f32 %v2297_v27, %v4830_v8  ;;  %v3365_v9 = vadd.f32 %v2443_v3, %v4830_v8  ;;  %v2299_v10 = vpop.f32.mrb[39].mxu0  ;;  %v2445_v11 = vpop.f32.mrb[39].mxu1 }
 0x201   :  { %v2501_v12 = vmax.f32 %v3348_v25, 0.0  ;;  %v2503_v49 = vmax.f32 %v3364_v26, 0.0  ;;  %v3350_v13 = vadd.f32 %v2299_v10, %v4830_v8  ;;  %v3366_v14 = vadd.f32 %v2445_v11, %v4830_v8 }
 0x202   :  { %v2512_v17 = vmax.f32 %v3349_v7, 0.0  ;;  %v2514_v18 = vmax.f32 %v3365_v9, 0.0 }
 0x203   :  { %v3247_v19 = vpack.c.bf16 %v2501_v12, %v2500_v4  ;;  %v3248_v35 = vpack.c.bf16 %v2503_v49, %v2502_v6  ;;  %v2513_v20 = vmax.f32 %v3350_v13, 0.0  ;;  %v2515_v21 = vmax.f32 %v3366_v14, 0.0 }
 0x205   :  { %2871 = vst [vmem:[%s5095_s3 + $0x80] sm:$0xff] %v3247_v19  ;;  %2872 = vst.msk [vmem:[%s5095_s3 + $0x88] sm:$0xff] %vm5000_vm3, %v3248_v35  ;;  %v3253_v22 = vpack.c.bf16 %v2513_v20, %v2512_v17  ;;  %v3254_v23 = vpack.c.bf16 %v2515_v21, %v2514_v18  ;;  %v2303_v29 = vpop.f32.mrb[40].mxu0  ;;  %v2449_v8 = vpop.f32.mrb[40].mxu1 }
 0x206   :  { %v3351_v31 = vadd.f32 %v2303_v29, %v4852_v24  ;;  %v3367_v32 = vadd.f32 %v2449_v8, %v4852_v24  ;;  %v2305_v33 = vpop.f32.mrb[41].mxu0  ;;  %v2451_v39 = vpop.f32.mrb[41].mxu1 }
 0x207   :  { %2877 = vst [vmem:[%s5095_s3 + $0xb0] sm:$0xff] %v3253_v22  ;;  %2878 = vst.msk [vmem:[%s5095_s3 + $0xb8] sm:$0xff] %vm5000_vm3, %v3254_v23  ;;  %v3352_v36 = vadd.f32 %v2305_v33, %v4852_v24  ;;  %v3368_v37 = vadd.f32 %v2451_v39, %v4852_v24  ;;  %v2307_v38 = vpop.f32.mrb[42].mxu0  ;;  %v2453_v40 = vpop.f32.mrb[42].mxu1 }
 0x208   :  { %v2524_v41 = vmax.f32 %v3351_v31, 0.0  ;;  %v2526_v42 = vmax.f32 %v3367_v32, 0.0  ;;  %v3353_v47 = vadd.f32 %v2307_v38, %v4854_v28  ;;  %v3369_v43 = vadd.f32 %v2453_v40, %v4854_v28  ;;  %v2309_v44 = vpop.f32.mrb[43].mxu0  ;;  %v2455_v45 = vpop.f32.mrb[43].mxu1 }
 0x209   :  { %v2525_v1 = vmax.f32 %v3352_v36, 0.0  ;;  %v2527_v46 = vmax.f32 %v3368_v37, 0.0  ;;  %v3354_v48 = vadd.f32 %v2309_v44, %v4854_v28  ;;  %v3370_v50 = vadd.f32 %v2455_v45, %v4854_v28 }
 0x20a   :  { %v2536_v51 = vmax.f32 %v3353_v47, 0.0  ;;  %v2538_v52 = vmax.f32 %v3369_v43, 0.0 }
 0x20b   :  { %v3259_v53 = vpack.c.bf16 %v2525_v1, %v2524_v41  ;;  %v3260_v24 = vpack.c.bf16 %v2527_v46, %v2526_v42  ;;  %v2537_v54 = vmax.f32 %v3354_v48, 0.0  ;;  %v2539_v55 = vmax.f32 %v3370_v50, 0.0 }
 0x20d   :  { %2883 = vst [vmem:[%s5095_s3 + $0xe0] sm:$0xff] %v3259_v53  ;;  %2884 = vst.msk [vmem:[%s5095_s3 + $0xe8] sm:$0xff] %vm5000_vm3, %v3260_v24  ;;  %v3265_v56 = vpack.c.bf16 %v2537_v54, %v2536_v51  ;;  %v3266_v57 = vpack.c.bf16 %v2539_v55, %v2538_v52  ;;  %v2313_v58 = vpop.f32.mrb[44].mxu0  ;;  %v2459_v28 = vpop.f32.mrb[44].mxu1 }
 0x20e   :  { %v3355_v5 = vadd.f32 %v2313_v58, %v4876_v59  ;;  %v3371_v34 = vadd.f32 %v2459_v28, %v4876_v59  ;;  %v2315_v62 = vpop.f32.mrb[45].mxu0  ;;  %v2461_v63 = vpop.f32.mrb[45].mxu1 }
 0x20f   :  { %2889 = vst [vmem:[%s5095_s3 + $0x110] sm:$0xff] %v3265_v56  ;;  %2890 = vst.msk [vmem:[%s5095_s3 + $0x118] sm:$0xff] %vm5000_vm3, %v3266_v57  ;;  %v3356_v0 = vadd.f32 %v2315_v62, %v4876_v59  ;;  %v3372_v15 = vadd.f32 %v2461_v63, %v4876_v59  ;;  %v2317_v61 = vpop.f32.mrb[46].mxu0  ;;  %v2463_v16 = vpop.f32.mrb[46].mxu1 }
 0x210   :  { %v2548_v2 = vmax.f32 %v3355_v5, 0.0  ;;  %v2550_v25 = vmax.f32 %v3371_v34, 0.0  ;;  %v3357_v26 = vadd.f32 %v2317_v61, %v4878_v60  ;;  %v3373_v27 = vadd.f32 %v2463_v16, %v4878_v60  ;;  %v2319_v3 = vpop.f32.mrb[47].mxu0  ;;  %v2465_v4 = vpop.f32.mrb[47].mxu1 }
 0x211   :  { %v2549_v6 = vmax.f32 %v3356_v0, 0.0  ;;  %v2551_v7 = vmax.f32 %v3372_v15, 0.0  ;;  %v3358_v9 = vadd.f32 %v2319_v3, %v4878_v60  ;;  %v3374_v10 = vadd.f32 %v2465_v4, %v4878_v60 }
 0x212   :  { %v2560_v11 = vmax.f32 %v3357_v26, 0.0  ;;  %v2562_v12 = vmax.f32 %v3373_v27, 0.0 }
 0x213   :  { %v3271_v49 = vpack.c.bf16 %v2549_v6, %v2548_v2  ;;  %v3272_v59 = vpack.c.bf16 %v2551_v7, %v2550_v25  ;;  %v2561_v13 = vmax.f32 %v3358_v9, 0.0  ;;  %v2563_v14 = vmax.f32 %v3374_v10, 0.0 }
 0x215   :  { %2895 = vst [vmem:[%s5095_s3 + $0x140] sm:$0xff] %v3271_v49  ;;  %2896 = vst.msk [vmem:[%s5095_s3 + $0x148] sm:$0xff] %vm5000_vm3, %v3272_v59  ;;  %v3277_v17 = vpack.c.bf16 %v2561_v13, %v2560_v11  ;;  %v3278_v18 = vpack.c.bf16 %v2563_v14, %v2562_v12 }
 0x217   :  { %2901 = vst [vmem:[%s5095_s3 + $0x170] sm:$0xff] %v3277_v17  ;;  %2902 = vst.msk [vmem:[%s5095_s3 + $0x178] sm:$0xff] %vm5000_vm3, %v3278_v18 }

// kernel: cnn_forward.6
= control target key start
LH: loop header
LB: loop body
LE: loop exit
PB: predicated region body
PF: predicated region fallthrough
CT: control target
= control target key end

     0   :  { %v2783_v1 = vmov 0   ;;  %vm2006_vm0 = vcmask 420864   ;;  %s3697_s1 = inlined_call_operand.vmem [shape: bf16[640,308], index: 1, kind: input, shape index: {}]   ;;  %s3698_s0 = inlined_call_operand.vmem [shape: bf16[128,640], index: 0, kind: input, shape index: {}]   ;;  %s3699_s2 = inlined_call_operand.vmem [shape: f32[128,1], index: 2, kind: input, shape index: {}]   ;;  %s3700_s3 = inlined_call_operand.vmem [shape: bf16[128,308], index: 3, kind: output, shape index: {}]  }
   0x1   :  { %v2557_v0 = vld [vmem:[%s3697_s1 + $0x4] ss:$12 sps:$4 sm:$0xff]   ;;  %1465 = vmatprep.mubr.bf16.mxu1 %v2783_v1  ;;  %2555 = vset.pattern.permute.xlu0 %v2783_v1  ;;  %v2561_v3 = vld [vmem:[%s3697_s1] ss:$12 sps:$4 sm:$0xff]   ;;  %v2563_v5 = vld [vmem:[%s3697_s1 + $0x1c] ss:$12 sps:$4 sm:$0xff]  }
   0x2   :  { %v2559_v2 = vld [vmem:[%s3697_s1 + $0x304] ss:$12 sps:$4 sm:$0xff]   ;;  %2556 = vset.pattern.permute.xlu1 %v2783_v1  ;;  %1167 = vmatprep.subr.bf16.mxu0 %v2557_v0  ;;  %v2562_v4 = vld [vmem:[%s3697_s1 + $0x300] ss:$12 sps:$4 sm:$0xff]   ;;  %v2565_v6 = vld [vmem:[%s3697_s1 + $0x31c] ss:$12 sps:$4 sm:$0xff]  }
   0x3   :  { %2442 = vmatprep.subr.bf16.mxu1 %v2559_v2  ;;  %1168 = vmatpush1.bf16.msra.mxu0 %v2561_v3  ;;  %v2567_v7 = vld [vmem:[%s3697_s1 + $0x18] ss:$12 sps:$4 sm:$0xff]   ;;  %v2569_v9 = vld [vmem:[%s3697_s1 + $0x34] ss:$12 sps:$4 sm:$0xff]   ;;  %v2573_v11 = vld [vmem:[%s3697_s1 + $0x30] ss:$12 sps:$4 sm:$0xff]  }
   0x4   :  { %2450 = vmatpush1.bf16.msra.mxu1 %v2562_v4  ;;  %1169 = vmatprep.subr.bf16.mxu0 %v2563_v5  ;;  %v2568_v8 = vld [vmem:[%s3697_s1 + $0x318] ss:$12 sps:$4 sm:$0xff]   ;;  %v2571_v10 = vld [vmem:[%s3697_s1 + $0x334] ss:$12 sps:$4 sm:$0xff]   ;;  %v2574_v12 = vld [vmem:[%s3697_s1 + $0x330] ss:$12 sps:$4 sm:$0xff]  }
   0x5   :  { %2443 = vmatprep.subr.bf16.mxu1 %v2565_v6  ;;  %v2575_v13 = vld [vmem:[%s3697_s1 + $0x4c] ss:$12 sps:$4 sm:$0xff]   ;;  %v2579_v15 = vld [vmem:[%s3697_s1 + $0x48] ss:$12 sps:$4 sm:$0xff]   ;;  %v2581_v17 = vld [vmem:[%s3697_s1 + $0x64] ss:$12 sps:$4 sm:$0xff]  }
   0x6   :  { %v2577_v14 = vld [vmem:[%s3697_s1 + $0x34c] ss:$12 sps:$4 sm:$0xff]   ;;  %v2580_v16 = vld [vmem:[%s3697_s1 + $0x348] ss:$12 sps:$4 sm:$0xff]   ;;  %v2861_v18 = vld [vmem:[%s3697_s1 + $0x364] ss:$12 sps:$4 sm:$0xff]  }
   0x7   :  { %1170 = vmatpush1.bf16.msra.mxu0 %v2567_v7  ;;  %v2585_v19 = vld [vmem:[%s3697_s1 + $0x60] ss:$12 sps:$4 sm:$0xff]   ;;  %v2587_v21 = vld [vmem:[%s3697_s1 + $0x7c] ss:$12 sps:$4 sm:$0xff]   ;;  %v2591_v23 = vld [vmem:[%s3697_s1 + $0x78] ss:$12 sps:$4 sm:$0xff]  }
   0x8   :  { %2451 = vmatpush1.bf16.msra.mxu1 %v2568_v8  ;;  %1171 = vmatprep.subr.bf16.mxu0 %v2569_v9  ;;  %v2586_v20 = vld [vmem:[%s3697_s1 + $0x360] ss:$12 sps:$4 sm:$0xff]   ;;  %v2876_v22 = vld [vmem:[%s3697_s1 + $0x37c] ss:$12 sps:$4 sm:$0xff]   ;;  %v2884_v24 = vld [vmem:[%s3697_s1 + $0x378] ss:$12 sps:$4 sm:$0xff]  }
   0x9   :  { %2444 = vmatprep.subr.bf16.mxu1 %v2571_v10  ;;  %v2593_v25 = vld [vmem:[%s3697_s1 + $0x94] ss:$12 sps:$4 sm:$0xff]   ;;  %v2597_v27 = vld [vmem:[%s3697_s1 + $0x90] ss:$12 sps:$4 sm:$0xff]   ;;  %v2599_v29 = vld [vmem:[%s3697_s1 + $0xac] ss:$12 sps:$4 sm:$0xff]  }
   0xa   :  { %v2893_v26 = vld [vmem:[%s3697_s1 + $0x394] ss:$12 sps:$4 sm:$0xff]   ;;  %v2902_v28 = vld [vmem:[%s3697_s1 + $0x390] ss:$12 sps:$4 sm:$0xff]   ;;  %v2911_v30 = vld [vmem:[%s3697_s1 + $0x3ac] ss:$12 sps:$4 sm:$0xff]  }
   0xb   :  { %1172 = vmatpush1.bf16.msra.mxu0 %v2573_v11  ;;  %v2603_v31 = vld [vmem:[%s3697_s1 + $0xa8] ss:$12 sps:$4 sm:$0xff]   ;;  %v2605_v33 = vld [vmem:[%s3697_s1 + $0xc4] ss:$12 sps:$4 sm:$0xff]   ;;  %v2609_v36 = vld [vmem:[%s3697_s1 + $0xc0] ss:$12 sps:$4 sm:$0xff]  }
   0xc   :  { %2452 = vmatpush1.bf16.msra.mxu1 %v2574_v12  ;;  %1173 = vmatprep.subr.bf16.mxu0 %v2575_v13  ;;  %v2919_v32 = vld [vmem:[%s3697_s1 + $0x3a8] ss:$12 sps:$4 sm:$0xff]   ;;  %v2607_v34 = vld [vmem:[%s3698_s0 + $0xb0] ss:$20 sps:$4 sm:$0xff]   ;;  %v2613_v39 = vld [vmem:[%s3697_s1 + $0xe0] ss:$12 sps:$4 sm:$0xff]  }
   0xd   :  { %2445 = vmatprep.subr.bf16.mxu1 %v2577_v14  ;;  %v2608_v35 = vld [vmem:[%s3697_s1 + $0xc8] ss:$12 sps:$4 sm:$0xff]   ;;  %v2614_v40 = vld [vmem:[%s3697_s1 + $0xd8] ss:$12 sps:$4 sm:$0xff]   ;;  %v2615_v41 = vld [vmem:[%s3697_s1 + $0x20] ss:$12 sps:$4 sm:$0xff]  }
   0xe   :  { %v2610_v37 = vld [vmem:[%s3697_s1 + $0x8] ss:$12 sps:$4 sm:$0xff]   ;;  %v2619_v43 = vld [vmem:[%s3697_s1 + $0xf8] ss:$12 sps:$4 sm:$0xff]   ;;  %v2620_v45 = vld [vmem:[%s3697_s1 + $0xf0] ss:$12 sps:$4 sm:$0xff]  }
   0xf   :  { %1174 = vmatpush1.bf16.msra.mxu0 %v2579_v15  ;;  %v2611_v38 = vld [vmem:[%s3697_s1 + $0xdc] ss:$12 sps:$4 sm:$0xff]   ;;  %v2616_v42 = vld [vmem:[%s3697_s1 + $0xf4] ss:$12 sps:$4 sm:$0xff]   ;;  %v2961_v44 = vld [vmem:[%s3698_s0 + $0xd8] ss:$20 sps:$4 sm:$0xff]  }
  0x10   :  { %2453 = vmatpush1.bf16.msra.mxu1 %v2580_v16  ;;  %1175 = vmatprep.subr.bf16.mxu0 %v2581_v17  ;;  %v2621_v46 = vld [vmem:[%s3697_s1 + $0x38] ss:$12 sps:$4 sm:$0xff]   ;;  %v2624_v48 = vld [vmem:[%s3697_s1 + $0x110] ss:$12 sps:$4 sm:$0xff]   ;;  %v2625_v49 = vld [vmem:[%s3697_s1 + $0x108] ss:$12 sps:$4 sm:$0xff]  }
  0x11   :  { %2446 = vmatprep.subr.bf16.mxu1 %v2861_v18  ;;  %v2622_v47 = vld [vmem:[%s3697_s1 + $0x10c] ss:$12 sps:$4 sm:$0xff]   ;;  %v2626_v50 = vld [vmem:[%s3697_s1 + $0x50] ss:$12 sps:$4 sm:$0xff]   ;;  %v2630_v52 = vld [vmem:[%s3697_s1 + $0x128] ss:$12 sps:$4 sm:$0xff]  }
  0x12   :  { %v2627_v51 = vld [vmem:[%s3697_s1 + $0x124] ss:$12 sps:$4 sm:$0xff]   ;;  %v2992_v53 = vld [vmem:[%s3698_s0 + $0x100] ss:$20 sps:$4 sm:$0xff]   ;;  %v2633_v56 = vld [vmem:[%s3697_s1 + $0x13c] ss:$12 sps:$4 sm:$0xff]  }
  0x13   :  { %1176 = vmatpush1.bf16.msra.mxu0 %v2585_v19  ;;  %v2631_v54 = vld [vmem:[%s3697_s1 + $0x120] ss:$12 sps:$4 sm:$0xff]   ;;  %v2632_v55 = vld [vmem:[%s3697_s1 + $0x68] ss:$12 sps:$4 sm:$0xff]   ;;  %v2636_v58 = vld [vmem:[%s3697_s1 + $0x138] ss:$12 sps:$4 sm:$0xff]  }
  0x14   :  { %2454 = vmatpush1.bf16.msra.mxu1 %v2586_v20  ;;  %1177 = vmatprep.subr.bf16.mxu0 %v2587_v21  ;;  %v2635_v57 = vld [vmem:[%s3697_s1 + $0x140] ss:$12 sps:$4 sm:$0xff]   ;;  %v2641_v61 = vld [vmem:[%s3697_s1 + $0x158] ss:$12 sps:$4 sm:$0xff]   ;;  %v3026_v63 = vld [vmem:[%s3698_s0 + $0x128] ss:$20 sps:$4 sm:$0xff]  }
  0x15   :  { %2447 = vmatprep.subr.bf16.mxu1 %v2876_v22  ;;  %v2637_v59 = vld [vmem:[%s3697_s1 + $0x80] ss:$12 sps:$4 sm:$0xff]   ;;  %v2651_v62 = vld [vmem:[%s3698_s0 + $0x4] ss:$20 sps:$4 sm:$0xff]   ;;  %v2642_v0 = vld [vmem:[%s3697_s1 + $0x150] ss:$12 sps:$4 sm:$0xff]  }
  0x16   :  { %v2638_v60 = vld [vmem:[%s3697_s1 + $0x154] ss:$12 sps:$4 sm:$0xff]   ;;  %1199 = vmatprep.mubr.bf16.mxu0 %v2651_v62  ;;  %v2643_v2 = vld [vmem:[%s3697_s1 + $0x98] ss:$12 sps:$4 sm:$0xff]   ;;  %v2646_v4 = vld [vmem:[%s3697_s1 + $0x170] ss:$12 sps:$4 sm:$0xff]  }
  0x17   :  { %1178 = vmatpush1.bf16.msra.mxu0 %v2591_v23  ;;  %v2644_v3 = vld [vmem:[%s3697_s1 + $0x16c] ss:$12 sps:$4 sm:$0xff]   ;;  %v2647_v5 = vld [vmem:[%s3697_s1 + $0x168] ss:$12 sps:$4 sm:$0xff]   ;;  %v2648_v6 = vld [vmem:[%s3697_s1 + $0xb0] ss:$12 sps:$4 sm:$0xff]  }
  0x18   :  { %2455 = vmatpush1.bf16.msra.mxu1 %v2884_v24  ;;  %1179 = vmatprep.subr.bf16.mxu0 %v2593_v25  ;;  %v2654_v7 = vld [vmem:[%s3697_s1 + $0x184] ss:$12 sps:$4 sm:$0xff]   ;;  %v2655_v8 = vld [vmem:[%s3697_s1 + $0x248] ss:$12 sps:$4 sm:$0xff]   ;;  %v2652_v10 = vld [vmem:[%s3697_s1 + $0x180] ss:$12 sps:$4 sm:$0xff]  }
  0x19   :  { %2448 = vmatprep.subr.bf16.mxu1 %v2893_v26  ;;  %v2649_v9 = vld [vmem:[%s3698_s0] ss:$20 sps:$4 sm:$0xff]   ;;  %v2659_v12 = vld [vmem:[%s3697_s1 + $0x19c] ss:$12 sps:$4 sm:$0xff]   ;;  %v2657_v15 = vld [vmem:[%s3697_s1 + $0x198] ss:$12 sps:$4 sm:$0xff]  }
  0x1a   :  { %v2656_v11 = vld [vmem:[%s3697_s1 + $0x188] ss:$12 sps:$4 sm:$0xff]   ;;  %v2660_v13 = vld [vmem:[%s3698_s0 + $0x2c] ss:$20 sps:$4 sm:$0xff]   ;;  %v2677_v19 = vld [vmem:[%s3697_s1 + $0x278] ss:$12 sps:$4 sm:$0xff]  }
  0x1b   :  { %1180 = vmatpush1.bf16.msra.mxu0 %v2597_v27  ;;  %v2666_v14 = vld [vmem:[%s3697_s1 + $0x260] ss:$12 sps:$4 sm:$0xff]   ;;  %v2662_v20 = vld [vmem:[%s3698_s0 + $0x28] ss:$20 sps:$4 sm:$0xff]   ;;  %v2678_v27 = vld [vmem:[%s3697_s1 + $0x1b8] ss:$12 sps:$4 sm:$0xff]  }
  0x1c   :  { %2456 = vmatpush1.bf16.msra.mxu1 %v2902_v28  ;;  %1181 = vmatprep.subr.bf16.mxu0 %v2599_v29  ;;  %v2667_v16 = vld [vmem:[%s3697_s1 + $0x1a0] ss:$12 sps:$4 sm:$0xff]   ;;  %v2663_v21 = vld [vmem:[%s3697_s1 + $0x1b0] ss:$12 sps:$4 sm:$0xff]   ;;  %v2671_v23 = vld [vmem:[%s3698_s0 + $0x54] ss:$20 sps:$4 sm:$0xff]  }
  0x1d   :  { %2449 = vmatprep.subr.bf16.mxu1 %v2911_v30  ;;  %v2665_v17 = vld [vmem:[%s3697_s1 + $0x1b4] ss:$12 sps:$4 sm:$0xff]   ;;  %v2670_v25 = vld [vmem:[%s3697_s1 + $0x1cc] ss:$12 sps:$4 sm:$0xff]   ;;  %v2688_v29 = vld [vmem:[%s3697_s1 + $0x290] ss:$12 sps:$4 sm:$0xff]  }
  0x1f   :  { %1182 = vmatpush1.bf16.msra.mxu0 %v2603_v31  ;;  %v2668_v31 = vld [vmem:[%s3697_s1 + $0x1c8] ss:$12 sps:$4 sm:$0xff]  }
  0x20   :  { %2457 = vmatpush1.bf16.msra.mxu1 %v2919_v32  ;;  %1183 = vmatprep.subr.bf16.mxu0 %v2605_v33  ;;  %v2676_v33 = vld [vmem:[%s3697_s1 + $0x1e4] ss:$12 sps:$4 sm:$0xff]  }
  0x21   :  { %2266 = vmatprep.subr.bf16.mxu1 %v2608_v35  ;;  %v2689_v35 = vld [vmem:[%s3697_s1 + $0x1d0] ss:$12 sps:$4 sm:$0xff]  }
  0x23   :  { %1466 = vmatmul.mubr.bf16.vlgmr.msra.gmra.mrb[0].mxu1 %v2607_v34  ;;  %1184 = vmatpush1.bf16.msra.mxu0 %v2609_v36  ;;  %v2673_v34 = vld [vmem:[%s3698_s0 + $0x50] ss:$20 sps:$4 sm:$0xff]   ;;  %v2674_v36 = vld [vmem:[%s3697_s1 + $0x1e0] ss:$12 sps:$4 sm:$0xff]  }
  0x24   :  { %2267 = vmatpush3.bf16.msra.mxu1 %v2610_v37  ;;  %1185 = vmatprep.subr.bf16.mxu0 %v2611_v38  ;;  %v2682_v37 = vld [vmem:[%s3698_s0 + $0x7c] ss:$20 sps:$4 sm:$0xff]  }
  0x25   :  { %2268 = vmatprep.subr.bf16.mxu1 %v2613_v39  ;;  %1475 = vmatprep.mubr.bf16.mxu1 %v2783_v1  ;;  %v2681_v38 = vld [vmem:[%s3697_s1 + $0x1fc] ss:$12 sps:$4 sm:$0xff]  }
  0x26   :  { %v2699_v39 = vld [vmem:[%s3697_s1 + $0x2a8] ss:$12 sps:$4 sm:$0xff]  }
  0x27   :  { %1186 = vmatpush1.bf16.msra.mxu0 %v2614_v40  ;;  %v2700_v40 = vld [vmem:[%s3697_s1 + $0x1e8] ss:$12 sps:$4 sm:$0xff]  }
  0x28   :  { %2269 = vmatpush3.bf16.msra.mxu1 %v2615_v41  ;;  %1187 = vmatprep.subr.bf16.mxu0 %v2616_v42  ;;  %v2679_v41 = vld [vmem:[%s3697_s1 + $0x1f8] ss:$12 sps:$4 sm:$0xff]   ;;  %v2687_v42 = vld [vmem:[%s3697_s1 + $0x214] ss:$12 sps:$4 sm:$0xff]  }
  0x29   :  { %2270 = vmatprep.subr.bf16.mxu1 %v2619_v43  ;;  %v2710_v43 = vld [vmem:[%s3697_s1 + $0x2c0] ss:$12 sps:$4 sm:$0xff]  }
  0x2b   :  { %1476 = vmatmul.mubr.bf16.gmra.mrb[4].mxu1 %v2961_v44  ;;  %1188 = vmatpush1.bf16.msra.mxu0 %v2620_v45  ;;  %v2684_v45 = vld [vmem:[%s3698_s0 + $0x78] ss:$20 sps:$4 sm:$0xff]  }
  0x2c   :  { %2271 = vmatpush3.bf16.msra.mxu1 %v2621_v46  ;;  %1189 = vmatprep.subr.bf16.mxu0 %v2622_v47  ;;  %v2685_v46 = vld [vmem:[%s3697_s1 + $0x210] ss:$12 sps:$4 sm:$0xff]   ;;  %v2693_v47 = vld [vmem:[%s3698_s0 + $0xa4] ss:$20 sps:$4 sm:$0xff]  }
  0x2d   :  { %2272 = vmatprep.subr.bf16.mxu1 %v2624_v48  ;;  %1485 = vmatprep.mubr.bf16.mxu1 %v2783_v1  ;;  %v2692_v48 = vld [vmem:[%s3697_s1 + $0x22c] ss:$12 sps:$4 sm:$0xff]  }
  0x2f   :  { %1190 = vmatpush1.bf16.msra.mxu0 %v2625_v49  ;;  %v2711_v49 = vld [vmem:[%s3697_s1 + $0x200] ss:$12 sps:$4 sm:$0xff]  }
  0x30   :  { %2273 = vmatpush3.bf16.msra.mxu1 %v2626_v50  ;;  %1191 = vmatprep.subr.bf16.mxu0 %v2627_v51  ;;  %v2721_v50 = vld [vmem:[%s3697_s1 + $0x2d8] ss:$12 sps:$4 sm:$0xff]   ;;  %v2690_v51 = vld [vmem:[%s3697_s1 + $0x228] ss:$12 sps:$4 sm:$0xff]  }
  0x31   :  { %2274 = vmatprep.subr.bf16.mxu1 %v2630_v52  ;;  %v2698_v52 = vld [vmem:[%s3697_s1 + $0x244] ss:$12 sps:$4 sm:$0xff]  }
  0x33   :  { %1486 = vmatmul.mubr.bf16.gmra.mrb[8].mxu1 %v2992_v53  ;;  %1192 = vmatpush1.bf16.msra.mxu0 %v2631_v54  ;;  %v2722_v54 = vld [vmem:[%s3697_s1 + $0x218] ss:$12 sps:$4 sm:$0xff]  }
  0x34   :  { %2275 = vmatpush3.bf16.msra.mxu1 %v2632_v55  ;;  %1193 = vmatprep.subr.bf16.mxu0 %v2633_v56  ;;  %v2695_v55 = vld [vmem:[%s3698_s0 + $0xa0] ss:$20 sps:$4 sm:$0xff]  }
  0x35   :  { %2276 = vmatprep.subr.bf16.mxu1 %v2635_v57  ;;  %1495 = vmatprep.mubr.bf16.mxu1 %v2783_v1  ;;  %v2696_v56 = vld [vmem:[%s3697_s1 + $0x240] ss:$12 sps:$4 sm:$0xff]  }
  0x36   :  { %v2704_v57 = vld [vmem:[%s3698_s0 + $0xcc] ss:$20 sps:$4 sm:$0xff]  }
  0x37   :  { %1194 = vmatpush1.bf16.msra.mxu0 %v2636_v58  ;;  %v2703_v58 = vld [vmem:[%s3697_s1 + $0x25c] ss:$12 sps:$4 sm:$0xff]  }
  0x38   :  { %2277 = vmatpush3.bf16.msra.mxu1 %v2637_v59  ;;  %1195 = vmatprep.subr.bf16.mxu0 %v2638_v60  ;;  %v2732_v59 = vld [vmem:[%s3697_s1 + $0x2f0] ss:$12 sps:$4 sm:$0xff]  }
  0x39   :  { %2278 = vmatprep.subr.bf16.mxu1 %v2641_v61  ;;  %v2733_v60 = vld [vmem:[%s3697_s1 + $0x230] ss:$12 sps:$4 sm:$0xff]   ;;  %v2701_v61 = vld [vmem:[%s3697_s1 + $0x258] ss:$12 sps:$4 sm:$0xff]  }
  0x3b   :  { %1496 = vmatmul.mubr.bf16.gmra.mrb[12].mxu1 %v3026_v63  ;;  %1196 = vmatpush1.bf16.msra.mxu0 %v2642_v0  ;;  %v3191_v0 = vld [vmem:[%s3697_s1 + $0x308] ss:$12 sps:$4 sm:$0xff]  }
  0x3c   :  { %2279 = vmatpush3.bf16.msra.mxu1 %v2643_v2  ;;  %1197 = vmatprep.subr.bf16.mxu0 %v2644_v3  ;;  %v2706_v2 = vld [vmem:[%s3698_s0 + $0xc8] ss:$20 sps:$4 sm:$0xff]  }
  0x3d   :  { %2280 = vmatprep.subr.bf16.mxu1 %v2646_v4  ;;  %1538 = vmatprep.mubr.bf16.mxu1 %v2651_v62  ;;  %v2709_v62 = vld [vmem:[%s3697_s1 + $0x274] ss:$12 sps:$4 sm:$0xff]   ;;  %v2707_v3 = vld [vmem:[%s3697_s1 + $0x270] ss:$12 sps:$4 sm:$0xff]  }
  0x3e   :  { %v2715_v4 = vld [vmem:[%s3698_s0 + $0xf4] ss:$20 sps:$4 sm:$0xff]  }
  0x3f   :  { %1198 = vmatpush1.bf16.msra.mxu0 %v2647_v5  ;;  %v2714_v5 = vld [vmem:[%s3697_s1 + $0x28c] ss:$12 sps:$4 sm:$0xff]  }
  0x40   :  { %2281 = vmatpush3.bf16.msra.mxu1 %v2648_v6  ;;  %1280 = vmatprep.subr.bf16.mxu0 %v2654_v7  ;;  %v223_v6 = vld [vmem:[%s3699_s2] sm:$0xff]  ;;  %v2712_v7 = vld [vmem:[%s3697_s1 + $0x288] ss:$12 sps:$4 sm:$0xff]  }
  0x41   :  { %2330 = vmatprep.subr.bf16.mxu1 %v2655_v8  ;;  %v2720_v8 = vld [vmem:[%s3697_s1 + $0x2a4] ss:$12 sps:$4 sm:$0xff]   ;;  %241 = vperm.xlu0 %2555, %v223_v6  }
  0x42   :  { %1200 = vmatmul.mubr.bf16.vlgmr.msra.gmra.mrb[0].mxu0 %v2649_v9  ;;  %v2769_v6 = vld [vmem:[%s3698_s0 + $0x10] ss:$20 sps:$4 sm:$0xff]  }
  0x43   :  { %1539 = vmatmul.mubr.bf16.vlgmr.msra.gmra.mrb[16].mxu1 %v2649_v9  ;;  %1281 = vmatpush1.bf16.msra.mxu0 %v2652_v10  ;;  %v225_v9 = vld [vmem:[%s3699_s2 + $0x10] sm:$0xff] }
  0x44   :  { %2331 = vmatpush3.bf16.msra.mxu1 %v2656_v11  ;;  %1282 = vmatprep.subr.bf16.mxu0 %v2659_v12  ;;  %v2717_v10 = vld [vmem:[%s3698_s0 + $0xf0] ss:$20 sps:$4 sm:$0xff]   ;;  %v224_v11 = vld [vmem:[%s3699_s2 + $0x8] sm:$0xff] }
  0x45   :  { %1209 = vmatprep.mubr.bf16.mxu0 %v2660_v13  ;;  %1546 = vmatprep.mubr.bf16.mxu1 %v2660_v13  ;;  %v2718_v12 = vld [vmem:[%s3697_s1 + $0x2a0] ss:$12 sps:$4 sm:$0xff]   ;;  %v2726_v13 = vld [vmem:[%s3698_s0 + $0x11c] ss:$20 sps:$4 sm:$0xff]  }
  0x46   :  { %2332 = vmatprep.subr.bf16.mxu1 %v2666_v14  ;;  %251 = vperm.xlu1 %2556, %v225_v9   ;;  %v2725_v14 = vld [vmem:[%s3697_s1 + $0x2bc] ss:$12 sps:$4 sm:$0xff]  }
  0x47   :  { %1283 = vmatpush1.bf16.msra.mxu0 %v2657_v15  ;;  %246 = vperm.xlu0 %2555, %v224_v11   ;;  %v226_v15 = vld [vmem:[%s3699_s2 + $0x18] sm:$0xff] }
  0x48   :  { %2333 = vmatpush3.bf16.msra.mxu1 %v2667_v16  ;;  %1284 = vmatprep.subr.bf16.mxu0 %v2665_v17  ;;  %v227_v16 = vld [vmem:[%s3699_s2 + $0x20] sm:$0xff]  ;;  %v2772_v9 = vld [vmem:[%s3698_s0 + $0x88] ss:$20 sps:$4 sm:$0xff]  }
  0x49   :  { %2334 = vmatprep.subr.bf16.mxu1 %v2677_v19  ;;  %v2723_v17 = vld [vmem:[%s3697_s1 + $0x2b8] ss:$12 sps:$4 sm:$0xff]   ;;  %v2731_v19 = vld [vmem:[%s3697_s1 + $0x2d4] ss:$12 sps:$4 sm:$0xff]  }
  0x4a   :  { %1210 = vmatmul.mubr.bf16.gmra.mrb[4].mxu0 %v2662_v20  ;;  %256 = vperm.xlu1 %2556, %v226_v15  }
  0x4b   :  { %1547 = vmatmul.mubr.bf16.gmra.mrb[20].mxu1 %v2662_v20  ;;  %1285 = vmatpush1.bf16.msra.mxu0 %v2663_v21  ;;  %v2728_v20 = vld [vmem:[%s3698_s0 + $0x118] ss:$20 sps:$4 sm:$0xff]  }
  0x4c   :  { %1219 = vmatprep.mubr.bf16.mxu0 %v2671_v23  ;;  %1286 = vmatprep.subr.bf16.mxu0 %v2670_v25  ;;  %v228_v21 = vld [vmem:[%s3699_s2 + $0x28] sm:$0xff]  ;;  %v2729_v25 = vld [vmem:[%s3697_s1 + $0x2d0] ss:$12 sps:$4 sm:$0xff]  }
  0x4d   :  { %1554 = vmatprep.mubr.bf16.mxu1 %v2671_v23  ;;  %2335 = vmatpush3.bf16.msra.mxu1 %v2678_v27  ;;  %v229_v23 = vld [vmem:[%s3699_s2 + $0x30] sm:$0xff]  ;;  %v2739_v27 = vld [vmem:[%s3698_s0 + $0xc] ss:$20 sps:$4 sm:$0xff]  }
  0x4e   :  { %2336 = vmatprep.subr.bf16.mxu1 %v2688_v29  ;;  %261 = vperm.xlu0 %2555, %v227_v16   ;;  %v2736_v29 = vld [vmem:[%s3697_s1 + $0x2ec] ss:$12 sps:$4 sm:$0xff]  }
  0x4f   :  { %1287 = vmatpush1.bf16.msra.mxu0 %v2668_v31  ;;  %266 = vperm.xlu1 %2556, %v228_v21   ;;  %v230_v31 = vld [vmem:[%s3699_s2 + $0x38] sm:$0xff] }
  0x50   :  { %1288 = vmatprep.subr.bf16.mxu0 %v2676_v33  ;;  %v231_v33 = vld [vmem:[%s3699_s2 + $0x40] sm:$0xff] }
  0x51   :  { %2337 = vmatpush3.bf16.msra.mxu1 %v2689_v35  ;;  %v2737_v35 = vld [vmem:[%s3698_s0 + $0x8] ss:$20 sps:$4 sm:$0xff]  }
  0x52   :  { %1220 = vmatmul.mubr.bf16.gmra.mrb[8].mxu0 %v2673_v34  ;;  %2338 = vmatprep.subr.bf16.mxu1 %v2699_v39  ;;  %v2741_v39 = vld [vmem:[%s3698_s0 + $0x34] ss:$20 sps:$4 sm:$0xff]  }
  0x53   :  { %1555 = vmatmul.mubr.bf16.gmra.mrb[24].mxu1 %v2673_v34  ;;  %1289 = vmatpush1.bf16.msra.mxu0 %v2674_v36  ;;  %v2734_v34 = vld [vmem:[%s3697_s1 + $0x2e8] ss:$12 sps:$4 sm:$0xff]  }
  0x54   :  { %1229 = vmatprep.mubr.bf16.mxu0 %v2682_v37  ;;  %1290 = vmatprep.subr.bf16.mxu0 %v2681_v38  ;;  %v232_v36 = vld [vmem:[%s3699_s2 + $0x48] sm:$0xff]  ;;  %v2773_v38 = vld [vmem:[%s3697_s1 + $0x304] ss:$12 sps:$4 sm:$0xff]  }
  0x55   :  { %1562 = vmatprep.mubr.bf16.mxu1 %v2682_v37  ;;  %2339 = vmatpush3.bf16.msra.mxu1 %v2700_v40  ;;  %v233_v37 = vld [vmem:[%s3699_s2 + $0x50] sm:$0xff]  ;;  %v2744_v40 = vld [vmem:[%s3697_s1 + $0x320] ss:$12 sps:$4 sm:$0xff]  }
  0x56   :  { %2340 = vmatprep.subr.bf16.mxu1 %v2710_v43  ;;  %271 = vperm.xlu0 %2555, %v229_v23   ;;  %v235_v43 = vld [vmem:[%s3699_s2 + $0x60] sm:$0xff] }
  0x57   :  { %1291 = vmatpush1.bf16.msra.mxu0 %v2679_v41  ;;  %276 = vperm.xlu1 %2556, %v230_v31   ;;  %v2774_v41 = vld [vmem:[%s3697_s1 + $0x300] ss:$12 sps:$4 sm:$0xff]  }
  0x58   :  { %1292 = vmatprep.subr.bf16.mxu0 %v2687_v42  ;;  %v234_v42 = vld [vmem:[%s3699_s2 + $0x58] sm:$0xff] }
  0x59   :  { %2341 = vmatpush3.bf16.msra.mxu1 %v2711_v49  ;;  %v2745_v49 = vld [vmem:[%s3698_s0 + $0x5c] ss:$20 sps:$4 sm:$0xff]  }
  0x5a   :  { %1230 = vmatmul.mubr.bf16.gmra.mrb[12].mxu0 %v2684_v45  ;;  %2342 = vmatprep.subr.bf16.mxu1 %v2721_v50  ;;  %v2777_v50 = vld [vmem:[%s3697_s1 + $0x334] ss:$12 sps:$4 sm:$0xff]  }
  0x5b   :  { %1563 = vmatmul.mubr.bf16.gmra.mrb[28].mxu1 %v2684_v45  ;;  %1293 = vmatpush1.bf16.msra.mxu0 %v2685_v46  ;;  %v2748_v45 = vld [vmem:[%s3697_s1 + $0x338] ss:$12 sps:$4 sm:$0xff]   ;;  %v2775_v46 = vld [vmem:[%s3697_s1 + $0x31c] ss:$12 sps:$4 sm:$0xff]  }
  0x5c   :  { %1239 = vmatprep.mubr.bf16.mxu0 %v2693_v47  ;;  %1294 = vmatprep.subr.bf16.mxu0 %v2692_v48  ;;  %v2776_v48 = vld [vmem:[%s3697_s1 + $0x318] ss:$12 sps:$4 sm:$0xff]  }
  0x5d   :  { %1570 = vmatprep.mubr.bf16.mxu1 %v2693_v47  ;;  %2343 = vmatpush3.bf16.msra.mxu1 %v2722_v54  ;;  %v2743_v47 = vld [vmem:[%s3698_s0 + $0x30] ss:$20 sps:$4 sm:$0xff]  }
  0x5e   :  { %2344 = vmatprep.subr.bf16.mxu1 %v2732_v59  ;;  %281 = vperm.xlu0 %2555, %v231_v33   ;;  %v237_v54 = vld [vmem:[%s3699_s2 + $0x70] sm:$0xff]  ;;  %v2749_v59 = vld [vmem:[%s3698_s0 + $0x84] ss:$20 sps:$4 sm:$0xff]  }
  0x5f   :  { %1295 = vmatpush1.bf16.msra.mxu0 %v2690_v51  ;;  %286 = vperm.xlu1 %2556, %v232_v36   ;;  %v2752_v51 = vld [vmem:[%s3697_s1 + $0x350] ss:$12 sps:$4 sm:$0xff]  }
  0x60   :  { %1296 = vmatprep.subr.bf16.mxu0 %v2698_v52  ;;  %v236_v52 = vld [vmem:[%s3699_s2 + $0x68] sm:$0xff] }
  0x61   :  { %2345 = vmatpush3.bf16.msra.mxu1 %v2733_v60  ;;  %v2780_v60 = vld [vmem:[%s3697_s1 + $0x348] ss:$12 sps:$4 sm:$0xff]  }
  0x62   :  { %1240 = vmatmul.mubr.bf16.gmra.mrb[16].mxu0 %v2695_v55  ;;  %2410 = vmatprep.subr.bf16.mxu1 %v3191_v0 }
  0x63   :  { %1571 = vmatmul.mubr.bf16.gmra.mrb[32].mxu1 %v2695_v55  ;;  %1297 = vmatpush1.bf16.msra.mxu0 %v2696_v56  ;;  %v2778_v55 = vld [vmem:[%s3697_s1 + $0x330] ss:$12 sps:$4 sm:$0xff]   ;;  %v2779_v56 = vld [vmem:[%s3697_s1 + $0x34c] ss:$12 sps:$4 sm:$0xff]  }
  0x64   :  { %1249 = vmatprep.mubr.bf16.mxu0 %v2704_v57  ;;  %1298 = vmatprep.subr.bf16.mxu0 %v2703_v58  ;;  %v2747_v58 = vld [vmem:[%s3698_s0 + $0x58] ss:$20 sps:$4 sm:$0xff]  }
  0x65   :  { %1578 = vmatprep.mubr.bf16.mxu1 %v2704_v57  ;;  %291 = vperm.xlu0 %2555, %v233_v37   ;;  %v2756_v57 = vld [vmem:[%s3697_s1 + $0x368] ss:$12 sps:$4 sm:$0xff]  }
  0x66   :  { %296 = vperm.xlu1 %2556, %v234_v42  }
  0x67   :  { %1299 = vmatpush1.bf16.msra.mxu0 %v2701_v61  ;;  %v2760_v61 = vld [vmem:[%s3697_s1 + $0x380] ss:$12 sps:$4 sm:$0xff]  }
  0x68   :  { %1300 = vmatprep.subr.bf16.mxu0 %v2709_v62  ;;  %v238_v62 = vld [vmem:[%s3699_s2 + $0x78] sm:$0xff] }
  0x69   :  { %301 = vperm.xlu0 %2555, %v235_v43  }
  0x6a   :  { %1250 = vmatmul.mubr.bf16.gmra.mrb[20].mxu0 %v2706_v2  ;;  %306 = vperm.xlu1 %2556, %v236_v52  }
  0x6b   :  { %1579 = vmatmul.mubr.bf16.gmra.mrb[36].mxu1 %v2706_v2  ;;  %1301 = vmatpush1.bf16.msra.mxu0 %v2707_v3  ;;  %v2751_v2 = vld [vmem:[%s3698_s0 + $0x80] ss:$20 sps:$4 sm:$0xff]  }
  0x6c   :  { %1259 = vmatprep.mubr.bf16.mxu0 %v2715_v4  ;;  %1302 = vmatprep.subr.bf16.mxu0 %v2714_v5  ;;  %v2753_v3 = vld [vmem:[%s3698_s0 + $0xac] ss:$20 sps:$4 sm:$0xff]  }
  0x6d   :  { %1586 = vmatprep.mubr.bf16.mxu1 %v2715_v4  ;;  %311 = vperm.xlu0 %2555, %v237_v54   ;;  %v2765_v4 = vld [vmem:[%s3698_s0 + $0x124] ss:$20 sps:$4 sm:$0xff]   ;;  %v2767_v5 = vld [vmem:[%s3698_s0 + $0x120] ss:$20 sps:$4 sm:$0xff]  }
  0x6e   :  { %316 = vperm.xlu1 %2556, %v238_v62  }
  0x6f   :  { %1303 = vmatpush1.bf16.msra.mxu0 %v2712_v7  ;;  %v2770_v7 = vld [vmem:[%s3698_s0 + $0x38] ss:$20 sps:$4 sm:$0xff]  }
  0x70   :  { %1304 = vmatprep.subr.bf16.mxu0 %v2720_v8  ;;  %v2771_v8 = vld [vmem:[%s3698_s0 + $0x60] ss:$20 sps:$4 sm:$0xff]  }
  0x72   :  { %1260 = vmatmul.mubr.bf16.gmra.mrb[24].mxu0 %v2717_v10 }
  0x73   :  { %1587 = vmatmul.mubr.bf16.gmra.mrb[40].mxu1 %v2717_v10  ;;  %1305 = vmatpush1.bf16.msra.mxu0 %v2718_v12  ;;  %v2782_v10 = vld [vmem:[%s3698_s0 + $0xb0] ss:$20 sps:$4 sm:$0xff]  }
  0x74   :  { %1269 = vmatprep.mubr.bf16.mxu0 %v2726_v13  ;;  %1306 = vmatprep.subr.bf16.mxu0 %v2725_v14 }
  0x75   :  { %1594 = vmatprep.mubr.bf16.mxu1 %v2726_v13 }
  0x77   :  { %1307 = vmatpush1.bf16.msra.mxu0 %v2723_v17 }
  0x78   :  { %1308 = vmatprep.subr.bf16.mxu0 %v2731_v19 }
  0x7a   :  { %1270 = vmatmul.mubr.bf16.gmra.mrb[28].mxu0 %v2728_v20 }
  0x7b   :  { %1595 = vmatmul.mubr.bf16.gmra.mrb[44].mxu1 %v2728_v20  ;;  %1309 = vmatpush1.bf16.msra.mxu0 %v2729_v25 }
  0x7c   :  { %1312 = vmatprep.mubr.bf16.mxu0 %v2739_v27  ;;  %1310 = vmatprep.subr.bf16.mxu0 %v2736_v29 }
  0x7d   :  { %1635 = vmatprep.mubr.bf16.mxu1 %v2739_v27 }
  0x7f   :  { %1311 = vmatpush1.bf16.msra.mxu0 %v2734_v34 }
  0x80   :  { %1393 = vmatprep.subr.bf16.mxu0 %v2773_v38 }
  0x82   :  { %1313 = vmatmul.mubr.bf16.vlgmr.msra.gmra.mrb[0].mxu0 %v2737_v35 }
  0x83   :  { %1636 = vmatmul.mubr.bf16.vlgmr.msra.gmra.mrb[48].mxu1 %v2737_v35  ;;  %1394 = vmatpush1.bf16.msra.mxu0 %v2774_v41 }
  0x84   :  { %2411 = vmatpush3.bf16.msra.mxu1 %v3191_v0  ;;  %1322 = vmatprep.mubr.bf16.mxu0 %v2741_v39  ;;  %v2781_v0 = vld [vmem:[%s3697_s1 + $0x360] ss:$12 sps:$4 sm:$0xff]  }
  0x85   :  { %1643 = vmatprep.mubr.bf16.mxu1 %v2741_v39  ;;  %1395 = vmatprep.subr.bf16.mxu0 %v2775_v46 }
  0x86   :  { %2412 = vmatprep.subr.bf16.mxu1 %v2744_v40 }
  0x87   :  { %1396 = vmatpush1.bf16.msra.mxu0 %v2776_v48 }
  0x88   :  { %2413 = vmatpush3.bf16.msra.mxu1 %v2744_v40  ;;  %1397 = vmatprep.subr.bf16.mxu0 %v2777_v50 }
  0x89   :  { %2414 = vmatprep.subr.bf16.mxu1 %v2748_v45 }
  0x8a   :  { %1323 = vmatmul.mubr.bf16.gmra.mrb[4].mxu0 %v2743_v47 }
  0x8b   :  { %1644 = vmatmul.mubr.bf16.gmra.mrb[52].mxu1 %v2743_v47  ;;  %1332 = vmatprep.mubr.bf16.mxu0 %v2745_v49 }
  0x8c   :  { %1651 = vmatprep.mubr.bf16.mxu1 %v2745_v49  ;;  %1398 = vmatpush1.bf16.msra.mxu0 %v2778_v55 }
  0x8d   :  { %2415 = vmatpush3.bf16.msra.mxu1 %v2748_v45  ;;  %1399 = vmatprep.subr.bf16.mxu0 %v2779_v56 }
  0x8e   :  { %2416 = vmatprep.subr.bf16.mxu1 %v2752_v51 }
  0x90   :  { %1400 = vmatpush1.bf16.msra.mxu0 %v2780_v60 }
  0x91   :  { %2417 = vmatpush3.bf16.msra.mxu1 %v2752_v51  ;;  %1401 = vmatprep.subr.bf16.mxu0 %v2861_v18  ;;  %v2764_v18 = vld [vmem:[%s3697_s1 + $0x398] ss:$12 sps:$4 sm:$0xff]  }
  0x92   :  { %2418 = vmatprep.subr.bf16.mxu1 %v2756_v57  ;;  %1333 = vmatmul.mubr.bf16.gmra.mrb[8].mxu0 %v2747_v58 }
  0x93   :  { %1652 = vmatmul.mubr.bf16.gmra.mrb[56].mxu1 %v2747_v58  ;;  %1342 = vmatprep.mubr.bf16.mxu0 %v2749_v59 }
  0x94   :  { %1659 = vmatprep.mubr.bf16.mxu1 %v2749_v59  ;;  %1402 = vmatpush1.bf16.msra.mxu0 %v2781_v0 }
  0x95   :  { %2419 = vmatpush3.bf16.msra.mxu1 %v2756_v57  ;;  %1403 = vmatprep.subr.bf16.mxu0 %v2876_v22  ;;  %v2768_v22 = vld [vmem:[%s3697_s1 + $0x3b0] ss:$12 sps:$4 sm:$0xff]  }
  0x96   :  { %2420 = vmatprep.subr.bf16.mxu1 %v2760_v61 }
  0x98   :  { %1404 = vmatpush1.bf16.msra.mxu0 %v2884_v24  ;;  %v2755_v24 = vld [vmem:[%s3698_s0 + $0xa8] ss:$20 sps:$4 sm:$0xff]  }
  0x99   :  { %2421 = vmatpush3.bf16.msra.mxu1 %v2760_v61  ;;  %1405 = vmatprep.subr.bf16.mxu0 %v2893_v26  ;;  %v2757_v26 = vld [vmem:[%s3698_s0 + $0xd4] ss:$20 sps:$4 sm:$0xff]  }
  0x9a   :  { %2422 = vmatprep.subr.bf16.mxu1 %v2764_v18  ;;  %1343 = vmatmul.mubr.bf16.gmra.mrb[12].mxu0 %v2751_v2 }
  0x9b   :  { %1660 = vmatmul.mubr.bf16.gmra.mrb[60].mxu1 %v2751_v2  ;;  %1352 = vmatprep.mubr.bf16.mxu0 %v2753_v3 }
  0x9c   :  { %1667 = vmatprep.mubr.bf16.mxu1 %v2753_v3  ;;  %1406 = vmatpush1.bf16.msra.mxu0 %v2902_v28  ;;  %v2759_v28 = vld [vmem:[%s3698_s0 + $0xd0] ss:$20 sps:$4 sm:$0xff]  }
  0x9d   :  { %2423 = vmatpush3.bf16.msra.mxu1 %v2764_v18  ;;  %1407 = vmatprep.subr.bf16.mxu0 %v2911_v30  ;;  %v2761_v30 = vld [vmem:[%s3698_s0 + $0xfc] ss:$20 sps:$4 sm:$0xff]  }
  0x9e   :  { %2424 = vmatprep.subr.bf16.mxu1 %v2768_v22 }
  0xa0   :  { %1408 = vmatpush1.bf16.msra.mxu0 %v2919_v32  ;;  %v2763_v32 = vld [vmem:[%s3698_s0 + $0xf8] ss:$20 sps:$4 sm:$0xff]  }
  0xa1   :  { %2425 = vmatpush3.bf16.msra.mxu1 %v2768_v22 }
  0xa2   :  { %1353 = vmatmul.mubr.bf16.gmra.mrb[16].mxu0 %v2755_v24 }
  0xa3   :  { %1668 = vmatmul.mubr.bf16.gmra.mrb[64].mxu1 %v2755_v24  ;;  %1362 = vmatprep.mubr.bf16.mxu0 %v2757_v26 }
  0xa4   :  { %1675 = vmatprep.mubr.bf16.mxu1 %v2757_v26 }
  0xaa   :  { %1363 = vmatmul.mubr.bf16.gmra.mrb[20].mxu0 %v2759_v28 }
  0xab   :  { %1676 = vmatmul.mubr.bf16.gmra.mrb[68].mxu1 %v2759_v28  ;;  %1372 = vmatprep.mubr.bf16.mxu0 %v2761_v30 }
  0xac   :  { %1683 = vmatprep.mubr.bf16.mxu1 %v2761_v30 }
  0xb2   :  { %1373 = vmatmul.mubr.bf16.gmra.mrb[24].mxu0 %v2763_v32 }
  0xb3   :  { %1684 = vmatmul.mubr.bf16.gmra.mrb[72].mxu1 %v2763_v32  ;;  %1382 = vmatprep.mubr.bf16.mxu0 %v2765_v4 }
  0xb4   :  { %1691 = vmatprep.mubr.bf16.mxu1 %v2765_v4 }
  0xba   :  { %1383 = vmatmul.mubr.bf16.gmra.mrb[28].mxu0 %v2767_v5 }
  0xbb   :  { %1692 = vmatmul.mubr.bf16.gmra.mrb[76].mxu1 %v2767_v5  ;;  %1425 = vmatprep.mubr.bf16.mxu0 %v2783_v1 }
  0xbc   :  { %2426 = vmatprep.mubr.bf16.mxu1 %v2769_v6 }
  0xc2   :  { %1426 = vmatmul.mubr.bf16.vlgmr.msra.gmra.mrb[0].mxu0 %v2769_v6 }
  0xc3   :  { %2427 = vmatmul.mubr.bf16.vlgmr.msra.gmra.mrb[80].mxu1 %v2770_v7  ;;  %1435 = vmatprep.mubr.bf16.mxu0 %v2783_v1 }
  0xc4   :  { %2430 = vmatprep.mubr.bf16.mxu1 %v2771_v8 }
  0xca   :  { %1436 = vmatmul.mubr.bf16.gmra.mrb[4].mxu0 %v2770_v7 }
  0xcb   :  { %2431 = vmatmul.mubr.bf16.gmra.mrb[84].mxu1 %v2772_v9  ;;  %1445 = vmatprep.mubr.bf16.mxu0 %v2783_v1 }
  0xcc   :  { %2434 = vmatprep.mubr.bf16.mxu1 %v2782_v10 }
  0xd2   :  { %1446 = vmatmul.mubr.bf16.gmra.mrb[8].mxu0 %v2771_v8 }
  0xd3   :  { %2435 = vmatmul.mubr.bf16.gmra.mrb[88].mxu1 %v2961_v44  ;;  %1455 = vmatprep.mubr.bf16.mxu0 %v2783_v1 }
  0xd4   :  { %2438 = vmatprep.mubr.bf16.mxu1 %v2992_v53 }
  0xda   :  { %1456 = vmatmul.mubr.bf16.gmra.mrb[12].mxu0 %v2772_v9  ;;  %v3468_v9 = vpop.permute.xlu0 %241 }
  0xdb   :  { %2439 = vmatmul.mubr.bf16.gmra.mrb[92].mxu1 %v3026_v63 }
  0xf6   :  { %v3416_v11 = vpop.f32.mrb[0].mxu1 }
  0xf7   :  { %v3418_v12 = vpop.f32.mrb[1].mxu1 }
  0xf8   :  { %v3420_v13 = vpop.f32.mrb[2].mxu1 }
  0xf9   :  { %v3422_v14 = vpop.f32.mrb[3].mxu1 }
  0xfe   :  { %v3424_v15 = vpop.f32.mrb[4].mxu1 }
  0xff   :  { %v3426_v16 = vpop.f32.mrb[5].mxu1 }
 0x100   :  { %v3428_v44 = vpop.f32.mrb[6].mxu1 }
 0x101   :  { %v3430_v1 = vpop.f32.mrb[7].mxu1 }
 0x106   :  { %v3432_v53 = vpop.f32.mrb[8].mxu1 }
 0x107   :  { %v3434_v17 = vpop.f32.mrb[9].mxu1 }
 0x108   :  { %v3436_v63 = vpop.f32.mrb[10].mxu1 }
 0x109   :  { %v3438_v19 = vpop.f32.mrb[11].mxu1 }
 0x10e   :  { %v3440_v20 = vpop.f32.mrb[12].mxu1 }
 0x10f   :  { %v3442_v21 = vpop.f32.mrb[13].mxu1 }
 0x110   :  { %v3444_v23 = vpop.f32.mrb[14].mxu1 }
 0x111   :  { %v3446_v25 = vpop.f32.mrb[15].mxu1 }
 0x116   :  { %v2282_v27 = vpop.f32.mrb[16].mxu1 }
 0x117   :  { %v2283_v29 = vpop.f32.mrb[17].mxu1 }
 0x118   :  { %v2284_v31 = vadd.f32 %v2283_v29, %v2282_v27  ;;  %v2285_v33 = vpop.f32.mrb[18].mxu1 }
 0x119   :  { %v2286_v34 = vpop.f32.mrb[19].mxu1 }
 0x11a   :  { %v2287_v35 = vadd.f32 %v2286_v34, %v2285_v33  ;;  %v3472_v33 = vpop.permute.xlu0 %246 }
 0x11e   :  { %v2288_v36 = vpop.f32.mrb[20].mxu1 }
 0x11f   :  { %v2289_v37 = vpop.f32.mrb[21].mxu1 }
 0x120   :  { %v2290_v38 = vadd.f32 %v2289_v37, %v2288_v36  ;;  %v2291_v39 = vpop.f32.mrb[22].mxu1  ;;  %v1541_v36 = vadd.f32 %v2284_v31, %v3468_v9 }
 0x121   :  { %v2292_v40 = vpop.f32.mrb[23].mxu1 }
 0x122   :  { %v2293_v41 = vadd.f32 %v2292_v40, %v2291_v39  ;;  %v3475_v40 = vpop.permute.xlu1 %251 }
 0x126   :  { %v2294_v42 = vpop.f32.mrb[24].mxu1 }
 0x127   :  { %v2295_v43 = vpop.f32.mrb[25].mxu1 }
 0x128   :  { %v2296_v45 = vadd.f32 %v2295_v43, %v2294_v42  ;;  %v2297_v46 = vpop.f32.mrb[26].mxu1  ;;  %v1544_v43 = vadd.f32 %v2287_v35, %v3472_v33 }
 0x129   :  { %v2298_v47 = vpop.f32.mrb[27].mxu1 }
 0x12a   :  { %v3448_v48 = vadd.f32 %v2298_v47, %v2297_v46 }
 0x12e   :  { %v2300_v49 = vpop.f32.mrb[28].mxu1 }
 0x12f   :  { %v2301_v50 = vpop.f32.mrb[29].mxu1 }
 0x130   :  { %v3450_v51 = vadd.f32 %v2301_v50, %v2300_v49  ;;  %v2303_v52 = vpop.f32.mrb[30].mxu1 }
 0x131   :  { %v2304_v54 = vpop.f32.mrb[31].mxu1 }
 0x132   :  { %v3452_v55 = vadd.f32 %v2304_v54, %v2303_v52  ;;  %v3482_v52 = vpop.permute.xlu1 %256 }
 0x136   :  { %v2306_v56 = vpop.f32.mrb[32].mxu1 }
 0x137   :  { %v2307_v57 = vpop.f32.mrb[33].mxu1 }
 0x138   :  { %v3454_v58 = vadd.f32 %v2307_v57, %v2306_v56  ;;  %v2309_v59 = vpop.f32.mrb[34].mxu1  ;;  %v1549_v56 = vadd.f32 %v2290_v38, %v3475_v40 }
 0x139   :  { %v2310_v60 = vpop.f32.mrb[35].mxu1 }
 0x13a   :  { %v3456_v61 = vadd.f32 %v2310_v60, %v2309_v59  ;;  %v1552_v60 = vadd.f32 %v2293_v41, %v3482_v52 }
 0x13e   :  { %v2312_v62 = vpop.f32.mrb[36].mxu1 }
 0x13f   :  { %v2313_v0 = vpop.f32.mrb[37].mxu1 }
 0x140   :  { %v3458_v18 = vadd.f32 %v2313_v0, %v2312_v62  ;;  %v2315_v2 = vpop.f32.mrb[38].mxu1 }
 0x141   :  { %v2316_v3 = vpop.f32.mrb[39].mxu1 }
 0x142   :  { %v3460_v22 = vadd.f32 %v2316_v3, %v2315_v2  ;;  %v3490_v2 = vpop.permute.xlu0 %261 }
 0x146   :  { %v2318_v24 = vpop.f32.mrb[40].mxu1 }
 0x147   :  { %v2319_v26 = vpop.f32.mrb[41].mxu1 }
 0x148   :  { %v3462_v28 = vadd.f32 %v2319_v26, %v2318_v24  ;;  %v2321_v30 = vpop.f32.mrb[42].mxu1  ;;  %v3492_v24 = vpop.permute.xlu1 %266 }
 0x149   :  { %v2322_v32 = vpop.f32.mrb[43].mxu1 }
 0x14a   :  { %v3464_v4 = vadd.f32 %v2322_v32, %v2321_v30  ;;  %v1557_v30 = vadd.f32 %v2296_v45, %v3490_v2 }
 0x14e   :  { %v2324_v5 = vpop.f32.mrb[44].mxu1 }
 0x14f   :  { %v2325_v6 = vpop.f32.mrb[45].mxu1 }
 0x150   :  { %v3466_v7 = vadd.f32 %v2325_v6, %v2324_v5  ;;  %v2327_v8 = vpop.f32.mrb[46].mxu1  ;;  %v1560_v6 = vadd.f32 %v3448_v48, %v3492_v24 }
 0x151   :  { %v2328_v10 = vpop.f32.mrb[47].mxu1 }
 0x152   :  { %v3470_v27 = vadd.f32 %v2328_v10, %v2327_v8 }
 0x156   :  { %v2346_v29 = vpop.f32.mrb[48].mxu1 }
 0x157   :  { %v2347_v34 = vpop.f32.mrb[49].mxu1 }
 0x158   :  { %v2348_v37 = vadd.f32 %v2347_v34, %v2346_v29  ;;  %v2349_v39 = vpop.f32.mrb[50].mxu1  ;;  %v3501_v29 = vpop.permute.xlu0 %271 }
 0x159   :  { %v2350_v42 = vpop.f32.mrb[51].mxu1  ;;  %v1565_v45 = vadd.f32 %v3450_v51, %v3501_v29 }
 0x15a   :  { %v2351_v46 = vadd.f32 %v2350_v42, %v2349_v39  ;;  %v3478_v47 = vadd.f32 %v2348_v37, %v1541_v36  ;;  %v3503_v36 = vpop.permute.xlu1 %276 }
 0x15b   :  { %v1568_v48 = vadd.f32 %v3452_v55, %v3503_v36 }
 0x15c   :  { %v3480_v49 = vadd.f32 %v2351_v46, %v1544_v43 }
 0x15e   :  { %v2352_v50 = vpop.f32.mrb[52].mxu1 }
 0x15f   :  { %v2353_v54 = vpop.f32.mrb[53].mxu1 }
 0x160   :  { %v2354_v57 = vadd.f32 %v2353_v54, %v2352_v50  ;;  %v2355_v31 = vpop.f32.mrb[54].mxu1 }
 0x161   :  { %v2356_v59 = vpop.f32.mrb[55].mxu1 }
 0x162   :  { %v2357_v62 = vadd.f32 %v2356_v59, %v2355_v31  ;;  %v3486_v0 = vadd.f32 %v2354_v57, %v1549_v56  ;;  %v282_v56 = vpop.permute.xlu0 %281  ;;  %v287_v57 = vpop.permute.xlu1 %286 }
 0x163   :  { %v1573_v51 = vadd.f32 %v3454_v58, %v282_v56  ;;  %v1576_v55 = vadd.f32 %v3456_v61, %v287_v57 }
 0x164   :  { %v3488_v35 = vadd.f32 %v2357_v62, %v1552_v60 }
 0x166   :  { %v2358_v3 = vpop.f32.mrb[56].mxu1  ;;  %v292_v61 = vpop.permute.xlu0 %291 }
 0x167   :  { %v2359_v26 = vpop.f32.mrb[57].mxu1 }
 0x168   :  { %v2360_v32 = vadd.f32 %v2359_v26, %v2358_v3  ;;  %v2361_v38 = vpop.f32.mrb[58].mxu1 }
 0x169   :  { %v2362_v5 = vpop.f32.mrb[59].mxu1 }
 0x16a   :  { %v2363_v41 = vadd.f32 %v2362_v5, %v2361_v38  ;;  %v3497_v8 = vadd.f32 %v2360_v32, %v1557_v30 }
 0x16c   :  { %v3499_v10 = vadd.f32 %v2363_v41, %v1560_v6 }
 0x16e   :  { %v2364_v34 = vpop.f32.mrb[60].mxu1 }
 0x16f   :  { %v2365_v37 = vpop.f32.mrb[61].mxu1 }
 0x170   :  { %v2366_v39 = vadd.f32 %v2365_v37, %v2364_v34  ;;  %v2367_v42 = vpop.f32.mrb[62].mxu1 }
 0x171   :  { %v2368_v43 = vpop.f32.mrb[63].mxu1 }
 0x172   :  { %v2369_v46 = vadd.f32 %v2368_v43, %v2367_v42  ;;  %v3509_v50 = vadd.f32 %v2366_v39, %v1565_v45 }
 0x174   :  { %v3511_v54 = vadd.f32 %v2369_v46, %v1568_v48 }
 0x175   :  { %v1354_v31 = vpop.f32.mrb[16].mxu0 }
 0x176   :  { %v2370_v59 = vpop.f32.mrb[64].mxu1  ;;  %v2474_v60 = vadd.f32 %v1354_v31, %v282_v56  ;;  %v1356_v62 = vpop.f32.mrb[17].mxu0 }
 0x177   :  { %v2371_v3 = vpop.f32.mrb[65].mxu1  ;;  %v2476_v26 = vadd.f32 %v1356_v62, %v282_v56  ;;  %v1358_v32 = vpop.f32.mrb[18].mxu0 }
 0x178   :  { %v2372_v30 = vadd.f32 %v2371_v3, %v2370_v59  ;;  %v2373_v38 = vpop.f32.mrb[66].mxu1  ;;  %v2475_v5 = vadd.f32 %v2474_v60, %v3416_v11  ;;  %v2478_v6 = vadd.f32 %v1358_v32, %v287_v57  ;;  %v1360_v41 = vpop.f32.mrb[19].mxu0 }
 0x179   :  { %v2374_v34 = vpop.f32.mrb[67].mxu1  ;;  %v2477_v37 = vadd.f32 %v2476_v26, %v3418_v12  ;;  %v2480_v45 = vadd.f32 %v1360_v41, %v287_v57  ;;  %v297_v31 = vpop.permute.xlu1 %296 }
 0x17a   :  { %v2375_v39 = vadd.f32 %v2374_v34, %v2373_v38  ;;  %v3517_v42 = vadd.f32 %v2372_v30, %v1573_v51  ;;  %v1821_v43 = vmax.f32 %v2475_v5, 0.0  ;;  %v2479_v58 = vadd.f32 %v2478_v6, %v3420_v13 }
 0x17b   :  { %v1822_v48 = vmax.f32 %v2477_v37, 0.0  ;;  %v2481_v46 = vadd.f32 %v2480_v45, %v3422_v14  ;;  %v1581_v51 = vadd.f32 %v3458_v18, %v292_v61 }
 0x17c   :  { %v3521_v56 = vadd.f32 %v2375_v39, %v1576_v55  ;;  %v1824_v11 = vmax.f32 %v2479_v58, 0.0  ;;  %v1584_v55 = vadd.f32 %v3460_v22, %v297_v31 }
 0x17d   :  { %v2250_v59 = vpack.c.bf16 %v1822_v48, %v1821_v43  ;;  %v1825_v60 = vmax.f32 %v2481_v46, 0.0  ;;  %v1364_v62 = vpop.f32.mrb[20].mxu0  ;;  %v302_v46 = vpop.permute.xlu0 %301 }
 0x17e   :  { %v2376_v3 = vpop.f32.mrb[68].mxu1  ;;  %v2482_v12 = vadd.f32 %v1364_v62, %v292_v61  ;;  %v1366_v57 = vpop.f32.mrb[21].mxu0 }
 0x17f   :  { %v2377_v26 = vpop.f32.mrb[69].mxu1  ;;  %2022 = vst [vmem:[%s3700_s3 + $0x60] sm:$0xff] %v2250_v59  ;;  %v2252_v13 = vpack.c.bf16 %v1825_v60, %v1824_v11  ;;  %v2484_v14 = vadd.f32 %v1366_v57, %v292_v61  ;;  %v1368_v32 = vpop.f32.mrb[22].mxu0  ;;  %v1589_v57 = vadd.f32 %v3462_v28, %v302_v46 }
 0x180   :  { %v2378_v30 = vadd.f32 %v2377_v26, %v2376_v3  ;;  %v2379_v38 = vpop.f32.mrb[70].mxu1  ;;  %v2483_v5 = vadd.f32 %v2482_v12, %v3424_v15  ;;  %v2486_v6 = vadd.f32 %v1368_v32, %v297_v31  ;;  %v1370_v41 = vpop.f32.mrb[23].mxu0 }
 0x181   :  { %v2380_v34 = vpop.f32.mrb[71].mxu1  ;;  %2024 = vst [vmem:[%s3700_s3 + $0x6c] sm:$0xff] %v2252_v13  ;;  %v2485_v18 = vadd.f32 %v2484_v14, %v3426_v16  ;;  %v2488_v37 = vadd.f32 %v1370_v41, %v297_v31  ;;  %v307_v61 = vpop.permute.xlu1 %306 }
 0x182   :  { %v2381_v45 = vadd.f32 %v2380_v34, %v2379_v38  ;;  %v3533_v39 = vadd.f32 %v2378_v30, %v1581_v51  ;;  %v1827_v43 = vmax.f32 %v2483_v5, 0.0  ;;  %v2487_v58 = vadd.f32 %v2486_v6, %v3428_v44 }
 0x183   :  { %v1828_v48 = vmax.f32 %v2485_v18, 0.0  ;;  %v2489_v22 = vadd.f32 %v2488_v37, %v3430_v1  ;;  %v1592_v14 = vadd.f32 %v3464_v4, %v307_v61 }
 0x184   :  { %v3537_v15 = vadd.f32 %v2381_v45, %v1584_v55  ;;  %v1830_v11 = vmax.f32 %v2487_v58, 0.0  ;;  %v312_v45 = vpop.permute.xlu0 %311 }
 0x185   :  { %v2254_v59 = vpack.c.bf16 %v1828_v48, %v1827_v43  ;;  %v1831_v60 = vmax.f32 %v2489_v22, 0.0  ;;  %v1374_v62 = vpop.f32.mrb[24].mxu0  ;;  %v317_v43 = vpop.permute.xlu1 %316 }
 0x186   :  { %v2382_v3 = vpop.f32.mrb[72].mxu1  ;;  %v2490_v16 = vadd.f32 %v1374_v62, %v302_v46  ;;  %v1376_v31 = vpop.f32.mrb[25].mxu0 }
 0x187   :  { %v2383_v12 = vpop.f32.mrb[73].mxu1  ;;  %2026 = vst [vmem:[%s3700_s3 + $0x78] sm:$0xff] %v2254_v59  ;;  %v2256_v44 = vpack.c.bf16 %v1831_v60, %v1830_v11  ;;  %v2492_v1 = vadd.f32 %v1376_v31, %v302_v46  ;;  %v1378_v51 = vpop.f32.mrb[26].mxu0  ;;  %v1597_v60 = vadd.f32 %v3466_v7, %v312_v45  ;;  %v1600_v31 = vadd.f32 %v3470_v27, %v317_v43 }
 0x188   :  { %v2384_v26 = vadd.f32 %v2383_v12, %v2382_v3  ;;  %v2385_v13 = vpop.f32.mrb[74].mxu1  ;;  %v2491_v30 = vadd.f32 %v2490_v16, %v3432_v53  ;;  %v2494_v32 = vadd.f32 %v1378_v51, %v307_v61  ;;  %v1380_v38 = vpop.f32.mrb[27].mxu0 }
 0x189   :  { %v2386_v55 = vpop.f32.mrb[75].mxu1  ;;  %2028 = vst [vmem:[%s3700_s3 + $0x84] sm:$0xff] %v2256_v44  ;;  %v2493_v28 = vadd.f32 %v2492_v1, %v3434_v17  ;;  %v2496_v5 = vadd.f32 %v1380_v38, %v307_v61 }
 0x18a   :  { %v2387_v6 = vadd.f32 %v2386_v55, %v2385_v13  ;;  %v3549_v41 = vadd.f32 %v2384_v26, %v1589_v57  ;;  %v1833_v34 = vmax.f32 %v2491_v30, 0.0  ;;  %v2495_v18 = vadd.f32 %v2494_v32, %v3436_v63 }
 0x18b   :  { %v1834_v37 = vmax.f32 %v2493_v28, 0.0  ;;  %v2497_v4 = vadd.f32 %v2496_v5, %v3438_v19 }
 0x18c   :  { %v3553_v53 = vadd.f32 %v2387_v6, %v1592_v14  ;;  %v1836_v58 = vmax.f32 %v2495_v18, 0.0 }
 0x18d   :  { %v2258_v48 = vpack.c.bf16 %v1834_v37, %v1833_v34  ;;  %v1837_v22 = vmax.f32 %v2497_v4, 0.0  ;;  %v1384_v46 = vpop.f32.mrb[28].mxu0 }
 0x18e   :  { %v2388_v11 = vpop.f32.mrb[76].mxu1  ;;  %v2498_v17 = vadd.f32 %v1384_v46, %v312_v45  ;;  %v1386_v61 = vpop.f32.mrb[29].mxu0 }
 0x18f   :  { %v2389_v59 = vpop.f32.mrb[77].mxu1  ;;  %2030 = vst [vmem:[%s3700_s3 + $0x90] sm:$0xff] %v2258_v48  ;;  %v2260_v63 = vpack.c.bf16 %v1837_v22, %v1836_v58  ;;  %v2500_v19 = vadd.f32 %v1386_v61, %v312_v45  ;;  %v1388_v3 = vpop.f32.mrb[30].mxu0 }
 0x190   :  { %v2390_v62 = vadd.f32 %v2389_v59, %v2388_v11  ;;  %v2391_v16 = vpop.f32.mrb[78].mxu1  ;;  %v2499_v12 = vadd.f32 %v2498_v17, %v3440_v20  ;;  %v2502_v57 = vadd.f32 %v1388_v3, %v317_v43  ;;  %v1390_v44 = vpop.f32.mrb[31].mxu0 }
 0x191   :  { %v2392_v1 = vpop.f32.mrb[79].mxu1  ;;  %2032 = vst [vmem:[%s3700_s3 + $0x9c] sm:$0xff] %v2260_v63  ;;  %v2501_v7 = vadd.f32 %v2500_v19, %v3442_v21  ;;  %v2504_v26 = vadd.f32 %v1390_v44, %v317_v43 }
 0x192   :  { %v2393_v51 = vadd.f32 %v2392_v1, %v2391_v16  ;;  %v3565_v13 = vadd.f32 %v2390_v62, %v1597_v60  ;;  %v1839_v14 = vmax.f32 %v2499_v12, 0.0  ;;  %v2503_v30 = vadd.f32 %v2502_v57, %v3444_v23 }
 0x193   :  { %v1840_v32 = vmax.f32 %v2501_v7, 0.0  ;;  %v2505_v27 = vadd.f32 %v2504_v26, %v3446_v25 }
 0x194   :  { %v3569_v20 = vadd.f32 %v2393_v51, %v1600_v31  ;;  %v1842_v38 = vmax.f32 %v2503_v30, 0.0 }
 0x195   :  { %v2262_v55 = vpack.c.bf16 %v1840_v32, %v1839_v14  ;;  %v1843_v28 = vmax.f32 %v2505_v27, 0.0  ;;  %v1427_v5 = vpop.f32.mrb[0].mxu0 }
 0x196   :  { %v2428_v6 = vpop.f32.mrb[80].mxu1  ;;  %v2458_v34 = vadd.f32 %v1427_v5, %v3468_v9  ;;  %v1429_v18 = vpop.f32.mrb[1].mxu0 }
 0x197   :  { %v1743_v21 = vadd.f32 %v2428_v6, %v3486_v0  ;;  %v1734_v37 = vpop.f32.mrb[81].mxu1  ;;  %2034 = vst [vmem:[%s3700_s3 + $0xa8] sm:$0xff] %v2262_v55  ;;  %v2264_v23 = vpack.c.bf16 %v1843_v28, %v1842_v38  ;;  %v2459_v25 = vadd.f32 %v1429_v18, %v3468_v9  ;;  %v1431_v45 = vpop.f32.mrb[2].mxu0 }
 0x198   :  { %v1735_v4 = vadd.f32 %v1734_v37, %v3478_v47  ;;  %v2429_v43 = vpop.f32.mrb[82].mxu1  ;;  %v1797_v58 = vmax.f32 %v2458_v34, 0.0  ;;  %v2460_v22 = vadd.f32 %v1431_v45, %v3472_v33  ;;  %v1433_v46 = vpop.f32.mrb[3].mxu0 }
 0x199   :  { %v1805_v48 = vmax.f32 %v1743_v21, 0.0  ;;  %v1746_v0 = vadd.f32 %v2429_v43, %v3488_v35  ;;  %v1737_v11 = vpop.f32.mrb[83].mxu1  ;;  %2036 = vst [vmem:[%s3700_s3 + $0xb4] sm:$0xff] %v2264_v23  ;;  %v1798_v17 = vmax.f32 %v2459_v25, 0.0  ;;  %v2461_v9 = vadd.f32 %v1433_v46, %v3472_v33 }
 0x19a   :  { %v1799_v61 = vmax.f32 %v1735_v4, 0.0  ;;  %v1738_v47 = vadd.f32 %v1737_v11, %v3480_v49  ;;  %v1800_v60 = vmax.f32 %v2460_v22, 0.0 }
 0x19b   :  { %v2239_v59 = vpack.c.bf16 %v1805_v48, %v1805_v48  ;;  %v1808_v63 = vmax.f32 %v1746_v0, 0.0  ;;  %v2234_v19 = vpack.c.bf16 %v1798_v17, %v1797_v58  ;;  %v1801_v3 = vmax.f32 %v2461_v9, 0.0 }
 0x19c   :  { %v2235_v62 = vpack.c.bf16 %v1799_v61, %v1799_v61  ;;  %v1802_v16 = vmax.f32 %v1738_v47, 0.0 }
 0x19d   :  { %2011 = vst.msk [vmem:[%s3700_s3 + $0x20] sm:$0xf] %vm2006_vm0, %v2239_v59  ;;  %v2241_v35 = vpack.c.bf16 %v1808_v63, %v1808_v63  ;;  %2005 = vst [vmem:[%s3700_s3] sm:$0xff] %v2234_v19  ;;  %v2236_v33 = vpack.c.bf16 %v1801_v3, %v1800_v60  ;;  %v1437_v31 = vpop.f32.mrb[4].mxu0 }
 0x19e   :  { %2007 = vst.msk [vmem:[%s3700_s3 + $0x8] sm:$0xf] %vm2006_vm0, %v2235_v62  ;;  %v2237_v49 = vpack.c.bf16 %v1802_v16, %v1802_v16  ;;  %v2432_v12 = vpop.f32.mrb[84].mxu1  ;;  %v2462_v57 = vadd.f32 %v1437_v31, %v3475_v40  ;;  %v1439_v1 = vpop.f32.mrb[5].mxu0 }
 0x19f   :  { %2013 = vst.msk [vmem:[%s3700_s3 + $0x2c] sm:$0xf] %vm2006_vm0, %v2241_v35  ;;  %v1759_v44 = vadd.f32 %v2432_v12, %v3509_v50  ;;  %v1750_v7 = vpop.f32.mrb[85].mxu1  ;;  %2008 = vst [vmem:[%s3700_s3 + $0xc] sm:$0xff] %v2236_v33  ;;  %v2463_v26 = vadd.f32 %v1439_v1, %v3475_v40  ;;  %v1441_v14 = vpop.f32.mrb[6].mxu0 }
 0x1a0   :  { %2009 = vst.msk [vmem:[%s3700_s3 + $0x14] sm:$0xf] %vm2006_vm0, %v2237_v49  ;;  %v1751_v51 = vadd.f32 %v1750_v7, %v3497_v8  ;;  %v2433_v30 = vpop.f32.mrb[86].mxu1  ;;  %v1803_v32 = vmax.f32 %v2462_v57, 0.0  ;;  %v2464_v50 = vadd.f32 %v1441_v14, %v3482_v52  ;;  %v1443_v55 = vpop.f32.mrb[7].mxu0 }
 0x1a1   :  { %v1817_v27 = vmax.f32 %v1759_v44, 0.0  ;;  %v1762_v38 = vadd.f32 %v2433_v30, %v3511_v54  ;;  %v1753_v28 = vpop.f32.mrb[87].mxu1  ;;  %v1804_v5 = vmax.f32 %v2463_v26, 0.0  ;;  %v2465_v34 = vadd.f32 %v1443_v55, %v3482_v52 }
 0x1a2   :  { %v1811_v6 = vmax.f32 %v1751_v51, 0.0  ;;  %v1754_v21 = vadd.f32 %v1753_v28, %v3499_v10  ;;  %v1806_v40 = vmax.f32 %v2464_v50, 0.0 }
 0x1a3   :  { %v2247_v18 = vpack.c.bf16 %v1817_v27, %v1817_v27  ;;  %v1820_v37 = vmax.f32 %v1762_v38, 0.0  ;;  %v2238_v8 = vpack.c.bf16 %v1804_v5, %v1803_v32  ;;  %v1807_v25 = vmax.f32 %v2465_v34, 0.0 }
 0x1a4   :  { %v2243_v23 = vpack.c.bf16 %v1811_v6, %v1811_v6  ;;  %v1814_v4 = vmax.f32 %v1754_v21, 0.0 }
 0x1a5   :  { %2019 = vst.msk [vmem:[%s3700_s3 + $0x50] sm:$0xf] %vm2006_vm0, %v2247_v18  ;;  %v2249_v54 = vpack.c.bf16 %v1820_v37, %v1820_v37  ;;  %2010 = vst [vmem:[%s3700_s3 + $0x18] sm:$0xff] %v2238_v8  ;;  %v2240_v52 = vpack.c.bf16 %v1807_v25, %v1806_v40  ;;  %v1447_v45 = vpop.f32.mrb[8].mxu0 }
 0x1a6   :  { %2015 = vst.msk [vmem:[%s3700_s3 + $0x38] sm:$0xf] %vm2006_vm0, %v2243_v23  ;;  %v2245_v10 = vpack.c.bf16 %v1814_v4, %v1814_v4  ;;  %v2436_v43 = vpop.f32.mrb[88].mxu1  ;;  %v2466_v58 = vadd.f32 %v1447_v45, %v3490_v2  ;;  %v1449_v22 = vpop.f32.mrb[9].mxu0 }
 0x1a7   :  { %2021 = vst.msk [vmem:[%s3700_s3 + $0x5c] sm:$0xf] %vm2006_vm0, %v2249_v54  ;;  %v1775_v48 = vadd.f32 %v2436_v43, %v3533_v39  ;;  %v1766_v0 = vpop.f32.mrb[89].mxu1  ;;  %2012 = vst [vmem:[%s3700_s3 + $0x24] sm:$0xff] %v2240_v52  ;;  %v2467_v46 = vadd.f32 %v1449_v22, %v3490_v2  ;;  %v1451_v17 = vpop.f32.mrb[10].mxu0 }
 0x1a8   :  { %2017 = vst.msk [vmem:[%s3700_s3 + $0x44] sm:$0xf] %vm2006_vm0, %v2245_v10  ;;  %v1767_v11 = vadd.f32 %v1766_v0, %v3517_v42  ;;  %v2437_v61 = vpop.f32.mrb[90].mxu1  ;;  %v1809_v9 = vmax.f32 %v2466_v58, 0.0  ;;  %v2468_v39 = vadd.f32 %v1451_v17, %v3492_v24  ;;  %v1453_v60 = vpop.f32.mrb[11].mxu0 }
 0x1a9   :  { %v1829_v47 = vmax.f32 %v1775_v48, 0.0  ;;  %v1778_v59 = vadd.f32 %v2437_v61, %v3537_v15  ;;  %v1769_v63 = vpop.f32.mrb[91].mxu1  ;;  %v1810_v19 = vmax.f32 %v2467_v46, 0.0  ;;  %v2469_v3 = vadd.f32 %v1453_v60, %v3492_v24 }
 0x1aa   :  { %v1823_v62 = vmax.f32 %v1767_v11, 0.0  ;;  %v1770_v16 = vadd.f32 %v1769_v63, %v3521_v56  ;;  %v1812_v2 = vmax.f32 %v2468_v39, 0.0 }
 0x1ab   :  { %v2255_v35 = vpack.c.bf16 %v1829_v47, %v1829_v47  ;;  %v1832_v33 = vmax.f32 %v1778_v59, 0.0  ;;  %v2242_v42 = vpack.c.bf16 %v1810_v19, %v1809_v9  ;;  %v1813_v31 = vmax.f32 %v2469_v3, 0.0 }
 0x1ac   :  { %v2251_v49 = vpack.c.bf16 %v1823_v62, %v1823_v62  ;;  %v1826_v12 = vmax.f32 %v1770_v16, 0.0 }
 0x1ad   :  { %2027 = vst.msk [vmem:[%s3700_s3 + $0x80] sm:$0xf] %vm2006_vm0, %v2255_v35  ;;  %v2257_v15 = vpack.c.bf16 %v1832_v33, %v1832_v33  ;;  %2014 = vst [vmem:[%s3700_s3 + $0x30] sm:$0xff] %v2242_v42  ;;  %v2244_v24 = vpack.c.bf16 %v1813_v31, %v1812_v2  ;;  %v1457_v57 = vpop.f32.mrb[12].mxu0 }
 0x1ae   :  { %2023 = vst.msk [vmem:[%s3700_s3 + $0x68] sm:$0xf] %vm2006_vm0, %v2251_v49  ;;  %v2253_v56 = vpack.c.bf16 %v1826_v12, %v1826_v12  ;;  %v2440_v44 = vpop.f32.mrb[92].mxu1  ;;  %v2470_v1 = vadd.f32 %v1457_v57, %v3501_v29  ;;  %v1459_v26 = vpop.f32.mrb[13].mxu0 }
 0x1af   :  { %2029 = vst.msk [vmem:[%s3700_s3 + $0x8c] sm:$0xf] %vm2006_vm0, %v2257_v15  ;;  %v1791_v7 = vadd.f32 %v2440_v44, %v3565_v13  ;;  %v1782_v51 = vpop.f32.mrb[93].mxu1  ;;  %2016 = vst [vmem:[%s3700_s3 + $0x3c] sm:$0xff] %v2244_v24  ;;  %v2471_v14 = vadd.f32 %v1459_v26, %v3501_v29  ;;  %v1461_v32 = vpop.f32.mrb[14].mxu0 }
 0x1b0   :  { %2025 = vst.msk [vmem:[%s3700_s3 + $0x74] sm:$0xf] %vm2006_vm0, %v2253_v56  ;;  %v1783_v30 = vadd.f32 %v1782_v51, %v3549_v41  ;;  %v2441_v27 = vpop.f32.mrb[94].mxu1  ;;  %v1815_v50 = vmax.f32 %v2470_v1, 0.0  ;;  %v2472_v13 = vadd.f32 %v1461_v32, %v3503_v36  ;;  %v1463_v28 = vpop.f32.mrb[15].mxu0 }
 0x1b1   :  { %v1841_v38 = vmax.f32 %v1791_v7, 0.0  ;;  %v1794_v55 = vadd.f32 %v2441_v27, %v3569_v20  ;;  %v1785_v5 = vpop.f32.mrb[95].mxu1  ;;  %v1816_v6 = vmax.f32 %v2471_v14, 0.0  ;;  %v2473_v21 = vadd.f32 %v1463_v28, %v3503_v36 }
 0x1b2   :  { %v1835_v34 = vmax.f32 %v1783_v30, 0.0  ;;  %v1786_v18 = vadd.f32 %v1785_v5, %v3553_v53  ;;  %v1818_v29 = vmax.f32 %v2472_v13, 0.0 }
 0x1b3   :  { %v2263_v40 = vpack.c.bf16 %v1841_v38, %v1841_v38  ;;  %v1844_v37 = vmax.f32 %v1794_v55, 0.0  ;;  %v2246_v41 = vpack.c.bf16 %v1816_v6, %v1815_v50  ;;  %v1819_v23 = vmax.f32 %v2473_v21, 0.0 }
 0x1b4   :  { %v2259_v8 = vpack.c.bf16 %v1835_v34, %v1835_v34  ;;  %v1838_v25 = vmax.f32 %v1786_v18, 0.0 }
 0x1b5   :  { %2035 = vst.msk [vmem:[%s3700_s3 + $0xb0] sm:$0xf] %vm2006_vm0, %v2263_v40  ;;  %v2265_v20 = vpack.c.bf16 %v1844_v37, %v1844_v37  ;;  %2018 = vst [vmem:[%s3700_s3 + $0x48] sm:$0xff] %v2246_v41  ;;  %v2248_v36 = vpack.c.bf16 %v1819_v23, %v1818_v29 }
 0x1b6   :  { %2031 = vst.msk [vmem:[%s3700_s3 + $0x98] sm:$0xf] %vm2006_vm0, %v2259_v8  ;;  %v2261_v53 = vpack.c.bf16 %v1838_v25, %v1838_v25 }
 0x1b7   :  { %2037 = vst.msk [vmem:[%s3700_s3 + $0xbc] sm:$0xf] %vm2006_vm0, %v2265_v20  ;;  %2020 = vst [vmem:[%s3700_s3 + $0x54] sm:$0xff] %v2248_v36 }
 0x1b8   :  { %2033 = vst.msk [vmem:[%s3700_s3 + $0xa4] sm:$0xf] %vm2006_vm0, %v2261_v53 }

// kernel: cnn_forward.7
= control target key start
LH: loop header
LB: loop body
LE: loop exit
PB: predicated region body
PF: predicated region fallthrough
CT: control target
= control target key end

     0   :  { %10 = vsyncpa [#allocation4], 0  ;;  %s7983_s18 = smov 0   ;;  %s9075_s0 = inlined_call_operand.vmem [shape: bf16[2,19712], index: 0, kind: input, shape index: {}]   ;;  %s9076_s1 = inlined_call_operand.vmem [shape: bf16[19712,500], index: 1, kind: input, shape index: {}]   ;;  %s9077_s2 = inlined_call_operand.vmem [shape: f32[1,500], index: 2, kind: input, shape index: {}]   ;;  %s9078_s3 = inlined_call_operand.vmem [shape: f32[500,4], index: 3, kind: input, shape index: {}]   ;;  %s9079_s4 = inlined_call_operand.vmem [shape: f32[1,4], index: 4, kind: input, shape index: {}]   ;;  %s9080_s5 = inlined_call_operand.hbm [shape: f32[2,4], index: 5, kind: output, shape index: {}]  }
   0x1 LB: > { %s7989_s19 = sadd.s32 4294967295, %s7945_s18   ;;  %p5919_p0 = scmp.ge.s32.totalorder %s7945_s18, 1  ;;  %s7945_s18 = sphi %s7983_s18, %s16_s18  }
   0x2   : > { %p195_p1 = scmp.lt.s32.totalorder %s7945_s18, 8 }
   0x4   : > { %p196_p2 = pnand %p5919_p0, %p195_p1 }
   0x5   : > { %s223_s20 = smul.u32 (!%p196_p2), 22, %s7989_s19  ;;  %p5922_p5 = scmp.ne.s32.totalorder (!%p196_p2), %s7989_s19, 0 }
   0x6   : > { %199 = sbr.rel (%p196_p2) target bundleno = 1224 (0x4c8), region = 40 }
   0x7   : > { %s228_s21 = smul.u32 (!%p196_p2), 352, %s7989_s19  ;;  %p224_p3 = scmp.lt.s32.totalorder (!%p196_p2), %s223_s20, 153 }
   0x9   : > { %p229_p4 = scmp.lt.s32.totalorder (!%p196_p2), %s228_s21, 2463 }
   0xd   : > { %s9082_s20 = smov (!%p224_p3, %s223_s20), 153  ;;  %s9084_s21 = smov (!%p229_p4, %s228_s21), 2463 }
   0xe   : > { %s7998_s24 = scalar_lea.vmem %s9075_s0, %s9082_s20  ;;  %s6635_s25 = sshll.u32 %s9084_s21, 4  ;;  %vm239_vm0 = vcmask (!%p5922_p5), 1041408   ;;  %vm240_vm1 = vcmask (!%p5922_p5), 1043458   ;;  %vm242_vm2 = vcmask (!%p5922_p5), 1045508   ;;  %vm244_vm3 = vcmask (!%p5922_p5), 949254  }
   0xf   : > { %s8003_s28 = scalar_lea.vmem %s9076_s1, %s6635_s25  ;;  %238 = sbr.rel (%p5922_p5) target bundleno = 22 (0x16), region = 44  ;;  %vm241_vm4 = vmor (!%p5922_p5), %vm240_vm1, %vm239_vm0  ;;  %v7947_v0 = vmov (!%p5922_p5), 0.0  }
  0x10   : > { %vm243_vm5 = vmor (!%p5922_p5), %vm242_vm2, %vm241_vm4 }
  0x11   : > { %vm245_vm6 = vmor (!%p5922_p5), %vm244_vm3, %vm243_vm5 }
  0x12   : > { %246 = vst.msk [vmem:[#allocation2] sm:$0xff] (!%p5922_p5), %vm245_vm6, %v7947_v0 }
  0x16 PF: > { %v6848_v1 = vld [vmem:[%s8003_s28 + $0x4] ss:$16 sps:$4 sm:$0xff]   ;;  %v6850_v2 = vld [vmem:[%s8003_s28 + $0xc] ss:$16 sps:$4 sm:$0xff]   ;;  %v6852_v3 = vld [vmem:[%s8003_s28] ss:$16 sps:$4 sm:$0xff]   ;;  %v962_v39 = vlaneseq }
  0x17   : > { %4645 = vmatprep.subr.bf16.mxu0 %v6848_v1  ;;  %v6853_v4 = vld [vmem:[%s8003_s28 + $0x8] ss:$16 sps:$4 sm:$0xff]   ;;  %5096 = vmatprep.subr.bf16.mxu1 %v6850_v2  ;;  %v6854_v5 = vld [vmem:[%s8003_s28 + $0x24] ss:$16 sps:$4 sm:$0xff]   ;;  %v6856_v6 = vld [vmem:[%s8003_s28 + $0x2c] ss:$16 sps:$4 sm:$0xff]  }
  0x18   : > { %4646 = vmatpush1.bf16.msra.mxu0 %v6852_v3  ;;  %5097 = vmatpush1.bf16.msra.mxu1 %v6853_v4  ;;  %v6858_v7 = vld [vmem:[%s8003_s28 + $0x20] ss:$16 sps:$4 sm:$0xff]   ;;  %v6859_v8 = vld [vmem:[%s8003_s28 + $0x28] ss:$16 sps:$4 sm:$0xff]   ;;  %v6860_v9 = vld [vmem:[%s8003_s28 + $0x44] ss:$16 sps:$4 sm:$0xff]  }
  0x19   : > { %4647 = vmatprep.subr.bf16.mxu0 %v6854_v5  ;;  %5098 = vmatprep.subr.bf16.mxu1 %v6856_v6  ;;  %v6862_v10 = vld [vmem:[%s8003_s28 + $0x4c] ss:$16 sps:$4 sm:$0xff]   ;;  %v6864_v11 = vld [vmem:[%s8003_s28 + $0x40] ss:$16 sps:$4 sm:$0xff]   ;;  %v6865_v12 = vld [vmem:[%s8003_s28 + $0x48] ss:$16 sps:$4 sm:$0xff]  }
  0x1a   : > { %v6866_v13 = vld [vmem:[%s8003_s28 + $0x64] ss:$16 sps:$4 sm:$0xff]   ;;  %v6868_v14 = vld [vmem:[%s8003_s28 + $0x6c] ss:$16 sps:$4 sm:$0xff]   ;;  %v6870_v15 = vld [vmem:[%s8003_s28 + $0x60] ss:$16 sps:$4 sm:$0xff]  }
  0x1b   : > { %v6871_v16 = vld [vmem:[%s8003_s28 + $0x68] ss:$16 sps:$4 sm:$0xff]   ;;  %v6872_v17 = vld [vmem:[%s8003_s28 + $0x84] ss:$16 sps:$4 sm:$0xff]   ;;  %v6874_v18 = vld [vmem:[%s8003_s28 + $0x8c] ss:$16 sps:$4 sm:$0xff]  }
  0x1c   : > { %4648 = vmatpush1.bf16.msra.mxu0 %v6858_v7  ;;  %5099 = vmatpush1.bf16.msra.mxu1 %v6859_v8  ;;  %v6876_v19 = vld [vmem:[%s8003_s28 + $0x80] ss:$16 sps:$4 sm:$0xff]   ;;  %v6877_v20 = vld [vmem:[%s8003_s28 + $0x88] ss:$16 sps:$4 sm:$0xff]   ;;  %v6878_v21 = vld [vmem:[%s8003_s28 + $0xa4] ss:$16 sps:$4 sm:$0xff]  }
  0x1d   : > { %4649 = vmatprep.subr.bf16.mxu0 %v6860_v9  ;;  %5100 = vmatprep.subr.bf16.mxu1 %v6862_v10  ;;  %v6880_v22 = vld [vmem:[%s8003_s28 + $0xac] ss:$16 sps:$4 sm:$0xff]   ;;  %v6882_v23 = vld [vmem:[%s8003_s28 + $0xa0] ss:$16 sps:$4 sm:$0xff]   ;;  %v6883_v24 = vld [vmem:[%s8003_s28 + $0xa8] ss:$16 sps:$4 sm:$0xff]  }
  0x1e   : > { %v6884_v25 = vld [vmem:[%s8003_s28 + $0xc4] ss:$16 sps:$4 sm:$0xff]   ;;  %v6886_v26 = vld [vmem:[%s8003_s28 + $0xcc] ss:$16 sps:$4 sm:$0xff]   ;;  %v6888_v27 = vld [vmem:[%s8003_s28 + $0xc0] ss:$16 sps:$4 sm:$0xff]  }
  0x1f   : > { %v6889_v28 = vld [vmem:[%s8003_s28 + $0xc8] ss:$16 sps:$4 sm:$0xff]   ;;  %v6890_v29 = vld [vmem:[%s8003_s28 + $0xe4] ss:$16 sps:$4 sm:$0xff]   ;;  %v6892_v30 = vld [vmem:[%s8003_s28 + $0xec] ss:$16 sps:$4 sm:$0xff]  }
  0x20   : > { %4650 = vmatpush1.bf16.msra.mxu0 %v6864_v11  ;;  %5101 = vmatpush1.bf16.msra.mxu1 %v6865_v12  ;;  %v6894_v31 = vld [vmem:[%s8003_s28 + $0xe0] ss:$16 sps:$4 sm:$0xff]   ;;  %v6895_v32 = vld [vmem:[%s8003_s28 + $0xe8] ss:$16 sps:$4 sm:$0xff]   ;;  %v6896_v33 = vld [vmem:[%s8003_s28 + $0x104] ss:$16 sps:$4 sm:$0xff]  }
  0x21   : > { %4651 = vmatprep.subr.bf16.mxu0 %v6866_v13  ;;  %5102 = vmatprep.subr.bf16.mxu1 %v6868_v14  ;;  %v6898_v34 = vld [vmem:[%s8003_s28 + $0x10c] ss:$16 sps:$4 sm:$0xff]   ;;  %v6900_v35 = vld [vmem:[%s8003_s28 + $0x100] ss:$16 sps:$4 sm:$0xff]   ;;  %v6901_v36 = vld [vmem:[%s8003_s28 + $0x108] ss:$16 sps:$4 sm:$0xff]  }
  0x22   : > { %v7948_v37 = vmov 1966171168   ;;  %v6902_v40 = vld [vmem:[%s8003_s28 + $0x124] ss:$16 sps:$4 sm:$0xff]   ;;  %v6904_v41 = vld [vmem:[%s8003_s28 + $0x12c] ss:$16 sps:$4 sm:$0xff]  }
  0x23   : > { %v960_v38 = vunpack.c.l.s4 %v7948_v37  ;;  %v6906_v42 = vld [vmem:[%s8003_s28 + $0x120] ss:$16 sps:$4 sm:$0xff]   ;;  %v8045_v44 = vshrl.u32 %v962_v39, 7  ;;  %v6907_v45 = vld [vmem:[%s8003_s28 + $0x128] ss:$16 sps:$4 sm:$0xff]   ;;  %vm5570_vm7 = vcmask 1041408  }
  0x24   : > { %4652 = vmatpush1.bf16.msra.mxu0 %v6870_v15  ;;  %5103 = vmatpush1.bf16.msra.mxu1 %v6871_v16  ;;  %v6908_v46 = vld [vmem:[%s8003_s28 + $0x144] ss:$16 sps:$4 sm:$0xff]   ;;  %v6910_v47 = vld [vmem:[%s8003_s28 + $0x14c] ss:$16 sps:$4 sm:$0xff]   ;;  %v6912_v48 = vld [vmem:[%s8003_s28 + $0x140] ss:$16 sps:$4 sm:$0xff]  }
  0x25   : > { %4653 = vmatprep.subr.bf16.mxu0 %v6872_v17  ;;  %5104 = vmatprep.subr.bf16.mxu1 %v6874_v18  ;;  %v961_v43 = vunpack.c.0.s8 %v960_v38  ;;  %v6913_v49 = vld [vmem:[%s8003_s28 + $0x148] ss:$16 sps:$4 sm:$0xff]   ;;  %v6914_v51 = vld [vmem:[%s8003_s28 + $0x164] ss:$16 sps:$4 sm:$0xff]   ;;  %v6916_v52 = vld [vmem:[%s8003_s28 + $0x16c] ss:$16 sps:$4 sm:$0xff]  }
  0x26   : > { %v8058_v53 = vld [vmem:[%s7998_s24] sm:$0xff]  ;;  %v6919_v56 = vld [vmem:[%s8003_s28 + $0x168] ss:$16 sps:$4 sm:$0xff]   ;;  %v6922_v58 = vld [vmem:[%s8003_s28 + $0x18c] ss:$16 sps:$4 sm:$0xff]   ;;  %vm5571_vm8 = vcmask 1043458  }
  0x27   : > { %v8053_v50 = vsub.s32 %v961_v43, %v8045_v44  ;;  %v6918_v54 = vld [vmem:[%s8003_s28 + $0x160] ss:$16 sps:$4 sm:$0xff]   ;;  %v6920_v57 = vld [vmem:[%s8003_s28 + $0x184] ss:$16 sps:$4 sm:$0xff]   ;;  %v6925_v62 = vld [vmem:[%s8003_s28 + $0x188] ss:$16 sps:$4 sm:$0xff]  }
  0x28   : > { %4654 = vmatpush1.bf16.msra.mxu0 %v6876_v19  ;;  %5105 = vmatpush1.bf16.msra.mxu1 %v6877_v20  ;;  %v6924_v60 = vld [vmem:[%s8003_s28 + $0x180] ss:$16 sps:$4 sm:$0xff]   ;;  %v6926_v63 = vld [vmem:[%s8003_s28 + $0x1a4] ss:$16 sps:$4 sm:$0xff]   ;;  %v6928_v0 = vld [vmem:[%s8003_s28 + $0x1ac] ss:$16 sps:$4 sm:$0xff]  }
  0x29   : > { %4655 = vmatprep.subr.bf16.mxu0 %v6878_v21  ;;  %5106 = vmatprep.subr.bf16.mxu1 %v6880_v22  ;;  %v965_v55 = vrot.slane %v8058_v53, %v8053_v50  ;;  %v6930_v1 = vld [vmem:[%s8003_s28 + $0x1a0] ss:$16 sps:$4 sm:$0xff]   ;;  %v6931_v2 = vld [vmem:[%s8003_s28 + $0x1a8] ss:$16 sps:$4 sm:$0xff]   ;;  %v6932_v3 = vld [vmem:[%s8003_s28 + $0x1c4] ss:$16 sps:$4 sm:$0xff]  }
  0x2a   : > { %v6934_v4 = vld [vmem:[%s8003_s28 + $0x1cc] ss:$16 sps:$4 sm:$0xff]   ;;  %v6936_v5 = vld [vmem:[%s8003_s28 + $0x1c0] ss:$16 sps:$4 sm:$0xff]   ;;  %v6937_v6 = vld [vmem:[%s8003_s28 + $0x1c8] ss:$16 sps:$4 sm:$0xff]  }
  0x2b   : > { %v973_v59 = vcombine.high %v965_v55, %v965_v55  ;;  %v6938_v7 = vld [vmem:[%s8003_s28 + $0x1e4] ss:$16 sps:$4 sm:$0xff]   ;;  %v6940_v8 = vld [vmem:[%s8003_s28 + $0x1ec] ss:$16 sps:$4 sm:$0xff]   ;;  %v6942_v9 = vld [vmem:[%s8003_s28 + $0x1e0] ss:$16 sps:$4 sm:$0xff]   ;;  %v8085_v14 = vrot.slane %v965_v55, %v8053_v50 }
  0x2c   : > { %4656 = vmatpush1.bf16.msra.mxu0 %v6882_v23  ;;  %5107 = vmatpush1.bf16.msra.mxu1 %v6883_v24  ;;  %v6943_v10 = vld [vmem:[%s8003_s28 + $0x1e8] ss:$16 sps:$4 sm:$0xff]   ;;  %v6946_v11 = vld [vmem:[%s8003_s28 + $0x204] ss:$16 sps:$4 sm:$0xff]   ;;  %v6949_v12 = vld [vmem:[%s8003_s28 + $0x20c] ss:$16 sps:$4 sm:$0xff]  }
  0x2d   : > { %4657 = vmatprep.subr.bf16.mxu0 %v6884_v25  ;;  %5108 = vmatprep.subr.bf16.mxu1 %v6886_v26  ;;  %v995_v61 = vrot.slane %v973_v59, %v8053_v50  ;;  %v6944_v13 = vld [vmem:[%s8003_s28 + $0x200] ss:$16 sps:$4 sm:$0xff]   ;;  %v6947_v15 = vld [vmem:[%s8003_s28 + $0x208] ss:$16 sps:$4 sm:$0xff]   ;;  %v6952_v16 = vld [vmem:[%s8003_s28 + $0x224] ss:$16 sps:$4 sm:$0xff]  }
  0x2e   : > { %v6955_v17 = vld [vmem:[%s8003_s28 + $0x22c] ss:$16 sps:$4 sm:$0xff]   ;;  %v6950_v19 = vld [vmem:[%s8003_s28 + $0x220] ss:$16 sps:$4 sm:$0xff]   ;;  %v6953_v20 = vld [vmem:[%s8003_s28 + $0x228] ss:$16 sps:$4 sm:$0xff]  }
  0x2f   : > { %4677 = vmatprep.mubr.bf16.mxu0 %v995_v61  ;;  %5128 = vmatprep.mubr.bf16.mxu1 %v995_v61  ;;  %v1005_v18 = vcombine.high %v995_v61, %v995_v61  ;;  %v6958_v21 = vld [vmem:[%s8003_s28 + $0x244] ss:$16 sps:$4 sm:$0xff]   ;;  %v6961_v22 = vld [vmem:[%s8003_s28 + $0x24c] ss:$16 sps:$4 sm:$0xff]   ;;  %v6956_v23 = vld [vmem:[%s8003_s28 + $0x240] ss:$16 sps:$4 sm:$0xff]  }
  0x30   : > { %4658 = vmatpush1.bf16.msra.mxu0 %v6888_v27  ;;  %5109 = vmatpush1.bf16.msra.mxu1 %v6889_v28  ;;  %v6959_v24 = vld [vmem:[%s8003_s28 + $0x248] ss:$16 sps:$4 sm:$0xff]   ;;  %v6964_v25 = vld [vmem:[%s8003_s28 + $0x264] ss:$16 sps:$4 sm:$0xff]   ;;  %v6967_v26 = vld [vmem:[%s8003_s28 + $0x26c] ss:$16 sps:$4 sm:$0xff]  }
  0x31   : > { %4659 = vmatprep.subr.bf16.mxu0 %v6890_v29  ;;  %5110 = vmatprep.subr.bf16.mxu1 %v6892_v30  ;;  %v6962_v27 = vld [vmem:[%s8003_s28 + $0x260] ss:$16 sps:$4 sm:$0xff]   ;;  %v6965_v28 = vld [vmem:[%s8003_s28 + $0x268] ss:$16 sps:$4 sm:$0xff]   ;;  %v6970_v29 = vld [vmem:[%s8003_s28 + $0x284] ss:$16 sps:$4 sm:$0xff]  }
  0x32   : > { %v6973_v30 = vld [vmem:[%s8003_s28 + $0x28c] ss:$16 sps:$4 sm:$0xff]   ;;  %v6982_v37 = vld [vmem:[%s8003_s28 + $0x2c4] ss:$16 sps:$4 sm:$0xff]   ;;  %v6980_v39 = vld [vmem:[%s8003_s28 + $0x2c0] ss:$16 sps:$4 sm:$0xff]  }
  0x33   : > { %v6985_v38 = vld [vmem:[%s8003_s28 + $0x2cc] ss:$16 sps:$4 sm:$0xff]   ;;  %v6986_v43 = vld [vmem:[%s8003_s28 + $0x2e0] ss:$16 sps:$4 sm:$0xff]   ;;  %v7001_v55 = vld [vmem:[%s8003_s28 + $0x328] ss:$16 sps:$4 sm:$0xff]  }
  0x34   : > { %4660 = vmatpush1.bf16.msra.mxu0 %v6894_v31  ;;  %5111 = vmatpush1.bf16.msra.mxu1 %v6895_v32  ;;  %v6968_v31 = vld [vmem:[%s8003_s28 + $0x280] ss:$16 sps:$4 sm:$0xff]   ;;  %v6971_v32 = vld [vmem:[%s8003_s28 + $0x288] ss:$16 sps:$4 sm:$0xff]   ;;  %v7015_v61 = vld [vmem:[%s8003_s28 + $0x36c] ss:$16 sps:$4 sm:$0xff]  }
  0x35   : > { %4661 = vmatprep.subr.bf16.mxu0 %v6896_v33  ;;  %5112 = vmatprep.subr.bf16.mxu1 %v6898_v34  ;;  %v6976_v33 = vld [vmem:[%s8003_s28 + $0x2a4] ss:$16 sps:$4 sm:$0xff]   ;;  %v6979_v34 = vld [vmem:[%s8003_s28 + $0x2ac] ss:$16 sps:$4 sm:$0xff]   ;;  %v7007_v59 = vld [vmem:[%s8003_s28 + $0x348] ss:$16 sps:$4 sm:$0xff]  }
  0x36   : > { %vm5572_vm9 = vmor %vm5571_vm8, %vm5570_vm7  ;;  %vm5573_vm10 = vcmask 1045508   ;;  %vm5575_vm12 = vcmask 949254   ;;  %p6627_p6 = scmp.ne.s32.totalorder %s7989_s19, 6 }
  0x37   : > { %vm5574_vm11 = vmor %vm5573_vm10, %vm5572_vm9  ;;  %vm5712_vm14 = vcmask (!%p6627_p6), 949248   ;;  %vm5715_vm15 = vcmask (!%p6627_p6), 1043456   ;;  %vm5859_vm0 = vcmask (!%p6627_p6), 25600  }
  0x38   : > { %4662 = vmatpush1.bf16.msra.mxu0 %v6900_v35  ;;  %5113 = vmatpush1.bf16.msra.mxu1 %v6901_v36  ;;  %v6974_v35 = vld [vmem:[%s8003_s28 + $0x2a0] ss:$16 sps:$4 sm:$0xff]   ;;  %v6977_v36 = vld [vmem:[%s8003_s28 + $0x2a8] ss:$16 sps:$4 sm:$0xff]   ;;  %vm5576_vm13 = vmor %vm5575_vm12, %vm5574_vm11 }
  0x39   : > { %4663 = vmatprep.subr.bf16.mxu0 %v6902_v40  ;;  %5114 = vmatprep.subr.bf16.mxu1 %v6904_v41  ;;  %v6983_v40 = vld [vmem:[%s8003_s28 + $0x2c8] ss:$16 sps:$4 sm:$0xff]   ;;  %v6988_v41 = vld [vmem:[%s8003_s28 + $0x2e4] ss:$16 sps:$4 sm:$0xff]  }
  0x3c   : > { %4664 = vmatpush1.bf16.msra.mxu0 %v6906_v42  ;;  %5115 = vmatpush1.bf16.msra.mxu1 %v6907_v45  ;;  %v6991_v42 = vld [vmem:[%s8003_s28 + $0x2ec] ss:$16 sps:$4 sm:$0xff]   ;;  %v6989_v45 = vld [vmem:[%s8003_s28 + $0x2e8] ss:$16 sps:$4 sm:$0xff]  }
  0x3d   : > { %4665 = vmatprep.subr.bf16.mxu0 %v6908_v46  ;;  %5116 = vmatprep.subr.bf16.mxu1 %v6910_v47  ;;  %v6994_v46 = vld [vmem:[%s8003_s28 + $0x304] ss:$16 sps:$4 sm:$0xff]   ;;  %v6997_v47 = vld [vmem:[%s8003_s28 + $0x30c] ss:$16 sps:$4 sm:$0xff]  }
  0x40   : > { %4666 = vmatpush1.bf16.msra.mxu0 %v6912_v48  ;;  %5117 = vmatpush1.bf16.msra.mxu1 %v6913_v49  ;;  %v6992_v48 = vld [vmem:[%s8003_s28 + $0x300] ss:$16 sps:$4 sm:$0xff]   ;;  %v6995_v49 = vld [vmem:[%s8003_s28 + $0x308] ss:$16 sps:$4 sm:$0xff]  }
  0x41   : > { %4667 = vmatprep.subr.bf16.mxu0 %v6914_v51  ;;  %5118 = vmatprep.subr.bf16.mxu1 %v6916_v52  ;;  %v7000_v51 = vld [vmem:[%s8003_s28 + $0x324] ss:$16 sps:$4 sm:$0xff]   ;;  %v7003_v52 = vld [vmem:[%s8003_s28 + $0x32c] ss:$16 sps:$4 sm:$0xff]  }
  0x44   : > { %4668 = vmatpush1.bf16.msra.mxu0 %v6918_v54  ;;  %5119 = vmatpush1.bf16.msra.mxu1 %v6919_v56  ;;  %v6998_v54 = vld [vmem:[%s8003_s28 + $0x320] ss:$16 sps:$4 sm:$0xff]   ;;  %v7006_v56 = vld [vmem:[%s8003_s28 + $0x344] ss:$16 sps:$4 sm:$0xff]  }
  0x45   : > { %4669 = vmatprep.subr.bf16.mxu0 %v6920_v57  ;;  %5120 = vmatprep.subr.bf16.mxu1 %v6922_v58  ;;  %v7009_v57 = vld [vmem:[%s8003_s28 + $0x34c] ss:$16 sps:$4 sm:$0xff]   ;;  %v7004_v58 = vld [vmem:[%s8003_s28 + $0x340] ss:$16 sps:$4 sm:$0xff]  }
  0x48   : > { %4670 = vmatpush1.bf16.msra.mxu0 %v6924_v60  ;;  %5121 = vmatpush1.bf16.msra.mxu1 %v6925_v62  ;;  %v7012_v60 = vld [vmem:[%s8003_s28 + $0x364] ss:$16 sps:$4 sm:$0xff]   ;;  %v7010_v62 = vld [vmem:[%s8003_s28 + $0x360] ss:$16 sps:$4 sm:$0xff]  }
  0x49   : > { %4671 = vmatprep.subr.bf16.mxu0 %v6926_v63  ;;  %5122 = vmatprep.subr.bf16.mxu1 %v6928_v0  ;;  %v7013_v63 = vld [vmem:[%s8003_s28 + $0x368] ss:$16 sps:$4 sm:$0xff]   ;;  %v7018_v0 = vld [vmem:[%s8003_s28 + $0x384] ss:$16 sps:$4 sm:$0xff]  }
  0x4c   : > { %4672 = vmatpush1.bf16.msra.mxu0 %v6930_v1  ;;  %5123 = vmatpush1.bf16.msra.mxu1 %v6931_v2  ;;  %v7021_v1 = vld [vmem:[%s8003_s28 + $0x38c] ss:$16 sps:$4 sm:$0xff]   ;;  %v7016_v2 = vld [vmem:[%s8003_s28 + $0x380] ss:$16 sps:$4 sm:$0xff]  }
  0x4d   : > { %4673 = vmatprep.subr.bf16.mxu0 %v6932_v3  ;;  %5124 = vmatprep.subr.bf16.mxu1 %v6934_v4  ;;  %v7019_v3 = vld [vmem:[%s8003_s28 + $0x388] ss:$16 sps:$4 sm:$0xff]   ;;  %v7024_v4 = vld [vmem:[%s8003_s28 + $0x3a4] ss:$16 sps:$4 sm:$0xff]  }
  0x50   : > { %4674 = vmatpush1.bf16.msra.mxu0 %v6936_v5  ;;  %5125 = vmatpush1.bf16.msra.mxu1 %v6937_v6  ;;  %v7027_v5 = vld [vmem:[%s8003_s28 + $0x3ac] ss:$16 sps:$4 sm:$0xff]   ;;  %v7022_v6 = vld [vmem:[%s8003_s28 + $0x3a0] ss:$16 sps:$4 sm:$0xff]  }
  0x51   : > { %4675 = vmatprep.subr.bf16.mxu0 %v6938_v7  ;;  %5126 = vmatprep.subr.bf16.mxu1 %v6940_v8  ;;  %v7025_v7 = vld [vmem:[%s8003_s28 + $0x3a8] ss:$16 sps:$4 sm:$0xff]   ;;  %v7030_v8 = vld [vmem:[%s8003_s28 + $0x3c4] ss:$16 sps:$4 sm:$0xff]  }
  0x54   : > { %4676 = vmatpush1.bf16.msra.mxu0 %v6942_v9  ;;  %5127 = vmatpush1.bf16.msra.mxu1 %v6943_v10  ;;  %v7033_v9 = vld [vmem:[%s8003_s28 + $0x3cc] ss:$16 sps:$4 sm:$0xff]   ;;  %v958_v10 = vcombine.high %v8058_v53, %v8058_v53  ;;  %v7037_v53 = vld [vmem:[%s8003_s28 + $0x3e8] ss:$16 sps:$4 sm:$0xff]  }
  0x55   : > { %4686 = vmatprep.subr.bf16.mxu0 %v6946_v11  ;;  %5137 = vmatprep.subr.bf16.mxu1 %v6949_v12  ;;  %v7028_v11 = vld [vmem:[%s8003_s28 + $0x3c0] ss:$16 sps:$4 sm:$0xff]   ;;  %v7031_v12 = vld [vmem:[%s8003_s28 + $0x3c8] ss:$16 sps:$4 sm:$0xff]  }
  0x57   : > { %4678 = vmatmul.mubr.bf16.vlgmr.msra.gmra.mrb[0].mxu0 %v8085_v14  ;;  %5129 = vmatmul.mubr.bf16.vlgmr.msra.gmra.mrb[0].mxu1 %v8085_v14 }
  0x58   : > { %4687 = vmatpush1.bf16.msra.mxu0 %v6944_v13  ;;  %5138 = vmatpush1.bf16.msra.mxu1 %v6947_v15  ;;  %v7036_v13 = vld [vmem:[%s8003_s28 + $0x3e4] ss:$16 sps:$4 sm:$0xff]   ;;  %v7039_v15 = vld [vmem:[%s8003_s28 + $0x3ec] ss:$16 sps:$4 sm:$0xff]  }
  0x59   : > { %4688 = vmatprep.subr.bf16.mxu0 %v6952_v16  ;;  %5139 = vmatprep.subr.bf16.mxu1 %v6955_v17  ;;  %v8151_v16 = vrot.slane %v958_v10, %v8053_v50  ;;  %v7034_v17 = vld [vmem:[%s8003_s28 + $0x3e0] ss:$16 sps:$4 sm:$0xff]   ;;  %v7115_v10 = vld [vmem:[%s8003_s28 + $0x588] ss:$16 sps:$4 sm:$0xff]  }
  0x5a   : > { %4718 = vmatprep.mubr.bf16.mxu0 %v1005_v18  ;;  %5169 = vmatprep.mubr.bf16.mxu1 %v1005_v18  ;;  %v7042_v18 = vld [vmem:[%s8003_s28 + $0x404] ss:$16 sps:$4 sm:$0xff]  }
  0x5c   : > { %4689 = vmatpush1.bf16.msra.mxu0 %v6950_v19  ;;  %5140 = vmatpush1.bf16.msra.mxu1 %v6953_v20  ;;  %v7045_v19 = vld [vmem:[%s8003_s28 + $0x40c] ss:$16 sps:$4 sm:$0xff]   ;;  %v974_v20 = vcombine.high %v8151_v16, %v8151_v16 }
  0x5d   : > { %4690 = vmatprep.subr.bf16.mxu0 %v6958_v21  ;;  %5141 = vmatprep.subr.bf16.mxu1 %v6961_v22  ;;  %v7040_v21 = vld [vmem:[%s8003_s28 + $0x400] ss:$16 sps:$4 sm:$0xff]   ;;  %v1003_v22 = vcombine.high %v8085_v14, %v8085_v14  ;;  %v7049_v14 = vld [vmem:[%s8003_s28 + $0x428] ss:$16 sps:$4 sm:$0xff]  }
  0x60   : > { %4691 = vmatpush1.bf16.msra.mxu0 %v6956_v23  ;;  %5142 = vmatpush1.bf16.msra.mxu1 %v6959_v24  ;;  %v7043_v23 = vld [vmem:[%s8003_s28 + $0x408] ss:$16 sps:$4 sm:$0xff]   ;;  %v7048_v24 = vld [vmem:[%s8003_s28 + $0x424] ss:$16 sps:$4 sm:$0xff]  }
  0x61   : > { %4692 = vmatprep.subr.bf16.mxu0 %v6964_v25  ;;  %5143 = vmatprep.subr.bf16.mxu1 %v6967_v26  ;;  %v7051_v25 = vld [vmem:[%s8003_s28 + $0x42c] ss:$16 sps:$4 sm:$0xff]   ;;  %v8166_v26 = vrot.slane %v974_v20, %v8053_v50  ;;  %v7132_v20 = vld [vmem:[%s8003_s28 + $0x5e4] ss:$16 sps:$4 sm:$0xff]  }
  0x64   : > { %4693 = vmatpush1.bf16.msra.mxu0 %v6962_v27  ;;  %5144 = vmatpush1.bf16.msra.mxu1 %v6965_v28  ;;  %v7046_v27 = vld [vmem:[%s8003_s28 + $0x420] ss:$16 sps:$4 sm:$0xff]   ;;  %v7054_v28 = vld [vmem:[%s8003_s28 + $0x444] ss:$16 sps:$4 sm:$0xff]  }
  0x65   : > { %4694 = vmatprep.subr.bf16.mxu0 %v6970_v29  ;;  %5145 = vmatprep.subr.bf16.mxu1 %v6973_v30  ;;  %v7057_v29 = vld [vmem:[%s8003_s28 + $0x44c] ss:$16 sps:$4 sm:$0xff]   ;;  %v7052_v30 = vld [vmem:[%s8003_s28 + $0x440] ss:$16 sps:$4 sm:$0xff]  }
  0x68   : > { %4695 = vmatpush1.bf16.msra.mxu0 %v6968_v31  ;;  %5146 = vmatpush1.bf16.msra.mxu1 %v6971_v32  ;;  %v7055_v31 = vld [vmem:[%s8003_s28 + $0x448] ss:$16 sps:$4 sm:$0xff]   ;;  %v7060_v32 = vld [vmem:[%s8003_s28 + $0x464] ss:$16 sps:$4 sm:$0xff]  }
  0x69   : > { %4696 = vmatprep.subr.bf16.mxu0 %v6976_v33  ;;  %5147 = vmatprep.subr.bf16.mxu1 %v6979_v34  ;;  %v7063_v33 = vld [vmem:[%s8003_s28 + $0x46c] ss:$16 sps:$4 sm:$0xff]   ;;  %v7058_v34 = vld [vmem:[%s8003_s28 + $0x460] ss:$16 sps:$4 sm:$0xff]  }
  0x6c   : > { %4697 = vmatpush1.bf16.msra.mxu0 %v6974_v35  ;;  %5148 = vmatpush1.bf16.msra.mxu1 %v6977_v36  ;;  %v7061_v35 = vld [vmem:[%s8003_s28 + $0x468] ss:$16 sps:$4 sm:$0xff]   ;;  %v7066_v36 = vld [vmem:[%s8003_s28 + $0x484] ss:$16 sps:$4 sm:$0xff]  }
  0x6d   : > { %4698 = vmatprep.subr.bf16.mxu0 %v6982_v37  ;;  %5149 = vmatprep.subr.bf16.mxu1 %v6985_v38  ;;  %v7069_v37 = vld [vmem:[%s8003_s28 + $0x48c] ss:$16 sps:$4 sm:$0xff]   ;;  %v7064_v38 = vld [vmem:[%s8003_s28 + $0x480] ss:$16 sps:$4 sm:$0xff]  }
  0x70   : > { %4699 = vmatpush1.bf16.msra.mxu0 %v6980_v39  ;;  %5150 = vmatpush1.bf16.msra.mxu1 %v6983_v40  ;;  %v7067_v39 = vld [vmem:[%s8003_s28 + $0x488] ss:$16 sps:$4 sm:$0xff]   ;;  %v7072_v40 = vld [vmem:[%s8003_s28 + $0x4a4] ss:$16 sps:$4 sm:$0xff]  }
  0x71   : > { %4700 = vmatprep.subr.bf16.mxu0 %v6988_v41  ;;  %5151 = vmatprep.subr.bf16.mxu1 %v6991_v42  ;;  %v7075_v41 = vld [vmem:[%s8003_s28 + $0x4ac] ss:$16 sps:$4 sm:$0xff]   ;;  %v7070_v42 = vld [vmem:[%s8003_s28 + $0x4a0] ss:$16 sps:$4 sm:$0xff]  }
  0x74   : > { %4701 = vmatpush1.bf16.msra.mxu0 %v6986_v43  ;;  %5152 = vmatpush1.bf16.msra.mxu1 %v6989_v45  ;;  %v7073_v43 = vld [vmem:[%s8003_s28 + $0x4a8] ss:$16 sps:$4 sm:$0xff]   ;;  %v7078_v45 = vld [vmem:[%s8003_s28 + $0x4c4] ss:$16 sps:$4 sm:$0xff]  }
  0x75   : > { %4702 = vmatprep.subr.bf16.mxu0 %v6994_v46  ;;  %5153 = vmatprep.subr.bf16.mxu1 %v6997_v47  ;;  %v7081_v46 = vld [vmem:[%s8003_s28 + $0x4cc] ss:$16 sps:$4 sm:$0xff]   ;;  %v7076_v47 = vld [vmem:[%s8003_s28 + $0x4c0] ss:$16 sps:$4 sm:$0xff]  }
  0x78   : > { %4703 = vmatpush1.bf16.msra.mxu0 %v6992_v48  ;;  %5154 = vmatpush1.bf16.msra.mxu1 %v6995_v49  ;;  %v7079_v48 = vld [vmem:[%s8003_s28 + $0x4c8] ss:$16 sps:$4 sm:$0xff]   ;;  %v7084_v49 = vld [vmem:[%s8003_s28 + $0x4e4] ss:$16 sps:$4 sm:$0xff]  }
  0x79   : > { %4704 = vmatprep.subr.bf16.mxu0 %v7000_v51  ;;  %5155 = vmatprep.subr.bf16.mxu1 %v7003_v52  ;;  %v7087_v51 = vld [vmem:[%s8003_s28 + $0x4ec] ss:$16 sps:$4 sm:$0xff]   ;;  %v7082_v52 = vld [vmem:[%s8003_s28 + $0x4e0] ss:$16 sps:$4 sm:$0xff]  }
  0x7c   : > { %4705 = vmatpush1.bf16.msra.mxu0 %v6998_v54  ;;  %5156 = vmatpush1.bf16.msra.mxu1 %v7001_v55  ;;  %v7085_v54 = vld [vmem:[%s8003_s28 + $0x4e8] ss:$16 sps:$4 sm:$0xff]   ;;  %v7090_v55 = vld [vmem:[%s8003_s28 + $0x504] ss:$16 sps:$4 sm:$0xff]  }
  0x7d   : > { %4706 = vmatprep.subr.bf16.mxu0 %v7006_v56  ;;  %5157 = vmatprep.subr.bf16.mxu1 %v7009_v57  ;;  %v7093_v56 = vld [vmem:[%s8003_s28 + $0x50c] ss:$16 sps:$4 sm:$0xff]   ;;  %v7088_v57 = vld [vmem:[%s8003_s28 + $0x500] ss:$16 sps:$4 sm:$0xff]  }
  0x80   : > { %4707 = vmatpush1.bf16.msra.mxu0 %v7004_v58  ;;  %5158 = vmatpush1.bf16.msra.mxu1 %v7007_v59  ;;  %v7091_v58 = vld [vmem:[%s8003_s28 + $0x508] ss:$16 sps:$4 sm:$0xff]   ;;  %v7096_v59 = vld [vmem:[%s8003_s28 + $0x524] ss:$16 sps:$4 sm:$0xff]  }
  0x81   : > { %4708 = vmatprep.subr.bf16.mxu0 %v7012_v60  ;;  %5159 = vmatprep.subr.bf16.mxu1 %v7015_v61  ;;  %v7099_v60 = vld [vmem:[%s8003_s28 + $0x52c] ss:$16 sps:$4 sm:$0xff]   ;;  %v7094_v61 = vld [vmem:[%s8003_s28 + $0x520] ss:$16 sps:$4 sm:$0xff]  }
  0x84   : > { %4709 = vmatpush1.bf16.msra.mxu0 %v7010_v62  ;;  %5160 = vmatpush1.bf16.msra.mxu1 %v7013_v63  ;;  %v7097_v62 = vld [vmem:[%s8003_s28 + $0x528] ss:$16 sps:$4 sm:$0xff]   ;;  %v7102_v63 = vld [vmem:[%s8003_s28 + $0x544] ss:$16 sps:$4 sm:$0xff]  }
  0x85   : > { %4710 = vmatprep.subr.bf16.mxu0 %v7018_v0  ;;  %5161 = vmatprep.subr.bf16.mxu1 %v7021_v1  ;;  %v7105_v0 = vld [vmem:[%s8003_s28 + $0x54c] ss:$16 sps:$4 sm:$0xff]   ;;  %v7100_v1 = vld [vmem:[%s8003_s28 + $0x540] ss:$16 sps:$4 sm:$0xff]  }
  0x88   : > { %4711 = vmatpush1.bf16.msra.mxu0 %v7016_v2  ;;  %5162 = vmatpush1.bf16.msra.mxu1 %v7019_v3  ;;  %v7103_v2 = vld [vmem:[%s8003_s28 + $0x548] ss:$16 sps:$4 sm:$0xff]   ;;  %v7108_v3 = vld [vmem:[%s8003_s28 + $0x564] ss:$16 sps:$4 sm:$0xff]  }
  0x89   : > { %4712 = vmatprep.subr.bf16.mxu0 %v7024_v4  ;;  %5163 = vmatprep.subr.bf16.mxu1 %v7027_v5  ;;  %v7111_v4 = vld [vmem:[%s8003_s28 + $0x56c] ss:$16 sps:$4 sm:$0xff]   ;;  %v7106_v5 = vld [vmem:[%s8003_s28 + $0x560] ss:$16 sps:$4 sm:$0xff]  }
  0x8c   : > { %4713 = vmatpush1.bf16.msra.mxu0 %v7022_v6  ;;  %5164 = vmatpush1.bf16.msra.mxu1 %v7025_v7  ;;  %v7109_v6 = vld [vmem:[%s8003_s28 + $0x568] ss:$16 sps:$4 sm:$0xff]   ;;  %v7114_v7 = vld [vmem:[%s8003_s28 + $0x584] ss:$16 sps:$4 sm:$0xff]  }
  0x8d   : > { %4714 = vmatprep.subr.bf16.mxu0 %v7030_v8  ;;  %5165 = vmatprep.subr.bf16.mxu1 %v7033_v9  ;;  %v7117_v8 = vld [vmem:[%s8003_s28 + $0x58c] ss:$16 sps:$4 sm:$0xff]   ;;  %v7112_v9 = vld [vmem:[%s8003_s28 + $0x580] ss:$16 sps:$4 sm:$0xff]  }
  0x90   : > { %4715 = vmatpush1.bf16.msra.mxu0 %v7028_v11  ;;  %5166 = vmatpush1.bf16.msra.mxu1 %v7031_v12  ;;  %v7120_v11 = vld [vmem:[%s8003_s28 + $0x5a4] ss:$16 sps:$4 sm:$0xff]   ;;  %v7123_v12 = vld [vmem:[%s8003_s28 + $0x5ac] ss:$16 sps:$4 sm:$0xff]  }
  0x91   : > { %4716 = vmatprep.subr.bf16.mxu0 %v7036_v13  ;;  %5167 = vmatprep.subr.bf16.mxu1 %v7039_v15  ;;  %v7118_v13 = vld [vmem:[%s8003_s28 + $0x5a0] ss:$16 sps:$4 sm:$0xff]   ;;  %v7121_v15 = vld [vmem:[%s8003_s28 + $0x5a8] ss:$16 sps:$4 sm:$0xff]  }
  0x94   : > { %4717 = vmatpush1.bf16.msra.mxu0 %v7034_v17  ;;  %5168 = vmatpush1.bf16.msra.mxu1 %v7037_v53  ;;  %v7126_v17 = vld [vmem:[%s8003_s28 + $0x5c4] ss:$16 sps:$4 sm:$0xff]   ;;  %v7129_v53 = vld [vmem:[%s8003_s28 + $0x5cc] ss:$16 sps:$4 sm:$0xff]  }
  0x95   : > { %4727 = vmatprep.subr.bf16.mxu0 %v7042_v18  ;;  %5178 = vmatprep.subr.bf16.mxu1 %v7045_v19  ;;  %v7124_v18 = vld [vmem:[%s8003_s28 + $0x5c0] ss:$16 sps:$4 sm:$0xff]   ;;  %v7127_v19 = vld [vmem:[%s8003_s28 + $0x5c8] ss:$16 sps:$4 sm:$0xff]  }
  0x97   : > { %4719 = vmatmul.mubr.bf16.vlgmr.msra.gmra.mrb[0].mxu0 %v1003_v22  ;;  %5170 = vmatmul.mubr.bf16.vlgmr.msra.gmra.mrb[0].mxu1 %v1003_v22  ;;  %v7130_v22 = vld [vmem:[%s8003_s28 + $0x5e0] ss:$16 sps:$4 sm:$0xff]  }
  0x98   : > { %4728 = vmatpush1.bf16.msra.mxu0 %v7040_v21  ;;  %5179 = vmatpush1.bf16.msra.mxu1 %v7043_v23  ;;  %v7135_v21 = vld [vmem:[%s8003_s28 + $0x5ec] ss:$16 sps:$4 sm:$0xff]   ;;  %v7133_v23 = vld [vmem:[%s8003_s28 + $0x5e8] ss:$16 sps:$4 sm:$0xff]  }
  0x99   : > { %4729 = vmatprep.subr.bf16.mxu0 %v7048_v24  ;;  %5180 = vmatprep.subr.bf16.mxu1 %v7051_v25  ;;  %v7139_v24 = vld [vmem:[%s8003_s28 + $0x604] ss:$16 sps:$4 sm:$0xff]   ;;  %v7142_v25 = vld [vmem:[%s8003_s28 + $0x60c] ss:$16 sps:$4 sm:$0xff]  }
  0x9a   : > { %4759 = vmatprep.mubr.bf16.mxu0 %v8166_v26  ;;  %5210 = vmatprep.mubr.bf16.mxu1 %v8166_v26 }
  0x9c   : > { %4730 = vmatpush1.bf16.msra.mxu0 %v7046_v27  ;;  %5181 = vmatpush1.bf16.msra.mxu1 %v7049_v14  ;;  %v7137_v27 = vld [vmem:[%s8003_s28 + $0x600] ss:$16 sps:$4 sm:$0xff]   ;;  %v8233_v14 = vrot.slane %v8151_v16, %v8053_v50 }
  0x9d   : > { %4731 = vmatprep.subr.bf16.mxu0 %v7054_v28  ;;  %5182 = vmatprep.subr.bf16.mxu1 %v7057_v29  ;;  %v7140_v28 = vld [vmem:[%s8003_s28 + $0x608] ss:$16 sps:$4 sm:$0xff]   ;;  %v7145_v29 = vld [vmem:[%s8003_s28 + $0x624] ss:$16 sps:$4 sm:$0xff]   ;;  %v7143_v16 = vld [vmem:[%s8003_s28 + $0x620] ss:$16 sps:$4 sm:$0xff]  }
  0xa0   : > { %4732 = vmatpush1.bf16.msra.mxu0 %v7052_v30  ;;  %5183 = vmatpush1.bf16.msra.mxu1 %v7055_v31  ;;  %v7148_v30 = vld [vmem:[%s8003_s28 + $0x62c] ss:$16 sps:$4 sm:$0xff]   ;;  %v1006_v31 = vcombine.high %v8166_v26, %v8166_v26  ;;  %v7149_v26 = vld [vmem:[%s8003_s28 + $0x640] ss:$16 sps:$4 sm:$0xff]  }
  0xa1   : > { %4733 = vmatprep.subr.bf16.mxu0 %v7060_v32  ;;  %5184 = vmatprep.subr.bf16.mxu1 %v7063_v33  ;;  %v7146_v32 = vld [vmem:[%s8003_s28 + $0x628] ss:$16 sps:$4 sm:$0xff]   ;;  %v7151_v33 = vld [vmem:[%s8003_s28 + $0x644] ss:$16 sps:$4 sm:$0xff]  }
  0xa4   : > { %4734 = vmatpush1.bf16.msra.mxu0 %v7058_v34  ;;  %5185 = vmatpush1.bf16.msra.mxu1 %v7061_v35  ;;  %v7154_v34 = vld [vmem:[%s8003_s28 + $0x64c] ss:$16 sps:$4 sm:$0xff]   ;;  %v7152_v35 = vld [vmem:[%s8003_s28 + $0x648] ss:$16 sps:$4 sm:$0xff]  }
  0xa5   : > { %4735 = vmatprep.subr.bf16.mxu0 %v7066_v36  ;;  %5186 = vmatprep.subr.bf16.mxu1 %v7069_v37  ;;  %v7157_v36 = vld [vmem:[%s8003_s28 + $0x664] ss:$16 sps:$4 sm:$0xff]   ;;  %v7160_v37 = vld [vmem:[%s8003_s28 + $0x66c] ss:$16 sps:$4 sm:$0xff]  }
  0xa8   : > { %4736 = vmatpush1.bf16.msra.mxu0 %v7064_v38  ;;  %5187 = vmatpush1.bf16.msra.mxu1 %v7067_v39  ;;  %v7155_v38 = vld [vmem:[%s8003_s28 + $0x660] ss:$16 sps:$4 sm:$0xff]   ;;  %v7158_v39 = vld [vmem:[%s8003_s28 + $0x668] ss:$16 sps:$4 sm:$0xff]  }
  0xa9   : > { %4737 = vmatprep.subr.bf16.mxu0 %v7072_v40  ;;  %5188 = vmatprep.subr.bf16.mxu1 %v7075_v41  ;;  %v7163_v40 = vld [vmem:[%s8003_s28 + $0x684] ss:$16 sps:$4 sm:$0xff]   ;;  %v7166_v41 = vld [vmem:[%s8003_s28 + $0x68c] ss:$16 sps:$4 sm:$0xff]  }
  0xac   : > { %4738 = vmatpush1.bf16.msra.mxu0 %v7070_v42  ;;  %5189 = vmatpush1.bf16.msra.mxu1 %v7073_v43  ;;  %v7161_v42 = vld [vmem:[%s8003_s28 + $0x680] ss:$16 sps:$4 sm:$0xff]   ;;  %v7164_v43 = vld [vmem:[%s8003_s28 + $0x688] ss:$16 sps:$4 sm:$0xff]  }
  0xad   : > { %4739 = vmatprep.subr.bf16.mxu0 %v7078_v45  ;;  %5190 = vmatprep.subr.bf16.mxu1 %v7081_v46  ;;  %v7169_v45 = vld [vmem:[%s8003_s28 + $0x6a4] ss:$16 sps:$4 sm:$0xff]   ;;  %v7172_v46 = vld [vmem:[%s8003_s28 + $0x6ac] ss:$16 sps:$4 sm:$0xff]  }
  0xb0   : > { %4740 = vmatpush1.bf16.msra.mxu0 %v7076_v47  ;;  %5191 = vmatpush1.bf16.msra.mxu1 %v7079_v48  ;;  %v7167_v47 = vld [vmem:[%s8003_s28 + $0x6a0] ss:$16 sps:$4 sm:$0xff]   ;;  %v7170_v48 = vld [vmem:[%s8003_s28 + $0x6a8] ss:$16 sps:$4 sm:$0xff]  }
  0xb1   : > { %4741 = vmatprep.subr.bf16.mxu0 %v7084_v49  ;;  %5192 = vmatprep.subr.bf16.mxu1 %v7087_v51  ;;  %v7175_v49 = vld [vmem:[%s8003_s28 + $0x6c4] ss:$16 sps:$4 sm:$0xff]   ;;  %v7178_v51 = vld [vmem:[%s8003_s28 + $0x6cc] ss:$16 sps:$4 sm:$0xff]  }
  0xb4   : > { %4742 = vmatpush1.bf16.msra.mxu0 %v7082_v52  ;;  %5193 = vmatpush1.bf16.msra.mxu1 %v7085_v54  ;;  %v7173_v52 = vld [vmem:[%s8003_s28 + $0x6c0] ss:$16 sps:$4 sm:$0xff]   ;;  %v7176_v54 = vld [vmem:[%s8003_s28 + $0x6c8] ss:$16 sps:$4 sm:$0xff]  }
  0xb5   : > { %4743 = vmatprep.subr.bf16.mxu0 %v7090_v55  ;;  %5194 = vmatprep.subr.bf16.mxu1 %v7093_v56  ;;  %v7181_v55 = vld [vmem:[%s8003_s28 + $0x6e4] ss:$16 sps:$4 sm:$0xff]   ;;  %v7184_v56 = vld [vmem:[%s8003_s28 + $0x6ec] ss:$16 sps:$4 sm:$0xff]  }
  0xb8   : > { %4744 = vmatpush1.bf16.msra.mxu0 %v7088_v57  ;;  %5195 = vmatpush1.bf16.msra.mxu1 %v7091_v58  ;;  %v7179_v57 = vld [vmem:[%s8003_s28 + $0x6e0] ss:$16 sps:$4 sm:$0xff]   ;;  %v7182_v58 = vld [vmem:[%s8003_s28 + $0x6e8] ss:$16 sps:$4 sm:$0xff]  }
  0xb9   : > { %4745 = vmatprep.subr.bf16.mxu0 %v7096_v59  ;;  %5196 = vmatprep.subr.bf16.mxu1 %v7099_v60  ;;  %v7187_v59 = vld [vmem:[%s8003_s28 + $0x704] ss:$16 sps:$4 sm:$0xff]   ;;  %v7190_v60 = vld [vmem:[%s8003_s28 + $0x70c] ss:$16 sps:$4 sm:$0xff]  }
  0xbc   : > { %4746 = vmatpush1.bf16.msra.mxu0 %v7094_v61  ;;  %5197 = vmatpush1.bf16.msra.mxu1 %v7097_v62  ;;  %v7185_v61 = vld [vmem:[%s8003_s28 + $0x700] ss:$16 sps:$4 sm:$0xff]   ;;  %v7188_v62 = vld [vmem:[%s8003_s28 + $0x708] ss:$16 sps:$4 sm:$0xff]  }
  0xbd   : > { %4747 = vmatprep.subr.bf16.mxu0 %v7102_v63  ;;  %5198 = vmatprep.subr.bf16.mxu1 %v7105_v0  ;;  %v7193_v63 = vld [vmem:[%s8003_s28 + $0x724] ss:$16 sps:$4 sm:$0xff]   ;;  %v7196_v0 = vld [vmem:[%s8003_s28 + $0x72c] ss:$16 sps:$4 sm:$0xff]  }
  0xc0   : > { %4748 = vmatpush1.bf16.msra.mxu0 %v7100_v1  ;;  %5199 = vmatpush1.bf16.msra.mxu1 %v7103_v2  ;;  %v7191_v1 = vld [vmem:[%s8003_s28 + $0x720] ss:$16 sps:$4 sm:$0xff]   ;;  %v7194_v2 = vld [vmem:[%s8003_s28 + $0x728] ss:$16 sps:$4 sm:$0xff]  }
  0xc1   : > { %4749 = vmatprep.subr.bf16.mxu0 %v7108_v3  ;;  %5200 = vmatprep.subr.bf16.mxu1 %v7111_v4  ;;  %v7199_v3 = vld [vmem:[%s8003_s28 + $0x744] ss:$16 sps:$4 sm:$0xff]   ;;  %v7202_v4 = vld [vmem:[%s8003_s28 + $0x74c] ss:$16 sps:$4 sm:$0xff]  }
  0xc4   : > { %4750 = vmatpush1.bf16.msra.mxu0 %v7106_v5  ;;  %5201 = vmatpush1.bf16.msra.mxu1 %v7109_v6  ;;  %v7197_v5 = vld [vmem:[%s8003_s28 + $0x740] ss:$16 sps:$4 sm:$0xff]   ;;  %v7200_v6 = vld [vmem:[%s8003_s28 + $0x748] ss:$16 sps:$4 sm:$0xff]  }
  0xc5   : > { %4751 = vmatprep.subr.bf16.mxu0 %v7114_v7  ;;  %5202 = vmatprep.subr.bf16.mxu1 %v7117_v8  ;;  %v7205_v7 = vld [vmem:[%s8003_s28 + $0x764] ss:$16 sps:$4 sm:$0xff]   ;;  %v7208_v8 = vld [vmem:[%s8003_s28 + $0x76c] ss:$16 sps:$4 sm:$0xff]  }
  0xc8   : > { %4752 = vmatpush1.bf16.msra.mxu0 %v7112_v9  ;;  %5203 = vmatpush1.bf16.msra.mxu1 %v7115_v10  ;;  %v7203_v9 = vld [vmem:[%s8003_s28 + $0x760] ss:$16 sps:$4 sm:$0xff]   ;;  %v7206_v10 = vld [vmem:[%s8003_s28 + $0x768] ss:$16 sps:$4 sm:$0xff]  }
  0xc9   : > { %4753 = vmatprep.subr.bf16.mxu0 %v7120_v11  ;;  %5204 = vmatprep.subr.bf16.mxu1 %v7123_v12  ;;  %v7211_v11 = vld [vmem:[%s8003_s28 + $0x784] ss:$16 sps:$4 sm:$0xff]   ;;  %v7214_v12 = vld [vmem:[%s8003_s28 + $0x78c] ss:$16 sps:$4 sm:$0xff]  }
  0xcc   : > { %4754 = vmatpush1.bf16.msra.mxu0 %v7118_v13  ;;  %5205 = vmatpush1.bf16.msra.mxu1 %v7121_v15  ;;  %v7209_v13 = vld [vmem:[%s8003_s28 + $0x780] ss:$16 sps:$4 sm:$0xff]   ;;  %v7212_v15 = vld [vmem:[%s8003_s28 + $0x788] ss:$16 sps:$4 sm:$0xff]  }
  0xcd   : > { %4755 = vmatprep.subr.bf16.mxu0 %v7126_v17  ;;  %5206 = vmatprep.subr.bf16.mxu1 %v7129_v53  ;;  %v7217_v17 = vld [vmem:[%s8003_s28 + $0x7a4] ss:$16 sps:$4 sm:$0xff]   ;;  %v7220_v53 = vld [vmem:[%s8003_s28 + $0x7ac] ss:$16 sps:$4 sm:$0xff]  }
  0xd0   : > { %4756 = vmatpush1.bf16.msra.mxu0 %v7124_v18  ;;  %5207 = vmatpush1.bf16.msra.mxu1 %v7127_v19  ;;  %v7215_v18 = vld [vmem:[%s8003_s28 + $0x7a0] ss:$16 sps:$4 sm:$0xff]   ;;  %v7218_v19 = vld [vmem:[%s8003_s28 + $0x7a8] ss:$16 sps:$4 sm:$0xff]  }
  0xd1   : > { %4757 = vmatprep.subr.bf16.mxu0 %v7132_v20  ;;  %5208 = vmatprep.subr.bf16.mxu1 %v7135_v21  ;;  %v7223_v20 = vld [vmem:[%s8003_s28 + $0x7c4] ss:$16 sps:$4 sm:$0xff]   ;;  %v7226_v21 = vld [vmem:[%s8003_s28 + $0x7cc] ss:$16 sps:$4 sm:$0xff]  }
  0xd4   : > { %4758 = vmatpush1.bf16.msra.mxu0 %v7130_v22  ;;  %5209 = vmatpush1.bf16.msra.mxu1 %v7133_v23  ;;  %v8295_v22 = vld.sshfl [vmem:[%s7998_s24 + $0x8] sm:$0xff pattern:$0x75316420]  ;;  %v7221_v23 = vld [vmem:[%s8003_s28 + $0x7c0] ss:$16 sps:$4 sm:$0xff]  }
  0xd5   : > { %4768 = vmatprep.subr.bf16.mxu0 %v7139_v24  ;;  %5219 = vmatprep.subr.bf16.mxu1 %v7142_v25  ;;  %v7224_v24 = vld [vmem:[%s8003_s28 + $0x7c8] ss:$16 sps:$4 sm:$0xff]   ;;  %v7229_v25 = vld [vmem:[%s8003_s28 + $0x7e4] ss:$16 sps:$4 sm:$0xff]  }
  0xd7   : > { %4760 = vmatmul.mubr.bf16.vlgmr.msra.gmra.mrb[0].mxu0 %v8233_v14  ;;  %5211 = vmatmul.mubr.bf16.vlgmr.msra.gmra.mrb[0].mxu1 %v8233_v14 }
  0xd8   : > { %4769 = vmatpush1.bf16.msra.mxu0 %v7137_v27  ;;  %5220 = vmatpush1.bf16.msra.mxu1 %v7140_v28  ;;  %v7232_v27 = vld [vmem:[%s8003_s28 + $0x7ec] ss:$16 sps:$4 sm:$0xff]   ;;  %v7227_v28 = vld [vmem:[%s8003_s28 + $0x7e0] ss:$16 sps:$4 sm:$0xff]  }
  0xd9   : > { %4770 = vmatprep.subr.bf16.mxu0 %v7145_v29  ;;  %5221 = vmatprep.subr.bf16.mxu1 %v7148_v30  ;;  %v7230_v29 = vld [vmem:[%s8003_s28 + $0x7e8] ss:$16 sps:$4 sm:$0xff]   ;;  %v7235_v30 = vld [vmem:[%s8003_s28 + $0x804] ss:$16 sps:$4 sm:$0xff]  }
  0xda   : > { %4800 = vmatprep.mubr.bf16.mxu0 %v1006_v31  ;;  %5251 = vmatprep.mubr.bf16.mxu1 %v1006_v31  ;;  %v7238_v31 = vld [vmem:[%s8003_s28 + $0x80c] ss:$16 sps:$4 sm:$0xff]  }
  0xdc   : > { %4771 = vmatpush1.bf16.msra.mxu0 %v7143_v16  ;;  %5222 = vmatpush1.bf16.msra.mxu1 %v7146_v32  ;;  %v1022_v16 = vcombine.high %v8295_v22, %v8295_v22  ;;  %v1004_v32 = vcombine.high %v8233_v14, %v8233_v14  ;;  %v7239_v14 = vld [vmem:[%s8003_s28 + $0x820] ss:$16 sps:$4 sm:$0xff]  }
  0xdd   : > { %4772 = vmatprep.subr.bf16.mxu0 %v7151_v33  ;;  %5223 = vmatprep.subr.bf16.mxu1 %v7154_v34  ;;  %v7233_v33 = vld [vmem:[%s8003_s28 + $0x800] ss:$16 sps:$4 sm:$0xff]   ;;  %v7236_v34 = vld [vmem:[%s8003_s28 + $0x808] ss:$16 sps:$4 sm:$0xff]  }
  0xe0   : > { %4773 = vmatpush1.bf16.msra.mxu0 %v7149_v26  ;;  %5224 = vmatpush1.bf16.msra.mxu1 %v7152_v35  ;;  %v7241_v26 = vld [vmem:[%s8003_s28 + $0x824] ss:$16 sps:$4 sm:$0xff]   ;;  %v7244_v35 = vld [vmem:[%s8003_s28 + $0x82c] ss:$16 sps:$4 sm:$0xff]  }
  0xe1   : > { %4774 = vmatprep.subr.bf16.mxu0 %v7157_v36  ;;  %5225 = vmatprep.subr.bf16.mxu1 %v7160_v37  ;;  %v8314_v36 = vrot.slane %v1022_v16, %v8053_v50  ;;  %v7242_v37 = vld [vmem:[%s8003_s28 + $0x828] ss:$16 sps:$4 sm:$0xff]   ;;  %v7325_v16 = vld [vmem:[%s8003_s28 + $0x9e4] ss:$16 sps:$4 sm:$0xff]  }
  0xe4   : > { %4775 = vmatpush1.bf16.msra.mxu0 %v7155_v38  ;;  %5226 = vmatpush1.bf16.msra.mxu1 %v7158_v39  ;;  %v7247_v38 = vld [vmem:[%s8003_s28 + $0x844] ss:$16 sps:$4 sm:$0xff]   ;;  %v7250_v39 = vld [vmem:[%s8003_s28 + $0x84c] ss:$16 sps:$4 sm:$0xff]  }
  0xe5   : > { %4776 = vmatprep.subr.bf16.mxu0 %v7163_v40  ;;  %5227 = vmatprep.subr.bf16.mxu1 %v7166_v41  ;;  %v7245_v40 = vld [vmem:[%s8003_s28 + $0x840] ss:$16 sps:$4 sm:$0xff]   ;;  %v7248_v41 = vld [vmem:[%s8003_s28 + $0x848] ss:$16 sps:$4 sm:$0xff]  }
  0xe8   : > { %4777 = vmatpush1.bf16.msra.mxu0 %v7161_v42  ;;  %5228 = vmatpush1.bf16.msra.mxu1 %v7164_v43  ;;  %v7253_v42 = vld [vmem:[%s8003_s28 + $0x864] ss:$16 sps:$4 sm:$0xff]   ;;  %v7256_v43 = vld [vmem:[%s8003_s28 + $0x86c] ss:$16 sps:$4 sm:$0xff]  }
  0xe9   : > { %4778 = vmatprep.subr.bf16.mxu0 %v7169_v45  ;;  %5229 = vmatprep.subr.bf16.mxu1 %v7172_v46  ;;  %v7251_v45 = vld [vmem:[%s8003_s28 + $0x860] ss:$16 sps:$4 sm:$0xff]   ;;  %v7254_v46 = vld [vmem:[%s8003_s28 + $0x868] ss:$16 sps:$4 sm:$0xff]  }
  0xec   : > { %4779 = vmatpush1.bf16.msra.mxu0 %v7167_v47  ;;  %5230 = vmatpush1.bf16.msra.mxu1 %v7170_v48  ;;  %v7259_v47 = vld [vmem:[%s8003_s28 + $0x884] ss:$16 sps:$4 sm:$0xff]   ;;  %v7262_v48 = vld [vmem:[%s8003_s28 + $0x88c] ss:$16 sps:$4 sm:$0xff]  }
  0xed   : > { %4780 = vmatprep.subr.bf16.mxu0 %v7175_v49  ;;  %5231 = vmatprep.subr.bf16.mxu1 %v7178_v51  ;;  %v7257_v49 = vld [vmem:[%s8003_s28 + $0x880] ss:$16 sps:$4 sm:$0xff]   ;;  %v7260_v51 = vld [vmem:[%s8003_s28 + $0x888] ss:$16 sps:$4 sm:$0xff]  }
  0xf0   : > { %4781 = vmatpush1.bf16.msra.mxu0 %v7173_v52  ;;  %5232 = vmatpush1.bf16.msra.mxu1 %v7176_v54  ;;  %v7265_v52 = vld [vmem:[%s8003_s28 + $0x8a4] ss:$16 sps:$4 sm:$0xff]   ;;  %v7268_v54 = vld [vmem:[%s8003_s28 + $0x8ac] ss:$16 sps:$4 sm:$0xff]  }
  0xf1   : > { %4782 = vmatprep.subr.bf16.mxu0 %v7181_v55  ;;  %5233 = vmatprep.subr.bf16.mxu1 %v7184_v56  ;;  %v7263_v55 = vld [vmem:[%s8003_s28 + $0x8a0] ss:$16 sps:$4 sm:$0xff]   ;;  %v7266_v56 = vld [vmem:[%s8003_s28 + $0x8a8] ss:$16 sps:$4 sm:$0xff]  }
  0xf4   : > { %4783 = vmatpush1.bf16.msra.mxu0 %v7179_v57  ;;  %5234 = vmatpush1.bf16.msra.mxu1 %v7182_v58  ;;  %v7271_v57 = vld [vmem:[%s8003_s28 + $0x8c4] ss:$16 sps:$4 sm:$0xff]   ;;  %v7274_v58 = vld [vmem:[%s8003_s28 + $0x8cc] ss:$16 sps:$4 sm:$0xff]  }
  0xf5   : > { %4784 = vmatprep.subr.bf16.mxu0 %v7187_v59  ;;  %5235 = vmatprep.subr.bf16.mxu1 %v7190_v60  ;;  %v7269_v59 = vld [vmem:[%s8003_s28 + $0x8c0] ss:$16 sps:$4 sm:$0xff]   ;;  %v7272_v60 = vld [vmem:[%s8003_s28 + $0x8c8] ss:$16 sps:$4 sm:$0xff]  }
  0xf8   : > { %4785 = vmatpush1.bf16.msra.mxu0 %v7185_v61  ;;  %5236 = vmatpush1.bf16.msra.mxu1 %v7188_v62  ;;  %v7277_v61 = vld [vmem:[%s8003_s28 + $0x8e4] ss:$16 sps:$4 sm:$0xff]   ;;  %v7280_v62 = vld [vmem:[%s8003_s28 + $0x8ec] ss:$16 sps:$4 sm:$0xff]  }
  0xf9   : > { %4786 = vmatprep.subr.bf16.mxu0 %v7193_v63  ;;  %5237 = vmatprep.subr.bf16.mxu1 %v7196_v0  ;;  %v7275_v63 = vld [vmem:[%s8003_s28 + $0x8e0] ss:$16 sps:$4 sm:$0xff]   ;;  %v7278_v0 = vld [vmem:[%s8003_s28 + $0x8e8] ss:$16 sps:$4 sm:$0xff]  }
  0xfc   : > { %4787 = vmatpush1.bf16.msra.mxu0 %v7191_v1  ;;  %5238 = vmatpush1.bf16.msra.mxu1 %v7194_v2  ;;  %v7283_v1 = vld [vmem:[%s8003_s28 + $0x904] ss:$16 sps:$4 sm:$0xff]   ;;  %v7286_v2 = vld [vmem:[%s8003_s28 + $0x90c] ss:$16 sps:$4 sm:$0xff]  }
  0xfd   : > { %4788 = vmatprep.subr.bf16.mxu0 %v7199_v3  ;;  %5239 = vmatprep.subr.bf16.mxu1 %v7202_v4  ;;  %v7281_v3 = vld [vmem:[%s8003_s28 + $0x900] ss:$16 sps:$4 sm:$0xff]   ;;  %v7284_v4 = vld [vmem:[%s8003_s28 + $0x908] ss:$16 sps:$4 sm:$0xff]  }
 0x100   : > { %4789 = vmatpush1.bf16.msra.mxu0 %v7197_v5  ;;  %5240 = vmatpush1.bf16.msra.mxu1 %v7200_v6  ;;  %v7289_v5 = vld [vmem:[%s8003_s28 + $0x924] ss:$16 sps:$4 sm:$0xff]   ;;  %v7292_v6 = vld [vmem:[%s8003_s28 + $0x92c] ss:$16 sps:$4 sm:$0xff]  }
 0x101   : > { %4790 = vmatprep.subr.bf16.mxu0 %v7205_v7  ;;  %5241 = vmatprep.subr.bf16.mxu1 %v7208_v8  ;;  %v7287_v7 = vld [vmem:[%s8003_s28 + $0x920] ss:$16 sps:$4 sm:$0xff]   ;;  %v7290_v8 = vld [vmem:[%s8003_s28 + $0x928] ss:$16 sps:$4 sm:$0xff]  }
 0x104   : > { %4791 = vmatpush1.bf16.msra.mxu0 %v7203_v9  ;;  %5242 = vmatpush1.bf16.msra.mxu1 %v7206_v10  ;;  %v7295_v9 = vld [vmem:[%s8003_s28 + $0x944] ss:$16 sps:$4 sm:$0xff]   ;;  %v7298_v10 = vld [vmem:[%s8003_s28 + $0x94c] ss:$16 sps:$4 sm:$0xff]  }
 0x105   : > { %4792 = vmatprep.subr.bf16.mxu0 %v7211_v11  ;;  %5243 = vmatprep.subr.bf16.mxu1 %v7214_v12  ;;  %v7293_v11 = vld [vmem:[%s8003_s28 + $0x940] ss:$16 sps:$4 sm:$0xff]   ;;  %v7296_v12 = vld [vmem:[%s8003_s28 + $0x948] ss:$16 sps:$4 sm:$0xff]  }
 0x108   : > { %4793 = vmatpush1.bf16.msra.mxu0 %v7209_v13  ;;  %5244 = vmatpush1.bf16.msra.mxu1 %v7212_v15  ;;  %v7301_v13 = vld [vmem:[%s8003_s28 + $0x964] ss:$16 sps:$4 sm:$0xff]   ;;  %v7304_v15 = vld [vmem:[%s8003_s28 + $0x96c] ss:$16 sps:$4 sm:$0xff]  }
 0x109   : > { %4794 = vmatprep.subr.bf16.mxu0 %v7217_v17  ;;  %5245 = vmatprep.subr.bf16.mxu1 %v7220_v53  ;;  %v7299_v17 = vld [vmem:[%s8003_s28 + $0x960] ss:$16 sps:$4 sm:$0xff]   ;;  %v7302_v53 = vld [vmem:[%s8003_s28 + $0x968] ss:$16 sps:$4 sm:$0xff]  }
 0x10c   : > { %4795 = vmatpush1.bf16.msra.mxu0 %v7215_v18  ;;  %5246 = vmatpush1.bf16.msra.mxu1 %v7218_v19  ;;  %v7307_v18 = vld [vmem:[%s8003_s28 + $0x984] ss:$16 sps:$4 sm:$0xff]   ;;  %v7310_v19 = vld [vmem:[%s8003_s28 + $0x98c] ss:$16 sps:$4 sm:$0xff]  }
 0x10d   : > { %4796 = vmatprep.subr.bf16.mxu0 %v7223_v20  ;;  %5247 = vmatprep.subr.bf16.mxu1 %v7226_v21  ;;  %v7305_v20 = vld [vmem:[%s8003_s28 + $0x980] ss:$16 sps:$4 sm:$0xff]   ;;  %v7308_v21 = vld [vmem:[%s8003_s28 + $0x988] ss:$16 sps:$4 sm:$0xff]  }
 0x110   : > { %4797 = vmatpush1.bf16.msra.mxu0 %v7221_v23  ;;  %5248 = vmatpush1.bf16.msra.mxu1 %v7224_v24  ;;  %v7313_v23 = vld [vmem:[%s8003_s28 + $0x9a4] ss:$16 sps:$4 sm:$0xff]   ;;  %v7316_v24 = vld [vmem:[%s8003_s28 + $0x9ac] ss:$16 sps:$4 sm:$0xff]  }
 0x111   : > { %4798 = vmatprep.subr.bf16.mxu0 %v7229_v25  ;;  %5249 = vmatprep.subr.bf16.mxu1 %v7232_v27  ;;  %v7311_v25 = vld [vmem:[%s8003_s28 + $0x9a0] ss:$16 sps:$4 sm:$0xff]   ;;  %v7314_v27 = vld [vmem:[%s8003_s28 + $0x9a8] ss:$16 sps:$4 sm:$0xff]  }
 0x114   : > { %4799 = vmatpush1.bf16.msra.mxu0 %v7227_v28  ;;  %5250 = vmatpush1.bf16.msra.mxu1 %v7230_v29  ;;  %v7319_v28 = vld [vmem:[%s8003_s28 + $0x9c4] ss:$16 sps:$4 sm:$0xff]   ;;  %v7322_v29 = vld [vmem:[%s8003_s28 + $0x9cc] ss:$16 sps:$4 sm:$0xff]  }
 0x115   : > { %4809 = vmatprep.subr.bf16.mxu0 %v7235_v30  ;;  %5260 = vmatprep.subr.bf16.mxu1 %v7238_v31  ;;  %v7317_v30 = vld [vmem:[%s8003_s28 + $0x9c0] ss:$16 sps:$4 sm:$0xff]   ;;  %v7320_v31 = vld [vmem:[%s8003_s28 + $0x9c8] ss:$16 sps:$4 sm:$0xff]  }
 0x117   : > { %4801 = vmatmul.mubr.bf16.vlgmr.msra.gmra.mrb[0].mxu0 %v1004_v32  ;;  %5252 = vmatmul.mubr.bf16.vlgmr.msra.gmra.mrb[0].mxu1 %v1004_v32  ;;  %v7328_v32 = vld [vmem:[%s8003_s28 + $0x9ec] ss:$16 sps:$4 sm:$0xff]  }
 0x118   : > { %4810 = vmatpush1.bf16.msra.mxu0 %v7233_v33  ;;  %5261 = vmatpush1.bf16.msra.mxu1 %v7236_v34  ;;  %v7323_v33 = vld [vmem:[%s8003_s28 + $0x9e0] ss:$16 sps:$4 sm:$0xff]   ;;  %v7326_v34 = vld [vmem:[%s8003_s28 + $0x9e8] ss:$16 sps:$4 sm:$0xff]  }
 0x119   : > { %4811 = vmatprep.subr.bf16.mxu0 %v7241_v26  ;;  %5262 = vmatprep.subr.bf16.mxu1 %v7244_v35  ;;  %v7331_v26 = vld [vmem:[%s8003_s28 + $0xa04] ss:$16 sps:$4 sm:$0xff]   ;;  %v7334_v35 = vld [vmem:[%s8003_s28 + $0xa0c] ss:$16 sps:$4 sm:$0xff]  }
 0x11a   : > { %4841 = vmatprep.mubr.bf16.mxu0 %v8314_v36  ;;  %5292 = vmatprep.mubr.bf16.mxu1 %v8314_v36 }
 0x11c   : > { %4812 = vmatpush1.bf16.msra.mxu0 %v7239_v14  ;;  %5263 = vmatpush1.bf16.msra.mxu1 %v7242_v37  ;;  %v8380_v14 = vrot.slane %v8295_v22, %v8053_v50  ;;  %v7329_v37 = vld [vmem:[%s8003_s28 + $0xa00] ss:$16 sps:$4 sm:$0xff]  }
 0x11d   : > { %4813 = vmatprep.subr.bf16.mxu0 %v7247_v38  ;;  %5264 = vmatprep.subr.bf16.mxu1 %v7250_v39  ;;  %v7332_v38 = vld [vmem:[%s8003_s28 + $0xa08] ss:$16 sps:$4 sm:$0xff]   ;;  %v7337_v39 = vld [vmem:[%s8003_s28 + $0xa24] ss:$16 sps:$4 sm:$0xff]   ;;  %v7335_v22 = vld [vmem:[%s8003_s28 + $0xa20] ss:$16 sps:$4 sm:$0xff]  }
 0x120   : > { %4814 = vmatpush1.bf16.msra.mxu0 %v7245_v40  ;;  %5265 = vmatpush1.bf16.msra.mxu1 %v7248_v41  ;;  %v7340_v40 = vld [vmem:[%s8003_s28 + $0xa2c] ss:$16 sps:$4 sm:$0xff]   ;;  %v1054_v41 = vcombine.high %v8314_v36, %v8314_v36  ;;  %v7341_v36 = vld [vmem:[%s8003_s28 + $0xa40] ss:$16 sps:$4 sm:$0xff]  }
 0x121   : > { %4815 = vmatprep.subr.bf16.mxu0 %v7253_v42  ;;  %5266 = vmatprep.subr.bf16.mxu1 %v7256_v43  ;;  %v7338_v42 = vld [vmem:[%s8003_s28 + $0xa28] ss:$16 sps:$4 sm:$0xff]   ;;  %v7343_v43 = vld [vmem:[%s8003_s28 + $0xa44] ss:$16 sps:$4 sm:$0xff]  }
 0x124   : > { %4816 = vmatpush1.bf16.msra.mxu0 %v7251_v45  ;;  %5267 = vmatpush1.bf16.msra.mxu1 %v7254_v46  ;;  %v7346_v45 = vld [vmem:[%s8003_s28 + $0xa4c] ss:$16 sps:$4 sm:$0xff]   ;;  %v7344_v46 = vld [vmem:[%s8003_s28 + $0xa48] ss:$16 sps:$4 sm:$0xff]  }
 0x125   : > { %4817 = vmatprep.subr.bf16.mxu0 %v7259_v47  ;;  %5268 = vmatprep.subr.bf16.mxu1 %v7262_v48  ;;  %v7349_v47 = vld [vmem:[%s8003_s28 + $0xa64] ss:$16 sps:$4 sm:$0xff]   ;;  %v7352_v48 = vld [vmem:[%s8003_s28 + $0xa6c] ss:$16 sps:$4 sm:$0xff]  }
 0x128   : > { %4818 = vmatpush1.bf16.msra.mxu0 %v7257_v49  ;;  %5269 = vmatpush1.bf16.msra.mxu1 %v7260_v51  ;;  %v7347_v49 = vld [vmem:[%s8003_s28 + $0xa60] ss:$16 sps:$4 sm:$0xff]   ;;  %v7350_v51 = vld [vmem:[%s8003_s28 + $0xa68] ss:$16 sps:$4 sm:$0xff]  }
 0x129   : > { %4819 = vmatprep.subr.bf16.mxu0 %v7265_v52  ;;  %5270 = vmatprep.subr.bf16.mxu1 %v7268_v54  ;;  %v7355_v52 = vld [vmem:[%s8003_s28 + $0xa84] ss:$16 sps:$4 sm:$0xff]   ;;  %v7358_v54 = vld [vmem:[%s8003_s28 + $0xa8c] ss:$16 sps:$4 sm:$0xff]  }
 0x12c   : > { %4820 = vmatpush1.bf16.msra.mxu0 %v7263_v55  ;;  %5271 = vmatpush1.bf16.msra.mxu1 %v7266_v56  ;;  %v7353_v55 = vld [vmem:[%s8003_s28 + $0xa80] ss:$16 sps:$4 sm:$0xff]   ;;  %v7356_v56 = vld [vmem:[%s8003_s28 + $0xa88] ss:$16 sps:$4 sm:$0xff]  }
 0x12d   : > { %4821 = vmatprep.subr.bf16.mxu0 %v7271_v57  ;;  %5272 = vmatprep.subr.bf16.mxu1 %v7274_v58  ;;  %v7361_v57 = vld [vmem:[%s8003_s28 + $0xaa4] ss:$16 sps:$4 sm:$0xff]   ;;  %v7364_v58 = vld [vmem:[%s8003_s28 + $0xaac] ss:$16 sps:$4 sm:$0xff]  }
 0x130   : > { %4822 = vmatpush1.bf16.msra.mxu0 %v7269_v59  ;;  %5273 = vmatpush1.bf16.msra.mxu1 %v7272_v60  ;;  %v7359_v59 = vld [vmem:[%s8003_s28 + $0xaa0] ss:$16 sps:$4 sm:$0xff]   ;;  %v7362_v60 = vld [vmem:[%s8003_s28 + $0xaa8] ss:$16 sps:$4 sm:$0xff]  }
 0x131   : > { %4823 = vmatprep.subr.bf16.mxu0 %v7277_v61  ;;  %5274 = vmatprep.subr.bf16.mxu1 %v7280_v62  ;;  %v7367_v61 = vld [vmem:[%s8003_s28 + $0xac4] ss:$16 sps:$4 sm:$0xff]   ;;  %v7370_v62 = vld [vmem:[%s8003_s28 + $0xacc] ss:$16 sps:$4 sm:$0xff]  }
 0x134   : > { %4824 = vmatpush1.bf16.msra.mxu0 %v7275_v63  ;;  %5275 = vmatpush1.bf16.msra.mxu1 %v7278_v0  ;;  %v7365_v63 = vld [vmem:[%s8003_s28 + $0xac0] ss:$16 sps:$4 sm:$0xff]   ;;  %v7368_v0 = vld [vmem:[%s8003_s28 + $0xac8] ss:$16 sps:$4 sm:$0xff]  }
 0x135   : > { %4825 = vmatprep.subr.bf16.mxu0 %v7283_v1  ;;  %5276 = vmatprep.subr.bf16.mxu1 %v7286_v2  ;;  %v7373_v1 = vld [vmem:[%s8003_s28 + $0xae4] ss:$16 sps:$4 sm:$0xff]   ;;  %v7376_v2 = vld [vmem:[%s8003_s28 + $0xaec] ss:$16 sps:$4 sm:$0xff]  }
 0x138   : > { %4826 = vmatpush1.bf16.msra.mxu0 %v7281_v3  ;;  %5277 = vmatpush1.bf16.msra.mxu1 %v7284_v4  ;;  %v7371_v3 = vld [vmem:[%s8003_s28 + $0xae0] ss:$16 sps:$4 sm:$0xff]   ;;  %v7374_v4 = vld [vmem:[%s8003_s28 + $0xae8] ss:$16 sps:$4 sm:$0xff]  }
 0x139   : > { %4827 = vmatprep.subr.bf16.mxu0 %v7289_v5  ;;  %5278 = vmatprep.subr.bf16.mxu1 %v7292_v6  ;;  %v7379_v5 = vld [vmem:[%s8003_s28 + $0xb04] ss:$16 sps:$4 sm:$0xff]   ;;  %v7382_v6 = vld [vmem:[%s8003_s28 + $0xb0c] ss:$16 sps:$4 sm:$0xff]  }
 0x13c   : > { %4828 = vmatpush1.bf16.msra.mxu0 %v7287_v7  ;;  %5279 = vmatpush1.bf16.msra.mxu1 %v7290_v8  ;;  %v7377_v7 = vld [vmem:[%s8003_s28 + $0xb00] ss:$16 sps:$4 sm:$0xff]   ;;  %v7380_v8 = vld [vmem:[%s8003_s28 + $0xb08] ss:$16 sps:$4 sm:$0xff]  }
 0x13d   : > { %4829 = vmatprep.subr.bf16.mxu0 %v7295_v9  ;;  %5280 = vmatprep.subr.bf16.mxu1 %v7298_v10  ;;  %v7385_v9 = vld [vmem:[%s8003_s28 + $0xb24] ss:$16 sps:$4 sm:$0xff]   ;;  %v7388_v10 = vld [vmem:[%s8003_s28 + $0xb2c] ss:$16 sps:$4 sm:$0xff]  }
 0x140   : > { %4830 = vmatpush1.bf16.msra.mxu0 %v7293_v11  ;;  %5281 = vmatpush1.bf16.msra.mxu1 %v7296_v12  ;;  %v7383_v11 = vld [vmem:[%s8003_s28 + $0xb20] ss:$16 sps:$4 sm:$0xff]   ;;  %v7386_v12 = vld [vmem:[%s8003_s28 + $0xb28] ss:$16 sps:$4 sm:$0xff]  }
 0x141   : > { %4831 = vmatprep.subr.bf16.mxu0 %v7301_v13  ;;  %5282 = vmatprep.subr.bf16.mxu1 %v7304_v15  ;;  %v7391_v13 = vld [vmem:[%s8003_s28 + $0xb44] ss:$16 sps:$4 sm:$0xff]   ;;  %v7394_v15 = vld [vmem:[%s8003_s28 + $0xb4c] ss:$16 sps:$4 sm:$0xff]  }
 0x144   : > { %4832 = vmatpush1.bf16.msra.mxu0 %v7299_v17  ;;  %5283 = vmatpush1.bf16.msra.mxu1 %v7302_v53  ;;  %v7389_v17 = vld [vmem:[%s8003_s28 + $0xb40] ss:$16 sps:$4 sm:$0xff]   ;;  %v7392_v53 = vld [vmem:[%s8003_s28 + $0xb48] ss:$16 sps:$4 sm:$0xff]  }
 0x145   : > { %4833 = vmatprep.subr.bf16.mxu0 %v7307_v18  ;;  %5284 = vmatprep.subr.bf16.mxu1 %v7310_v19  ;;  %v7397_v18 = vld [vmem:[%s8003_s28 + $0xb64] ss:$16 sps:$4 sm:$0xff]   ;;  %v7400_v19 = vld [vmem:[%s8003_s28 + $0xb6c] ss:$16 sps:$4 sm:$0xff]  }
 0x148   : > { %4834 = vmatpush1.bf16.msra.mxu0 %v7305_v20  ;;  %5285 = vmatpush1.bf16.msra.mxu1 %v7308_v21  ;;  %v7395_v20 = vld [vmem:[%s8003_s28 + $0xb60] ss:$16 sps:$4 sm:$0xff]   ;;  %v7398_v21 = vld [vmem:[%s8003_s28 + $0xb68] ss:$16 sps:$4 sm:$0xff]  }
 0x149   : > { %4835 = vmatprep.subr.bf16.mxu0 %v7313_v23  ;;  %5286 = vmatprep.subr.bf16.mxu1 %v7316_v24  ;;  %v7403_v23 = vld [vmem:[%s8003_s28 + $0xb84] ss:$16 sps:$4 sm:$0xff]   ;;  %v7406_v24 = vld [vmem:[%s8003_s28 + $0xb8c] ss:$16 sps:$4 sm:$0xff]  }
 0x14c   : > { %4836 = vmatpush1.bf16.msra.mxu0 %v7311_v25  ;;  %5287 = vmatpush1.bf16.msra.mxu1 %v7314_v27  ;;  %v7401_v25 = vld [vmem:[%s8003_s28 + $0xb80] ss:$16 sps:$4 sm:$0xff]   ;;  %v7404_v27 = vld [vmem:[%s8003_s28 + $0xb88] ss:$16 sps:$4 sm:$0xff]  }
 0x14d   : > { %4837 = vmatprep.subr.bf16.mxu0 %v7319_v28  ;;  %5288 = vmatprep.subr.bf16.mxu1 %v7322_v29  ;;  %v7409_v28 = vld [vmem:[%s8003_s28 + $0xba4] ss:$16 sps:$4 sm:$0xff]   ;;  %v7412_v29 = vld [vmem:[%s8003_s28 + $0xbac] ss:$16 sps:$4 sm:$0xff]  }
 0x150   : > { %4838 = vmatpush1.bf16.msra.mxu0 %v7317_v30  ;;  %5289 = vmatpush1.bf16.msra.mxu1 %v7320_v31  ;;  %v7407_v30 = vld [vmem:[%s8003_s28 + $0xba0] ss:$16 sps:$4 sm:$0xff]   ;;  %v7410_v31 = vld [vmem:[%s8003_s28 + $0xba8] ss:$16 sps:$4 sm:$0xff]  }
 0x151   : > { %4839 = vmatprep.subr.bf16.mxu0 %v7325_v16  ;;  %5290 = vmatprep.subr.bf16.mxu1 %v7328_v32  ;;  %v7415_v16 = vld [vmem:[%s8003_s28 + $0xbc4] ss:$16 sps:$4 sm:$0xff]   ;;  %v7418_v32 = vld [vmem:[%s8003_s28 + $0xbcc] ss:$16 sps:$4 sm:$0xff]  }
 0x154   : > { %4840 = vmatpush1.bf16.msra.mxu0 %v7323_v33  ;;  %5291 = vmatpush1.bf16.msra.mxu1 %v7326_v34  ;;  %v7907_v33 = vld [vmem:[%s7998_s24 + $0x8] sm:$0xff] }
 0x155   : > { %4850 = vmatprep.subr.bf16.mxu0 %v7331_v26  ;;  %5301 = vmatprep.subr.bf16.mxu1 %v7334_v35  ;;  %v1007_v34 = vcombine.high %v7907_v33, %v7907_v33  ;;  %v7413_v26 = vld [vmem:[%s8003_s28 + $0xbc0] ss:$16 sps:$4 sm:$0xff]   ;;  %v7416_v35 = vld [vmem:[%s8003_s28 + $0xbc8] ss:$16 sps:$4 sm:$0xff]  }
 0x156   : > { %v7497_v33 = vld [vmem:[%s8003_s28 + $0xd80] ss:$16 sps:$4 sm:$0xff]  }
 0x157   : > { %4842 = vmatmul.mubr.bf16.vlgmr.msra.gmra.mrb[0].mxu0 %v8380_v14  ;;  %5293 = vmatmul.mubr.bf16.vlgmr.msra.gmra.mrb[0].mxu1 %v8380_v14 }
 0x158   : > { %4851 = vmatpush1.bf16.msra.mxu0 %v7329_v37  ;;  %5302 = vmatpush1.bf16.msra.mxu1 %v7332_v38  ;;  %v7421_v37 = vld [vmem:[%s8003_s28 + $0xbe4] ss:$16 sps:$4 sm:$0xff]   ;;  %v7424_v38 = vld [vmem:[%s8003_s28 + $0xbec] ss:$16 sps:$4 sm:$0xff]  }
 0x159   : > { %4852 = vmatprep.subr.bf16.mxu0 %v7337_v39  ;;  %5303 = vmatprep.subr.bf16.mxu1 %v7340_v40  ;;  %v8448_v39 = vrot.slane %v1007_v34, %v8053_v50  ;;  %v7419_v40 = vld [vmem:[%s8003_s28 + $0xbe0] ss:$16 sps:$4 sm:$0xff]   ;;  %v7500_v34 = vld [vmem:[%s8003_s28 + $0xd88] ss:$16 sps:$4 sm:$0xff]  }
 0x15a   : > { %4882 = vmatprep.mubr.bf16.mxu0 %v1054_v41  ;;  %5333 = vmatprep.mubr.bf16.mxu1 %v1054_v41  ;;  %v7422_v41 = vld [vmem:[%s8003_s28 + $0xbe8] ss:$16 sps:$4 sm:$0xff]  }
 0x15c   : > { %4853 = vmatpush1.bf16.msra.mxu0 %v7335_v22  ;;  %5304 = vmatpush1.bf16.msra.mxu1 %v7338_v42  ;;  %v7427_v22 = vld [vmem:[%s8003_s28 + $0xc04] ss:$16 sps:$4 sm:$0xff]   ;;  %v7430_v42 = vld [vmem:[%s8003_s28 + $0xc0c] ss:$16 sps:$4 sm:$0xff]  }
 0x15d   : > { %4854 = vmatprep.subr.bf16.mxu0 %v7343_v43  ;;  %5305 = vmatprep.subr.bf16.mxu1 %v7346_v45  ;;  %v1023_v43 = vcombine.high %v8448_v39, %v8448_v39  ;;  %v1052_v45 = vcombine.high %v8380_v14, %v8380_v14  ;;  %v7431_v14 = vld [vmem:[%s8003_s28 + $0xc20] ss:$16 sps:$4 sm:$0xff]  }
 0x160   : > { %4855 = vmatpush1.bf16.msra.mxu0 %v7341_v36  ;;  %5306 = vmatpush1.bf16.msra.mxu1 %v7344_v46  ;;  %v7425_v36 = vld [vmem:[%s8003_s28 + $0xc00] ss:$16 sps:$4 sm:$0xff]   ;;  %v7428_v46 = vld [vmem:[%s8003_s28 + $0xc08] ss:$16 sps:$4 sm:$0xff]  }
 0x161   : > { %4856 = vmatprep.subr.bf16.mxu0 %v7349_v47  ;;  %5307 = vmatprep.subr.bf16.mxu1 %v7352_v48  ;;  %v7433_v47 = vld [vmem:[%s8003_s28 + $0xc24] ss:$16 sps:$4 sm:$0xff]   ;;  %v7436_v48 = vld [vmem:[%s8003_s28 + $0xc2c] ss:$16 sps:$4 sm:$0xff]  }
 0x164   : > { %4857 = vmatpush1.bf16.msra.mxu0 %v7347_v49  ;;  %5308 = vmatpush1.bf16.msra.mxu1 %v7350_v51  ;;  %v8463_v49 = vrot.slane %v1023_v43, %v8053_v50  ;;  %v7434_v51 = vld [vmem:[%s8003_s28 + $0xc28] ss:$16 sps:$4 sm:$0xff]   ;;  %v7517_v43 = vld [vmem:[%s8003_s28 + $0xde4] ss:$16 sps:$4 sm:$0xff]  }
 0x165   : > { %4858 = vmatprep.subr.bf16.mxu0 %v7355_v52  ;;  %5309 = vmatprep.subr.bf16.mxu1 %v7358_v54  ;;  %v7439_v52 = vld [vmem:[%s8003_s28 + $0xc44] ss:$16 sps:$4 sm:$0xff]   ;;  %v7442_v54 = vld [vmem:[%s8003_s28 + $0xc4c] ss:$16 sps:$4 sm:$0xff]  }
 0x168   : > { %4859 = vmatpush1.bf16.msra.mxu0 %v7353_v55  ;;  %5310 = vmatpush1.bf16.msra.mxu1 %v7356_v56  ;;  %v7437_v55 = vld [vmem:[%s8003_s28 + $0xc40] ss:$16 sps:$4 sm:$0xff]   ;;  %v7440_v56 = vld [vmem:[%s8003_s28 + $0xc48] ss:$16 sps:$4 sm:$0xff]  }
 0x169   : > { %4860 = vmatprep.subr.bf16.mxu0 %v7361_v57  ;;  %5311 = vmatprep.subr.bf16.mxu1 %v7364_v58  ;;  %v7445_v57 = vld [vmem:[%s8003_s28 + $0xc64] ss:$16 sps:$4 sm:$0xff]   ;;  %v7448_v58 = vld [vmem:[%s8003_s28 + $0xc6c] ss:$16 sps:$4 sm:$0xff]  }
 0x16c   : > { %4861 = vmatpush1.bf16.msra.mxu0 %v7359_v59  ;;  %5312 = vmatpush1.bf16.msra.mxu1 %v7362_v60  ;;  %v7443_v59 = vld [vmem:[%s8003_s28 + $0xc60] ss:$16 sps:$4 sm:$0xff]   ;;  %v7446_v60 = vld [vmem:[%s8003_s28 + $0xc68] ss:$16 sps:$4 sm:$0xff]  }
 0x16d   : > { %4862 = vmatprep.subr.bf16.mxu0 %v7367_v61  ;;  %5313 = vmatprep.subr.bf16.mxu1 %v7370_v62  ;;  %v7451_v61 = vld [vmem:[%s8003_s28 + $0xc84] ss:$16 sps:$4 sm:$0xff]   ;;  %v7454_v62 = vld [vmem:[%s8003_s28 + $0xc8c] ss:$16 sps:$4 sm:$0xff]  }
 0x170   : > { %4863 = vmatpush1.bf16.msra.mxu0 %v7365_v63  ;;  %5314 = vmatpush1.bf16.msra.mxu1 %v7368_v0  ;;  %v7449_v63 = vld [vmem:[%s8003_s28 + $0xc80] ss:$16 sps:$4 sm:$0xff]   ;;  %v7452_v0 = vld [vmem:[%s8003_s28 + $0xc88] ss:$16 sps:$4 sm:$0xff]  }
 0x171   : > { %4864 = vmatprep.subr.bf16.mxu0 %v7373_v1  ;;  %5315 = vmatprep.subr.bf16.mxu1 %v7376_v2  ;;  %v7457_v1 = vld [vmem:[%s8003_s28 + $0xca4] ss:$16 sps:$4 sm:$0xff]   ;;  %v7460_v2 = vld [vmem:[%s8003_s28 + $0xcac] ss:$16 sps:$4 sm:$0xff]  }
 0x174   : > { %4865 = vmatpush1.bf16.msra.mxu0 %v7371_v3  ;;  %5316 = vmatpush1.bf16.msra.mxu1 %v7374_v4  ;;  %v7455_v3 = vld [vmem:[%s8003_s28 + $0xca0] ss:$16 sps:$4 sm:$0xff]   ;;  %v7458_v4 = vld [vmem:[%s8003_s28 + $0xca8] ss:$16 sps:$4 sm:$0xff]  }
 0x175   : > { %4866 = vmatprep.subr.bf16.mxu0 %v7379_v5  ;;  %5317 = vmatprep.subr.bf16.mxu1 %v7382_v6  ;;  %v7463_v5 = vld [vmem:[%s8003_s28 + $0xcc4] ss:$16 sps:$4 sm:$0xff]   ;;  %v7466_v6 = vld [vmem:[%s8003_s28 + $0xccc] ss:$16 sps:$4 sm:$0xff]  }
 0x178   : > { %4867 = vmatpush1.bf16.msra.mxu0 %v7377_v7  ;;  %5318 = vmatpush1.bf16.msra.mxu1 %v7380_v8  ;;  %v7461_v7 = vld [vmem:[%s8003_s28 + $0xcc0] ss:$16 sps:$4 sm:$0xff]   ;;  %v7464_v8 = vld [vmem:[%s8003_s28 + $0xcc8] ss:$16 sps:$4 sm:$0xff]  }
 0x179   : > { %4868 = vmatprep.subr.bf16.mxu0 %v7385_v9  ;;  %5319 = vmatprep.subr.bf16.mxu1 %v7388_v10  ;;  %v7469_v9 = vld [vmem:[%s8003_s28 + $0xce4] ss:$16 sps:$4 sm:$0xff]   ;;  %v7472_v10 = vld [vmem:[%s8003_s28 + $0xcec] ss:$16 sps:$4 sm:$0xff]  }
 0x17c   : > { %4869 = vmatpush1.bf16.msra.mxu0 %v7383_v11  ;;  %5320 = vmatpush1.bf16.msra.mxu1 %v7386_v12  ;;  %v7467_v11 = vld [vmem:[%s8003_s28 + $0xce0] ss:$16 sps:$4 sm:$0xff]   ;;  %v7470_v12 = vld [vmem:[%s8003_s28 + $0xce8] ss:$16 sps:$4 sm:$0xff]  }
 0x17d   : > { %4870 = vmatprep.subr.bf16.mxu0 %v7391_v13  ;;  %5321 = vmatprep.subr.bf16.mxu1 %v7394_v15  ;;  %v7475_v13 = vld [vmem:[%s8003_s28 + $0xd04] ss:$16 sps:$4 sm:$0xff]   ;;  %v7478_v15 = vld [vmem:[%s8003_s28 + $0xd0c] ss:$16 sps:$4 sm:$0xff]  }
 0x180   : > { %4871 = vmatpush1.bf16.msra.mxu0 %v7389_v17  ;;  %5322 = vmatpush1.bf16.msra.mxu1 %v7392_v53  ;;  %v7473_v17 = vld [vmem:[%s8003_s28 + $0xd00] ss:$16 sps:$4 sm:$0xff]   ;;  %v7476_v53 = vld [vmem:[%s8003_s28 + $0xd08] ss:$16 sps:$4 sm:$0xff]  }
 0x181   : > { %4872 = vmatprep.subr.bf16.mxu0 %v7397_v18  ;;  %5323 = vmatprep.subr.bf16.mxu1 %v7400_v19  ;;  %v7481_v18 = vld [vmem:[%s8003_s28 + $0xd24] ss:$16 sps:$4 sm:$0xff]   ;;  %v7484_v19 = vld [vmem:[%s8003_s28 + $0xd2c] ss:$16 sps:$4 sm:$0xff]  }
 0x184   : > { %4873 = vmatpush1.bf16.msra.mxu0 %v7395_v20  ;;  %5324 = vmatpush1.bf16.msra.mxu1 %v7398_v21  ;;  %v7479_v20 = vld [vmem:[%s8003_s28 + $0xd20] ss:$16 sps:$4 sm:$0xff]   ;;  %v7482_v21 = vld [vmem:[%s8003_s28 + $0xd28] ss:$16 sps:$4 sm:$0xff]  }
 0x185   : > { %4874 = vmatprep.subr.bf16.mxu0 %v7403_v23  ;;  %5325 = vmatprep.subr.bf16.mxu1 %v7406_v24  ;;  %v7487_v23 = vld [vmem:[%s8003_s28 + $0xd44] ss:$16 sps:$4 sm:$0xff]   ;;  %v7490_v24 = vld [vmem:[%s8003_s28 + $0xd4c] ss:$16 sps:$4 sm:$0xff]  }
 0x188   : > { %4875 = vmatpush1.bf16.msra.mxu0 %v7401_v25  ;;  %5326 = vmatpush1.bf16.msra.mxu1 %v7404_v27  ;;  %v7485_v25 = vld [vmem:[%s8003_s28 + $0xd40] ss:$16 sps:$4 sm:$0xff]   ;;  %v7488_v27 = vld [vmem:[%s8003_s28 + $0xd48] ss:$16 sps:$4 sm:$0xff]  }
 0x189   : > { %4876 = vmatprep.subr.bf16.mxu0 %v7409_v28  ;;  %5327 = vmatprep.subr.bf16.mxu1 %v7412_v29  ;;  %v7493_v28 = vld [vmem:[%s8003_s28 + $0xd64] ss:$16 sps:$4 sm:$0xff]   ;;  %v7496_v29 = vld [vmem:[%s8003_s28 + $0xd6c] ss:$16 sps:$4 sm:$0xff]  }
 0x18c   : > { %4877 = vmatpush1.bf16.msra.mxu0 %v7407_v30  ;;  %5328 = vmatpush1.bf16.msra.mxu1 %v7410_v31  ;;  %v7491_v30 = vld [vmem:[%s8003_s28 + $0xd60] ss:$16 sps:$4 sm:$0xff]   ;;  %v7494_v31 = vld [vmem:[%s8003_s28 + $0xd68] ss:$16 sps:$4 sm:$0xff]  }
 0x18d   : > { %4878 = vmatprep.subr.bf16.mxu0 %v7415_v16  ;;  %5329 = vmatprep.subr.bf16.mxu1 %v7418_v32  ;;  %v7499_v16 = vld [vmem:[%s8003_s28 + $0xd84] ss:$16 sps:$4 sm:$0xff]   ;;  %v7502_v32 = vld [vmem:[%s8003_s28 + $0xd8c] ss:$16 sps:$4 sm:$0xff]  }
 0x190   : > { %4879 = vmatpush1.bf16.msra.mxu0 %v7413_v26  ;;  %5330 = vmatpush1.bf16.msra.mxu1 %v7416_v35  ;;  %v7505_v26 = vld [vmem:[%s8003_s28 + $0xda4] ss:$16 sps:$4 sm:$0xff]   ;;  %v7508_v35 = vld [vmem:[%s8003_s28 + $0xdac] ss:$16 sps:$4 sm:$0xff]  }
 0x191   : > { %4880 = vmatprep.subr.bf16.mxu0 %v7421_v37  ;;  %5331 = vmatprep.subr.bf16.mxu1 %v7424_v38  ;;  %v7503_v37 = vld [vmem:[%s8003_s28 + $0xda0] ss:$16 sps:$4 sm:$0xff]   ;;  %v7506_v38 = vld [vmem:[%s8003_s28 + $0xda8] ss:$16 sps:$4 sm:$0xff]  }
 0x194   : > { %4881 = vmatpush1.bf16.msra.mxu0 %v7419_v40  ;;  %5332 = vmatpush1.bf16.msra.mxu1 %v7422_v41  ;;  %v7511_v40 = vld [vmem:[%s8003_s28 + $0xdc4] ss:$16 sps:$4 sm:$0xff]   ;;  %v7514_v41 = vld [vmem:[%s8003_s28 + $0xdcc] ss:$16 sps:$4 sm:$0xff]  }
 0x195   : > { %4891 = vmatprep.subr.bf16.mxu0 %v7427_v22  ;;  %5342 = vmatprep.subr.bf16.mxu1 %v7430_v42  ;;  %v7509_v22 = vld [vmem:[%s8003_s28 + $0xdc0] ss:$16 sps:$4 sm:$0xff]   ;;  %v7512_v42 = vld [vmem:[%s8003_s28 + $0xdc8] ss:$16 sps:$4 sm:$0xff]  }
 0x197   : > { %4883 = vmatmul.mubr.bf16.vlgmr.msra.gmra.mrb[0].mxu0 %v1052_v45  ;;  %5334 = vmatmul.mubr.bf16.vlgmr.msra.gmra.mrb[0].mxu1 %v1052_v45  ;;  %v7520_v45 = vld [vmem:[%s8003_s28 + $0xdec] ss:$16 sps:$4 sm:$0xff]  }
 0x198   : > { %4892 = vmatpush1.bf16.msra.mxu0 %v7425_v36  ;;  %5343 = vmatpush1.bf16.msra.mxu1 %v7428_v46  ;;  %v7515_v36 = vld [vmem:[%s8003_s28 + $0xde0] ss:$16 sps:$4 sm:$0xff]   ;;  %v7518_v46 = vld [vmem:[%s8003_s28 + $0xde8] ss:$16 sps:$4 sm:$0xff]  }
 0x199   : > { %4893 = vmatprep.subr.bf16.mxu0 %v7433_v47  ;;  %5344 = vmatprep.subr.bf16.mxu1 %v7436_v48  ;;  %v7524_v47 = vld [vmem:[%s8003_s28 + $0xe04] ss:$16 sps:$4 sm:$0xff]   ;;  %v7527_v48 = vld [vmem:[%s8003_s28 + $0xe0c] ss:$16 sps:$4 sm:$0xff]  }
 0x19a   : > { %4923 = vmatprep.mubr.bf16.mxu0 %v8463_v49  ;;  %5374 = vmatprep.mubr.bf16.mxu1 %v8463_v49 }
 0x19c   : > { %4894 = vmatpush1.bf16.msra.mxu0 %v7431_v14  ;;  %5345 = vmatpush1.bf16.msra.mxu1 %v7434_v51  ;;  %v8529_v14 = vrot.slane %v8448_v39, %v8053_v50  ;;  %v7522_v51 = vld [vmem:[%s8003_s28 + $0xe00] ss:$16 sps:$4 sm:$0xff]  }
 0x19d   : > { %4895 = vmatprep.subr.bf16.mxu0 %v7439_v52  ;;  %5346 = vmatprep.subr.bf16.mxu1 %v7442_v54  ;;  %v7525_v52 = vld [vmem:[%s8003_s28 + $0xe08] ss:$16 sps:$4 sm:$0xff]   ;;  %v7530_v54 = vld [vmem:[%s8003_s28 + $0xe24] ss:$16 sps:$4 sm:$0xff]   ;;  %v7528_v39 = vld [vmem:[%s8003_s28 + $0xe20] ss:$16 sps:$4 sm:$0xff]  }
 0x1a0   : > { %4896 = vmatpush1.bf16.msra.mxu0 %v7437_v55  ;;  %5347 = vmatpush1.bf16.msra.mxu1 %v7440_v56  ;;  %v7533_v55 = vld [vmem:[%s8003_s28 + $0xe2c] ss:$16 sps:$4 sm:$0xff]   ;;  %v1055_v56 = vcombine.high %v8463_v49, %v8463_v49  ;;  %v7534_v49 = vld [vmem:[%s8003_s28 + $0xe40] ss:$16 sps:$4 sm:$0xff]  }
 0x1a1   : > { %4897 = vmatprep.subr.bf16.mxu0 %v7445_v57  ;;  %5348 = vmatprep.subr.bf16.mxu1 %v7448_v58  ;;  %v7531_v57 = vld [vmem:[%s8003_s28 + $0xe28] ss:$16 sps:$4 sm:$0xff]   ;;  %v7536_v58 = vld [vmem:[%s8003_s28 + $0xe44] ss:$16 sps:$4 sm:$0xff]  }
 0x1a4   : > { %4898 = vmatpush1.bf16.msra.mxu0 %v7443_v59  ;;  %5349 = vmatpush1.bf16.msra.mxu1 %v7446_v60  ;;  %v7539_v59 = vld [vmem:[%s8003_s28 + $0xe4c] ss:$16 sps:$4 sm:$0xff]   ;;  %v7537_v60 = vld [vmem:[%s8003_s28 + $0xe48] ss:$16 sps:$4 sm:$0xff]  }
 0x1a5   : > { %4899 = vmatprep.subr.bf16.mxu0 %v7451_v61  ;;  %5350 = vmatprep.subr.bf16.mxu1 %v7454_v62  ;;  %v7542_v61 = vld [vmem:[%s8003_s28 + $0xe64] ss:$16 sps:$4 sm:$0xff]   ;;  %v7545_v62 = vld [vmem:[%s8003_s28 + $0xe6c] ss:$16 sps:$4 sm:$0xff]  }
 0x1a8   : > { %4900 = vmatpush1.bf16.msra.mxu0 %v7449_v63  ;;  %5351 = vmatpush1.bf16.msra.mxu1 %v7452_v0  ;;  %v7540_v63 = vld [vmem:[%s8003_s28 + $0xe60] ss:$16 sps:$4 sm:$0xff]   ;;  %v7543_v0 = vld [vmem:[%s8003_s28 + $0xe68] ss:$16 sps:$4 sm:$0xff]  }
 0x1a9   : > { %4901 = vmatprep.subr.bf16.mxu0 %v7457_v1  ;;  %5352 = vmatprep.subr.bf16.mxu1 %v7460_v2  ;;  %v7548_v1 = vld [vmem:[%s8003_s28 + $0xe84] ss:$16 sps:$4 sm:$0xff]   ;;  %v7551_v2 = vld [vmem:[%s8003_s28 + $0xe8c] ss:$16 sps:$4 sm:$0xff]  }
 0x1ac   : > { %4902 = vmatpush1.bf16.msra.mxu0 %v7455_v3  ;;  %5353 = vmatpush1.bf16.msra.mxu1 %v7458_v4  ;;  %v7546_v3 = vld [vmem:[%s8003_s28 + $0xe80] ss:$16 sps:$4 sm:$0xff]   ;;  %v7549_v4 = vld [vmem:[%s8003_s28 + $0xe88] ss:$16 sps:$4 sm:$0xff]  }
 0x1ad   : > { %4903 = vmatprep.subr.bf16.mxu0 %v7463_v5  ;;  %5354 = vmatprep.subr.bf16.mxu1 %v7466_v6  ;;  %v7554_v5 = vld [vmem:[%s8003_s28 + $0xea4] ss:$16 sps:$4 sm:$0xff]   ;;  %v7557_v6 = vld [vmem:[%s8003_s28 + $0xeac] ss:$16 sps:$4 sm:$0xff]  }
 0x1b0   : > { %4904 = vmatpush1.bf16.msra.mxu0 %v7461_v7  ;;  %5355 = vmatpush1.bf16.msra.mxu1 %v7464_v8  ;;  %v7552_v7 = vld [vmem:[%s8003_s28 + $0xea0] ss:$16 sps:$4 sm:$0xff]   ;;  %v7555_v8 = vld [vmem:[%s8003_s28 + $0xea8] ss:$16 sps:$4 sm:$0xff]  }
 0x1b1   : > { %4905 = vmatprep.subr.bf16.mxu0 %v7469_v9  ;;  %5356 = vmatprep.subr.bf16.mxu1 %v7472_v10  ;;  %v7560_v9 = vld [vmem:[%s8003_s28 + $0xec4] ss:$16 sps:$4 sm:$0xff]   ;;  %v7563_v10 = vld [vmem:[%s8003_s28 + $0xecc] ss:$16 sps:$4 sm:$0xff]  }
 0x1b4   : > { %4906 = vmatpush1.bf16.msra.mxu0 %v7467_v11  ;;  %5357 = vmatpush1.bf16.msra.mxu1 %v7470_v12  ;;  %v7558_v11 = vld [vmem:[%s8003_s28 + $0xec0] ss:$16 sps:$4 sm:$0xff]   ;;  %v7561_v12 = vld [vmem:[%s8003_s28 + $0xec8] ss:$16 sps:$4 sm:$0xff]  }
 0x1b5   : > { %4907 = vmatprep.subr.bf16.mxu0 %v7475_v13  ;;  %5358 = vmatprep.subr.bf16.mxu1 %v7478_v15  ;;  %v7566_v13 = vld [vmem:[%s8003_s28 + $0xee4] ss:$16 sps:$4 sm:$0xff]   ;;  %v7569_v15 = vld [vmem:[%s8003_s28 + $0xeec] ss:$16 sps:$4 sm:$0xff]  }
 0x1b8   : > { %4908 = vmatpush1.bf16.msra.mxu0 %v7473_v17  ;;  %5359 = vmatpush1.bf16.msra.mxu1 %v7476_v53  ;;  %v7564_v17 = vld [vmem:[%s8003_s28 + $0xee0] ss:$16 sps:$4 sm:$0xff]   ;;  %v7567_v53 = vld [vmem:[%s8003_s28 + $0xee8] ss:$16 sps:$4 sm:$0xff]  }
 0x1b9   : > { %4909 = vmatprep.subr.bf16.mxu0 %v7481_v18  ;;  %5360 = vmatprep.subr.bf16.mxu1 %v7484_v19  ;;  %v7572_v18 = vld [vmem:[%s8003_s28 + $0xf04] ss:$16 sps:$4 sm:$0xff]   ;;  %v7575_v19 = vld [vmem:[%s8003_s28 + $0xf0c] ss:$16 sps:$4 sm:$0xff]  }
 0x1bc   : > { %4910 = vmatpush1.bf16.msra.mxu0 %v7479_v20  ;;  %5361 = vmatpush1.bf16.msra.mxu1 %v7482_v21  ;;  %v7570_v20 = vld [vmem:[%s8003_s28 + $0xf00] ss:$16 sps:$4 sm:$0xff]   ;;  %v7573_v21 = vld [vmem:[%s8003_s28 + $0xf08] ss:$16 sps:$4 sm:$0xff]  }
 0x1bd   : > { %4911 = vmatprep.subr.bf16.mxu0 %v7487_v23  ;;  %5362 = vmatprep.subr.bf16.mxu1 %v7490_v24  ;;  %v7578_v23 = vld [vmem:[%s8003_s28 + $0xf24] ss:$16 sps:$4 sm:$0xff]   ;;  %v7581_v24 = vld [vmem:[%s8003_s28 + $0xf2c] ss:$16 sps:$4 sm:$0xff]  }
 0x1c0   : > { %4912 = vmatpush1.bf16.msra.mxu0 %v7485_v25  ;;  %5363 = vmatpush1.bf16.msra.mxu1 %v7488_v27  ;;  %v7576_v25 = vld [vmem:[%s8003_s28 + $0xf20] ss:$16 sps:$4 sm:$0xff]   ;;  %v7579_v27 = vld [vmem:[%s8003_s28 + $0xf28] ss:$16 sps:$4 sm:$0xff]  }
 0x1c1   : > { %4913 = vmatprep.subr.bf16.mxu0 %v7493_v28  ;;  %5364 = vmatprep.subr.bf16.mxu1 %v7496_v29  ;;  %v7584_v28 = vld [vmem:[%s8003_s28 + $0xf44] ss:$16 sps:$4 sm:$0xff]   ;;  %v7587_v29 = vld [vmem:[%s8003_s28 + $0xf4c] ss:$16 sps:$4 sm:$0xff]  }
 0x1c4   : > { %4914 = vmatpush1.bf16.msra.mxu0 %v7491_v30  ;;  %5365 = vmatpush1.bf16.msra.mxu1 %v7494_v31  ;;  %v7582_v30 = vld [vmem:[%s8003_s28 + $0xf40] ss:$16 sps:$4 sm:$0xff]   ;;  %v7585_v31 = vld [vmem:[%s8003_s28 + $0xf48] ss:$16 sps:$4 sm:$0xff]  }
 0x1c5   : > { %4915 = vmatprep.subr.bf16.mxu0 %v7499_v16  ;;  %5366 = vmatprep.subr.bf16.mxu1 %v7502_v32  ;;  %v7590_v16 = vld [vmem:[%s8003_s28 + $0xf64] ss:$16 sps:$4 sm:$0xff]   ;;  %v7593_v32 = vld [vmem:[%s8003_s28 + $0xf6c] ss:$16 sps:$4 sm:$0xff]  }
 0x1c8   : > { %4916 = vmatpush1.bf16.msra.mxu0 %v7497_v33  ;;  %5367 = vmatpush1.bf16.msra.mxu1 %v7500_v34  ;;  %v7588_v33 = vld [vmem:[%s8003_s28 + $0xf60] ss:$16 sps:$4 sm:$0xff]   ;;  %v7591_v34 = vld [vmem:[%s8003_s28 + $0xf68] ss:$16 sps:$4 sm:$0xff]  }
 0x1c9   : > { %4917 = vmatprep.subr.bf16.mxu0 %v7505_v26  ;;  %5368 = vmatprep.subr.bf16.mxu1 %v7508_v35  ;;  %v7596_v26 = vld [vmem:[%s8003_s28 + $0xf84] ss:$16 sps:$4 sm:$0xff]   ;;  %v7599_v35 = vld [vmem:[%s8003_s28 + $0xf8c] ss:$16 sps:$4 sm:$0xff]  }
 0x1cc   : > { %4918 = vmatpush1.bf16.msra.mxu0 %v7503_v37  ;;  %5369 = vmatpush1.bf16.msra.mxu1 %v7506_v38  ;;  %v7594_v37 = vld [vmem:[%s8003_s28 + $0xf80] ss:$16 sps:$4 sm:$0xff]   ;;  %v7597_v38 = vld [vmem:[%s8003_s28 + $0xf88] ss:$16 sps:$4 sm:$0xff]  }
 0x1cd   : > { %4919 = vmatprep.subr.bf16.mxu0 %v7511_v40  ;;  %5370 = vmatprep.subr.bf16.mxu1 %v7514_v41  ;;  %v7602_v40 = vld [vmem:[%s8003_s28 + $0xfa4] ss:$16 sps:$4 sm:$0xff]   ;;  %v7605_v41 = vld [vmem:[%s8003_s28 + $0xfac] ss:$16 sps:$4 sm:$0xff]  }
 0x1d0   : > { %4920 = vmatpush1.bf16.msra.mxu0 %v7509_v22  ;;  %5371 = vmatpush1.bf16.msra.mxu1 %v7512_v42  ;;  %v7600_v22 = vld [vmem:[%s8003_s28 + $0xfa0] ss:$16 sps:$4 sm:$0xff]   ;;  %v7603_v42 = vld [vmem:[%s8003_s28 + $0xfa8] ss:$16 sps:$4 sm:$0xff]  }
 0x1d1   : > { %4921 = vmatprep.subr.bf16.mxu0 %v7517_v43  ;;  %5372 = vmatprep.subr.bf16.mxu1 %v7520_v45  ;;  %v7608_v43 = vld [vmem:[%s8003_s28 + $0xfc4] ss:$16 sps:$4 sm:$0xff]   ;;  %v7611_v45 = vld [vmem:[%s8003_s28 + $0xfcc] ss:$16 sps:$4 sm:$0xff]  }
 0x1d4   : > { %4922 = vmatpush1.bf16.msra.mxu0 %v7515_v36  ;;  %5373 = vmatpush1.bf16.msra.mxu1 %v7518_v46  ;;  %v8592_v36 = vld [vmem:[%s7998_s24 + $0x10] sm:$0x3f] }
 0x1d5   : > { %4932 = vmatprep.subr.bf16.mxu0 %v7524_v47  ;;  %5383 = vmatprep.subr.bf16.mxu1 %v7527_v48  ;;  %v7606_v46 = vld [vmem:[%s8003_s28 + $0xfc0] ss:$16 sps:$4 sm:$0xff]   ;;  %v7609_v47 = vld [vmem:[%s8003_s28 + $0xfc8] ss:$16 sps:$4 sm:$0xff]   ;;  %v7614_v48 = vld [vmem:[%s8003_s28 + $0xfe4] ss:$16 sps:$4 sm:$0xff]  }
 0x1d7   : > { %4924 = vmatmul.mubr.bf16.vlgmr.msra.gmra.mrb[0].mxu0 %v8529_v14  ;;  %5375 = vmatmul.mubr.bf16.vlgmr.msra.gmra.mrb[0].mxu1 %v8529_v14 }
 0x1d8   : > { %4933 = vmatpush1.bf16.msra.mxu0 %v7522_v51  ;;  %5384 = vmatpush1.bf16.msra.mxu1 %v7525_v52  ;;  %v7617_v51 = vld [vmem:[%s8003_s28 + $0xfec] ss:$16 sps:$4 sm:$0xff]   ;;  %v8600_v52 = vrot.slane %v8592_v36, %v8053_v50 }
 0x1d9   : > { %4934 = vmatprep.subr.bf16.mxu0 %v7530_v54  ;;  %5385 = vmatprep.subr.bf16.mxu1 %v7533_v55  ;;  %v7612_v54 = vld [vmem:[%s8003_s28 + $0xfe0] ss:$16 sps:$4 sm:$0xff]   ;;  %v7615_v55 = vld [vmem:[%s8003_s28 + $0xfe8] ss:$16 sps:$4 sm:$0xff]  }
 0x1da   : > { %4964 = vmatprep.mubr.bf16.mxu0 %v1055_v56  ;;  %5415 = vmatprep.mubr.bf16.mxu1 %v1055_v56  ;;  %v7620_v56 = vld [vmem:[%s8003_s28 + $0x1004] ss:$16 sps:$4 sm:$0xff]  }
 0x1dc   : > { %4935 = vmatpush1.bf16.msra.mxu0 %v7528_v39  ;;  %5386 = vmatpush1.bf16.msra.mxu1 %v7531_v57  ;;  %v7623_v39 = vld [vmem:[%s8003_s28 + $0x100c] ss:$16 sps:$4 sm:$0xff]   ;;  %v1071_v57 = vcombine.high %v8600_v52, %v8600_v52 }
 0x1dd   : > { %4936 = vmatprep.subr.bf16.mxu0 %v7536_v58  ;;  %5387 = vmatprep.subr.bf16.mxu1 %v7539_v59  ;;  %v1053_v58 = vcombine.high %v8529_v14, %v8529_v14  ;;  %v7618_v59 = vld [vmem:[%s8003_s28 + $0x1000] ss:$16 sps:$4 sm:$0xff]  }
 0x1de   : > { %v7624_v14 = vld [vmem:[%s8003_s28 + $0x1020] ss:$16 sps:$4 sm:$0xff]  }
 0x1e0   : > { %4937 = vmatpush1.bf16.msra.mxu0 %v7534_v49  ;;  %5388 = vmatpush1.bf16.msra.mxu1 %v7537_v60  ;;  %v7621_v49 = vld [vmem:[%s8003_s28 + $0x1008] ss:$16 sps:$4 sm:$0xff]   ;;  %v7626_v60 = vld [vmem:[%s8003_s28 + $0x1024] ss:$16 sps:$4 sm:$0xff]  }
 0x1e1   : > { %4938 = vmatprep.subr.bf16.mxu0 %v7542_v61  ;;  %5389 = vmatprep.subr.bf16.mxu1 %v7545_v62  ;;  %v7629_v61 = vld [vmem:[%s8003_s28 + $0x102c] ss:$16 sps:$4 sm:$0xff]   ;;  %v8615_v62 = vrot.slane %v1071_v57, %v8053_v50  ;;  %v7705_v57 = vld [vmem:[%s8003_s28 + $0x11c8] ss:$16 sps:$4 sm:$0xff]  }
 0x1e4   : > { %4939 = vmatpush1.bf16.msra.mxu0 %v7540_v63  ;;  %5390 = vmatpush1.bf16.msra.mxu1 %v7543_v0  ;;  %v7627_v63 = vld [vmem:[%s8003_s28 + $0x1028] ss:$16 sps:$4 sm:$0xff]   ;;  %v7632_v0 = vld [vmem:[%s8003_s28 + $0x1044] ss:$16 sps:$4 sm:$0xff]  }
 0x1e5   : > { %4940 = vmatprep.subr.bf16.mxu0 %v7548_v1  ;;  %5391 = vmatprep.subr.bf16.mxu1 %v7551_v2  ;;  %v7635_v1 = vld [vmem:[%s8003_s28 + $0x104c] ss:$16 sps:$4 sm:$0xff]   ;;  %v7630_v2 = vld [vmem:[%s8003_s28 + $0x1040] ss:$16 sps:$4 sm:$0xff]  }
 0x1e8   : > { %4941 = vmatpush1.bf16.msra.mxu0 %v7546_v3  ;;  %5392 = vmatpush1.bf16.msra.mxu1 %v7549_v4  ;;  %v7633_v3 = vld [vmem:[%s8003_s28 + $0x1048] ss:$16 sps:$4 sm:$0xff]   ;;  %v7638_v4 = vld [vmem:[%s8003_s28 + $0x1064] ss:$16 sps:$4 sm:$0xff]  }
 0x1e9   : > { %4942 = vmatprep.subr.bf16.mxu0 %v7554_v5  ;;  %5393 = vmatprep.subr.bf16.mxu1 %v7557_v6  ;;  %v7641_v5 = vld [vmem:[%s8003_s28 + $0x106c] ss:$16 sps:$4 sm:$0xff]   ;;  %v7636_v6 = vld [vmem:[%s8003_s28 + $0x1060] ss:$16 sps:$4 sm:$0xff]  }
 0x1ec   : > { %4943 = vmatpush1.bf16.msra.mxu0 %v7552_v7  ;;  %5394 = vmatpush1.bf16.msra.mxu1 %v7555_v8  ;;  %v7639_v7 = vld [vmem:[%s8003_s28 + $0x1068] ss:$16 sps:$4 sm:$0xff]   ;;  %v7644_v8 = vld [vmem:[%s8003_s28 + $0x1084] ss:$16 sps:$4 sm:$0xff]  }
 0x1ed   : > { %4944 = vmatprep.subr.bf16.mxu0 %v7560_v9  ;;  %5395 = vmatprep.subr.bf16.mxu1 %v7563_v10  ;;  %v7647_v9 = vld [vmem:[%s8003_s28 + $0x108c] ss:$16 sps:$4 sm:$0xff]   ;;  %v7642_v10 = vld [vmem:[%s8003_s28 + $0x1080] ss:$16 sps:$4 sm:$0xff]  }
 0x1f0   : > { %4945 = vmatpush1.bf16.msra.mxu0 %v7558_v11  ;;  %5396 = vmatpush1.bf16.msra.mxu1 %v7561_v12  ;;  %v7645_v11 = vld [vmem:[%s8003_s28 + $0x1088] ss:$16 sps:$4 sm:$0xff]   ;;  %v7650_v12 = vld [vmem:[%s8003_s28 + $0x10a4] ss:$16 sps:$4 sm:$0xff]  }
 0x1f1   : > { %4946 = vmatprep.subr.bf16.mxu0 %v7566_v13  ;;  %5397 = vmatprep.subr.bf16.mxu1 %v7569_v15  ;;  %v7653_v13 = vld [vmem:[%s8003_s28 + $0x10ac] ss:$16 sps:$4 sm:$0xff]   ;;  %v7648_v15 = vld [vmem:[%s8003_s28 + $0x10a0] ss:$16 sps:$4 sm:$0xff]  }
 0x1f4   : > { %4947 = vmatpush1.bf16.msra.mxu0 %v7564_v17  ;;  %5398 = vmatpush1.bf16.msra.mxu1 %v7567_v53  ;;  %v7651_v17 = vld [vmem:[%s8003_s28 + $0x10a8] ss:$16 sps:$4 sm:$0xff]   ;;  %v7656_v53 = vld [vmem:[%s8003_s28 + $0x10c4] ss:$16 sps:$4 sm:$0xff]  }
 0x1f5   : > { %4948 = vmatprep.subr.bf16.mxu0 %v7572_v18  ;;  %5399 = vmatprep.subr.bf16.mxu1 %v7575_v19  ;;  %v7659_v18 = vld [vmem:[%s8003_s28 + $0x10cc] ss:$16 sps:$4 sm:$0xff]   ;;  %v7654_v19 = vld [vmem:[%s8003_s28 + $0x10c0] ss:$16 sps:$4 sm:$0xff]  }
 0x1f8   : > { %4949 = vmatpush1.bf16.msra.mxu0 %v7570_v20  ;;  %5400 = vmatpush1.bf16.msra.mxu1 %v7573_v21  ;;  %v7657_v20 = vld [vmem:[%s8003_s28 + $0x10c8] ss:$16 sps:$4 sm:$0xff]   ;;  %v7662_v21 = vld [vmem:[%s8003_s28 + $0x10e4] ss:$16 sps:$4 sm:$0xff]  }
 0x1f9   : > { %4950 = vmatprep.subr.bf16.mxu0 %v7578_v23  ;;  %5401 = vmatprep.subr.bf16.mxu1 %v7581_v24  ;;  %v7665_v23 = vld [vmem:[%s8003_s28 + $0x10ec] ss:$16 sps:$4 sm:$0xff]   ;;  %v7660_v24 = vld [vmem:[%s8003_s28 + $0x10e0] ss:$16 sps:$4 sm:$0xff]  }
 0x1fc   : > { %4951 = vmatpush1.bf16.msra.mxu0 %v7576_v25  ;;  %5402 = vmatpush1.bf16.msra.mxu1 %v7579_v27  ;;  %v7663_v25 = vld [vmem:[%s8003_s28 + $0x10e8] ss:$16 sps:$4 sm:$0xff]   ;;  %v7668_v27 = vld [vmem:[%s8003_s28 + $0x1104] ss:$16 sps:$4 sm:$0xff]  }
 0x1fd   : > { %4952 = vmatprep.subr.bf16.mxu0 %v7584_v28  ;;  %5403 = vmatprep.subr.bf16.mxu1 %v7587_v29  ;;  %v7671_v28 = vld [vmem:[%s8003_s28 + $0x110c] ss:$16 sps:$4 sm:$0xff]   ;;  %v7666_v29 = vld [vmem:[%s8003_s28 + $0x1100] ss:$16 sps:$4 sm:$0xff]  }
 0x200   : > { %4953 = vmatpush1.bf16.msra.mxu0 %v7582_v30  ;;  %5404 = vmatpush1.bf16.msra.mxu1 %v7585_v31  ;;  %v7669_v30 = vld [vmem:[%s8003_s28 + $0x1108] ss:$16 sps:$4 sm:$0xff]   ;;  %v7674_v31 = vld [vmem:[%s8003_s28 + $0x1124] ss:$16 sps:$4 sm:$0xff]  }
 0x201   : > { %4954 = vmatprep.subr.bf16.mxu0 %v7590_v16  ;;  %5405 = vmatprep.subr.bf16.mxu1 %v7593_v32  ;;  %v7677_v16 = vld [vmem:[%s8003_s28 + $0x112c] ss:$16 sps:$4 sm:$0xff]   ;;  %v7672_v32 = vld [vmem:[%s8003_s28 + $0x1120] ss:$16 sps:$4 sm:$0xff]  }
 0x204   : > { %4955 = vmatpush1.bf16.msra.mxu0 %v7588_v33  ;;  %5406 = vmatpush1.bf16.msra.mxu1 %v7591_v34  ;;  %v7675_v33 = vld [vmem:[%s8003_s28 + $0x1128] ss:$16 sps:$4 sm:$0xff]   ;;  %v7680_v34 = vld [vmem:[%s8003_s28 + $0x1144] ss:$16 sps:$4 sm:$0xff]  }
 0x205   : > { %4956 = vmatprep.subr.bf16.mxu0 %v7596_v26  ;;  %5407 = vmatprep.subr.bf16.mxu1 %v7599_v35  ;;  %v7683_v26 = vld [vmem:[%s8003_s28 + $0x114c] ss:$16 sps:$4 sm:$0xff]   ;;  %v7678_v35 = vld [vmem:[%s8003_s28 + $0x1140] ss:$16 sps:$4 sm:$0xff]  }
 0x208   : > { %4957 = vmatpush1.bf16.msra.mxu0 %v7594_v37  ;;  %5408 = vmatpush1.bf16.msra.mxu1 %v7597_v38  ;;  %v7681_v37 = vld [vmem:[%s8003_s28 + $0x1148] ss:$16 sps:$4 sm:$0xff]   ;;  %v7686_v38 = vld [vmem:[%s8003_s28 + $0x1164] ss:$16 sps:$4 sm:$0xff]  }
 0x209   : > { %4958 = vmatprep.subr.bf16.mxu0 %v7602_v40  ;;  %5409 = vmatprep.subr.bf16.mxu1 %v7605_v41  ;;  %v7689_v40 = vld [vmem:[%s8003_s28 + $0x116c] ss:$16 sps:$4 sm:$0xff]   ;;  %v7684_v41 = vld [vmem:[%s8003_s28 + $0x1160] ss:$16 sps:$4 sm:$0xff]  }
 0x20c   : > { %4959 = vmatpush1.bf16.msra.mxu0 %v7600_v22  ;;  %5410 = vmatpush1.bf16.msra.mxu1 %v7603_v42  ;;  %v7687_v22 = vld [vmem:[%s8003_s28 + $0x1168] ss:$16 sps:$4 sm:$0xff]   ;;  %v7692_v42 = vld [vmem:[%s8003_s28 + $0x1184] ss:$16 sps:$4 sm:$0xff]  }
 0x20d   : > { %4960 = vmatprep.subr.bf16.mxu0 %v7608_v43  ;;  %5411 = vmatprep.subr.bf16.mxu1 %v7611_v45  ;;  %v7695_v43 = vld [vmem:[%s8003_s28 + $0x118c] ss:$16 sps:$4 sm:$0xff]   ;;  %v7690_v45 = vld [vmem:[%s8003_s28 + $0x1180] ss:$16 sps:$4 sm:$0xff]  }
 0x210   : > { %4961 = vmatpush1.bf16.msra.mxu0 %v7606_v46  ;;  %5412 = vmatpush1.bf16.msra.mxu1 %v7609_v47  ;;  %v7693_v46 = vld [vmem:[%s8003_s28 + $0x1188] ss:$16 sps:$4 sm:$0xff]   ;;  %v7698_v47 = vld [vmem:[%s8003_s28 + $0x11a4] ss:$16 sps:$4 sm:$0xff]  }
 0x211   : > { %4962 = vmatprep.subr.bf16.mxu0 %v7614_v48  ;;  %5413 = vmatprep.subr.bf16.mxu1 %v7617_v51  ;;  %v7701_v48 = vld [vmem:[%s8003_s28 + $0x11ac] ss:$16 sps:$4 sm:$0xff]   ;;  %v7696_v51 = vld [vmem:[%s8003_s28 + $0x11a0] ss:$16 sps:$4 sm:$0xff]  }
 0x214   : > { %4963 = vmatpush1.bf16.msra.mxu0 %v7612_v54  ;;  %5414 = vmatpush1.bf16.msra.mxu1 %v7615_v55  ;;  %v7699_v54 = vld [vmem:[%s8003_s28 + $0x11a8] ss:$16 sps:$4 sm:$0xff]   ;;  %v7704_v55 = vld [vmem:[%s8003_s28 + $0x11c4] ss:$16 sps:$4 sm:$0xff]  }
 0x215   : > { %4973 = vmatprep.subr.bf16.mxu0 %v7620_v56  ;;  %5424 = vmatprep.subr.bf16.mxu1 %v7623_v39  ;;  %v7707_v56 = vld [vmem:[%s8003_s28 + $0x11cc] ss:$16 sps:$4 sm:$0xff]   ;;  %v7702_v39 = vld [vmem:[%s8003_s28 + $0x11c0] ss:$16 sps:$4 sm:$0xff]  }
 0x217   : > { %4965 = vmatmul.mubr.bf16.vlgmr.msra.gmra.mrb[0].mxu0 %v1053_v58  ;;  %5416 = vmatmul.mubr.bf16.vlgmr.msra.gmra.mrb[0].mxu1 %v1053_v58  ;;  %v7710_v58 = vld [vmem:[%s8003_s28 + $0x11e4] ss:$16 sps:$4 sm:$0xff]  }
 0x218   : > { %4974 = vmatpush1.bf16.msra.mxu0 %v7618_v59  ;;  %5425 = vmatpush1.bf16.msra.mxu1 %v7621_v49  ;;  %v7713_v59 = vld [vmem:[%s8003_s28 + $0x11ec] ss:$16 sps:$4 sm:$0xff]   ;;  %v7708_v49 = vld [vmem:[%s8003_s28 + $0x11e0] ss:$16 sps:$4 sm:$0xff]  }
 0x219   : > { %4975 = vmatprep.subr.bf16.mxu0 %v7626_v60  ;;  %5426 = vmatprep.subr.bf16.mxu1 %v7629_v61  ;;  %v7711_v60 = vld [vmem:[%s8003_s28 + $0x11e8] ss:$16 sps:$4 sm:$0xff]   ;;  %v7716_v61 = vld [vmem:[%s8003_s28 + $0x1204] ss:$16 sps:$4 sm:$0xff]  }
 0x21a   : > { %5005 = vmatprep.mubr.bf16.mxu0 %v8615_v62  ;;  %5456 = vmatprep.mubr.bf16.mxu1 %v8615_v62 }
 0x21c   : > { %4976 = vmatpush1.bf16.msra.mxu0 %v7624_v14  ;;  %5427 = vmatpush1.bf16.msra.mxu1 %v7627_v63  ;;  %v7719_v14 = vld [vmem:[%s8003_s28 + $0x120c] ss:$16 sps:$4 sm:$0xff]   ;;  %v8681_v63 = vrot.slane %v8600_v52, %v8053_v50  ;;  %v7720_v52 = vld [vmem:[%s8003_s28 + $0x1220] ss:$16 sps:$4 sm:$0xff]  }
 0x21d   : > { %4977 = vmatprep.subr.bf16.mxu0 %v7632_v0  ;;  %5428 = vmatprep.subr.bf16.mxu1 %v7635_v1  ;;  %v7714_v0 = vld [vmem:[%s8003_s28 + $0x1200] ss:$16 sps:$4 sm:$0xff]   ;;  %v7717_v1 = vld [vmem:[%s8003_s28 + $0x1208] ss:$16 sps:$4 sm:$0xff]  }
 0x220   : > { %4978 = vmatpush1.bf16.msra.mxu0 %v7630_v2  ;;  %5429 = vmatpush1.bf16.msra.mxu1 %v7633_v3  ;;  %v7722_v2 = vld [vmem:[%s8003_s28 + $0x1224] ss:$16 sps:$4 sm:$0xff]   ;;  %v7725_v3 = vld [vmem:[%s8003_s28 + $0x122c] ss:$16 sps:$4 sm:$0xff]  }
 0x221   : > { %4979 = vmatprep.subr.bf16.mxu0 %v7638_v4  ;;  %5430 = vmatprep.subr.bf16.mxu1 %v7641_v5  ;;  %v1102_v4 = vcombine.high %v8615_v62, %v8615_v62  ;;  %v7723_v5 = vld [vmem:[%s8003_s28 + $0x1228] ss:$16 sps:$4 sm:$0xff]   ;;  %v7726_v62 = vld [vmem:[%s8003_s28 + $0x1240] ss:$16 sps:$4 sm:$0xff]  }
 0x224   : > { %4980 = vmatpush1.bf16.msra.mxu0 %v7636_v6  ;;  %5431 = vmatpush1.bf16.msra.mxu1 %v7639_v7  ;;  %v7728_v6 = vld [vmem:[%s8003_s28 + $0x1244] ss:$16 sps:$4 sm:$0xff]   ;;  %v7731_v7 = vld [vmem:[%s8003_s28 + $0x124c] ss:$16 sps:$4 sm:$0xff]  }
 0x225   : > { %4981 = vmatprep.subr.bf16.mxu0 %v7644_v8  ;;  %5432 = vmatprep.subr.bf16.mxu1 %v7647_v9  ;;  %v7729_v8 = vld [vmem:[%s8003_s28 + $0x1248] ss:$16 sps:$4 sm:$0xff]   ;;  %v7734_v9 = vld [vmem:[%s8003_s28 + $0x1264] ss:$16 sps:$4 sm:$0xff]  }
 0x228   : > { %4982 = vmatpush1.bf16.msra.mxu0 %v7642_v10  ;;  %5433 = vmatpush1.bf16.msra.mxu1 %v7645_v11  ;;  %v7737_v10 = vld [vmem:[%s8003_s28 + $0x126c] ss:$16 sps:$4 sm:$0xff]   ;;  %v7732_v11 = vld [vmem:[%s8003_s28 + $0x1260] ss:$16 sps:$4 sm:$0xff]  }
 0x229   : > { %4983 = vmatprep.subr.bf16.mxu0 %v7650_v12  ;;  %5434 = vmatprep.subr.bf16.mxu1 %v7653_v13  ;;  %v7735_v12 = vld [vmem:[%s8003_s28 + $0x1268] ss:$16 sps:$4 sm:$0xff]   ;;  %v7740_v13 = vld [vmem:[%s8003_s28 + $0x1284] ss:$16 sps:$4 sm:$0xff]  }
 0x22c   : > { %4984 = vmatpush1.bf16.msra.mxu0 %v7648_v15  ;;  %5435 = vmatpush1.bf16.msra.mxu1 %v7651_v17  ;;  %v7743_v15 = vld [vmem:[%s8003_s28 + $0x128c] ss:$16 sps:$4 sm:$0xff]   ;;  %v7738_v17 = vld [vmem:[%s8003_s28 + $0x1280] ss:$16 sps:$4 sm:$0xff]  }
 0x22d   : > { %4985 = vmatprep.subr.bf16.mxu0 %v7656_v53  ;;  %5436 = vmatprep.subr.bf16.mxu1 %v7659_v18  ;;  %v7741_v53 = vld [vmem:[%s8003_s28 + $0x1288] ss:$16 sps:$4 sm:$0xff]   ;;  %v7746_v18 = vld [vmem:[%s8003_s28 + $0x12a4] ss:$16 sps:$4 sm:$0xff]  }
 0x230   : > { %4986 = vmatpush1.bf16.msra.mxu0 %v7654_v19  ;;  %5437 = vmatpush1.bf16.msra.mxu1 %v7657_v20  ;;  %v7749_v19 = vld [vmem:[%s8003_s28 + $0x12ac] ss:$16 sps:$4 sm:$0xff]   ;;  %v7744_v20 = vld [vmem:[%s8003_s28 + $0x12a0] ss:$16 sps:$4 sm:$0xff]  }
 0x231   : > { %4987 = vmatprep.subr.bf16.mxu0 %v7662_v21  ;;  %5438 = vmatprep.subr.bf16.mxu1 %v7665_v23  ;;  %v7747_v21 = vld [vmem:[%s8003_s28 + $0x12a8] ss:$16 sps:$4 sm:$0xff]   ;;  %v7752_v23 = vld [vmem:[%s8003_s28 + $0x12c4] ss:$16 sps:$4 sm:$0xff]  }
 0x234   : > { %4988 = vmatpush1.bf16.msra.mxu0 %v7660_v24  ;;  %5439 = vmatpush1.bf16.msra.mxu1 %v7663_v25  ;;  %v7755_v24 = vld [vmem:[%s8003_s28 + $0x12cc] ss:$16 sps:$4 sm:$0xff]   ;;  %v7750_v25 = vld [vmem:[%s8003_s28 + $0x12c0] ss:$16 sps:$4 sm:$0xff]  }
 0x235   : > { %4989 = vmatprep.subr.bf16.mxu0 %v7668_v27  ;;  %5440 = vmatprep.subr.bf16.mxu1 %v7671_v28  ;;  %v7753_v27 = vld [vmem:[%s8003_s28 + $0x12c8] ss:$16 sps:$4 sm:$0xff]   ;;  %v7758_v28 = vld [vmem:[%s8003_s28 + $0x12e4] ss:$16 sps:$4 sm:$0xff]  }
 0x238   : > { %4990 = vmatpush1.bf16.msra.mxu0 %v7666_v29  ;;  %5441 = vmatpush1.bf16.msra.mxu1 %v7669_v30  ;;  %v7761_v29 = vld [vmem:[%s8003_s28 + $0x12ec] ss:$16 sps:$4 sm:$0xff]   ;;  %v7756_v30 = vld [vmem:[%s8003_s28 + $0x12e0] ss:$16 sps:$4 sm:$0xff]  }
 0x239   : > { %4991 = vmatprep.subr.bf16.mxu0 %v7674_v31  ;;  %5442 = vmatprep.subr.bf16.mxu1 %v7677_v16  ;;  %v7759_v31 = vld [vmem:[%s8003_s28 + $0x12e8] ss:$16 sps:$4 sm:$0xff]   ;;  %v7764_v16 = vld [vmem:[%s8003_s28 + $0x1304] ss:$16 sps:$4 sm:$0xff]  }
 0x23c   : > { %4992 = vmatpush1.bf16.msra.mxu0 %v7672_v32  ;;  %5443 = vmatpush1.bf16.msra.mxu1 %v7675_v33  ;;  %v7767_v32 = vld [vmem:[%s8003_s28 + $0x130c] ss:$16 sps:$4 sm:$0xff]   ;;  %v7762_v33 = vld [vmem:[%s8003_s28 + $0x1300] ss:$16 sps:$4 sm:$0xff]  }
 0x23d   : > { %4993 = vmatprep.subr.bf16.mxu0 %v7680_v34  ;;  %5444 = vmatprep.subr.bf16.mxu1 %v7683_v26  ;;  %v7765_v34 = vld [vmem:[%s8003_s28 + $0x1308] ss:$16 sps:$4 sm:$0xff]   ;;  %v7770_v26 = vld [vmem:[%s8003_s28 + $0x1324] ss:$16 sps:$4 sm:$0xff]  }
 0x240   : > { %4994 = vmatpush1.bf16.msra.mxu0 %v7678_v35  ;;  %5445 = vmatpush1.bf16.msra.mxu1 %v7681_v37  ;;  %v7773_v35 = vld [vmem:[%s8003_s28 + $0x132c] ss:$16 sps:$4 sm:$0xff]   ;;  %v7768_v37 = vld [vmem:[%s8003_s28 + $0x1320] ss:$16 sps:$4 sm:$0xff]  }
 0x241   : > { %4995 = vmatprep.subr.bf16.mxu0 %v7686_v38  ;;  %5446 = vmatprep.subr.bf16.mxu1 %v7689_v40  ;;  %v7771_v38 = vld [vmem:[%s8003_s28 + $0x1328] ss:$16 sps:$4 sm:$0xff]   ;;  %v7776_v40 = vld [vmem:[%s8003_s28 + $0x1344] ss:$16 sps:$4 sm:$0xff]  }
 0x244   : > { %4996 = vmatpush1.bf16.msra.mxu0 %v7684_v41  ;;  %5447 = vmatpush1.bf16.msra.mxu1 %v7687_v22  ;;  %v7779_v41 = vld [vmem:[%s8003_s28 + $0x134c] ss:$16 sps:$4 sm:$0xff]   ;;  %v7774_v22 = vld [vmem:[%s8003_s28 + $0x1340] ss:$16 sps:$4 sm:$0xff]  }
 0x245   : > { %4997 = vmatprep.subr.bf16.mxu0 %v7692_v42  ;;  %5448 = vmatprep.subr.bf16.mxu1 %v7695_v43  ;;  %v7777_v42 = vld [vmem:[%s8003_s28 + $0x1348] ss:$16 sps:$4 sm:$0xff]   ;;  %v7782_v43 = vld [vmem:[%s8003_s28 + $0x1364] ss:$16 sps:$4 sm:$0xff]  }
 0x248   : > { %4998 = vmatpush1.bf16.msra.mxu0 %v7690_v45  ;;  %5449 = vmatpush1.bf16.msra.mxu1 %v7693_v46  ;;  %v7785_v45 = vld [vmem:[%s8003_s28 + $0x136c] ss:$16 sps:$4 sm:$0xff]   ;;  %v7780_v46 = vld [vmem:[%s8003_s28 + $0x1360] ss:$16 sps:$4 sm:$0xff]  }
 0x249   : > { %4999 = vmatprep.subr.bf16.mxu0 %v7698_v47  ;;  %5450 = vmatprep.subr.bf16.mxu1 %v7701_v48  ;;  %v7783_v47 = vld [vmem:[%s8003_s28 + $0x1368] ss:$16 sps:$4 sm:$0xff]   ;;  %v7788_v48 = vld [vmem:[%s8003_s28 + $0x1384] ss:$16 sps:$4 sm:$0xff]  }
 0x24c   : > { %5000 = vmatpush1.bf16.msra.mxu0 %v7696_v51  ;;  %5451 = vmatpush1.bf16.msra.mxu1 %v7699_v54  ;;  %v7791_v51 = vld [vmem:[%s8003_s28 + $0x138c] ss:$16 sps:$4 sm:$0xff]   ;;  %v7786_v54 = vld [vmem:[%s8003_s28 + $0x1380] ss:$16 sps:$4 sm:$0xff]  }
 0x24d   : > { %5001 = vmatprep.subr.bf16.mxu0 %v7704_v55  ;;  %5452 = vmatprep.subr.bf16.mxu1 %v7707_v56  ;;  %v7789_v55 = vld [vmem:[%s8003_s28 + $0x1388] ss:$16 sps:$4 sm:$0xff]   ;;  %v7794_v56 = vld [vmem:[%s8003_s28 + $0x13a4] ss:$16 sps:$4 sm:$0xff]  }
 0x250   : > { %5002 = vmatpush1.bf16.msra.mxu0 %v7702_v39  ;;  %5453 = vmatpush1.bf16.msra.mxu1 %v7705_v57  ;;  %v7797_v39 = vld [vmem:[%s8003_s28 + $0x13ac] ss:$16 sps:$4 sm:$0xff]   ;;  %v7792_v57 = vld [vmem:[%s8003_s28 + $0x13a0] ss:$16 sps:$4 sm:$0xff]  }
 0x251   : > { %5003 = vmatprep.subr.bf16.mxu0 %v7710_v58  ;;  %5454 = vmatprep.subr.bf16.mxu1 %v7713_v59  ;;  %v7795_v58 = vld [vmem:[%s8003_s28 + $0x13a8] ss:$16 sps:$4 sm:$0xff]   ;;  %v7800_v59 = vld [vmem:[%s8003_s28 + $0x13c4] ss:$16 sps:$4 sm:$0xff]  }
 0x254   : > { %5004 = vmatpush1.bf16.msra.mxu0 %v7708_v49  ;;  %5455 = vmatpush1.bf16.msra.mxu1 %v7711_v60  ;;  %v7803_v49 = vld [vmem:[%s8003_s28 + $0x13cc] ss:$16 sps:$4 sm:$0xff]   ;;  %v1056_v60 = vcombine.high %v8592_v36, %v8592_v36  ;;  %v7804_v36 = vld [vmem:[%s8003_s28 + $0x13e0] ss:$16 sps:$4 sm:$0xff]  }
 0x255   : > { %5014 = vmatprep.subr.bf16.mxu0 %v7716_v61  ;;  %5465 = vmatprep.subr.bf16.mxu1 %v7719_v14  ;;  %v7798_v61 = vld [vmem:[%s8003_s28 + $0x13c0] ss:$16 sps:$4 sm:$0xff]   ;;  %v7801_v14 = vld [vmem:[%s8003_s28 + $0x13c8] ss:$16 sps:$4 sm:$0xff]  }
 0x257   : > { %5006 = vmatmul.mubr.bf16.vlgmr.msra.gmra.mrb[0].mxu0 %v8681_v63  ;;  %5457 = vmatmul.mubr.bf16.vlgmr.msra.gmra.mrb[0].mxu1 %v8681_v63 }
 0x258   : > { %5015 = vmatpush1.bf16.msra.mxu0 %v7714_v0  ;;  %5466 = vmatpush1.bf16.msra.mxu1 %v7717_v1  ;;  %v7806_v0 = vld [vmem:[%s8003_s28 + $0x13e4] ss:$16 sps:$4 sm:$0xff]   ;;  %v7809_v1 = vld [vmem:[%s8003_s28 + $0x13ec] ss:$16 sps:$4 sm:$0xff]  }
 0x259   : > { %5016 = vmatprep.subr.bf16.mxu0 %v7722_v2  ;;  %5467 = vmatprep.subr.bf16.mxu1 %v7725_v3  ;;  %v8750_v2 = vrot.slane %v1056_v60, %v8053_v50  ;;  %v7807_v3 = vld [vmem:[%s8003_s28 + $0x13e8] ss:$16 sps:$4 sm:$0xff]  }
 0x25a   : > { %5046 = vmatprep.mubr.bf16.mxu0 %v1102_v4  ;;  %5497 = vmatprep.mubr.bf16.mxu1 %v1102_v4  ;;  %v7812_v4 = vld [vmem:[%s8003_s28 + $0x1404] ss:$16 sps:$4 sm:$0xff]   ;;  %v7885_v60 = vld [vmem:[%s8003_s28 + $0x1588] ss:$16 sps:$4 sm:$0xff]  }
 0x25c   : > { %5017 = vmatpush1.bf16.msra.mxu0 %v7720_v52  ;;  %5468 = vmatpush1.bf16.msra.mxu1 %v7723_v5  ;;  %v7815_v52 = vld [vmem:[%s8003_s28 + $0x140c] ss:$16 sps:$4 sm:$0xff]   ;;  %v1072_v5 = vcombine.high %v8750_v2, %v8750_v2 }
 0x25d   : > { %5018 = vmatprep.subr.bf16.mxu0 %v7728_v6  ;;  %5469 = vmatprep.subr.bf16.mxu1 %v7731_v7  ;;  %v1101_v6 = vcombine.high %v8681_v63, %v8681_v63  ;;  %v7810_v7 = vld [vmem:[%s8003_s28 + $0x1400] ss:$16 sps:$4 sm:$0xff]  }
 0x25e   : > { %v7816_v63 = vld [vmem:[%s8003_s28 + $0x1420] ss:$16 sps:$4 sm:$0xff]  }
 0x260   : > { %5019 = vmatpush1.bf16.msra.mxu0 %v7726_v62  ;;  %5470 = vmatpush1.bf16.msra.mxu1 %v7729_v8  ;;  %v7813_v62 = vld [vmem:[%s8003_s28 + $0x1408] ss:$16 sps:$4 sm:$0xff]   ;;  %v7818_v8 = vld [vmem:[%s8003_s28 + $0x1424] ss:$16 sps:$4 sm:$0xff]  }
 0x261   : > { %5020 = vmatprep.subr.bf16.mxu0 %v7734_v9  ;;  %5471 = vmatprep.subr.bf16.mxu1 %v7737_v10  ;;  %v7821_v9 = vld [vmem:[%s8003_s28 + $0x142c] ss:$16 sps:$4 sm:$0xff]   ;;  %v1100_v10 = vrot.slane %v1072_v5, %v8053_v50  ;;  %v7902_v5 = vld [vmem:[%s8003_s28 + $0x15e4] ss:$16 sps:$4 sm:$0xff]  }
 0x264   : > { %5021 = vmatpush1.bf16.msra.mxu0 %v7732_v11  ;;  %5472 = vmatpush1.bf16.msra.mxu1 %v7735_v12  ;;  %v7819_v11 = vld [vmem:[%s8003_s28 + $0x1428] ss:$16 sps:$4 sm:$0xff]   ;;  %v7824_v12 = vld [vmem:[%s8003_s28 + $0x1444] ss:$16 sps:$4 sm:$0xff]  }
 0x265   : > { %5022 = vmatprep.subr.bf16.mxu0 %v7740_v13  ;;  %5473 = vmatprep.subr.bf16.mxu1 %v7743_v15  ;;  %v7827_v13 = vld [vmem:[%s8003_s28 + $0x144c] ss:$16 sps:$4 sm:$0xff]   ;;  %v7822_v15 = vld [vmem:[%s8003_s28 + $0x1440] ss:$16 sps:$4 sm:$0xff]  }
 0x268   : > { %5023 = vmatpush1.bf16.msra.mxu0 %v7738_v17  ;;  %5474 = vmatpush1.bf16.msra.mxu1 %v7741_v53  ;;  %v7825_v17 = vld [vmem:[%s8003_s28 + $0x1448] ss:$16 sps:$4 sm:$0xff]   ;;  %v7830_v53 = vld [vmem:[%s8003_s28 + $0x1464] ss:$16 sps:$4 sm:$0xff]  }
 0x269   : > { %5024 = vmatprep.subr.bf16.mxu0 %v7746_v18  ;;  %5475 = vmatprep.subr.bf16.mxu1 %v7749_v19  ;;  %v7833_v18 = vld [vmem:[%s8003_s28 + $0x146c] ss:$16 sps:$4 sm:$0xff]   ;;  %v7828_v19 = vld [vmem:[%s8003_s28 + $0x1460] ss:$16 sps:$4 sm:$0xff]  }
 0x26c   : > { %5025 = vmatpush1.bf16.msra.mxu0 %v7744_v20  ;;  %5476 = vmatpush1.bf16.msra.mxu1 %v7747_v21  ;;  %v7831_v20 = vld [vmem:[%s8003_s28 + $0x1468] ss:$16 sps:$4 sm:$0xff]   ;;  %v7836_v21 = vld [vmem:[%s8003_s28 + $0x1484] ss:$16 sps:$4 sm:$0xff]  }
 0x26d   : > { %5026 = vmatprep.subr.bf16.mxu0 %v7752_v23  ;;  %5477 = vmatprep.subr.bf16.mxu1 %v7755_v24  ;;  %v7839_v23 = vld [vmem:[%s8003_s28 + $0x148c] ss:$16 sps:$4 sm:$0xff]   ;;  %v7834_v24 = vld [vmem:[%s8003_s28 + $0x1480] ss:$16 sps:$4 sm:$0xff]  }
 0x270   : > { %5027 = vmatpush1.bf16.msra.mxu0 %v7750_v25  ;;  %5478 = vmatpush1.bf16.msra.mxu1 %v7753_v27  ;;  %v7837_v25 = vld [vmem:[%s8003_s28 + $0x1488] ss:$16 sps:$4 sm:$0xff]   ;;  %v7842_v27 = vld [vmem:[%s8003_s28 + $0x14a4] ss:$16 sps:$4 sm:$0xff]  }
 0x271   : > { %5028 = vmatprep.subr.bf16.mxu0 %v7758_v28  ;;  %5479 = vmatprep.subr.bf16.mxu1 %v7761_v29  ;;  %v7845_v28 = vld [vmem:[%s8003_s28 + $0x14ac] ss:$16 sps:$4 sm:$0xff]   ;;  %v7840_v29 = vld [vmem:[%s8003_s28 + $0x14a0] ss:$16 sps:$4 sm:$0xff]  }
 0x274   : > { %5029 = vmatpush1.bf16.msra.mxu0 %v7756_v30  ;;  %5480 = vmatpush1.bf16.msra.mxu1 %v7759_v31  ;;  %v7843_v30 = vld [vmem:[%s8003_s28 + $0x14a8] ss:$16 sps:$4 sm:$0xff]   ;;  %v7848_v31 = vld [vmem:[%s8003_s28 + $0x14c4] ss:$16 sps:$4 sm:$0xff]  }
 0x275   : > { %5030 = vmatprep.subr.bf16.mxu0 %v7764_v16  ;;  %5481 = vmatprep.subr.bf16.mxu1 %v7767_v32  ;;  %v7851_v16 = vld [vmem:[%s8003_s28 + $0x14cc] ss:$16 sps:$4 sm:$0xff]   ;;  %v7846_v32 = vld [vmem:[%s8003_s28 + $0x14c0] ss:$16 sps:$4 sm:$0xff]  }
 0x278   : > { %5031 = vmatpush1.bf16.msra.mxu0 %v7762_v33  ;;  %5482 = vmatpush1.bf16.msra.mxu1 %v7765_v34  ;;  %v7849_v33 = vld [vmem:[%s8003_s28 + $0x14c8] ss:$16 sps:$4 sm:$0xff]   ;;  %v7854_v34 = vld [vmem:[%s8003_s28 + $0x14e4] ss:$16 sps:$4 sm:$0xff]  }
 0x279   : > { %5032 = vmatprep.subr.bf16.mxu0 %v7770_v26  ;;  %5483 = vmatprep.subr.bf16.mxu1 %v7773_v35  ;;  %v7857_v26 = vld [vmem:[%s8003_s28 + $0x14ec] ss:$16 sps:$4 sm:$0xff]   ;;  %v7852_v35 = vld [vmem:[%s8003_s28 + $0x14e0] ss:$16 sps:$4 sm:$0xff]  }
 0x27c   : > { %5033 = vmatpush1.bf16.msra.mxu0 %v7768_v37  ;;  %5484 = vmatpush1.bf16.msra.mxu1 %v7771_v38  ;;  %v7855_v37 = vld [vmem:[%s8003_s28 + $0x14e8] ss:$16 sps:$4 sm:$0xff]   ;;  %v7860_v38 = vld [vmem:[%s8003_s28 + $0x1504] ss:$16 sps:$4 sm:$0xff]  }
 0x27d   : > { %5034 = vmatprep.subr.bf16.mxu0 %v7776_v40  ;;  %5485 = vmatprep.subr.bf16.mxu1 %v7779_v41  ;;  %v7863_v40 = vld [vmem:[%s8003_s28 + $0x150c] ss:$16 sps:$4 sm:$0xff]   ;;  %v7858_v41 = vld [vmem:[%s8003_s28 + $0x1500] ss:$16 sps:$4 sm:$0xff]  }
 0x280   : > { %5035 = vmatpush1.bf16.msra.mxu0 %v7774_v22  ;;  %5486 = vmatpush1.bf16.msra.mxu1 %v7777_v42  ;;  %v7861_v22 = vld [vmem:[%s8003_s28 + $0x1508] ss:$16 sps:$4 sm:$0xff]   ;;  %v7866_v42 = vld [vmem:[%s8003_s28 + $0x1524] ss:$16 sps:$4 sm:$0xff]  }
 0x281   : > { %5036 = vmatprep.subr.bf16.mxu0 %v7782_v43  ;;  %5487 = vmatprep.subr.bf16.mxu1 %v7785_v45  ;;  %v7869_v43 = vld [vmem:[%s8003_s28 + $0x152c] ss:$16 sps:$4 sm:$0xff]   ;;  %v7864_v45 = vld [vmem:[%s8003_s28 + $0x1520] ss:$16 sps:$4 sm:$0xff]  }
 0x284   : > { %5037 = vmatpush1.bf16.msra.mxu0 %v7780_v46  ;;  %5488 = vmatpush1.bf16.msra.mxu1 %v7783_v47  ;;  %v7867_v46 = vld [vmem:[%s8003_s28 + $0x1528] ss:$16 sps:$4 sm:$0xff]   ;;  %v7872_v47 = vld [vmem:[%s8003_s28 + $0x1544] ss:$16 sps:$4 sm:$0xff]  }
 0x285   : > { %5038 = vmatprep.subr.bf16.mxu0 %v7788_v48  ;;  %5489 = vmatprep.subr.bf16.mxu1 %v7791_v51  ;;  %v7875_v48 = vld [vmem:[%s8003_s28 + $0x154c] ss:$16 sps:$4 sm:$0xff]   ;;  %v7870_v51 = vld [vmem:[%s8003_s28 + $0x1540] ss:$16 sps:$4 sm:$0xff]  }
 0x288   : > { %5039 = vmatpush1.bf16.msra.mxu0 %v7786_v54  ;;  %5490 = vmatpush1.bf16.msra.mxu1 %v7789_v55  ;;  %v7873_v54 = vld [vmem:[%s8003_s28 + $0x1548] ss:$16 sps:$4 sm:$0xff]   ;;  %v7878_v55 = vld [vmem:[%s8003_s28 + $0x1564] ss:$16 sps:$4 sm:$0xff]  }
 0x289   : > { %5040 = vmatprep.subr.bf16.mxu0 %v7794_v56  ;;  %5491 = vmatprep.subr.bf16.mxu1 %v7797_v39  ;;  %v7881_v56 = vld [vmem:[%s8003_s28 + $0x156c] ss:$16 sps:$4 sm:$0xff]   ;;  %v7876_v39 = vld [vmem:[%s8003_s28 + $0x1560] ss:$16 sps:$4 sm:$0xff]  }
 0x28c   : > { %5041 = vmatpush1.bf16.msra.mxu0 %v7792_v57  ;;  %5492 = vmatpush1.bf16.msra.mxu1 %v7795_v58  ;;  %v7879_v57 = vld [vmem:[%s8003_s28 + $0x1568] ss:$16 sps:$4 sm:$0xff]   ;;  %v7884_v58 = vld [vmem:[%s8003_s28 + $0x1584] ss:$16 sps:$4 sm:$0xff]  }
 0x28d   : > { %5042 = vmatprep.subr.bf16.mxu0 %v7800_v59  ;;  %5493 = vmatprep.subr.bf16.mxu1 %v7803_v49  ;;  %v7887_v59 = vld [vmem:[%s8003_s28 + $0x158c] ss:$16 sps:$4 sm:$0xff]   ;;  %v7882_v49 = vld [vmem:[%s8003_s28 + $0x1580] ss:$16 sps:$4 sm:$0xff]  }
 0x290   : > { %5043 = vmatpush1.bf16.msra.mxu0 %v7798_v61  ;;  %5494 = vmatpush1.bf16.msra.mxu1 %v7801_v14  ;;  %v7890_v61 = vld [vmem:[%s8003_s28 + $0x15a4] ss:$16 sps:$4 sm:$0xff]   ;;  %v7893_v14 = vld [vmem:[%s8003_s28 + $0x15ac] ss:$16 sps:$4 sm:$0xff]  }
 0x291   : > { %5044 = vmatprep.subr.bf16.mxu0 %v7806_v0  ;;  %5495 = vmatprep.subr.bf16.mxu1 %v7809_v1  ;;  %v7888_v0 = vld [vmem:[%s8003_s28 + $0x15a0] ss:$16 sps:$4 sm:$0xff]   ;;  %v7891_v1 = vld [vmem:[%s8003_s28 + $0x15a8] ss:$16 sps:$4 sm:$0xff]  }
 0x294   : > { %5045 = vmatpush1.bf16.msra.mxu0 %v7804_v36  ;;  %5496 = vmatpush1.bf16.msra.mxu1 %v7807_v3  ;;  %v7896_v36 = vld [vmem:[%s8003_s28 + $0x15c4] ss:$16 sps:$4 sm:$0xff]   ;;  %v7899_v3 = vld [vmem:[%s8003_s28 + $0x15cc] ss:$16 sps:$4 sm:$0xff]  }
 0x295   : > { %5055 = vmatprep.subr.bf16.mxu0 %v7812_v4  ;;  %5506 = vmatprep.subr.bf16.mxu1 %v7815_v52  ;;  %v7894_v4 = vld [vmem:[%s8003_s28 + $0x15c0] ss:$16 sps:$4 sm:$0xff]   ;;  %v7897_v52 = vld [vmem:[%s8003_s28 + $0x15c8] ss:$16 sps:$4 sm:$0xff]  }
 0x297   : > { %5047 = vmatmul.mubr.bf16.vlgmr.msra.gmra.mrb[0].mxu0 %v1101_v6  ;;  %5498 = vmatmul.mubr.bf16.vlgmr.msra.gmra.mrb[0].mxu1 %v1101_v6  ;;  %v7905_v6 = vld [vmem:[%s8003_s28 + $0x15ec] ss:$16 sps:$4 sm:$0xff]  }
 0x298   : > { %5056 = vmatpush1.bf16.msra.mxu0 %v7810_v7  ;;  %5507 = vmatpush1.bf16.msra.mxu1 %v7813_v62  ;;  %v7900_v7 = vld [vmem:[%s8003_s28 + $0x15e0] ss:$16 sps:$4 sm:$0xff]   ;;  %v7903_v62 = vld [vmem:[%s8003_s28 + $0x15e8] ss:$16 sps:$4 sm:$0xff]  }
 0x299   : > { %5057 = vmatprep.subr.bf16.mxu0 %v7818_v8  ;;  %5508 = vmatprep.subr.bf16.mxu1 %v7821_v9  ;;  %v1086_v8 = vrot.slane %v8750_v2, %v8053_v50  ;;  %v7949_v9 = vmov 1983009808  }
 0x29a   : > { %5087 = vmatprep.mubr.bf16.mxu0 %v1100_v10  ;;  %5538 = vmatprep.mubr.bf16.mxu1 %v1100_v10  ;;  %v5554_v10 = vunpack.c.l.s4 %v7949_v9  ;;  %v5629_v9 = vld [vmem:[%s9078_s3 + $0x40] sm:$0xff] (!%p6627_p6) }
 0x29c   : > { %5058 = vmatpush1.bf16.msra.mxu0 %v7816_v63  ;;  %5509 = vmatpush1.bf16.msra.mxu1 %v7819_v11  ;;  %v5555_v63 = vunpack.c.0.s8 %v5554_v10  ;;  %v5587_v10 = vsub.s32 (!%p6627_p6), 0, %v8045_v44 }
 0x29d   : > { %5059 = vmatprep.subr.bf16.mxu0 %v7824_v12  ;;  %5510 = vmatprep.subr.bf16.mxu1 %v7827_v13 }
 0x29e   : > { %v8826_v13 = vsub.s32 %v5555_v63, %v8045_v44 }
 0x2a0   : > { %5060 = vmatpush1.bf16.msra.mxu0 %v7822_v15  ;;  %5511 = vmatpush1.bf16.msra.mxu1 %v7825_v17 }
 0x2a1   : > { %5061 = vmatprep.subr.bf16.mxu0 %v7830_v53  ;;  %5512 = vmatprep.subr.bf16.mxu1 %v7833_v18 }
 0x2a4   : > { %5062 = vmatpush1.bf16.msra.mxu0 %v7828_v19  ;;  %5513 = vmatpush1.bf16.msra.mxu1 %v7831_v20 }
 0x2a5   : > { %5063 = vmatprep.subr.bf16.mxu0 %v7836_v21  ;;  %5514 = vmatprep.subr.bf16.mxu1 %v7839_v23 }
 0x2a8   : > { %5064 = vmatpush1.bf16.msra.mxu0 %v7834_v24  ;;  %5515 = vmatpush1.bf16.msra.mxu1 %v7837_v25  ;;  %v247_v24 = vld [vmem:[#allocation2] sm:$0xff] }
 0x2a9   : > { %5065 = vmatprep.subr.bf16.mxu0 %v7842_v27  ;;  %5516 = vmatprep.subr.bf16.mxu1 %v7845_v28  ;;  %v5653_v28 = vld [vmem:[%s9078_s3 + $0x100] sm:$0xff] (!%p6627_p6) }
 0x2ac   : > { %5066 = vmatpush1.bf16.msra.mxu0 %v7840_v29  ;;  %5517 = vmatpush1.bf16.msra.mxu1 %v7843_v30  ;;  %v5654_v29 = vld [vmem:[%s9078_s3 + $0x108] sm:$0xff] (!%p6627_p6)  ;;  %v5655_v30 = vld [vmem:[%s9078_s3 + $0x110] sm:$0xff] (!%p6627_p6) }
 0x2ad   : > { %5067 = vmatprep.subr.bf16.mxu0 %v7848_v31  ;;  %5518 = vmatprep.subr.bf16.mxu1 %v7851_v16  ;;  %v7950_v31 = vmov (!%p6627_p6), 0.0|0.0   ;;  %v6704_v16 = vpack.c.bf16 (!%p6627_p6), %v5654_v29, %v5653_v28 }
 0x2b0   : > { %5068 = vmatpush1.bf16.msra.mxu0 %v7846_v32  ;;  %5519 = vmatpush1.bf16.msra.mxu1 %v7849_v33  ;;  %v5656_v32 = vld [vmem:[%s9078_s3 + $0x118] sm:$0xff] (!%p6627_p6) }
 0x2b1   : > { %5069 = vmatprep.subr.bf16.mxu0 %v7854_v34  ;;  %5520 = vmatprep.subr.bf16.mxu1 %v7857_v26  ;;  %v6707_v33 = vpack.c.bf16 (!%p6627_p6), %v5656_v32, %v5655_v30  ;;  %v5657_v34 = vld [vmem:[%s9078_s3 + $0x120] sm:$0xff] (!%p6627_p6)  ;;  %v5658_v26 = vld [vmem:[%s9078_s3 + $0x128] sm:$0xff] (!%p6627_p6) }
 0x2b2   : > { %v5649_v30 = vld [vmem:[%s9078_s3 + $0xe0] sm:$0xff] (!%p6627_p6) }
 0x2b4   : > { %5070 = vmatpush1.bf16.msra.mxu0 %v7852_v35  ;;  %5521 = vmatpush1.bf16.msra.mxu1 %v7855_v37  ;;  %v5637_v35 = vld [vmem:[%s9078_s3 + $0x80] sm:$0xff] (!%p6627_p6)  ;;  %v5638_v37 = vld [vmem:[%s9078_s3 + $0x88] sm:$0xff] (!%p6627_p6) }
 0x2b5   : > { %5071 = vmatprep.subr.bf16.mxu0 %v7860_v38  ;;  %5522 = vmatprep.subr.bf16.mxu1 %v7863_v40  ;;  %v5621_v38 = vld [vmem:[%s9078_s3] sm:$0xff] (!%p6627_p6)  ;;  %v6671_v40 = vpack.c.bf16 (!%p6627_p6), %v5638_v37, %v5637_v35  ;;  %v5668_v35 = vld [vmem:[%s9078_s3 + $0x178] sm:$0xff] (!%p6627_p6) }
 0x2b8   : > { %5072 = vmatpush1.bf16.msra.mxu0 %v7858_v41  ;;  %5523 = vmatpush1.bf16.msra.mxu1 %v7861_v22  ;;  %v5622_v41 = vld [vmem:[%s9078_s3 + $0x8] sm:$0xff] (!%p6627_p6) }
 0x2b9   : > { %5073 = vmatprep.subr.bf16.mxu0 %v7866_v42  ;;  %5524 = vmatprep.subr.bf16.mxu1 %v7869_v43  ;;  %v6673_v22 = vpack.c.bf16 (!%p6627_p6), %v5622_v41, %v5621_v38  ;;  %v5639_v42 = vld [vmem:[%s9078_s3 + $0x90] sm:$0xff] (!%p6627_p6)  ;;  %v5640_v43 = vld [vmem:[%s9078_s3 + $0x98] sm:$0xff] (!%p6627_p6)  ;;  %v5634_v41 = vld [vmem:[%s9078_s3 + $0x68] sm:$0xff] (!%p6627_p6) }
 0x2bc   : > { %5074 = vmatpush1.bf16.msra.mxu0 %v7864_v45  ;;  %5525 = vmatpush1.bf16.msra.mxu1 %v7867_v46  ;;  %v5623_v45 = vld [vmem:[%s9078_s3 + $0x10] sm:$0xff] (!%p6627_p6)  ;;  %v6710_v46 = vpack.c.bf16 (!%p6627_p6), %v5658_v26, %v5657_v34 }
 0x2bd   : > { %5075 = vmatprep.subr.bf16.mxu0 %v7872_v47  ;;  %5526 = vmatprep.subr.bf16.mxu1 %v7875_v48  ;;  %v5659_v47 = vld [vmem:[%s9078_s3 + $0x130] sm:$0xff] (!%p6627_p6)  ;;  %v6675_v48 = vpack.c.bf16 (!%p6627_p6), %v5640_v43, %v5639_v42 }
 0x2be   : > { %v5667_v26 = vld [vmem:[%s9078_s3 + $0x170] sm:$0xff] (!%p6627_p6) }
 0x2bf   : > { %v5651_v43 = vld [vmem:[%s9078_s3 + $0xf0] sm:$0xff] (!%p6627_p6) }
 0x2c0   : > { %5076 = vmatpush1.bf16.msra.mxu0 %v7870_v51  ;;  %5527 = vmatpush1.bf16.msra.mxu1 %v7873_v54  ;;  %v5624_v51 = vld [vmem:[%s9078_s3 + $0x18] sm:$0xff] (!%p6627_p6) }
 0x2c1   : > { %5077 = vmatprep.subr.bf16.mxu0 %v7878_v55  ;;  %5528 = vmatprep.subr.bf16.mxu1 %v7881_v56  ;;  %v5660_v54 = vld [vmem:[%s9078_s3 + $0x138] sm:$0xff] (!%p6627_p6)  ;;  %v6677_v55 = vpack.c.bf16 (!%p6627_p6), %v5624_v51, %v5623_v45  ;;  %v5641_v56 = vld [vmem:[%s9078_s3 + $0xa0] sm:$0xff] (!%p6627_p6) }
 0x2c2   : > { %v5652_v45 = vld [vmem:[%s9078_s3 + $0xf8] sm:$0xff] (!%p6627_p6)  ;;  %v5669_v51 = vld [vmem:[%s9078_s3 + $0x180] sm:$0xff] (!%p6627_p6) }
 0x2c4   : > { %5078 = vmatpush1.bf16.msra.mxu0 %v7876_v39  ;;  %5529 = vmatpush1.bf16.msra.mxu1 %v7879_v57  ;;  %v5642_v39 = vld [vmem:[%s9078_s3 + $0xa8] sm:$0xff] (!%p6627_p6) }
 0x2c5   : > { %5079 = vmatprep.subr.bf16.mxu0 %v7884_v58  ;;  %5530 = vmatprep.subr.bf16.mxu1 %v7887_v59  ;;  %v6679_v57 = vpack.c.bf16 (!%p6627_p6), %v5642_v39, %v5641_v56  ;;  %v5625_v58 = vld [vmem:[%s9078_s3 + $0x20] sm:$0xff] (!%p6627_p6)  ;;  %v5626_v59 = vld [vmem:[%s9078_s3 + $0x28] sm:$0xff] (!%p6627_p6)  ;;  %v6699_v56 = vpack.c.bf16 (!%p6627_p6), %v5652_v45, %v5651_v43  ;;  %v5635_v39 = vld [vmem:[%s9078_s3 + $0x70] sm:$0xff] (!%p6627_p6) }
 0x2c8   : > { %5080 = vmatpush1.bf16.msra.mxu0 %v7882_v49  ;;  %5531 = vmatpush1.bf16.msra.mxu1 %v7885_v60  ;;  %v5643_v49 = vld [vmem:[%s9078_s3 + $0xb0] sm:$0xff] (!%p6627_p6)  ;;  %v5644_v60 = vld [vmem:[%s9078_s3 + $0xb8] sm:$0xff] (!%p6627_p6) }
 0x2c9   : > { %5081 = vmatprep.subr.bf16.mxu0 %v7890_v61  ;;  %5532 = vmatprep.subr.bf16.mxu1 %v7893_v14  ;;  %v6713_v61 = vpack.c.bf16 (!%p6627_p6), %v5660_v54, %v5659_v47  ;;  %v5661_v14 = vld [vmem:[%s9078_s3 + $0x140] sm:$0xff] (!%p6627_p6)  ;;  %v6725_v47 = vpack.c.bf16 (!%p6627_p6), %v5668_v35, %v5667_v26  ;;  %v5670_v54 = vld [vmem:[%s9078_s3 + $0x188] sm:$0xff] (!%p6627_p6) }
 0x2cc   : > { %5082 = vmatpush1.bf16.msra.mxu0 %v7888_v0  ;;  %5533 = vmatpush1.bf16.msra.mxu1 %v7891_v1  ;;  %v5662_v0 = vld [vmem:[%s9078_s3 + $0x148] sm:$0xff] (!%p6627_p6)  ;;  %v6681_v1 = vpack.c.bf16 (!%p6627_p6), %v5626_v59, %v5625_v58  ;;  %v6728_v59 = vpack.c.bf16 (!%p6627_p6), %v5670_v54, %v5669_v51 }
 0x2cd   : > { %5083 = vmatprep.subr.bf16.mxu0 %v7896_v36  ;;  %5534 = vmatprep.subr.bf16.mxu1 %v7899_v3  ;;  %v6683_v36 = vpack.c.bf16 (!%p6627_p6), %v5644_v60, %v5643_v49  ;;  %v5627_v3 = vld [vmem:[%s9078_s3 + $0x30] sm:$0xff] (!%p6627_p6) }
 0x2ce   : > { %v5671_v60 = vld [vmem:[%s9078_s3 + $0x190] sm:$0xff] (!%p6627_p6) }
 0x2d0   : > { %5084 = vmatpush1.bf16.msra.mxu0 %v7894_v4  ;;  %5535 = vmatpush1.bf16.msra.mxu1 %v7897_v52  ;;  %v5628_v4 = vld [vmem:[%s9078_s3 + $0x38] sm:$0xff] (!%p6627_p6)  ;;  %v5645_v52 = vld [vmem:[%s9078_s3 + $0xc0] sm:$0xff] (!%p6627_p6) }
 0x2d1   : > { %5085 = vmatprep.subr.bf16.mxu0 %v7902_v5  ;;  %5536 = vmatprep.subr.bf16.mxu1 %v7905_v6  ;;  %v5646_v5 = vld [vmem:[%s9078_s3 + $0xc8] sm:$0xff] (!%p6627_p6)  ;;  %v6716_v6 = vpack.c.bf16 (!%p6627_p6), %v5662_v0, %v5661_v14 }
 0x2d2   : > { %v6687_v63 = vpack.c.bf16 (!%p6627_p6), %v5646_v5, %v5645_v52  ;;  %v5673_v52 = vld [vmem:[%s9078_s3 + $0x1a0] sm:$0xff] (!%p6627_p6)  ;;  %v5674_v5 = vld [vmem:[%s9078_s3 + $0x1a8] sm:$0xff] (!%p6627_p6) }
 0x2d4   : > { %5086 = vmatpush1.bf16.msra.mxu0 %v7900_v7  ;;  %5537 = vmatpush1.bf16.msra.mxu1 %v7903_v62  ;;  %v5663_v7 = vld [vmem:[%s9078_s3 + $0x150] sm:$0xff] (!%p6627_p6)  ;;  %v5664_v62 = vld [vmem:[%s9078_s3 + $0x158] sm:$0xff] (!%p6627_p6) }
 0x2d5   : > { %6703 = vmatprep.subr.bf16.mxu1 (!%p6627_p6), %v7950_v31  ;;  %6672 = vmatprep.subr.bf16.mxu0 (!%p6627_p6), %v6671_v40  ;;  %v5633_v40 = vld [vmem:[%s9078_s3 + $0x60] sm:$0xff] (!%p6627_p6) }
 0x2d7   : > { %5088 = vmatmul.mubr.bf16.vlgmr.msra.gmra.mrb[0].mxu0 %v1086_v8  ;;  %5539 = vmatmul.mubr.bf16.vlgmr.msra.gmra.mrb[0].mxu1 %v1086_v8  ;;  %v6685_v8 = vpack.c.bf16 (!%p6627_p6), %v5628_v4, %v5627_v3 }
 0x2d8   : > { %6705 = vmatpush1.bf16.msra.mxu1 (!%p6627_p6), %v6704_v16  ;;  %6674 = vmatpush3.bf16.msra.mxu0 (!%p6627_p6), %v6673_v22  ;;  %v5650_v16 = vld [vmem:[%s9078_s3 + $0xe8] sm:$0xff] (!%p6627_p6) }
 0x2d9   : > { %6706 = vmatprep.subr.bf16.mxu1 (!%p6627_p6), %v7950_v31  ;;  %6676 = vmatprep.subr.bf16.mxu0 (!%p6627_p6), %v6675_v48  ;;  %v6695_v38 = vpack.c.bf16 (!%p6627_p6), %v5650_v16, %v5649_v30 }
 0x2dc   : > { %6708 = vmatpush1.bf16.msra.mxu1 (!%p6627_p6), %v6707_v33  ;;  %6678 = vmatpush3.bf16.msra.mxu0 (!%p6627_p6), %v6677_v55  ;;  %v6697_v55 = vpack.c.bf16 (!%p6627_p6), %v5634_v41, %v5633_v40 }
 0x2dd   : > { %6709 = vmatprep.subr.bf16.mxu1 (!%p6627_p6), %v7950_v31  ;;  %6680 = vmatprep.subr.bf16.mxu0 (!%p6627_p6), %v6679_v57  ;;  %v5636_v57 = vld [vmem:[%s9078_s3 + $0x78] sm:$0xff] (!%p6627_p6) }
 0x2de   : > { %v6701_v14 = vpack.c.bf16 (!%p6627_p6), %v5636_v57, %v5635_v39 }
 0x2e0   : > { %6711 = vmatpush1.bf16.msra.mxu1 (!%p6627_p6), %v6710_v46  ;;  %6682 = vmatpush3.bf16.msra.mxu0 (!%p6627_p6), %v6681_v1 }
 0x2e1   : > { %6712 = vmatprep.subr.bf16.mxu1 (!%p6627_p6), %v7950_v31  ;;  %6684 = vmatprep.subr.bf16.mxu0 (!%p6627_p6), %v6683_v36 }
 0x2e4   : > { %6714 = vmatpush1.bf16.msra.mxu1 (!%p6627_p6), %v6713_v61  ;;  %6686 = vmatpush3.bf16.msra.mxu0 (!%p6627_p6), %v6685_v8  ;;  %v5672_v61 = vld [vmem:[%s9078_s3 + $0x198] sm:$0xff] (!%p6627_p6) }
 0x2e5   : > { %6715 = vmatprep.subr.bf16.mxu1 (!%p6627_p6), %v7950_v31  ;;  %6688 = vmatprep.subr.bf16.mxu0 (!%p6627_p6), %v6687_v63  ;;  %v6731_v36 = vpack.c.bf16 (!%p6627_p6), %v5672_v61, %v5671_v60 }
 0x2e8   : > { %6717 = vmatpush1.bf16.msra.mxu1 (!%p6627_p6), %v6716_v6 }
 0x2e9   : > { %6718 = vmatprep.subr.bf16.mxu1 (!%p6627_p6), %v7950_v31 }
 0x3aa   : > { %v5089_v11 = vpop.f32.mrb[0].mxu0  ;;  %v5540_v12 = vpop.f32.mrb[0].mxu1 }
 0x3ab   : > { %v5091_v15 = vpop.f32.mrb[1].mxu0  ;;  %v5542_v17 = vpop.f32.mrb[1].mxu1 }
 0x3ac   : > { %v5551_v53 = vcombine.low %v5089_v11, %v5091_v15  ;;  %v5552_v50 = vcombine.low %v5540_v12, %v5542_v17  ;;  %v5093_v2 = vpop.f32.mrb[2].mxu0  ;;  %v5544_v18 = vpop.f32.mrb[2].mxu1  ;;  %v5630_v11 = vld [vmem:[%s9078_s3 + $0x48] sm:$0xff] (!%p6627_p6)  ;;  %v5647_v12 = vld [vmem:[%s9078_s3 + $0xd0] sm:$0xff] (!%p6627_p6)  ;;  %v5648_v15 = vld [vmem:[%s9078_s3 + $0xd8] sm:$0xff] (!%p6627_p6)  ;;  %v5591_v17 = vsub.s32 (!%p6627_p6), 1, %v8045_v44 }
 0x3ad   : > { %v5094_v19 = vpop.f32.mrb[3].mxu0  ;;  %v5545_v20 = vpop.f32.mrb[3].mxu1  ;;  %v6719_v2 = vpack.c.bf16 (!%p6627_p6), %v5664_v62, %v5663_v7  ;;  %v5665_v18 = vld [vmem:[%s9078_s3 + $0x160] sm:$0xff] (!%p6627_p6)  ;;  %v6734_v7 = vpack.c.bf16 (!%p6627_p6), %v5674_v5, %v5673_v52  ;;  %v5676_v62 = vld [vmem:[%s9078_s3 + $0x1b8] sm:$0xff] (!%p6627_p6) }
 0x3ae   : > { %v5559_v21 = vrot.slane %v5551_v53, %v8826_v13  ;;  %v5566_v23 = vrot.slane %v5552_v50, %v8826_v13  ;;  %5581 = sbr.rel (%p6627_p6) target bundleno = 1199 (0x4af), region = 48  ;;  %v5595_v53 = vsub.s32 (!%p6627_p6), 2, %v8045_v44  ;;  %v5599_v50 = vsub.s32 (!%p6627_p6), 3, %v8045_v44  ;;  %v5666_v19 = vld [vmem:[%s9078_s3 + $0x168] sm:$0xff] (!%p6627_p6)  ;;  %v5631_v44 = vld [vmem:[%s9078_s3 + $0x50] sm:$0xff] (!%p6627_p6) }
 0x3af   : > { %v6689_v20 = vpack.c.bf16 (!%p6627_p6), %v5630_v11, %v5629_v9  ;;  %6720 = vmatpush1.bf16.msra.mxu1 (!%p6627_p6), %v6719_v2  ;;  %v6722_v32 = vpack.c.bf16 (!%p6627_p6), %v5666_v19, %v5665_v18  ;;  %v5677_v9 = vld [vmem:[%s9078_s3 + $0x1c0] sm:$0xff] (!%p6627_p6)  ;;  %v5679_v11 = vld [vmem:[%s9078_s3 + $0x1d0] sm:$0xff] (!%p6627_p6)  ;;  %v7951_v2 = vmov (!%p6627_p6), 0.0  }
 0x3b0   : > { %v5567_v25 = vcombine.low %v5559_v21, %v5566_v23  ;;  %v6691_v21 = vpack.c.bf16 (!%p6627_p6), %v5648_v15, %v5647_v12  ;;  %v5583_v23 = vld [vmem:[%s9077_s2] sm:$0xf] (!%p6627_p6)  ;;  %6721 = vmatprep.subr.bf16.mxu1 (!%p6627_p6), %v7950_v31  ;;  %v5680_v12 = vld [vmem:[%s9078_s3 + $0x1d8] sm:$0xff] (!%p6627_p6)  ;;  %v5683_v18 = vld [vmem:[%s9078_s3 + $0x1f0] sm:$0xf] (!%p6627_p6) }
 0x3b1   : > { %v5596_v28 = vrot.slane (!%p6627_p6), %v5583_v23, %v5595_v53  ;;  %v5600_v29 = vrot.slane (!%p6627_p6), %v5583_v23, %v5599_v50  ;;  %6690 = vmatpush3.bf16.msra.mxu0 (!%p6627_p6), %v6689_v20  ;;  %v6743_v15 = vpack.c.bf16 (!%p6627_p6), %v5680_v12, %v5679_v11  ;;  %v5682_v53 = vld [vmem:[%s9078_s3 + $0x1e8] sm:$0xff] (!%p6627_p6) }
 0x3b2   : > { %v5569_v27 = vadd.f32 %v5567_v25, %v247_v24  ;;  %v5632_v24 = vld [vmem:[%s9078_s3 + $0x58] sm:$0xff] (!%p6627_p6)  ;;  %v5588_v25 = vrot.slane (!%p6627_p6), %v5583_v23, %v5587_v10  ;;  %6692 = vmatprep.subr.bf16.mxu0 (!%p6627_p6), %v6691_v21  ;;  %v5678_v10 = vld [vmem:[%s9078_s3 + $0x1c8] sm:$0xff] (!%p6627_p6) }
 0x3b3   : > { %v5602_v34 = vcombine.low (!%p6627_p6), %v5596_v28, %v5600_v29  ;;  %v6693_v37 = vpack.c.bf16 (!%p6627_p6), %v5632_v24, %v5631_v44  ;;  %6723 = vmatpush1.bf16.msra.mxu1 (!%p6627_p6), %v6722_v32  ;;  %v6740_v63 = vpack.c.bf16 (!%p6627_p6), %v5678_v10, %v5677_v9 }
 0x3b4   : > { %5577 = vst.msk [vmem:[#allocation2] sm:$0xff] %vm5576_vm13, %v5569_v27  ;;  %v5592_v27 = vrot.slane (!%p6627_p6), %v5583_v23, %v5591_v17  ;;  %6724 = vmatprep.subr.bf16.mxu1 (!%p6627_p6), %v7950_v31  ;;  %v5681_v17 = vld [vmem:[%s9078_s3 + $0x1e0] sm:$0xff] (!%p6627_p6) }
 0x3b5   : > { %v5616_v42 = vrot.slane %v5602_v34, %v8826_v13  ;;  %6694 = vmatpush3.bf16.msra.mxu0 %v6693_v37  ;;  %v6746_v50 = vpack.c.bf16 %v5682_v53, %v5681_v17  ;;  %v6628_v23 = vld [vmem:[%s9079_s4] ss:$0 sm:$0xff] }
 0x3b6   : > { %v5601_v33 = vcombine.low %v5588_v25, %v5592_v27  ;;  %6696 = vmatprep.subr.bf16.mxu0 %v6695_v38 }
 0x3b7   : > { %6726 = vmatpush1.bf16.msra.mxu1 %v6725_v47 }
 0x3b8   : > { %v5609_v22 = vrot.slane %v5601_v33, %v8826_v13  ;;  %6727 = vmatprep.subr.bf16.mxu1 %v7950_v31 }
 0x3b9   : > { %6698 = vmatpush3.bf16.msra.mxu0 %v6697_v55 }
 0x3ba   : > { %v5617_v48 = vcombine.low %v5609_v22, %v5616_v42  ;;  %6700 = vmatprep.subr.bf16.mxu0 %v6699_v56 }
 0x3bb   : > { %v5582_v46 = vld [vmem:[#allocation2] sm:$0xff]  ;;  %6729 = vmatpush1.bf16.msra.mxu1 %v6728_v59 }
 0x3bc   : > { %v5619_v58 = vadd.f32 %v5617_v48, %v5582_v46  ;;  %6730 = vmatprep.subr.bf16.mxu1 %v7950_v31 }
 0x3bd   : > { %6702 = vmatpush3.bf16.msra.mxu0 %v6701_v14 }
 0x3be   : > { %v5620_v49 = vmax.f32 %v5619_v58, 0.0 }
 0x3bf   : > { %6732 = vmatpush1.bf16.msra.mxu1 %v6731_v36 }
 0x3c0   : > { %v5699_v0 = vrot.slane %v5620_v49, %v8826_v13  ;;  %v5692_v1 = vcombine.high %v5620_v49, %v5620_v49  ;;  %6733 = vmatprep.subr.bf16.mxu1 %v7950_v31 }
 0x3c2   : > { %v5707_v3 = vcombine.high %v5699_v0, %v5699_v0  ;;  %v5706_v4 = vrot.slane %v5692_v1, %v8826_v13  ;;  %v5675_v13 = vld [vmem:[%s9078_s3 + $0x1b0] sm:$0xff] }
 0x3c3   : > { %6735 = vmatpush1.bf16.msra.mxu1 %v6734_v7  ;;  %v6737_v8 = vpack.c.bf16 %v5676_v62, %v5675_v13 }
 0x3c4   : > { %5783 = vmatprep.mubr.f32.mxu0 %v5707_v3  ;;  %v5708_v6 = vcombine.high %v5706_v4, %v5706_v4  ;;  %6736 = vmatprep.subr.bf16.mxu1 %v7950_v31 }
 0x3c5   : > { %5784 = vmatmul.mubr.f32.vlgmr.msra.gmra.mrb[0].mxu0 %v5699_v0 }
 0x3c6   : > { %6630 = vmatprep.mubr.msk.f32.mxu1 %vm5712_vm14, %v5708_v6 }
 0x3c7   : > { %6738 = vmatpush1.bf16.msra.mxu1 %v6737_v8 }
 0x3c8   : > { %6739 = vmatprep.subr.bf16.mxu1 %v7950_v31 }
 0x3cb   : > { %6741 = vmatpush1.bf16.msra.mxu1 %v6740_v63 }
 0x3cc   : > { %6742 = vmatprep.subr.bf16.mxu1 %v7950_v31 }
 0x3cf   : > { %6744 = vmatpush1.bf16.msra.mxu1 %v6743_v15 }
 0x3d0   : > { %6745 = vmatprep.subr.bf16.mxu1 %v7950_v31 }
 0x3d3   : > { %6747 = vmatpush1.bf16.msra.mxu1 %v6746_v50 }
 0x3d4   : > { %5849 = vmatprep.subr.mxu1 %v7951_v2 }
 0x3d7   : > { %6629 = vmatpush1.msk.msra.mxu1 %vm5715_vm15, %v5683_v18 }
 0x3d8   : > { %5854 = vmatmul.mubr.f32.vlgmr.msra.gmra.mrb[0].mxu1 %v5706_v4 }
 0x498   : > { %v6668_v19 = vpop.f32.mrb[0].mxu0 }
 0x499   : > { %v6669_v20 = vpop.f32.mrb[1].mxu0 }
 0x49a   : > { %v6670_v21 = vadd.f32 %v6669_v20, %v6668_v19 }
 0x49c   : > { %v5786_v44 = vadd.f32 %v6670_v21, %v6628_v23 }
 0x4ab   : > { %v5855_v24 = vpop.f32.mrb[0].mxu1 }
 0x4ac   : > { %v5856_v31 = vadd.f32 %v5855_v24, %v5786_v44  ;;  %v5857_v25 = vpop.f32.mrb[1].mxu1 }
 0x4ae   : > { %5860 = vst.msk [vmem:[#allocation3] sm:$0x3] %vm5859_vm0, %v5856_v31 }
 0x4af PF: > { %p6832_p7 = scmp.eq.s32.totalorder %s7989_s19, 6  ;;  %s7952_s21 = smov [#allocation3]  }
 0x4b0   : > { %s5868_s22 = sshll.u32 %s7952_s21, 4  ;;  %s5869_s22 = int_to_ptr.vmem [resolvable:$true] %s5868_s22 }
 0x4b1   : > { %s7909_s23 = scalar_lea.vmem %s5869_s22, 32  ;;  %p7916_p11 = scmp.lt.s32.totalorder %s5869_s22, %s5869_s22 }
 0x4b2   : > { %p7910_p8 = scmp.ne.s32.totalorder %s5869_s22, %s7909_s23  ;;  %p7917_p12 = scmp.lt.s32.totalorder %s7909_s23, %s7909_s23 }
 0x4b4   : > { %p7911_p9 = pnand %p7910_p8, %p6832_p7  ;;  %p7918_p13 = por %p7917_p12, %p7916_p11 }
 0x4b6   : > { %p7912_p10 = pneg %p7911_p9 }
 0x4b8   : > { %p7919_p0 = pnand %p7918_p13, %p7912_p10 }
 0x4ba   : > { %7922 = shalt.err (!%p7919_p0)
}
 0x4bb   : > { %s7923_s26 = scalar_lea.hbm %s9080_s5, 32 }
 0x4bc   : > { %p7924_p1 = scmp.ne.s32.totalorder %s9080_s5, %s7923_s26  ;;  %p7929_p4 = scmp.lt.u32.totalorder %s7923_s26, %s9080_s5 }
 0x4be   : > { %p7925_p2 = pnand %p7924_p1, %p6832_p7 }
 0x4c0   : > { %p7926_p3 = pneg %p7925_p2 }
 0x4c2   : > { %p7931_p5 = pnand %p7929_p4, %p7926_p3 }
 0x4c4   : > { %7934 = shalt.err (!%p7931_p5)
}
 0x4c5   : > { %6829 = dma.vmem_to_hbm [thread:$0]  (%p6832_p7), %s5869_s22, 32, %s9080_s5, [#allocation4]  }
 0x4c6   : > { %7940 = dma.done.wait (%p6832_p7), [#allocation4], 32  }
 0x4c7   : > { %7942 = vsyncadd (%p6832_p7), [#allocation4], 4294967264 }
 0x4c8 PF: > { %s16_s18 = sadd.s32 1, %s7945_s18  }
 0x4c9   : > { %p13_p6 = scmp.ge.s32.totalorder %s16_s18, 9  }
 0x4cb   :  { %15 = sbr.rel (!%p13_p6) target bundleno = 1 (0x1), region = 78 }
 0x4d2   :  { %5881 = vsyncpa [#allocation4], 1 }
 0x4d3   :  { %5883 = vsyncpa [#allocation4 + $0x1], 1 }

</bundles_post_ra>
